<compile_context>
chip_gen: v6e
topology: v6e:2x2x1
jax: 0.10.0
libtpu: 0.0.40
codegen_flags: <defaults>
</compile_context>

<pallas_src>
import jax
import jax.numpy as jnp
from jax.experimental import pallas as pl
from jax.experimental.pallas import tpu as pltpu


# ----------------------------------------------------------------------------
# Kernel 1: conv1 (folded dense 5x5, 1 -> 32) + bias + ReLU + 2x2 max-pool
#           + conv2's 1x1 SVD factor (32 -> 16).  One image per grid step.
# ----------------------------------------------------------------------------
def _conv1_block_kernel(x_ref, w_ref, b_ref, wa2_ref, o_ref):
    # x_ref  : [1, 20, 20, 1]  f32   zero-padded input image (pad=2)
    # w_ref  : [25, 32]        f32   folded dense conv1 taps, row t = ky*5+kx
    # b_ref  : [1, 32]         f32   conv1 bias
    # wa2_ref: [32, 16]        bf16  conv2 1x1 SVD factor
    # o_ref  : [1, 128, 16]    bf16  rank map, rows = h2*16 + w (W not yet compacted)
    xv = x_ref[0]                                              # [20, 20, 1]
    acc = jnp.zeros((16, 16, 32), jnp.float32)
    for ky in range(5):
        for kx in range(5):
            t = ky * 5 + kx
            patch = xv[ky:ky + 16, kx:kx + 16, :]              # [16, 16, 1]
            w_row = w_ref[t:t + 1, :].reshape(1, 1, 32)        # [1, 1, 32]
            acc = acc + patch * w_row                          # VPU broadcast-MAC
    acc = jnp.maximum(acc + b_ref[...].reshape(1, 1, 32), 0.0)  # bias + ReLU
    # fused 2x2 max-pool: H pairs via leading-dim split, W pairs via shift + max
    hp = jnp.max(acc.reshape(8, 2, 16, 32), axis=1)            # [8, 16, 32]
    hs = jnp.concatenate([hp[:, 1:, :], hp[:, :1, :]], axis=1)
    wp = jnp.maximum(hp, hs)                                   # valid at even w
    # conv2's rank projection (pointwise) applied before the cheap XLA compaction
    m = wp.reshape(128, 32).astype(jnp.bfloat16)
    r = jnp.dot(m, wa2_ref[...], preferred_element_type=jnp.float32)
    o_ref[...] = r.astype(jnp.bfloat16)[None]


# ----------------------------------------------------------------------------
# Kernel 2: conv2 5x5 factor (16 -> 32) + bias + ReLU + 2x2 max-pool
#           + full FC stack (fc1_wa, fc1_wb+b, fc2_wa, fc2_wb+b, fc3+b).
#           One image per grid step; all weights stay resident in VMEM.
# ----------------------------------------------------------------------------
def _conv2_fc_kernel(x_ref, wt_ref, b_ref, wa3_ref, w1b_ref, b1_ref,
                     w2a_ref, w2b_ref, b2_ref, w3_ref, b3_ref, o_ref):
    # x_ref  : [1, 12, 12, 16] bf16  zero-padded rank-16 map (pad=2)
    # wt_ref : [25, 16, 32]    bf16  conv2 5x5 taps (row t = ky*5+kx)
    # b_ref  : [1, 32]         f32   conv2 bias
    # wa3_ref: [16, 32, 32]    bf16  fc1 first factor, pixel-major [p, c, r]
    # w1b_ref: [32, 128] bf16  b1_ref: [1, 128] f32
    # w2a_ref: [128, 16] bf16
    # w2b_ref: [16, 32]  bf16  b2_ref: [1, 32]  f32
    # w3_ref : [32, 10]  bf16  b3_ref: [1, 10]  f32
    # o_ref  : [1, 1, 10]      f32
    xv = x_ref[0]                                              # [12, 12, 16]
    acc = jnp.zeros((64, 32), jnp.float32)
    for ky in range(5):
        for kx in range(5):
            t = ky * 5 + kx
            patch = xv[ky:ky + 8, kx:kx + 8, :].reshape(64, 16)
            acc = acc + jnp.dot(patch, wt_ref[t],
                                preferred_element_type=jnp.float32)
    acc = jnp.maximum(acc + b_ref[...], 0.0)                   # bias + ReLU
    a = acc.reshape(8, 8, 32)
    hp = jnp.max(a.reshape(4, 2, 8, 32), axis=1)               # [4, 8, 32]
    hs = jnp.concatenate([hp[:, 1:, :], hp[:, :1, :]], axis=1)
    m = jnp.maximum(hp, hs)                                    # valid at even x

    # fc1 first SVD factor == NCHW flatten + [512,32] matmul, with the flatten
    # absorbed into pixel-major weights (no in-kernel transpose needed).
    f = jnp.zeros((1, 32), jnp.float32)
    for yo in range(4):
        for xo in range(4):
            p = yo * 4 + xo
            pix = m[yo, 2 * xo:2 * xo + 1, :].astype(jnp.bfloat16)  # [1, 32]
            f = f + jnp.dot(pix, wa3_ref[p], preferred_element_type=jnp.float32)

    h = jnp.dot(f.astype(jnp.bfloat16), w1b_ref[...],
                preferred_element_type=jnp.float32) + b1_ref[...]
    h = jnp.dot(h.astype(jnp.bfloat16), w2a_ref[...],
                preferred_element_type=jnp.float32)
    h = jnp.dot(h.astype(jnp.bfloat16), w2b_ref[...],
                preferred_element_type=jnp.float32) + b2_ref[...]
    h = jnp.dot(h.astype(jnp.bfloat16), w3_ref[...],
                preferred_element_type=jnp.float32) + b3_ref[...]
    o_ref[...] = h[None]


# ----------------------------------------------------------------------------
# Forward pass (2 pallas_calls total; everything between them is cheap layout glue)
# ----------------------------------------------------------------------------
def forward_pallas(kp, x_nchw):
    N = x_nchw.shape[0]
    x = jnp.transpose(x_nchw, (0, 2, 3, 1)).astype(jnp.float32)    # NHWC [N,16,16,1]
    xp = jnp.pad(x, ((0, 0), (2, 2), (2, 2), (0, 0)))              # [N,20,20,1]

    rank_map = pl.pallas_call(
        _conv1_block_kernel,
        out_shape=jax.ShapeDtypeStruct((N, 128, 16), jnp.bfloat16),
        grid=(N,),
        in_specs=[
            pl.BlockSpec((1, 20, 20, 1), lambda n: (n, 0, 0, 0)),
            pl.BlockSpec((25, 32), lambda n: (0, 0)),
            pl.BlockSpec((1, 32), lambda n: (0, 0)),
            pl.BlockSpec((32, 16), lambda n: (0, 0)),
        ],
        out_specs=pl.BlockSpec((1, 128, 16), lambda n: (n, 0, 0)),
        compiler_params=pltpu.CompilerParams(dimension_semantics=("parallel",)),
    )(xp, kp["conv1_w"], kp["conv1_b"], kp["conv2_wa"])

    # compact the W dimension (pooled values live at even columns) + pad for conv2
    r = rank_map.reshape(N, 8, 16, 16)[:, :, 0::2, :]              # [N,8,8,16]
    rp = jnp.pad(r, ((0, 0), (2, 2), (2, 2), (0, 0)))              # [N,12,12,16]

    out = pl.pallas_call(
        _conv2_fc_kernel,
        out_shape=jax.ShapeDtypeStruct((N, 1, 10), jnp.float32),
        grid=(N,),
        in_specs=[
            pl.BlockSpec((1, 12, 12, 16), lambda n: (n, 0, 0, 0)),
            pl.BlockSpec((25, 16, 32), lambda n: (0, 0, 0)),
            pl.BlockSpec((1, 32), lambda n: (0, 0)),
            pl.BlockSpec((16, 32, 32), lambda n: (0, 0, 0)),
            pl.BlockSpec((32, 128), lambda n: (0, 0)),
            pl.BlockSpec((1, 128), lambda n: (0, 0)),
            pl.BlockSpec((128, 16), lambda n: (0, 0)),
            pl.BlockSpec((16, 32), lambda n: (0, 0)),
            pl.BlockSpec((1, 32), lambda n: (0, 0)),
            pl.BlockSpec((32, 10), lambda n: (0, 0)),
            pl.BlockSpec((1, 10), lambda n: (0, 0)),
        ],
        out_specs=pl.BlockSpec((1, 1, 10), lambda n: (n, 0, 0)),
        compiler_params=pltpu.CompilerParams(dimension_semantics=("parallel",)),
    )(rp, kp["conv2_wt"], kp["conv2_b"], kp["fc1_wa"], kp["fc1_wb"], kp["fc1_b"],
      kp["fc2_wa"], kp["fc2_wb"], kp["fc2_b"], kp["fc3_w"], kp["fc3_b"])

    return out.reshape(N, 10)


# ----------------------------------------------------------------------------
# Parameter construction (deterministic, SVD-factorized) + kernel-ready prep
# ----------------------------------------------------------------------------
def _conv_svd_params(kw, kb, c_in, c_out, k, rank):
    W = jax.random.normal(kw, (c_out, c_in, k, k), jnp.float32) * 0.1
    b = jax.random.normal(kb, (c_out,), jnp.float32) * 0.1
    Wm = jnp.transpose(W, (0, 2, 3, 1)).reshape(c_out * k * k, c_in)
    U, S, Vh = jnp.linalg.svd(Wm, full_matrices=False)
    p = min(rank, S.shape[0])
    US = jnp.zeros((c_out * k * k, rank), jnp.float32).at[:, :p].set(U[:, :p] * S[:p])
    V = jnp.zeros((c_in, rank), jnp.float32).at[:, :p].set(Vh[:p, :].T)
    wa = V                                                      # 1x1 conv: [C_in, rank]
    wb = jnp.transpose(US.reshape(c_out, k, k, rank), (1, 2, 3, 0)).reshape(
        k * k * rank, c_out)                                    # rows (ky,kx,r)
    return wa, wb, b


def _fc_svd_params(kw, kb, in_f, out_f, rank):
    W = jax.random.normal(kw, (out_f, in_f), jnp.float32) * 0.1
    b = jax.random.normal(kb, (out_f,), jnp.float32) * 0.1
    U, S, Vh = jnp.linalg.svd(W, full_matrices=False)
    r = min(rank, S.shape[0])
    wa = Vh[:r, :].T              # [in_f, rank]  (no bias)
    wb = (U[:, :r] * S[:r]).T     # [rank, out_f] (with bias)
    return wa, wb, b


def init_params(key):
    ks = jax.random.split(key, 10)
    p = {}
    p["conv1_wa"], p["conv1_wb"], p["conv1_b"] = _conv_svd_params(ks[0], ks[1], 1, 32, 5, 16)
    p["conv2_wa"], p["conv2_wb"], p["conv2_b"] = _conv_svd_params(ks[2], ks[3], 32, 32, 5, 16)
    p["fc1_wa"], p["fc1_wb"], p["fc1_b"] = _fc_svd_params(ks[4], ks[5], 32 * 4 * 4, 128, 32)
    p["fc2_wa"], p["fc2_wb"], p["fc2_b"] = _fc_svd_params(ks[6], ks[7], 128, 32, 16)
    W3 = jax.random.normal(ks[8], (10, 32), jnp.float32) * 0.1
    b3 = jax.random.normal(ks[9], (10,), jnp.float32) * 0.1
    p["fc3_w"], p["fc3_b"] = W3.T, b3
    return p


def prep_kernel_params(p):
    f32, bf16 = jnp.float32, jnp.bfloat16
    wb3 = p["conv1_wb"].reshape(25, 16, 32)
    # fold conv1's two factors into one dense 5x5 tap table (exact reassociation)
    conv1_w = jnp.einsum("r,tro->to", p["conv1_wa"][0], wb3).astype(f32)   # [25,32]
    # fc1 first factor, re-indexed from NCHW-flat rows to pixel-major [p, c, r]
    wa3 = p["fc1_wa"].reshape(32, 16, 32).transpose(1, 0, 2)
    return dict(
        conv1_w=conv1_w,
        conv1_b=p["conv1_b"].reshape(1, 32).astype(f32),
        conv2_wa=p["conv2_wa"].astype(bf16),                          # [32,16]
        conv2_wt=p["conv2_wb"].reshape(25, 16, 32).astype(bf16),      # [25,16,32]
        conv2_b=p["conv2_b"].reshape(1, 32).astype(f32),
        fc1_wa=wa3.astype(bf16),                                      # [16,32,32]
        fc1_wb=p["fc1_wb"].astype(bf16),                              # [32,128]
        fc1_b=p["fc1_b"].reshape(1, 128).astype(f32),
        fc2_wa=p["fc2_wa"].astype(bf16),                              # [128,16]
        fc2_wb=p["fc2_wb"].astype(bf16),                              # [16,32]
        fc2_b=p["fc2_b"].reshape(1, 32).astype(f32),
        fc3_w=p["fc3_w"].astype(bf16),                                # [32,10]
        fc3_b=p["fc3_b"].reshape(1, 10).astype(f32),
    )


# ----------------------------------------------------------------------------
# Pure-jnp reference (same factored math; op_dtype mirrors the kernels' bf16 casts)
# ----------------------------------------------------------------------------
def im2col_same(x, k=5, pad=2):
    N, H, W, C = x.shape
    xp = jnp.pad(x, ((0, 0), (pad, pad), (pad, pad), (0, 0)))
    patches = [xp[:, ky:ky + H, kx:kx + W, :] for ky in range(k) for kx in range(k)]
    cols = jnp.stack(patches, axis=3)                  # [N,H,W,k*k,C]
    return cols.reshape(N * H * W, k * k * C)


def _pool_ref(x):
    return jnp.max(
        jnp.stack([x[:, 0::2, 0::2, :], x[:, 0::2, 1::2, :],
                   x[:, 1::2, 0::2, :], x[:, 1::2, 1::2, :]], axis=0),
        axis=0,
    )


def forward_ref(params, x_nchw, op_dtype=jnp.bfloat16):
    def mm(x, w, dt):
        return jnp.dot(x.astype(dt), w.astype(dt), preferred_element_type=jnp.float32)

    N = x_nchw.shape[0]
    x = jnp.transpose(x_nchw, (0, 2, 3, 1)).astype(jnp.float32)
    # conv1 (factored): the kernel computes this stage fully in f32 on the VPU
    h = mm(x.reshape(-1, 1), params["conv1_wa"], jnp.float32).reshape(N, 16, 16, 16)
    h = mm(im2col_same(h), params["conv1_wb"], jnp.float32) + params["conv1_b"]
    h = jnp.maximum(h, 0.0).reshape(N, 16, 16, 32)
    h = _pool_ref(h)                                               # [N,8,8,32]
    # conv2 (factored)
    g = mm(h.reshape(-1, 32), params["conv2_wa"], op_dtype).reshape(N, 8, 8, 16)
    g = mm(im2col_same(g), params["conv2_wb"], op_dtype) + params["conv2_b"]
    g = jnp.maximum(g, 0.0).reshape(N, 8, 8, 32)
    g = _pool_ref(g)                                               # [N,4,4,32]
    f = jnp.transpose(g, (0, 3, 1, 2)).reshape(N, -1)              # NCHW flatten
    f = mm(f, params["fc1_wa"], op_dtype)
    f = mm(f, params["fc1_wb"], op_dtype) + params["fc1_b"]
    f = mm(f, params["fc2_wa"], op_dtype)
    f = mm(f, params["fc2_wb"], op_dtype) + params["fc2_b"]
    f = mm(f, params["fc3_w"], op_dtype) + params["fc3_b"]
    return f


if __name__ == "__main__":
    key = jax.random.PRNGKey(0)
    k_params, k_x = jax.random.split(key)
    params = init_params(k_params)
    x = jax.random.normal(k_x, (2, 1, 16, 16), jnp.float32)        # NCHW input

    kparams = prep_kernel_params(params)
    fwd = jax.jit(forward_pallas)
    out = jax.block_until_ready(fwd(kparams, x))

    ref_bf16 = forward_ref(params, x, op_dtype=jnp.bfloat16)       # same quantization
    ref_f32 = forward_ref(params, x, op_dtype=jnp.float32)         # float-mode module

    assert out.shape == (2, 10), out.shape
    assert bool(jnp.all(jnp.isfinite(out)))
    assert bool(jnp.allclose(out, ref_bf16, rtol=1e-2, atol=1e-2)), (out, ref_bf16)
    assert bool(jnp.max(jnp.abs(out - ref_f32)) < 0.25), (out, ref_f32)
    print("KERNEL_OK")
</pallas_src>

<mosaic_0001>
module attributes {stable_mosaic.version = 11 : i64} {
  func.func @_conv1_block_kernel(%arg0: i32, %arg1: memref<1x20x20x1xf32, #tpu.memory_space<vmem>>, %arg2: memref<25x32xf32, #tpu.memory_space<vmem>>, %arg3: memref<1x32xf32, #tpu.memory_space<vmem>>, %arg4: memref<32x16xbf16, #tpu.memory_space<vmem>>, %arg5: memref<1x128x16xbf16, #tpu.memory_space<vmem>>) attributes {dimension_semantics = [#tpu.dimension_semantics<parallel>], iteration_bounds = array<i64: 2>, scalar_prefetch = 0 : i64, scratch_operands = 0 : i64, tpu.core_type = #tpu.core_type<tc>, window_params = [{transform_indices = @transform_0, window_bounds = array<i64: 1, 20, 20, 1>}, {pipeline_mode = #tpu.pipeline_mode<synchronous>, transform_indices = @transform_1, window_bounds = array<i64: 25, 32>}, {pipeline_mode = #tpu.pipeline_mode<synchronous>, transform_indices = @transform_2, window_bounds = array<i64: 1, 32>}, {pipeline_mode = #tpu.pipeline_mode<synchronous>, transform_indices = @transform_3, window_bounds = array<i64: 32, 16>}, {transform_indices = @transform_4, window_bounds = array<i64: 1, 128, 16>}]} {
    %c0 = arith.constant 0 : index
    %c0_0 = arith.constant 0 : index
    %c0_1 = arith.constant 0 : index
    %c0_2 = arith.constant 0 : index
    %0 = vector.load %arg1[%c0, %c0_0, %c0_1, %c0_2] : memref<1x20x20x1xf32, #tpu.memory_space<vmem>>, vector<1x20x20x1xf32>
    %1 = vector.shape_cast %0 : vector<1x20x20x1xf32> to vector<20x20x1xf32>
    %cst = arith.constant 0.000000e+00 : f32
    %2 = vector.broadcast %cst : f32 to vector<16x16x32xf32>
    %3 = vector.extract_strided_slice %1 {offsets = [0, 0, 0], sizes = [16, 16, 1], strides = [1, 1, 1]} : vector<20x20x1xf32> to vector<16x16x1xf32>
    %c0_3 = arith.constant 0 : index
    %c0_4 = arith.constant 0 : index
    %4 = vector.load %arg2[%c0_3, %c0_4] : memref<25x32xf32, #tpu.memory_space<vmem>>, vector<1x32xf32>
    %5 = vector.shape_cast %4 : vector<1x32xf32> to vector<1x1x32xf32>
    %6 = vector.broadcast %3 : vector<16x16x1xf32> to vector<16x16x32xf32>
    %7 = vector.broadcast %5 : vector<1x1x32xf32> to vector<16x16x32xf32>
    %8 = arith.mulf %6, %7 : vector<16x16x32xf32>
    %9 = arith.addf %2, %8 : vector<16x16x32xf32>
    %10 = vector.extract_strided_slice %1 {offsets = [0, 1, 0], sizes = [16, 16, 1], strides = [1, 1, 1]} : vector<20x20x1xf32> to vector<16x16x1xf32>
    %c1 = arith.constant 1 : index
    %c0_5 = arith.constant 0 : index
    %11 = vector.load %arg2[%c1, %c0_5] : memref<25x32xf32, #tpu.memory_space<vmem>>, vector<1x32xf32>
    %12 = vector.shape_cast %11 : vector<1x32xf32> to vector<1x1x32xf32>
    %13 = vector.broadcast %10 : vector<16x16x1xf32> to vector<16x16x32xf32>
    %14 = vector.broadcast %12 : vector<1x1x32xf32> to vector<16x16x32xf32>
    %15 = arith.mulf %13, %14 : vector<16x16x32xf32>
    %16 = arith.addf %9, %15 : vector<16x16x32xf32>
    %17 = vector.extract_strided_slice %1 {offsets = [0, 2, 0], sizes = [16, 16, 1], strides = [1, 1, 1]} : vector<20x20x1xf32> to vector<16x16x1xf32>
    %c2 = arith.constant 2 : index
    %c0_6 = arith.constant 0 : index
    %18 = vector.load %arg2[%c2, %c0_6] : memref<25x32xf32, #tpu.memory_space<vmem>>, vector<1x32xf32>
    %19 = vector.shape_cast %18 : vector<1x32xf32> to vector<1x1x32xf32>
    %20 = vector.broadcast %17 : vector<16x16x1xf32> to vector<16x16x32xf32>
    %21 = vector.broadcast %19 : vector<1x1x32xf32> to vector<16x16x32xf32>
    %22 = arith.mulf %20, %21 : vector<16x16x32xf32>
    %23 = arith.addf %16, %22 : vector<16x16x32xf32>
    %24 = vector.extract_strided_slice %1 {offsets = [0, 3, 0], sizes = [16, 16, 1], strides = [1, 1, 1]} : vector<20x20x1xf32> to vector<16x16x1xf32>
    %c3 = arith.constant 3 : index
    %c0_7 = arith.constant 0 : index
    %25 = vector.load %arg2[%c3, %c0_7] : memref<25x32xf32, #tpu.memory_space<vmem>>, vector<1x32xf32>
    %26 = vector.shape_cast %25 : vector<1x32xf32> to vector<1x1x32xf32>
    %27 = vector.broadcast %24 : vector<16x16x1xf32> to vector<16x16x32xf32>
    %28 = vector.broadcast %26 : vector<1x1x32xf32> to vector<16x16x32xf32>
    %29 = arith.mulf %27, %28 : vector<16x16x32xf32>
    %30 = arith.addf %23, %29 : vector<16x16x32xf32>
    %31 = vector.extract_strided_slice %1 {offsets = [0, 4, 0], sizes = [16, 16, 1], strides = [1, 1, 1]} : vector<20x20x1xf32> to vector<16x16x1xf32>
    %c4 = arith.constant 4 : index
    %c0_8 = arith.constant 0 : index
    %32 = vector.load %arg2[%c4, %c0_8] : memref<25x32xf32, #tpu.memory_space<vmem>>, vector<1x32xf32>
    %33 = vector.shape_cast %32 : vector<1x32xf32> to vector<1x1x32xf32>
    %34 = vector.broadcast %31 : vector<16x16x1xf32> to vector<16x16x32xf32>
    %35 = vector.broadcast %33 : vector<1x1x32xf32> to vector<16x16x32xf32>
    %36 = arith.mulf %34, %35 : vector<16x16x32xf32>
    %37 = arith.addf %30, %36 : vector<16x16x32xf32>
    %38 = vector.extract_strided_slice %1 {offsets = [1, 0, 0], sizes = [16, 16, 1], strides = [1, 1, 1]} : vector<20x20x1xf32> to vector<16x16x1xf32>
    %c5 = arith.constant 5 : index
    %c0_9 = arith.constant 0 : index
    %39 = vector.load %arg2[%c5, %c0_9] : memref<25x32xf32, #tpu.memory_space<vmem>>, vector<1x32xf32>
    %40 = vector.shape_cast %39 : vector<1x32xf32> to vector<1x1x32xf32>
    %41 = vector.broadcast %38 : vector<16x16x1xf32> to vector<16x16x32xf32>
    %42 = vector.broadcast %40 : vector<1x1x32xf32> to vector<16x16x32xf32>
    %43 = arith.mulf %41, %42 : vector<16x16x32xf32>
    %44 = arith.addf %37, %43 : vector<16x16x32xf32>
    %45 = vector.extract_strided_slice %1 {offsets = [1, 1, 0], sizes = [16, 16, 1], strides = [1, 1, 1]} : vector<20x20x1xf32> to vector<16x16x1xf32>
    %c6 = arith.constant 6 : index
    %c0_10 = arith.constant 0 : index
    %46 = vector.load %arg2[%c6, %c0_10] : memref<25x32xf32, #tpu.memory_space<vmem>>, vector<1x32xf32>
    %47 = vector.shape_cast %46 : vector<1x32xf32> to vector<1x1x32xf32>
    %48 = vector.broadcast %45 : vector<16x16x1xf32> to vector<16x16x32xf32>
    %49 = vector.broadcast %47 : vector<1x1x32xf32> to vector<16x16x32xf32>
    %50 = arith.mulf %48, %49 : vector<16x16x32xf32>
    %51 = arith.addf %44, %50 : vector<16x16x32xf32>
    %52 = vector.extract_strided_slice %1 {offsets = [1, 2, 0], sizes = [16, 16, 1], strides = [1, 1, 1]} : vector<20x20x1xf32> to vector<16x16x1xf32>
    %c7 = arith.constant 7 : index
    %c0_11 = arith.constant 0 : index
    %53 = vector.load %arg2[%c7, %c0_11] : memref<25x32xf32, #tpu.memory_space<vmem>>, vector<1x32xf32>
    %54 = vector.shape_cast %53 : vector<1x32xf32> to vector<1x1x32xf32>
    %55 = vector.broadcast %52 : vector<16x16x1xf32> to vector<16x16x32xf32>
    %56 = vector.broadcast %54 : vector<1x1x32xf32> to vector<16x16x32xf32>
    %57 = arith.mulf %55, %56 : vector<16x16x32xf32>
    %58 = arith.addf %51, %57 : vector<16x16x32xf32>
    %59 = vector.extract_strided_slice %1 {offsets = [1, 3, 0], sizes = [16, 16, 1], strides = [1, 1, 1]} : vector<20x20x1xf32> to vector<16x16x1xf32>
    %c8 = arith.constant 8 : index
    %c0_12 = arith.constant 0 : index
    %60 = vector.load %arg2[%c8, %c0_12] : memref<25x32xf32, #tpu.memory_space<vmem>>, vector<1x32xf32>
    %61 = vector.shape_cast %60 : vector<1x32xf32> to vector<1x1x32xf32>
    %62 = vector.broadcast %59 : vector<16x16x1xf32> to vector<16x16x32xf32>
    %63 = vector.broadcast %61 : vector<1x1x32xf32> to vector<16x16x32xf32>
    %64 = arith.mulf %62, %63 : vector<16x16x32xf32>
    %65 = arith.addf %58, %64 : vector<16x16x32xf32>
    %66 = vector.extract_strided_slice %1 {offsets = [1, 4, 0], sizes = [16, 16, 1], strides = [1, 1, 1]} : vector<20x20x1xf32> to vector<16x16x1xf32>
    %c9 = arith.constant 9 : index
    %c0_13 = arith.constant 0 : index
    %67 = vector.load %arg2[%c9, %c0_13] : memref<25x32xf32, #tpu.memory_space<vmem>>, vector<1x32xf32>
    %68 = vector.shape_cast %67 : vector<1x32xf32> to vector<1x1x32xf32>
    %69 = vector.broadcast %66 : vector<16x16x1xf32> to vector<16x16x32xf32>
    %70 = vector.broadcast %68 : vector<1x1x32xf32> to vector<16x16x32xf32>
    %71 = arith.mulf %69, %70 : vector<16x16x32xf32>
    %72 = arith.addf %65, %71 : vector<16x16x32xf32>
    %73 = vector.extract_strided_slice %1 {offsets = [2, 0, 0], sizes = [16, 16, 1], strides = [1, 1, 1]} : vector<20x20x1xf32> to vector<16x16x1xf32>
    %c10 = arith.constant 10 : index
    %c0_14 = arith.constant 0 : index
    %74 = vector.load %arg2[%c10, %c0_14] : memref<25x32xf32, #tpu.memory_space<vmem>>, vector<1x32xf32>
    %75 = vector.shape_cast %74 : vector<1x32xf32> to vector<1x1x32xf32>
    %76 = vector.broadcast %73 : vector<16x16x1xf32> to vector<16x16x32xf32>
    %77 = vector.broadcast %75 : vector<1x1x32xf32> to vector<16x16x32xf32>
    %78 = arith.mulf %76, %77 : vector<16x16x32xf32>
    %79 = arith.addf %72, %78 : vector<16x16x32xf32>
    %80 = vector.extract_strided_slice %1 {offsets = [2, 1, 0], sizes = [16, 16, 1], strides = [1, 1, 1]} : vector<20x20x1xf32> to vector<16x16x1xf32>
    %c11 = arith.constant 11 : index
    %c0_15 = arith.constant 0 : index
    %81 = vector.load %arg2[%c11, %c0_15] : memref<25x32xf32, #tpu.memory_space<vmem>>, vector<1x32xf32>
    %82 = vector.shape_cast %81 : vector<1x32xf32> to vector<1x1x32xf32>
    %83 = vector.broadcast %80 : vector<16x16x1xf32> to vector<16x16x32xf32>
    %84 = vector.broadcast %82 : vector<1x1x32xf32> to vector<16x16x32xf32>
    %85 = arith.mulf %83, %84 : vector<16x16x32xf32>
    %86 = arith.addf %79, %85 : vector<16x16x32xf32>
    %87 = vector.extract_strided_slice %1 {offsets = [2, 2, 0], sizes = [16, 16, 1], strides = [1, 1, 1]} : vector<20x20x1xf32> to vector<16x16x1xf32>
    %c12 = arith.constant 12 : index
    %c0_16 = arith.constant 0 : index
    %88 = vector.load %arg2[%c12, %c0_16] : memref<25x32xf32, #tpu.memory_space<vmem>>, vector<1x32xf32>
    %89 = vector.shape_cast %88 : vector<1x32xf32> to vector<1x1x32xf32>
    %90 = vector.broadcast %87 : vector<16x16x1xf32> to vector<16x16x32xf32>
    %91 = vector.broadcast %89 : vector<1x1x32xf32> to vector<16x16x32xf32>
    %92 = arith.mulf %90, %91 : vector<16x16x32xf32>
    %93 = arith.addf %86, %92 : vector<16x16x32xf32>
    %94 = vector.extract_strided_slice %1 {offsets = [2, 3, 0], sizes = [16, 16, 1], strides = [1, 1, 1]} : vector<20x20x1xf32> to vector<16x16x1xf32>
    %c13 = arith.constant 13 : index
    %c0_17 = arith.constant 0 : index
    %95 = vector.load %arg2[%c13, %c0_17] : memref<25x32xf32, #tpu.memory_space<vmem>>, vector<1x32xf32>
    %96 = vector.shape_cast %95 : vector<1x32xf32> to vector<1x1x32xf32>
    %97 = vector.broadcast %94 : vector<16x16x1xf32> to vector<16x16x32xf32>
    %98 = vector.broadcast %96 : vector<1x1x32xf32> to vector<16x16x32xf32>
    %99 = arith.mulf %97, %98 : vector<16x16x32xf32>
    %100 = arith.addf %93, %99 : vector<16x16x32xf32>
    %101 = vector.extract_strided_slice %1 {offsets = [2, 4, 0], sizes = [16, 16, 1], strides = [1, 1, 1]} : vector<20x20x1xf32> to vector<16x16x1xf32>
    %c14 = arith.constant 14 : index
    %c0_18 = arith.constant 0 : index
    %102 = vector.load %arg2[%c14, %c0_18] : memref<25x32xf32, #tpu.memory_space<vmem>>, vector<1x32xf32>
    %103 = vector.shape_cast %102 : vector<1x32xf32> to vector<1x1x32xf32>
    %104 = vector.broadcast %101 : vector<16x16x1xf32> to vector<16x16x32xf32>
    %105 = vector.broadcast %103 : vector<1x1x32xf32> to vector<16x16x32xf32>
    %106 = arith.mulf %104, %105 : vector<16x16x32xf32>
    %107 = arith.addf %100, %106 : vector<16x16x32xf32>
    %108 = vector.extract_strided_slice %1 {offsets = [3, 0, 0], sizes = [16, 16, 1], strides = [1, 1, 1]} : vector<20x20x1xf32> to vector<16x16x1xf32>
    %c15 = arith.constant 15 : index
    %c0_19 = arith.constant 0 : index
    %109 = vector.load %arg2[%c15, %c0_19] : memref<25x32xf32, #tpu.memory_space<vmem>>, vector<1x32xf32>
    %110 = vector.shape_cast %109 : vector<1x32xf32> to vector<1x1x32xf32>
    %111 = vector.broadcast %108 : vector<16x16x1xf32> to vector<16x16x32xf32>
    %112 = vector.broadcast %110 : vector<1x1x32xf32> to vector<16x16x32xf32>
    %113 = arith.mulf %111, %112 : vector<16x16x32xf32>
    %114 = arith.addf %107, %113 : vector<16x16x32xf32>
    %115 = vector.extract_strided_slice %1 {offsets = [3, 1, 0], sizes = [16, 16, 1], strides = [1, 1, 1]} : vector<20x20x1xf32> to vector<16x16x1xf32>
    %c16 = arith.constant 16 : index
    %c0_20 = arith.constant 0 : index
    %116 = vector.load %arg2[%c16, %c0_20] : memref<25x32xf32, #tpu.memory_space<vmem>>, vector<1x32xf32>
    %117 = vector.shape_cast %116 : vector<1x32xf32> to vector<1x1x32xf32>
    %118 = vector.broadcast %115 : vector<16x16x1xf32> to vector<16x16x32xf32>
    %119 = vector.broadcast %117 : vector<1x1x32xf32> to vector<16x16x32xf32>
    %120 = arith.mulf %118, %119 : vector<16x16x32xf32>
    %121 = arith.addf %114, %120 : vector<16x16x32xf32>
    %122 = vector.extract_strided_slice %1 {offsets = [3, 2, 0], sizes = [16, 16, 1], strides = [1, 1, 1]} : vector<20x20x1xf32> to vector<16x16x1xf32>
    %c17 = arith.constant 17 : index
    %c0_21 = arith.constant 0 : index
    %123 = vector.load %arg2[%c17, %c0_21] : memref<25x32xf32, #tpu.memory_space<vmem>>, vector<1x32xf32>
    %124 = vector.shape_cast %123 : vector<1x32xf32> to vector<1x1x32xf32>
    %125 = vector.broadcast %122 : vector<16x16x1xf32> to vector<16x16x32xf32>
    %126 = vector.broadcast %124 : vector<1x1x32xf32> to vector<16x16x32xf32>
    %127 = arith.mulf %125, %126 : vector<16x16x32xf32>
    %128 = arith.addf %121, %127 : vector<16x16x32xf32>
    %129 = vector.extract_strided_slice %1 {offsets = [3, 3, 0], sizes = [16, 16, 1], strides = [1, 1, 1]} : vector<20x20x1xf32> to vector<16x16x1xf32>
    %c18 = arith.constant 18 : index
    %c0_22 = arith.constant 0 : index
    %130 = vector.load %arg2[%c18, %c0_22] : memref<25x32xf32, #tpu.memory_space<vmem>>, vector<1x32xf32>
    %131 = vector.shape_cast %130 : vector<1x32xf32> to vector<1x1x32xf32>
    %132 = vector.broadcast %129 : vector<16x16x1xf32> to vector<16x16x32xf32>
    %133 = vector.broadcast %131 : vector<1x1x32xf32> to vector<16x16x32xf32>
    %134 = arith.mulf %132, %133 : vector<16x16x32xf32>
    %135 = arith.addf %128, %134 : vector<16x16x32xf32>
    %136 = vector.extract_strided_slice %1 {offsets = [3, 4, 0], sizes = [16, 16, 1], strides = [1, 1, 1]} : vector<20x20x1xf32> to vector<16x16x1xf32>
    %c19 = arith.constant 19 : index
    %c0_23 = arith.constant 0 : index
    %137 = vector.load %arg2[%c19, %c0_23] : memref<25x32xf32, #tpu.memory_space<vmem>>, vector<1x32xf32>
    %138 = vector.shape_cast %137 : vector<1x32xf32> to vector<1x1x32xf32>
    %139 = vector.broadcast %136 : vector<16x16x1xf32> to vector<16x16x32xf32>
    %140 = vector.broadcast %138 : vector<1x1x32xf32> to vector<16x16x32xf32>
    %141 = arith.mulf %139, %140 : vector<16x16x32xf32>
    %142 = arith.addf %135, %141 : vector<16x16x32xf32>
    %143 = vector.extract_strided_slice %1 {offsets = [4, 0, 0], sizes = [16, 16, 1], strides = [1, 1, 1]} : vector<20x20x1xf32> to vector<16x16x1xf32>
    %c20 = arith.constant 20 : index
    %c0_24 = arith.constant 0 : index
    %144 = vector.load %arg2[%c20, %c0_24] : memref<25x32xf32, #tpu.memory_space<vmem>>, vector<1x32xf32>
    %145 = vector.shape_cast %144 : vector<1x32xf32> to vector<1x1x32xf32>
    %146 = vector.broadcast %143 : vector<16x16x1xf32> to vector<16x16x32xf32>
    %147 = vector.broadcast %145 : vector<1x1x32xf32> to vector<16x16x32xf32>
    %148 = arith.mulf %146, %147 : vector<16x16x32xf32>
    %149 = arith.addf %142, %148 : vector<16x16x32xf32>
    %150 = vector.extract_strided_slice %1 {offsets = [4, 1, 0], sizes = [16, 16, 1], strides = [1, 1, 1]} : vector<20x20x1xf32> to vector<16x16x1xf32>
    %c21 = arith.constant 21 : index
    %c0_25 = arith.constant 0 : index
    %151 = vector.load %arg2[%c21, %c0_25] : memref<25x32xf32, #tpu.memory_space<vmem>>, vector<1x32xf32>
    %152 = vector.shape_cast %151 : vector<1x32xf32> to vector<1x1x32xf32>
    %153 = vector.broadcast %150 : vector<16x16x1xf32> to vector<16x16x32xf32>
    %154 = vector.broadcast %152 : vector<1x1x32xf32> to vector<16x16x32xf32>
    %155 = arith.mulf %153, %154 : vector<16x16x32xf32>
    %156 = arith.addf %149, %155 : vector<16x16x32xf32>
    %157 = vector.extract_strided_slice %1 {offsets = [4, 2, 0], sizes = [16, 16, 1], strides = [1, 1, 1]} : vector<20x20x1xf32> to vector<16x16x1xf32>
    %c22 = arith.constant 22 : index
    %c0_26 = arith.constant 0 : index
    %158 = vector.load %arg2[%c22, %c0_26] : memref<25x32xf32, #tpu.memory_space<vmem>>, vector<1x32xf32>
    %159 = vector.shape_cast %158 : vector<1x32xf32> to vector<1x1x32xf32>
    %160 = vector.broadcast %157 : vector<16x16x1xf32> to vector<16x16x32xf32>
    %161 = vector.broadcast %159 : vector<1x1x32xf32> to vector<16x16x32xf32>
    %162 = arith.mulf %160, %161 : vector<16x16x32xf32>
    %163 = arith.addf %156, %162 : vector<16x16x32xf32>
    %164 = vector.extract_strided_slice %1 {offsets = [4, 3, 0], sizes = [16, 16, 1], strides = [1, 1, 1]} : vector<20x20x1xf32> to vector<16x16x1xf32>
    %c23 = arith.constant 23 : index
    %c0_27 = arith.constant 0 : index
    %165 = vector.load %arg2[%c23, %c0_27] : memref<25x32xf32, #tpu.memory_space<vmem>>, vector<1x32xf32>
    %166 = vector.shape_cast %165 : vector<1x32xf32> to vector<1x1x32xf32>
    %167 = vector.broadcast %164 : vector<16x16x1xf32> to vector<16x16x32xf32>
    %168 = vector.broadcast %166 : vector<1x1x32xf32> to vector<16x16x32xf32>
    %169 = arith.mulf %167, %168 : vector<16x16x32xf32>
    %170 = arith.addf %163, %169 : vector<16x16x32xf32>
    %171 = vector.extract_strided_slice %1 {offsets = [4, 4, 0], sizes = [16, 16, 1], strides = [1, 1, 1]} : vector<20x20x1xf32> to vector<16x16x1xf32>
    %c24 = arith.constant 24 : index
    %c0_28 = arith.constant 0 : index
    %172 = vector.load %arg2[%c24, %c0_28] : memref<25x32xf32, #tpu.memory_space<vmem>>, vector<1x32xf32>
    %173 = vector.shape_cast %172 : vector<1x32xf32> to vector<1x1x32xf32>
    %174 = vector.broadcast %171 : vector<16x16x1xf32> to vector<16x16x32xf32>
    %175 = vector.broadcast %173 : vector<1x1x32xf32> to vector<16x16x32xf32>
    %176 = arith.mulf %174, %175 : vector<16x16x32xf32>
    %177 = arith.addf %170, %176 : vector<16x16x32xf32>
    %c0_29 = arith.constant 0 : index
    %c0_30 = arith.constant 0 : index
    %178 = vector.load %arg3[%c0_29, %c0_30] : memref<1x32xf32, #tpu.memory_space<vmem>>, vector<1x32xf32>
    %179 = vector.shape_cast %178 : vector<1x32xf32> to vector<1x1x32xf32>
    %180 = vector.broadcast %179 : vector<1x1x32xf32> to vector<16x16x32xf32>
    %181 = arith.addf %177, %180 : vector<16x16x32xf32>
    %cst_31 = arith.constant 0.000000e+00 : f32
    %182 = vector.broadcast %cst_31 : f32 to vector<16x16x32xf32>
    %183 = arith.maximumf %181, %182 : vector<16x16x32xf32>
    %184 = vector.shape_cast %183 : vector<16x16x32xf32> to vector<8x2x16x32xf32>
    %cst_32 = arith.constant dense<0xFF800000> : vector<8x16x32xf32>
    %185 = vector.multi_reduction <maximumf>, %184, %cst_32 [1] : vector<8x2x16x32xf32> to vector<8x16x32xf32>
    %186 = vector.extract_strided_slice %185 {offsets = [0, 1, 0], sizes = [8, 15, 32], strides = [1, 1, 1]} : vector<8x16x32xf32> to vector<8x15x32xf32>
    %187 = vector.extract_strided_slice %185 {offsets = [0, 0, 0], sizes = [8, 1, 32], strides = [1, 1, 1]} : vector<8x16x32xf32> to vector<8x1x32xf32>
    %188 = tpu.concatenate %186, %187 in 1 : vector<8x15x32xf32>, vector<8x1x32xf32> -> vector<8x16x32xf32>
    %189 = arith.maximumf %185, %188 : vector<8x16x32xf32>
    %190 = vector.shape_cast %189 : vector<8x16x32xf32> to vector<128x32xf32>
    %191 = arith.truncf %190 : vector<128x32xf32> to vector<128x32xbf16>
    %c0_33 = arith.constant 0 : index
    %c0_34 = arith.constant 0 : index
    %192 = vector.load %arg4[%c0_33, %c0_34] : memref<32x16xbf16, #tpu.memory_space<vmem>>, vector<32x16xbf16>
    %cst_35 = arith.constant dense<0.000000e+00> : vector<128x16xf32>
    %193 = tpu.matmul %191, %192, %cst_35 {dimension_numbers = #tpu.dot_dimension_numbers<[1], [0], [0], [1], [0, 0, 1, 1], [], []>} : vector<128x32xbf16>, vector<32x16xbf16>, vector<128x16xf32> -> vector<128x16xf32>
    %194 = arith.truncf %193 : vector<128x16xf32> to vector<128x16xbf16>
    %195 = vector.shape_cast %194 : vector<128x16xbf16> to vector<1x128x16xbf16>
    %c0_36 = arith.constant 0 : index
    %c0_37 = arith.constant 0 : index
    %c0_38 = arith.constant 0 : index
    %196 = vector.load %arg5[%c0_36, %c0_37, %c0_38] : memref<1x128x16xbf16, #tpu.memory_space<vmem>>, vector<1x128x16xbf16>
    tpu.vector_store %arg5[%c0_36, %c0_37, %c0_38], %195 {strides = array<i32>} : memref<1x128x16xbf16, #tpu.memory_space<vmem>>, vector<1x128x16xbf16>,
    return
  }
  func.func @transform_0(%arg0: i32) -> (i32, i32, i32, i32) {
    %c0_i32 = arith.constant 0 : i32
    %c0_i32_0 = arith.constant 0 : i32
    %c0_i32_1 = arith.constant 0 : i32
    %c0_i32_2 = arith.constant 0 : i32
    return %arg0, %c0_i32, %c0_i32_0, %c0_i32_1 : i32, i32, i32, i32
  }
  func.func @transform_1(%arg0: i32) -> (i32, i32) {
    %c0_i32 = arith.constant 0 : i32
    %c0_i32_0 = arith.constant 0 : i32
    %c0_i32_1 = arith.constant 0 : i32
    return %c0_i32, %c0_i32_0 : i32, i32
  }
  func.func @transform_2(%arg0: i32) -> (i32, i32) {
    %c0_i32 = arith.constant 0 : i32
    %c0_i32_0 = arith.constant 0 : i32
    %c0_i32_1 = arith.constant 0 : i32
    return %c0_i32, %c0_i32_0 : i32, i32
  }
  func.func @transform_3(%arg0: i32) -> (i32, i32) {
    %c0_i32 = arith.constant 0 : i32
    %c0_i32_0 = arith.constant 0 : i32
    %c0_i32_1 = arith.constant 0 : i32
    return %c0_i32, %c0_i32_0 : i32, i32
  }
  func.func @transform_4(%arg0: i32) -> (i32, i32, i32) {
    %c0_i32 = arith.constant 0 : i32
    %c0_i32_0 = arith.constant 0 : i32
    %c0_i32_1 = arith.constant 0 : i32
    return %arg0, %c0_i32, %c0_i32_0 : i32, i32, i32
  }
}

module attributes {stable_mosaic.version = 11 : i64} {
  func.func @_conv2_fc_kernel(%arg0: i32, %arg1: memref<1x12x12x16xbf16, #tpu.memory_space<vmem>>, %arg2: memref<25x16x32xbf16, #tpu.memory_space<vmem>>, %arg3: memref<1x32xf32, #tpu.memory_space<vmem>>, %arg4: memref<16x32x32xbf16, #tpu.memory_space<vmem>>, %arg5: memref<32x128xbf16, #tpu.memory_space<vmem>>, %arg6: memref<1x128xf32, #tpu.memory_space<vmem>>, %arg7: memref<128x16xbf16, #tpu.memory_space<vmem>>, %arg8: memref<16x32xbf16, #tpu.memory_space<vmem>>, %arg9: memref<1x32xf32, #tpu.memory_space<vmem>>, %arg10: memref<32x10xbf16, #tpu.memory_space<vmem>>, %arg11: memref<1x10xf32, #tpu.memory_space<vmem>>, %arg12: memref<1x1x10xf32, #tpu.memory_space<vmem>>) attributes {dimension_semantics = [#tpu.dimension_semantics<parallel>], iteration_bounds = array<i64: 2>, scalar_prefetch = 0 : i64, scratch_operands = 0 : i64, tpu.core_type = #tpu.core_type<tc>, window_params = [{transform_indices = @transform_0, window_bounds = array<i64: 1, 12, 12, 16>}, {pipeline_mode = #tpu.pipeline_mode<synchronous>, transform_indices = @transform_1, window_bounds = array<i64: 25, 16, 32>}, {pipeline_mode = #tpu.pipeline_mode<synchronous>, transform_indices = @transform_2, window_bounds = array<i64: 1, 32>}, {pipeline_mode = #tpu.pipeline_mode<synchronous>, transform_indices = @transform_3, window_bounds = array<i64: 16, 32, 32>}, {pipeline_mode = #tpu.pipeline_mode<synchronous>, transform_indices = @transform_4, window_bounds = array<i64: 32, 128>}, {pipeline_mode = #tpu.pipeline_mode<synchronous>, transform_indices = @transform_5, window_bounds = array<i64: 1, 128>}, {pipeline_mode = #tpu.pipeline_mode<synchronous>, transform_indices = @transform_6, window_bounds = array<i64: 128, 16>}, {pipeline_mode = #tpu.pipeline_mode<synchronous>, transform_indices = @transform_7, window_bounds = array<i64: 16, 32>}, {pipeline_mode = #tpu.pipeline_mode<synchronous>, transform_indices = @transform_8, window_bounds = array<i64: 1, 32>}, {pipeline_mode = #tpu.pipeline_mode<synchronous>, transform_indices = @transform_9, window_bounds = array<i64: 32, 10>}, {pipeline_mode = #tpu.pipeline_mode<synchronous>, transform_indices = @transform_10, window_bounds = array<i64: 1, 10>}, {transform_indices = @transform_11, window_bounds = array<i64: 1, 1, 10>}]} {
    %c0 = arith.constant 0 : index
    %c0_0 = arith.constant 0 : index
    %c0_1 = arith.constant 0 : index
    %c0_2 = arith.constant 0 : index
    %0 = vector.load %arg1[%c0, %c0_0, %c0_1, %c0_2] : memref<1x12x12x16xbf16, #tpu.memory_space<vmem>>, vector<1x12x12x16xbf16>
    %1 = vector.shape_cast %0 : vector<1x12x12x16xbf16> to vector<12x12x16xbf16>
    %cst = arith.constant 0.000000e+00 : f32
    %2 = vector.broadcast %cst : f32 to vector<64x32xf32>
    %3 = vector.extract_strided_slice %1 {offsets = [0, 0, 0], sizes = [8, 8, 16], strides = [1, 1, 1]} : vector<12x12x16xbf16> to vector<8x8x16xbf16>
    %4 = vector.shape_cast %3 : vector<8x8x16xbf16> to vector<64x16xbf16>
    %c0_3 = arith.constant 0 : index
    %c0_4 = arith.constant 0 : index
    %c0_5 = arith.constant 0 : index
    %5 = vector.load %arg2[%c0_3, %c0_4, %c0_5] : memref<25x16x32xbf16, #tpu.memory_space<vmem>>, vector<1x16x32xbf16>
    %6 = vector.shape_cast %5 : vector<1x16x32xbf16> to vector<16x32xbf16>
    %cst_6 = arith.constant dense<0.000000e+00> : vector<64x32xf32>
    %7 = tpu.matmul %4, %6, %cst_6 {dimension_numbers = #tpu.dot_dimension_numbers<[1], [0], [0], [1], [0, 0, 1, 1], [], []>} : vector<64x16xbf16>, vector<16x32xbf16>, vector<64x32xf32> -> vector<64x32xf32>
    %8 = arith.addf %2, %7 : vector<64x32xf32>
    %9 = vector.extract_strided_slice %1 {offsets = [0, 1, 0], sizes = [8, 8, 16], strides = [1, 1, 1]} : vector<12x12x16xbf16> to vector<8x8x16xbf16>
    %10 = vector.shape_cast %9 : vector<8x8x16xbf16> to vector<64x16xbf16>
    %c1 = arith.constant 1 : index
    %c0_7 = arith.constant 0 : index
    %c0_8 = arith.constant 0 : index
    %11 = vector.load %arg2[%c1, %c0_7, %c0_8] : memref<25x16x32xbf16, #tpu.memory_space<vmem>>, vector<1x16x32xbf16>
    %12 = vector.shape_cast %11 : vector<1x16x32xbf16> to vector<16x32xbf16>
    %cst_9 = arith.constant dense<0.000000e+00> : vector<64x32xf32>
    %13 = tpu.matmul %10, %12, %cst_9 {dimension_numbers = #tpu.dot_dimension_numbers<[1], [0], [0], [1], [0, 0, 1, 1], [], []>} : vector<64x16xbf16>, vector<16x32xbf16>, vector<64x32xf32> -> vector<64x32xf32>
    %14 = arith.addf %8, %13 : vector<64x32xf32>
    %15 = vector.extract_strided_slice %1 {offsets = [0, 2, 0], sizes = [8, 8, 16], strides = [1, 1, 1]} : vector<12x12x16xbf16> to vector<8x8x16xbf16>
    %16 = vector.shape_cast %15 : vector<8x8x16xbf16> to vector<64x16xbf16>
    %c2 = arith.constant 2 : index
    %c0_10 = arith.constant 0 : index
    %c0_11 = arith.constant 0 : index
    %17 = vector.load %arg2[%c2, %c0_10, %c0_11] : memref<25x16x32xbf16, #tpu.memory_space<vmem>>, vector<1x16x32xbf16>
    %18 = vector.shape_cast %17 : vector<1x16x32xbf16> to vector<16x32xbf16>
    %cst_12 = arith.constant dense<0.000000e+00> : vector<64x32xf32>
    %19 = tpu.matmul %16, %18, %cst_12 {dimension_numbers = #tpu.dot_dimension_numbers<[1], [0], [0], [1], [0, 0, 1, 1], [], []>} : vector<64x16xbf16>, vector<16x32xbf16>, vector<64x32xf32> -> vector<64x32xf32>
    %20 = arith.addf %14, %19 : vector<64x32xf32>
    %21 = vector.extract_strided_slice %1 {offsets = [0, 3, 0], sizes = [8, 8, 16], strides = [1, 1, 1]} : vector<12x12x16xbf16> to vector<8x8x16xbf16>
    %22 = vector.shape_cast %21 : vector<8x8x16xbf16> to vector<64x16xbf16>
    %c3 = arith.constant 3 : index
    %c0_13 = arith.constant 0 : index
    %c0_14 = arith.constant 0 : index
    %23 = vector.load %arg2[%c3, %c0_13, %c0_14] : memref<25x16x32xbf16, #tpu.memory_space<vmem>>, vector<1x16x32xbf16>
    %24 = vector.shape_cast %23 : vector<1x16x32xbf16> to vector<16x32xbf16>
    %cst_15 = arith.constant dense<0.000000e+00> : vector<64x32xf32>
    %25 = tpu.matmul %22, %24, %cst_15 {dimension_numbers = #tpu.dot_dimension_numbers<[1], [0], [0], [1], [0, 0, 1, 1], [], []>} : vector<64x16xbf16>, vector<16x32xbf16>, vector<64x32xf32> -> vector<64x32xf32>
    %26 = arith.addf %20, %25 : vector<64x32xf32>
    %27 = vector.extract_strided_slice %1 {offsets = [0, 4, 0], sizes = [8, 8, 16], strides = [1, 1, 1]} : vector<12x12x16xbf16> to vector<8x8x16xbf16>
    %28 = vector.shape_cast %27 : vector<8x8x16xbf16> to vector<64x16xbf16>
    %c4 = arith.constant 4 : index
    %c0_16 = arith.constant 0 : index
    %c0_17 = arith.constant 0 : index
    %29 = vector.load %arg2[%c4, %c0_16, %c0_17] : memref<25x16x32xbf16, #tpu.memory_space<vmem>>, vector<1x16x32xbf16>
    %30 = vector.shape_cast %29 : vector<1x16x32xbf16> to vector<16x32xbf16>
    %cst_18 = arith.constant dense<0.000000e+00> : vector<64x32xf32>
    %31 = tpu.matmul %28, %30, %cst_18 {dimension_numbers = #tpu.dot_dimension_numbers<[1], [0], [0], [1], [0, 0, 1, 1], [], []>} : vector<64x16xbf16>, vector<16x32xbf16>, vector<64x32xf32> -> vector<64x32xf32>
    %32 = arith.addf %26, %31 : vector<64x32xf32>
    %33 = vector.extract_strided_slice %1 {offsets = [1, 0, 0], sizes = [8, 8, 16], strides = [1, 1, 1]} : vector<12x12x16xbf16> to vector<8x8x16xbf16>
    %34 = vector.shape_cast %33 : vector<8x8x16xbf16> to vector<64x16xbf16>
    %c5 = arith.constant 5 : index
    %c0_19 = arith.constant 0 : index
    %c0_20 = arith.constant 0 : index
    %35 = vector.load %arg2[%c5, %c0_19, %c0_20] : memref<25x16x32xbf16, #tpu.memory_space<vmem>>, vector<1x16x32xbf16>
    %36 = vector.shape_cast %35 : vector<1x16x32xbf16> to vector<16x32xbf16>
    %cst_21 = arith.constant dense<0.000000e+00> : vector<64x32xf32>
    %37 = tpu.matmul %34, %36, %cst_21 {dimension_numbers = #tpu.dot_dimension_numbers<[1], [0], [0], [1], [0, 0, 1, 1], [], []>} : vector<64x16xbf16>, vector<16x32xbf16>, vector<64x32xf32> -> vector<64x32xf32>
    %38 = arith.addf %32, %37 : vector<64x32xf32>
    %39 = vector.extract_strided_slice %1 {offsets = [1, 1, 0], sizes = [8, 8, 16], strides = [1, 1, 1]} : vector<12x12x16xbf16> to vector<8x8x16xbf16>
    %40 = vector.shape_cast %39 : vector<8x8x16xbf16> to vector<64x16xbf16>
    %c6 = arith.constant 6 : index
    %c0_22 = arith.constant 0 : index
    %c0_23 = arith.constant 0 : index
    %41 = vector.load %arg2[%c6, %c0_22, %c0_23] : memref<25x16x32xbf16, #tpu.memory_space<vmem>>, vector<1x16x32xbf16>
    %42 = vector.shape_cast %41 : vector<1x16x32xbf16> to vector<16x32xbf16>
    %cst_24 = arith.constant dense<0.000000e+00> : vector<64x32xf32>
    %43 = tpu.matmul %40, %42, %cst_24 {dimension_numbers = #tpu.dot_dimension_numbers<[1], [0], [0], [1], [0, 0, 1, 1], [], []>} : vector<64x16xbf16>, vector<16x32xbf16>, vector<64x32xf32> -> vector<64x32xf32>
    %44 = arith.addf %38, %43 : vector<64x32xf32>
    %45 = vector.extract_strided_slice %1 {offsets = [1, 2, 0], sizes = [8, 8, 16], strides = [1, 1, 1]} : vector<12x12x16xbf16> to vector<8x8x16xbf16>
    %46 = vector.shape_cast %45 : vector<8x8x16xbf16> to vector<64x16xbf16>
    %c7 = arith.constant 7 : index
    %c0_25 = arith.constant 0 : index
    %c0_26 = arith.constant 0 : index
    %47 = vector.load %arg2[%c7, %c0_25, %c0_26] : memref<25x16x32xbf16, #tpu.memory_space<vmem>>, vector<1x16x32xbf16>
    %48 = vector.shape_cast %47 : vector<1x16x32xbf16> to vector<16x32xbf16>
    %cst_27 = arith.constant dense<0.000000e+00> : vector<64x32xf32>
    %49 = tpu.matmul %46, %48, %cst_27 {dimension_numbers = #tpu.dot_dimension_numbers<[1], [0], [0], [1], [0, 0, 1, 1], [], []>} : vector<64x16xbf16>, vector<16x32xbf16>, vector<64x32xf32> -> vector<64x32xf32>
    %50 = arith.addf %44, %49 : vector<64x32xf32>
    %51 = vector.extract_strided_slice %1 {offsets = [1, 3, 0], sizes = [8, 8, 16], strides = [1, 1, 1]} : vector<12x12x16xbf16> to vector<8x8x16xbf16>
    %52 = vector.shape_cast %51 : vector<8x8x16xbf16> to vector<64x16xbf16>
    %c8 = arith.constant 8 : index
    %c0_28 = arith.constant 0 : index
    %c0_29 = arith.constant 0 : index
    %53 = vector.load %arg2[%c8, %c0_28, %c0_29] : memref<25x16x32xbf16, #tpu.memory_space<vmem>>, vector<1x16x32xbf16>
    %54 = vector.shape_cast %53 : vector<1x16x32xbf16> to vector<16x32xbf16>
    %cst_30 = arith.constant dense<0.000000e+00> : vector<64x32xf32>
    %55 = tpu.matmul %52, %54, %cst_30 {dimension_numbers = #tpu.dot_dimension_numbers<[1], [0], [0], [1], [0, 0, 1, 1], [], []>} : vector<64x16xbf16>, vector<16x32xbf16>, vector<64x32xf32> -> vector<64x32xf32>
    %56 = arith.addf %50, %55 : vector<64x32xf32>
    %57 = vector.extract_strided_slice %1 {offsets = [1, 4, 0], sizes = [8, 8, 16], strides = [1, 1, 1]} : vector<12x12x16xbf16> to vector<8x8x16xbf16>
    %58 = vector.shape_cast %57 : vector<8x8x16xbf16> to vector<64x16xbf16>
    %c9 = arith.constant 9 : index
    %c0_31 = arith.constant 0 : index
    %c0_32 = arith.constant 0 : index
    %59 = vector.load %arg2[%c9, %c0_31, %c0_32] : memref<25x16x32xbf16, #tpu.memory_space<vmem>>, vector<1x16x32xbf16>
    %60 = vector.shape_cast %59 : vector<1x16x32xbf16> to vector<16x32xbf16>
    %cst_33 = arith.constant dense<0.000000e+00> : vector<64x32xf32>
    %61 = tpu.matmul %58, %60, %cst_33 {dimension_numbers = #tpu.dot_dimension_numbers<[1], [0], [0], [1], [0, 0, 1, 1], [], []>} : vector<64x16xbf16>, vector<16x32xbf16>, vector<64x32xf32> -> vector<64x32xf32>
    %62 = arith.addf %56, %61 : vector<64x32xf32>
    %63 = vector.extract_strided_slice %1 {offsets = [2, 0, 0], sizes = [8, 8, 16], strides = [1, 1, 1]} : vector<12x12x16xbf16> to vector<8x8x16xbf16>
    %64 = vector.shape_cast %63 : vector<8x8x16xbf16> to vector<64x16xbf16>
    %c10 = arith.constant 10 : index
    %c0_34 = arith.constant 0 : index
    %c0_35 = arith.constant 0 : index
    %65 = vector.load %arg2[%c10, %c0_34, %c0_35] : memref<25x16x32xbf16, #tpu.memory_space<vmem>>, vector<1x16x32xbf16>
    %66 = vector.shape_cast %65 : vector<1x16x32xbf16> to vector<16x32xbf16>
    %cst_36 = arith.constant dense<0.000000e+00> : vector<64x32xf32>
    %67 = tpu.matmul %64, %66, %cst_36 {dimension_numbers = #tpu.dot_dimension_numbers<[1], [0], [0], [1], [0, 0, 1, 1], [], []>} : vector<64x16xbf16>, vector<16x32xbf16>, vector<64x32xf32> -> vector<64x32xf32>
    %68 = arith.addf %62, %67 : vector<64x32xf32>
    %69 = vector.extract_strided_slice %1 {offsets = [2, 1, 0], sizes = [8, 8, 16], strides = [1, 1, 1]} : vector<12x12x16xbf16> to vector<8x8x16xbf16>
    %70 = vector.shape_cast %69 : vector<8x8x16xbf16> to vector<64x16xbf16>
    %c11 = arith.constant 11 : index
    %c0_37 = arith.constant 0 : index
    %c0_38 = arith.constant 0 : index
    %71 = vector.load %arg2[%c11, %c0_37, %c0_38] : memref<25x16x32xbf16, #tpu.memory_space<vmem>>, vector<1x16x32xbf16>
    %72 = vector.shape_cast %71 : vector<1x16x32xbf16> to vector<16x32xbf16>
    %cst_39 = arith.constant dense<0.000000e+00> : vector<64x32xf32>
    %73 = tpu.matmul %70, %72, %cst_39 {dimension_numbers = #tpu.dot_dimension_numbers<[1], [0], [0], [1], [0, 0, 1, 1], [], []>} : vector<64x16xbf16>, vector<16x32xbf16>, vector<64x32xf32> -> vector<64x32xf32>
    %74 = arith.addf %68, %73 : vector<64x32xf32>
    %75 = vector.extract_strided_slice %1 {offsets = [2, 2, 0], sizes = [8, 8, 16], strides = [1, 1, 1]} : vector<12x12x16xbf16> to vector<8x8x16xbf16>
    %76 = vector.shape_cast %75 : vector<8x8x16xbf16> to vector<64x16xbf16>
    %c12 = arith.constant 12 : index
    %c0_40 = arith.constant 0 : index
    %c0_41 = arith.constant 0 : index
    %77 = vector.load %arg2[%c12, %c0_40, %c0_41] : memref<25x16x32xbf16, #tpu.memory_space<vmem>>, vector<1x16x32xbf16>
    %78 = vector.shape_cast %77 : vector<1x16x32xbf16> to vector<16x32xbf16>
    %cst_42 = arith.constant dense<0.000000e+00> : vector<64x32xf32>
    %79 = tpu.matmul %76, %78, %cst_42 {dimension_numbers = #tpu.dot_dimension_numbers<[1], [0], [0], [1], [0, 0, 1, 1], [], []>} : vector<64x16xbf16>, vector<16x32xbf16>, vector<64x32xf32> -> vector<64x32xf32>
    %80 = arith.addf %74, %79 : vector<64x32xf32>
    %81 = vector.extract_strided_slice %1 {offsets = [2, 3, 0], sizes = [8, 8, 16], strides = [1, 1, 1]} : vector<12x12x16xbf16> to vector<8x8x16xbf16>
    %82 = vector.shape_cast %81 : vector<8x8x16xbf16> to vector<64x16xbf16>
    %c13 = arith.constant 13 : index
    %c0_43 = arith.constant 0 : index
    %c0_44 = arith.constant 0 : index
    %83 = vector.load %arg2[%c13, %c0_43, %c0_44] : memref<25x16x32xbf16, #tpu.memory_space<vmem>>, vector<1x16x32xbf16>
    %84 = vector.shape_cast %83 : vector<1x16x32xbf16> to vector<16x32xbf16>
    %cst_45 = arith.constant dense<0.000000e+00> : vector<64x32xf32>
    %85 = tpu.matmul %82, %84, %cst_45 {dimension_numbers = #tpu.dot_dimension_numbers<[1], [0], [0], [1], [0, 0, 1, 1], [], []>} : vector<64x16xbf16>, vector<16x32xbf16>, vector<64x32xf32> -> vector<64x32xf32>
    %86 = arith.addf %80, %85 : vector<64x32xf32>
    %87 = vector.extract_strided_slice %1 {offsets = [2, 4, 0], sizes = [8, 8, 16], strides = [1, 1, 1]} : vector<12x12x16xbf16> to vector<8x8x16xbf16>
    %88 = vector.shape_cast %87 : vector<8x8x16xbf16> to vector<64x16xbf16>
    %c14 = arith.constant 14 : index
    %c0_46 = arith.constant 0 : index
    %c0_47 = arith.constant 0 : index
    %89 = vector.load %arg2[%c14, %c0_46, %c0_47] : memref<25x16x32xbf16, #tpu.memory_space<vmem>>, vector<1x16x32xbf16>
    %90 = vector.shape_cast %89 : vector<1x16x32xbf16> to vector<16x32xbf16>
    %cst_48 = arith.constant dense<0.000000e+00> : vector<64x32xf32>
    %91 = tpu.matmul %88, %90, %cst_48 {dimension_numbers = #tpu.dot_dimension_numbers<[1], [0], [0], [1], [0, 0, 1, 1], [], []>} : vector<64x16xbf16>, vector<16x32xbf16>, vector<64x32xf32> -> vector<64x32xf32>
    %92 = arith.addf %86, %91 : vector<64x32xf32>
    %93 = vector.extract_strided_slice %1 {offsets = [3, 0, 0], sizes = [8, 8, 16], strides = [1, 1, 1]} : vector<12x12x16xbf16> to vector<8x8x16xbf16>
    %94 = vector.shape_cast %93 : vector<8x8x16xbf16> to vector<64x16xbf16>
    %c15 = arith.constant 15 : index
    %c0_49 = arith.constant 0 : index
    %c0_50 = arith.constant 0 : index
    %95 = vector.load %arg2[%c15, %c0_49, %c0_50] : memref<25x16x32xbf16, #tpu.memory_space<vmem>>, vector<1x16x32xbf16>
    %96 = vector.shape_cast %95 : vector<1x16x32xbf16> to vector<16x32xbf16>
    %cst_51 = arith.constant dense<0.000000e+00> : vector<64x32xf32>
    %97 = tpu.matmul %94, %96, %cst_51 {dimension_numbers = #tpu.dot_dimension_numbers<[1], [0], [0], [1], [0, 0, 1, 1], [], []>} : vector<64x16xbf16>, vector<16x32xbf16>, vector<64x32xf32> -> vector<64x32xf32>
    %98 = arith.addf %92, %97 : vector<64x32xf32>
    %99 = vector.extract_strided_slice %1 {offsets = [3, 1, 0], sizes = [8, 8, 16], strides = [1, 1, 1]} : vector<12x12x16xbf16> to vector<8x8x16xbf16>
    %100 = vector.shape_cast %99 : vector<8x8x16xbf16> to vector<64x16xbf16>
    %c16 = arith.constant 16 : index
    %c0_52 = arith.constant 0 : index
    %c0_53 = arith.constant 0 : index
    %101 = vector.load %arg2[%c16, %c0_52, %c0_53] : memref<25x16x32xbf16, #tpu.memory_space<vmem>>, vector<1x16x32xbf16>
    %102 = vector.shape_cast %101 : vector<1x16x32xbf16> to vector<16x32xbf16>
    %cst_54 = arith.constant dense<0.000000e+00> : vector<64x32xf32>
    %103 = tpu.matmul %100, %102, %cst_54 {dimension_numbers = #tpu.dot_dimension_numbers<[1], [0], [0], [1], [0, 0, 1, 1], [], []>} : vector<64x16xbf16>, vector<16x32xbf16>, vector<64x32xf32> -> vector<64x32xf32>
    %104 = arith.addf %98, %103 : vector<64x32xf32>
    %105 = vector.extract_strided_slice %1 {offsets = [3, 2, 0], sizes = [8, 8, 16], strides = [1, 1, 1]} : vector<12x12x16xbf16> to vector<8x8x16xbf16>
    %106 = vector.shape_cast %105 : vector<8x8x16xbf16> to vector<64x16xbf16>
    %c17 = arith.constant 17 : index
    %c0_55 = arith.constant 0 : index
    %c0_56 = arith.constant 0 : index
    %107 = vector.load %arg2[%c17, %c0_55, %c0_56] : memref<25x16x32xbf16, #tpu.memory_space<vmem>>, vector<1x16x32xbf16>
    %108 = vector.shape_cast %107 : vector<1x16x32xbf16> to vector<16x32xbf16>
    %cst_57 = arith.constant dense<0.000000e+00> : vector<64x32xf32>
    %109 = tpu.matmul %106, %108, %cst_57 {dimension_numbers = #tpu.dot_dimension_numbers<[1], [0], [0], [1], [0, 0, 1, 1], [], []>} : vector<64x16xbf16>, vector<16x32xbf16>, vector<64x32xf32> -> vector<64x32xf32>
    %110 = arith.addf %104, %109 : vector<64x32xf32>
    %111 = vector.extract_strided_slice %1 {offsets = [3, 3, 0], sizes = [8, 8, 16], strides = [1, 1, 1]} : vector<12x12x16xbf16> to vector<8x8x16xbf16>
    %112 = vector.shape_cast %111 : vector<8x8x16xbf16> to vector<64x16xbf16>
    %c18 = arith.constant 18 : index
    %c0_58 = arith.constant 0 : index
    %c0_59 = arith.constant 0 : index
    %113 = vector.load %arg2[%c18, %c0_58, %c0_59] : memref<25x16x32xbf16, #tpu.memory_space<vmem>>, vector<1x16x32xbf16>
    %114 = vector.shape_cast %113 : vector<1x16x32xbf16> to vector<16x32xbf16>
    %cst_60 = arith.constant dense<0.000000e+00> : vector<64x32xf32>
    %115 = tpu.matmul %112, %114, %cst_60 {dimension_numbers = #tpu.dot_dimension_numbers<[1], [0], [0], [1], [0, 0, 1, 1], [], []>} : vector<64x16xbf16>, vector<16x32xbf16>, vector<64x32xf32> -> vector<64x32xf32>
    %116 = arith.addf %110, %115 : vector<64x32xf32>
    %117 = vector.extract_strided_slice %1 {offsets = [3, 4, 0], sizes = [8, 8, 16], strides = [1, 1, 1]} : vector<12x12x16xbf16> to vector<8x8x16xbf16>
    %118 = vector.shape_cast %117 : vector<8x8x16xbf16> to vector<64x16xbf16>
    %c19 = arith.constant 19 : index
    %c0_61 = arith.constant 0 : index
    %c0_62 = arith.constant 0 : index
    %119 = vector.load %arg2[%c19, %c0_61, %c0_62] : memref<25x16x32xbf16, #tpu.memory_space<vmem>>, vector<1x16x32xbf16>
    %120 = vector.shape_cast %119 : vector<1x16x32xbf16> to vector<16x32xbf16>
    %cst_63 = arith.constant dense<0.000000e+00> : vector<64x32xf32>
    %121 = tpu.matmul %118, %120, %cst_63 {dimension_numbers = #tpu.dot_dimension_numbers<[1], [0], [0], [1], [0, 0, 1, 1], [], []>} : vector<64x16xbf16>, vector<16x32xbf16>, vector<64x32xf32> -> vector<64x32xf32>
    %122 = arith.addf %116, %121 : vector<64x32xf32>
    %123 = vector.extract_strided_slice %1 {offsets = [4, 0, 0], sizes = [8, 8, 16], strides = [1, 1, 1]} : vector<12x12x16xbf16> to vector<8x8x16xbf16>
    %124 = vector.shape_cast %123 : vector<8x8x16xbf16> to vector<64x16xbf16>
    %c20 = arith.constant 20 : index
    %c0_64 = arith.constant 0 : index
    %c0_65 = arith.constant 0 : index
    %125 = vector.load %arg2[%c20, %c0_64, %c0_65] : memref<25x16x32xbf16, #tpu.memory_space<vmem>>, vector<1x16x32xbf16>
    %126 = vector.shape_cast %125 : vector<1x16x32xbf16> to vector<16x32xbf16>
    %cst_66 = arith.constant dense<0.000000e+00> : vector<64x32xf32>
    %127 = tpu.matmul %124, %126, %cst_66 {dimension_numbers = #tpu.dot_dimension_numbers<[1], [0], [0], [1], [0, 0, 1, 1], [], []>} : vector<64x16xbf16>, vector<16x32xbf16>, vector<64x32xf32> -> vector<64x32xf32>
    %128 = arith.addf %122, %127 : vector<64x32xf32>
    %129 = vector.extract_strided_slice %1 {offsets = [4, 1, 0], sizes = [8, 8, 16], strides = [1, 1, 1]} : vector<12x12x16xbf16> to vector<8x8x16xbf16>
    %130 = vector.shape_cast %129 : vector<8x8x16xbf16> to vector<64x16xbf16>
    %c21 = arith.constant 21 : index
    %c0_67 = arith.constant 0 : index
    %c0_68 = arith.constant 0 : index
    %131 = vector.load %arg2[%c21, %c0_67, %c0_68] : memref<25x16x32xbf16, #tpu.memory_space<vmem>>, vector<1x16x32xbf16>
    %132 = vector.shape_cast %131 : vector<1x16x32xbf16> to vector<16x32xbf16>
    %cst_69 = arith.constant dense<0.000000e+00> : vector<64x32xf32>
    %133 = tpu.matmul %130, %132, %cst_69 {dimension_numbers = #tpu.dot_dimension_numbers<[1], [0], [0], [1], [0, 0, 1, 1], [], []>} : vector<64x16xbf16>, vector<16x32xbf16>, vector<64x32xf32> -> vector<64x32xf32>
    %134 = arith.addf %128, %133 : vector<64x32xf32>
    %135 = vector.extract_strided_slice %1 {offsets = [4, 2, 0], sizes = [8, 8, 16], strides = [1, 1, 1]} : vector<12x12x16xbf16> to vector<8x8x16xbf16>
    %136 = vector.shape_cast %135 : vector<8x8x16xbf16> to vector<64x16xbf16>
    %c22 = arith.constant 22 : index
    %c0_70 = arith.constant 0 : index
    %c0_71 = arith.constant 0 : index
    %137 = vector.load %arg2[%c22, %c0_70, %c0_71] : memref<25x16x32xbf16, #tpu.memory_space<vmem>>, vector<1x16x32xbf16>
    %138 = vector.shape_cast %137 : vector<1x16x32xbf16> to vector<16x32xbf16>
    %cst_72 = arith.constant dense<0.000000e+00> : vector<64x32xf32>
    %139 = tpu.matmul %136, %138, %cst_72 {dimension_numbers = #tpu.dot_dimension_numbers<[1], [0], [0], [1], [0, 0, 1, 1], [], []>} : vector<64x16xbf16>, vector<16x32xbf16>, vector<64x32xf32> -> vector<64x32xf32>
    %140 = arith.addf %134, %139 : vector<64x32xf32>
    %141 = vector.extract_strided_slice %1 {offsets = [4, 3, 0], sizes = [8, 8, 16], strides = [1, 1, 1]} : vector<12x12x16xbf16> to vector<8x8x16xbf16>
    %142 = vector.shape_cast %141 : vector<8x8x16xbf16> to vector<64x16xbf16>
    %c23 = arith.constant 23 : index
    %c0_73 = arith.constant 0 : index
    %c0_74 = arith.constant 0 : index
    %143 = vector.load %arg2[%c23, %c0_73, %c0_74] : memref<25x16x32xbf16, #tpu.memory_space<vmem>>, vector<1x16x32xbf16>
    %144 = vector.shape_cast %143 : vector<1x16x32xbf16> to vector<16x32xbf16>
    %cst_75 = arith.constant dense<0.000000e+00> : vector<64x32xf32>
    %145 = tpu.matmul %142, %144, %cst_75 {dimension_numbers = #tpu.dot_dimension_numbers<[1], [0], [0], [1], [0, 0, 1, 1], [], []>} : vector<64x16xbf16>, vector<16x32xbf16>, vector<64x32xf32> -> vector<64x32xf32>
    %146 = arith.addf %140, %145 : vector<64x32xf32>
    %147 = vector.extract_strided_slice %1 {offsets = [4, 4, 0], sizes = [8, 8, 16], strides = [1, 1, 1]} : vector<12x12x16xbf16> to vector<8x8x16xbf16>
    %148 = vector.shape_cast %147 : vector<8x8x16xbf16> to vector<64x16xbf16>
    %c24 = arith.constant 24 : index
    %c0_76 = arith.constant 0 : index
    %c0_77 = arith.constant 0 : index
    %149 = vector.load %arg2[%c24, %c0_76, %c0_77] : memref<25x16x32xbf16, #tpu.memory_space<vmem>>, vector<1x16x32xbf16>
    %150 = vector.shape_cast %149 : vector<1x16x32xbf16> to vector<16x32xbf16>
    %cst_78 = arith.constant dense<0.000000e+00> : vector<64x32xf32>
    %151 = tpu.matmul %148, %150, %cst_78 {dimension_numbers = #tpu.dot_dimension_numbers<[1], [0], [0], [1], [0, 0, 1, 1], [], []>} : vector<64x16xbf16>, vector<16x32xbf16>, vector<64x32xf32> -> vector<64x32xf32>
    %152 = arith.addf %146, %151 : vector<64x32xf32>
    %c0_79 = arith.constant 0 : index
    %c0_80 = arith.constant 0 : index
    %153 = vector.load %arg3[%c0_79, %c0_80] : memref<1x32xf32, #tpu.memory_space<vmem>>, vector<1x32xf32>
    %154 = vector.broadcast %153 : vector<1x32xf32> to vector<64x32xf32>
    %155 = arith.addf %152, %154 : vector<64x32xf32>
    %cst_81 = arith.constant 0.000000e+00 : f32
    %156 = vector.broadcast %cst_81 : f32 to vector<64x32xf32>
    %157 = arith.maximumf %155, %156 : vector<64x32xf32>
    %158 = vector.shape_cast %157 : vector<64x32xf32> to vector<8x8x32xf32>
    %159 = vector.shape_cast %158 : vector<8x8x32xf32> to vector<4x2x8x32xf32>
    %cst_82 = arith.constant dense<0xFF800000> : vector<4x8x32xf32>
    %160 = vector.multi_reduction <maximumf>, %159, %cst_82 [1] : vector<4x2x8x32xf32> to vector<4x8x32xf32>
    %161 = vector.extract_strided_slice %160 {offsets = [0, 1, 0], sizes = [4, 7, 32], strides = [1, 1, 1]} : vector<4x8x32xf32> to vector<4x7x32xf32>
    %162 = vector.extract_strided_slice %160 {offsets = [0, 0, 0], sizes = [4, 1, 32], strides = [1, 1, 1]} : vector<4x8x32xf32> to vector<4x1x32xf32>
    %163 = tpu.concatenate %161, %162 in 1 : vector<4x7x32xf32>, vector<4x1x32xf32> -> vector<4x8x32xf32>
    %164 = arith.maximumf %160, %163 : vector<4x8x32xf32>
    %cst_83 = arith.constant 0.000000e+00 : f32
    %165 = vector.broadcast %cst_83 : f32 to vector<1x32xf32>
    %166 = vector.extract_strided_slice %164 {offsets = [0, 0, 0], sizes = [1, 1, 32], strides = [1, 1, 1]} : vector<4x8x32xf32> to vector<1x1x32xf32>
    %167 = vector.shape_cast %166 : vector<1x1x32xf32> to vector<1x32xf32>
    %168 = arith.truncf %167 : vector<1x32xf32> to vector<1x32xbf16>
    %c0_84 = arith.constant 0 : index
    %c0_85 = arith.constant 0 : index
    %c0_86 = arith.constant 0 : index
    %169 = vector.load %arg4[%c0_84, %c0_85, %c0_86] : memref<16x32x32xbf16, #tpu.memory_space<vmem>>, vector<1x32x32xbf16>
    %170 = vector.shape_cast %169 : vector<1x32x32xbf16> to vector<32x32xbf16>
    %cst_87 = arith.constant dense<0.000000e+00> : vector<1x32xf32>
    %171 = tpu.matmul %168, %170, %cst_87 {dimension_numbers = #tpu.dot_dimension_numbers<[1], [0], [0], [1], [0, 0, 1, 1], [], []>} : vector<1x32xbf16>, vector<32x32xbf16>, vector<1x32xf32> -> vector<1x32xf32>
    %172 = arith.addf %165, %171 : vector<1x32xf32>
    %173 = vector.extract_strided_slice %164 {offsets = [0, 2, 0], sizes = [1, 1, 32], strides = [1, 1, 1]} : vector<4x8x32xf32> to vector<1x1x32xf32>
    %174 = vector.shape_cast %173 : vector<1x1x32xf32> to vector<1x32xf32>
    %175 = arith.truncf %174 : vector<1x32xf32> to vector<1x32xbf16>
    %c1_88 = arith.constant 1 : index
    %c0_89 = arith.constant 0 : index
    %c0_90 = arith.constant 0 : index
    %176 = vector.load %arg4[%c1_88, %c0_89, %c0_90] : memref<16x32x32xbf16, #tpu.memory_space<vmem>>, vector<1x32x32xbf16>
    %177 = vector.shape_cast %176 : vector<1x32x32xbf16> to vector<32x32xbf16>
    %cst_91 = arith.constant dense<0.000000e+00> : vector<1x32xf32>
    %178 = tpu.matmul %175, %177, %cst_91 {dimension_numbers = #tpu.dot_dimension_numbers<[1], [0], [0], [1], [0, 0, 1, 1], [], []>} : vector<1x32xbf16>, vector<32x32xbf16>, vector<1x32xf32> -> vector<1x32xf32>
    %179 = arith.addf %172, %178 : vector<1x32xf32>
    %180 = vector.extract_strided_slice %164 {offsets = [0, 4, 0], sizes = [1, 1, 32], strides = [1, 1, 1]} : vector<4x8x32xf32> to vector<1x1x32xf32>
    %181 = vector.shape_cast %180 : vector<1x1x32xf32> to vector<1x32xf32>
    %182 = arith.truncf %181 : vector<1x32xf32> to vector<1x32xbf16>
    %c2_92 = arith.constant 2 : index
    %c0_93 = arith.constant 0 : index
    %c0_94 = arith.constant 0 : index
    %183 = vector.load %arg4[%c2_92, %c0_93, %c0_94] : memref<16x32x32xbf16, #tpu.memory_space<vmem>>, vector<1x32x32xbf16>
    %184 = vector.shape_cast %183 : vector<1x32x32xbf16> to vector<32x32xbf16>
    %cst_95 = arith.constant dense<0.000000e+00> : vector<1x32xf32>
    %185 = tpu.matmul %182, %184, %cst_95 {dimension_numbers = #tpu.dot_dimension_numbers<[1], [0], [0], [1], [0, 0, 1, 1], [], []>} : vector<1x32xbf16>, vector<32x32xbf16>, vector<1x32xf32> -> vector<1x32xf32>
    %186 = arith.addf %179, %185 : vector<1x32xf32>
    %187 = vector.extract_strided_slice %164 {offsets = [0, 6, 0], sizes = [1, 1, 32], strides = [1, 1, 1]} : vector<4x8x32xf32> to vector<1x1x32xf32>
    %188 = vector.shape_cast %187 : vector<1x1x32xf32> to vector<1x32xf32>
    %189 = arith.truncf %188 : vector<1x32xf32> to vector<1x32xbf16>
    %c3_96 = arith.constant 3 : index
    %c0_97 = arith.constant 0 : index
    %c0_98 = arith.constant 0 : index
    %190 = vector.load %arg4[%c3_96, %c0_97, %c0_98] : memref<16x32x32xbf16, #tpu.memory_space<vmem>>, vector<1x32x32xbf16>
    %191 = vector.shape_cast %190 : vector<1x32x32xbf16> to vector<32x32xbf16>
    %cst_99 = arith.constant dense<0.000000e+00> : vector<1x32xf32>
    %192 = tpu.matmul %189, %191, %cst_99 {dimension_numbers = #tpu.dot_dimension_numbers<[1], [0], [0], [1], [0, 0, 1, 1], [], []>} : vector<1x32xbf16>, vector<32x32xbf16>, vector<1x32xf32> -> vector<1x32xf32>
    %193 = arith.addf %186, %192 : vector<1x32xf32>
    %194 = vector.extract_strided_slice %164 {offsets = [1, 0, 0], sizes = [1, 1, 32], strides = [1, 1, 1]} : vector<4x8x32xf32> to vector<1x1x32xf32>
    %195 = vector.shape_cast %194 : vector<1x1x32xf32> to vector<1x32xf32>
    %196 = arith.truncf %195 : vector<1x32xf32> to vector<1x32xbf16>
    %c4_100 = arith.constant 4 : index
    %c0_101 = arith.constant 0 : index
    %c0_102 = arith.constant 0 : index
    %197 = vector.load %arg4[%c4_100, %c0_101, %c0_102] : memref<16x32x32xbf16, #tpu.memory_space<vmem>>, vector<1x32x32xbf16>
    %198 = vector.shape_cast %197 : vector<1x32x32xbf16> to vector<32x32xbf16>
    %cst_103 = arith.constant dense<0.000000e+00> : vector<1x32xf32>
    %199 = tpu.matmul %196, %198, %cst_103 {dimension_numbers = #tpu.dot_dimension_numbers<[1], [0], [0], [1], [0, 0, 1, 1], [], []>} : vector<1x32xbf16>, vector<32x32xbf16>, vector<1x32xf32> -> vector<1x32xf32>
    %200 = arith.addf %193, %199 : vector<1x32xf32>
    %201 = vector.extract_strided_slice %164 {offsets = [1, 2, 0], sizes = [1, 1, 32], strides = [1, 1, 1]} : vector<4x8x32xf32> to vector<1x1x32xf32>
    %202 = vector.shape_cast %201 : vector<1x1x32xf32> to vector<1x32xf32>
    %203 = arith.truncf %202 : vector<1x32xf32> to vector<1x32xbf16>
    %c5_104 = arith.constant 5 : index
    %c0_105 = arith.constant 0 : index
    %c0_106 = arith.constant 0 : index
    %204 = vector.load %arg4[%c5_104, %c0_105, %c0_106] : memref<16x32x32xbf16, #tpu.memory_space<vmem>>, vector<1x32x32xbf16>
    %205 = vector.shape_cast %204 : vector<1x32x32xbf16> to vector<32x32xbf16>
    %cst_107 = arith.constant dense<0.000000e+00> : vector<1x32xf32>
    %206 = tpu.matmul %203, %205, %cst_107 {dimension_numbers = #tpu.dot_dimension_numbers<[1], [0], [0], [1], [0, 0, 1, 1], [], []>} : vector<1x32xbf16>, vector<32x32xbf16>, vector<1x32xf32> -> vector<1x32xf32>
    %207 = arith.addf %200, %206 : vector<1x32xf32>
    %208 = vector.extract_strided_slice %164 {offsets = [1, 4, 0], sizes = [1, 1, 32], strides = [1, 1, 1]} : vector<4x8x32xf32> to vector<1x1x32xf32>
    %209 = vector.shape_cast %208 : vector<1x1x32xf32> to vector<1x32xf32>
    %210 = arith.truncf %209 : vector<1x32xf32> to vector<1x32xbf16>
    %c6_108 = arith.constant 6 : index
    %c0_109 = arith.constant 0 : index
    %c0_110 = arith.constant 0 : index
    %211 = vector.load %arg4[%c6_108, %c0_109, %c0_110] : memref<16x32x32xbf16, #tpu.memory_space<vmem>>, vector<1x32x32xbf16>
    %212 = vector.shape_cast %211 : vector<1x32x32xbf16> to vector<32x32xbf16>
    %cst_111 = arith.constant dense<0.000000e+00> : vector<1x32xf32>
    %213 = tpu.matmul %210, %212, %cst_111 {dimension_numbers = #tpu.dot_dimension_numbers<[1], [0], [0], [1], [0, 0, 1, 1], [], []>} : vector<1x32xbf16>, vector<32x32xbf16>, vector<1x32xf32> -> vector<1x32xf32>
    %214 = arith.addf %207, %213 : vector<1x32xf32>
    %215 = vector.extract_strided_slice %164 {offsets = [1, 6, 0], sizes = [1, 1, 32], strides = [1, 1, 1]} : vector<4x8x32xf32> to vector<1x1x32xf32>
    %216 = vector.shape_cast %215 : vector<1x1x32xf32> to vector<1x32xf32>
    %217 = arith.truncf %216 : vector<1x32xf32> to vector<1x32xbf16>
    %c7_112 = arith.constant 7 : index
    %c0_113 = arith.constant 0 : index
    %c0_114 = arith.constant 0 : index
    %218 = vector.load %arg4[%c7_112, %c0_113, %c0_114] : memref<16x32x32xbf16, #tpu.memory_space<vmem>>, vector<1x32x32xbf16>
    %219 = vector.shape_cast %218 : vector<1x32x32xbf16> to vector<32x32xbf16>
    %cst_115 = arith.constant dense<0.000000e+00> : vector<1x32xf32>
    %220 = tpu.matmul %217, %219, %cst_115 {dimension_numbers = #tpu.dot_dimension_numbers<[1], [0], [0], [1], [0, 0, 1, 1], [], []>} : vector<1x32xbf16>, vector<32x32xbf16>, vector<1x32xf32> -> vector<1x32xf32>
    %221 = arith.addf %214, %220 : vector<1x32xf32>
    %222 = vector.extract_strided_slice %164 {offsets = [2, 0, 0], sizes = [1, 1, 32], strides = [1, 1, 1]} : vector<4x8x32xf32> to vector<1x1x32xf32>
    %223 = vector.shape_cast %222 : vector<1x1x32xf32> to vector<1x32xf32>
    %224 = arith.truncf %223 : vector<1x32xf32> to vector<1x32xbf16>
    %c8_116 = arith.constant 8 : index
    %c0_117 = arith.constant 0 : index
    %c0_118 = arith.constant 0 : index
    %225 = vector.load %arg4[%c8_116, %c0_117, %c0_118] : memref<16x32x32xbf16, #tpu.memory_space<vmem>>, vector<1x32x32xbf16>
    %226 = vector.shape_cast %225 : vector<1x32x32xbf16> to vector<32x32xbf16>
    %cst_119 = arith.constant dense<0.000000e+00> : vector<1x32xf32>
    %227 = tpu.matmul %224, %226, %cst_119 {dimension_numbers = #tpu.dot_dimension_numbers<[1], [0], [0], [1], [0, 0, 1, 1], [], []>} : vector<1x32xbf16>, vector<32x32xbf16>, vector<1x32xf32> -> vector<1x32xf32>
    %228 = arith.addf %221, %227 : vector<1x32xf32>
    %229 = vector.extract_strided_slice %164 {offsets = [2, 2, 0], sizes = [1, 1, 32], strides = [1, 1, 1]} : vector<4x8x32xf32> to vector<1x1x32xf32>
    %230 = vector.shape_cast %229 : vector<1x1x32xf32> to vector<1x32xf32>
    %231 = arith.truncf %230 : vector<1x32xf32> to vector<1x32xbf16>
    %c9_120 = arith.constant 9 : index
    %c0_121 = arith.constant 0 : index
    %c0_122 = arith.constant 0 : index
    %232 = vector.load %arg4[%c9_120, %c0_121, %c0_122] : memref<16x32x32xbf16, #tpu.memory_space<vmem>>, vector<1x32x32xbf16>
    %233 = vector.shape_cast %232 : vector<1x32x32xbf16> to vector<32x32xbf16>
    %cst_123 = arith.constant dense<0.000000e+00> : vector<1x32xf32>
    %234 = tpu.matmul %231, %233, %cst_123 {dimension_numbers = #tpu.dot_dimension_numbers<[1], [0], [0], [1], [0, 0, 1, 1], [], []>} : vector<1x32xbf16>, vector<32x32xbf16>, vector<1x32xf32> -> vector<1x32xf32>
    %235 = arith.addf %228, %234 : vector<1x32xf32>
    %236 = vector.extract_strided_slice %164 {offsets = [2, 4, 0], sizes = [1, 1, 32], strides = [1, 1, 1]} : vector<4x8x32xf32> to vector<1x1x32xf32>
    %237 = vector.shape_cast %236 : vector<1x1x32xf32> to vector<1x32xf32>
    %238 = arith.truncf %237 : vector<1x32xf32> to vector<1x32xbf16>
    %c10_124 = arith.constant 10 : index
    %c0_125 = arith.constant 0 : index
    %c0_126 = arith.constant 0 : index
    %239 = vector.load %arg4[%c10_124, %c0_125, %c0_126] : memref<16x32x32xbf16, #tpu.memory_space<vmem>>, vector<1x32x32xbf16>
    %240 = vector.shape_cast %239 : vector<1x32x32xbf16> to vector<32x32xbf16>
    %cst_127 = arith.constant dense<0.000000e+00> : vector<1x32xf32>
    %241 = tpu.matmul %238, %240, %cst_127 {dimension_numbers = #tpu.dot_dimension_numbers<[1], [0], [0], [1], [0, 0, 1, 1], [], []>} : vector<1x32xbf16>, vector<32x32xbf16>, vector<1x32xf32> -> vector<1x32xf32>
    %242 = arith.addf %235, %241 : vector<1x32xf32>
    %243 = vector.extract_strided_slice %164 {offsets = [2, 6, 0], sizes = [1, 1, 32], strides = [1, 1, 1]} : vector<4x8x32xf32> to vector<1x1x32xf32>
    %244 = vector.shape_cast %243 : vector<1x1x32xf32> to vector<1x32xf32>
    %245 = arith.truncf %244 : vector<1x32xf32> to vector<1x32xbf16>
    %c11_128 = arith.constant 11 : index
    %c0_129 = arith.constant 0 : index
    %c0_130 = arith.constant 0 : index
    %246 = vector.load %arg4[%c11_128, %c0_129, %c0_130] : memref<16x32x32xbf16, #tpu.memory_space<vmem>>, vector<1x32x32xbf16>
    %247 = vector.shape_cast %246 : vector<1x32x32xbf16> to vector<32x32xbf16>
    %cst_131 = arith.constant dense<0.000000e+00> : vector<1x32xf32>
    %248 = tpu.matmul %245, %247, %cst_131 {dimension_numbers = #tpu.dot_dimension_numbers<[1], [0], [0], [1], [0, 0, 1, 1], [], []>} : vector<1x32xbf16>, vector<32x32xbf16>, vector<1x32xf32> -> vector<1x32xf32>
    %249 = arith.addf %242, %248 : vector<1x32xf32>
    %250 = vector.extract_strided_slice %164 {offsets = [3, 0, 0], sizes = [1, 1, 32], strides = [1, 1, 1]} : vector<4x8x32xf32> to vector<1x1x32xf32>
    %251 = vector.shape_cast %250 : vector<1x1x32xf32> to vector<1x32xf32>
    %252 = arith.truncf %251 : vector<1x32xf32> to vector<1x32xbf16>
    %c12_132 = arith.constant 12 : index
    %c0_133 = arith.constant 0 : index
    %c0_134 = arith.constant 0 : index
    %253 = vector.load %arg4[%c12_132, %c0_133, %c0_134] : memref<16x32x32xbf16, #tpu.memory_space<vmem>>, vector<1x32x32xbf16>
    %254 = vector.shape_cast %253 : vector<1x32x32xbf16> to vector<32x32xbf16>
    %cst_135 = arith.constant dense<0.000000e+00> : vector<1x32xf32>
    %255 = tpu.matmul %252, %254, %cst_135 {dimension_numbers = #tpu.dot_dimension_numbers<[1], [0], [0], [1], [0, 0, 1, 1], [], []>} : vector<1x32xbf16>, vector<32x32xbf16>, vector<1x32xf32> -> vector<1x32xf32>
    %256 = arith.addf %249, %255 : vector<1x32xf32>
    %257 = vector.extract_strided_slice %164 {offsets = [3, 2, 0], sizes = [1, 1, 32], strides = [1, 1, 1]} : vector<4x8x32xf32> to vector<1x1x32xf32>
    %258 = vector.shape_cast %257 : vector<1x1x32xf32> to vector<1x32xf32>
    %259 = arith.truncf %258 : vector<1x32xf32> to vector<1x32xbf16>
    %c13_136 = arith.constant 13 : index
    %c0_137 = arith.constant 0 : index
    %c0_138 = arith.constant 0 : index
    %260 = vector.load %arg4[%c13_136, %c0_137, %c0_138] : memref<16x32x32xbf16, #tpu.memory_space<vmem>>, vector<1x32x32xbf16>
    %261 = vector.shape_cast %260 : vector<1x32x32xbf16> to vector<32x32xbf16>
    %cst_139 = arith.constant dense<0.000000e+00> : vector<1x32xf32>
    %262 = tpu.matmul %259, %261, %cst_139 {dimension_numbers = #tpu.dot_dimension_numbers<[1], [0], [0], [1], [0, 0, 1, 1], [], []>} : vector<1x32xbf16>, vector<32x32xbf16>, vector<1x32xf32> -> vector<1x32xf32>
    %263 = arith.addf %256, %262 : vector<1x32xf32>
    %264 = vector.extract_strided_slice %164 {offsets = [3, 4, 0], sizes = [1, 1, 32], strides = [1, 1, 1]} : vector<4x8x32xf32> to vector<1x1x32xf32>
    %265 = vector.shape_cast %264 : vector<1x1x32xf32> to vector<1x32xf32>
    %266 = arith.truncf %265 : vector<1x32xf32> to vector<1x32xbf16>
    %c14_140 = arith.constant 14 : index
    %c0_141 = arith.constant 0 : index
    %c0_142 = arith.constant 0 : index
    %267 = vector.load %arg4[%c14_140, %c0_141, %c0_142] : memref<16x32x32xbf16, #tpu.memory_space<vmem>>, vector<1x32x32xbf16>
    %268 = vector.shape_cast %267 : vector<1x32x32xbf16> to vector<32x32xbf16>
    %cst_143 = arith.constant dense<0.000000e+00> : vector<1x32xf32>
    %269 = tpu.matmul %266, %268, %cst_143 {dimension_numbers = #tpu.dot_dimension_numbers<[1], [0], [0], [1], [0, 0, 1, 1], [], []>} : vector<1x32xbf16>, vector<32x32xbf16>, vector<1x32xf32> -> vector<1x32xf32>
    %270 = arith.addf %263, %269 : vector<1x32xf32>
    %271 = vector.extract_strided_slice %164 {offsets = [3, 6, 0], sizes = [1, 1, 32], strides = [1, 1, 1]} : vector<4x8x32xf32> to vector<1x1x32xf32>
    %272 = vector.shape_cast %271 : vector<1x1x32xf32> to vector<1x32xf32>
    %273 = arith.truncf %272 : vector<1x32xf32> to vector<1x32xbf16>
    %c15_144 = arith.constant 15 : index
    %c0_145 = arith.constant 0 : index
    %c0_146 = arith.constant 0 : index
    %274 = vector.load %arg4[%c15_144, %c0_145, %c0_146] : memref<16x32x32xbf16, #tpu.memory_space<vmem>>, vector<1x32x32xbf16>
    %275 = vector.shape_cast %274 : vector<1x32x32xbf16> to vector<32x32xbf16>
    %cst_147 = arith.constant dense<0.000000e+00> : vector<1x32xf32>
    %276 = tpu.matmul %273, %275, %cst_147 {dimension_numbers = #tpu.dot_dimension_numbers<[1], [0], [0], [1], [0, 0, 1, 1], [], []>} : vector<1x32xbf16>, vector<32x32xbf16>, vector<1x32xf32> -> vector<1x32xf32>
    %277 = arith.addf %270, %276 : vector<1x32xf32>
    %278 = arith.truncf %277 : vector<1x32xf32> to vector<1x32xbf16>
    %c0_148 = arith.constant 0 : index
    %c0_149 = arith.constant 0 : index
    %279 = vector.load %arg5[%c0_148, %c0_149] : memref<32x128xbf16, #tpu.memory_space<vmem>>, vector<32x128xbf16>
    %cst_150 = arith.constant dense<0.000000e+00> : vector<1x128xf32>
    %280 = tpu.matmul %278, %279, %cst_150 {dimension_numbers = #tpu.dot_dimension_numbers<[1], [0], [0], [1], [0, 0, 1, 1], [], []>} : vector<1x32xbf16>, vector<32x128xbf16>, vector<1x128xf32> -> vector<1x128xf32>
    %c0_151 = arith.constant 0 : index
    %c0_152 = arith.constant 0 : index
    %281 = vector.load %arg6[%c0_151, %c0_152] : memref<1x128xf32, #tpu.memory_space<vmem>>, vector<1x128xf32>
    %282 = arith.addf %280, %281 : vector<1x128xf32>
    %283 = arith.truncf %282 : vector<1x128xf32> to vector<1x128xbf16>
    %c0_153 = arith.constant 0 : index
    %c0_154 = arith.constant 0 : index
    %284 = vector.load %arg7[%c0_153, %c0_154] : memref<128x16xbf16, #tpu.memory_space<vmem>>, vector<128x16xbf16>
    %cst_155 = arith.constant dense<0.000000e+00> : vector<1x16xf32>
    %285 = tpu.matmul %283, %284, %cst_155 {dimension_numbers = #tpu.dot_dimension_numbers<[1], [0], [0], [1], [0, 0, 1, 1], [], []>} : vector<1x128xbf16>, vector<128x16xbf16>, vector<1x16xf32> -> vector<1x16xf32>
    %286 = arith.truncf %285 : vector<1x16xf32> to vector<1x16xbf16>
    %c0_156 = arith.constant 0 : index
    %c0_157 = arith.constant 0 : index
    %287 = vector.load %arg8[%c0_156, %c0_157] : memref<16x32xbf16, #tpu.memory_space<vmem>>, vector<16x32xbf16>
    %cst_158 = arith.constant dense<0.000000e+00> : vector<1x32xf32>
    %288 = tpu.matmul %286, %287, %cst_158 {dimension_numbers = #tpu.dot_dimension_numbers<[1], [0], [0], [1], [0, 0, 1, 1], [], []>} : vector<1x16xbf16>, vector<16x32xbf16>, vector<1x32xf32> -> vector<1x32xf32>
    %c0_159 = arith.constant 0 : index
    %c0_160 = arith.constant 0 : index
    %289 = vector.load %arg9[%c0_159, %c0_160] : memref<1x32xf32, #tpu.memory_space<vmem>>, vector<1x32xf32>
    %290 = arith.addf %288, %289 : vector<1x32xf32>
    %291 = arith.truncf %290 : vector<1x32xf32> to vector<1x32xbf16>
    %c0_161 = arith.constant 0 : index
    %c0_162 = arith.constant 0 : index
    %292 = vector.load %arg10[%c0_161, %c0_162] : memref<32x10xbf16, #tpu.memory_space<vmem>>, vector<32x10xbf16>
    %cst_163 = arith.constant dense<0.000000e+00> : vector<1x10xf32>
    %293 = tpu.matmul %291, %292, %cst_163 {dimension_numbers = #tpu.dot_dimension_numbers<[1], [0], [0], [1], [0, 0, 1, 1], [], []>} : vector<1x32xbf16>, vector<32x10xbf16>, vector<1x10xf32> -> vector<1x10xf32>
    %c0_164 = arith.constant 0 : index
    %c0_165 = arith.constant 0 : index
    %294 = vector.load %arg11[%c0_164, %c0_165] : memref<1x10xf32, #tpu.memory_space<vmem>>, vector<1x10xf32>
    %295 = arith.addf %293, %294 : vector<1x10xf32>
    %296 = vector.shape_cast %295 : vector<1x10xf32> to vector<1x1x10xf32>
    %c0_166 = arith.constant 0 : index
    %c0_167 = arith.constant 0 : index
    %c0_168 = arith.constant 0 : index
    %297 = vector.load %arg12[%c0_166, %c0_167, %c0_168] : memref<1x1x10xf32, #tpu.memory_space<vmem>>, vector<1x1x10xf32>
    tpu.vector_store %arg12[%c0_166, %c0_167, %c0_168], %296 {strides = array<i32>} : memref<1x1x10xf32, #tpu.memory_space<vmem>>, vector<1x1x10xf32>,
    return
  }
  func.func @transform_0(%arg0: i32) -> (i32, i32, i32, i32) {
    %c0_i32 = arith.constant 0 : i32
    %c0_i32_0 = arith.constant 0 : i32
    %c0_i32_1 = arith.constant 0 : i32
    %c0_i32_2 = arith.constant 0 : i32
    return %arg0, %c0_i32, %c0_i32_0, %c0_i32_1 : i32, i32, i32, i32
  }
  func.func @transform_1(%arg0: i32) -> (i32, i32, i32) {
    %c0_i32 = arith.constant 0 : i32
    %c0_i32_0 = arith.constant 0 : i32
    %c0_i32_1 = arith.constant 0 : i32
    %c0_i32_2 = arith.constant 0 : i32
    return %c0_i32, %c0_i32_0, %c0_i32_1 : i32, i32, i32
  }
  func.func @transform_2(%arg0: i32) -> (i32, i32) {
    %c0_i32 = arith.constant 0 : i32
    %c0_i32_0 = arith.constant 0 : i32
    %c0_i32_1 = arith.constant 0 : i32
    return %c0_i32, %c0_i32_0 : i32, i32
  }
  func.func @transform_3(%arg0: i32) -> (i32, i32, i32) {
    %c0_i32 = arith.constant 0 : i32
    %c0_i32_0 = arith.constant 0 : i32
    %c0_i32_1 = arith.constant 0 : i32
    %c0_i32_2 = arith.constant 0 : i32
    return %c0_i32, %c0_i32_0, %c0_i32_1 : i32, i32, i32
  }
  func.func @transform_4(%arg0: i32) -> (i32, i32) {
    %c0_i32 = arith.constant 0 : i32
    %c0_i32_0 = arith.constant 0 : i32
    %c0_i32_1 = arith.constant 0 : i32
    return %c0_i32, %c0_i32_0 : i32, i32
  }
  func.func @transform_5(%arg0: i32) -> (i32, i32) {
    %c0_i32 = arith.constant 0 : i32
    %c0_i32_0 = arith.constant 0 : i32
    %c0_i32_1 = arith.constant 0 : i32
    return %c0_i32, %c0_i32_0 : i32, i32
  }
  func.func @transform_6(%arg0: i32) -> (i32, i32) {
    %c0_i32 = arith.constant 0 : i32
    %c0_i32_0 = arith.constant 0 : i32
    %c0_i32_1 = arith.constant 0 : i32
    return %c0_i32, %c0_i32_0 : i32, i32
  }
  func.func @transform_7(%arg0: i32) -> (i32, i32) {
    %c0_i32 = arith.constant 0 : i32
    %c0_i32_0 = arith.constant 0 : i32
    %c0_i32_1 = arith.constant 0 : i32
    return %c0_i32, %c0_i32_0 : i32, i32
  }
  func.func @transform_8(%arg0: i32) -> (i32, i32) {
    %c0_i32 = arith.constant 0 : i32
    %c0_i32_0 = arith.constant 0 : i32
    %c0_i32_1 = arith.constant 0 : i32
    return %c0_i32, %c0_i32_0 : i32, i32
  }
  func.func @transform_9(%arg0: i32) -> (i32, i32) {
    %c0_i32 = arith.constant 0 : i32
    %c0_i32_0 = arith.constant 0 : i32
    %c0_i32_1 = arith.constant 0 : i32
    return %c0_i32, %c0_i32_0 : i32, i32
  }
  func.func @transform_10(%arg0: i32) -> (i32, i32) {
    %c0_i32 = arith.constant 0 : i32
    %c0_i32_0 = arith.constant 0 : i32
    %c0_i32_1 = arith.constant 0 : i32
    return %c0_i32, %c0_i32_0 : i32, i32
  }
  func.func @transform_11(%arg0: i32) -> (i32, i32, i32) {
    %c0_i32 = arith.constant 0 : i32
    %c0_i32_0 = arith.constant 0 : i32
    %c0_i32_1 = arith.constant 0 : i32
    return %arg0, %c0_i32, %c0_i32_0 : i32, i32, i32
  }
}

</mosaic_0001>

<bundles_post_ra>
// kernel: forward_pallas.3
= control target key start
LH: loop header
LB: loop body
LE: loop exit
PB: predicated region body
PF: predicated region fallthrough
CT: control target
= control target key end

     0   :  { %s7192_s0 = inlined_call_operand.vmem [shape: bf16[2,12,12,16], index: 0, kind: input, shape index: {}]   ;;  %s7193_s1 = inlined_call_operand.vmem [shape: bf16[25,16,32], index: 1, kind: input, shape index: {}]   ;;  %s7194_s2 = inlined_call_operand.vmem [shape: f32[1,32], index: 2, kind: input, shape index: {}]   ;;  %s7195_s3 = inlined_call_operand.vmem [shape: bf16[16,32,32], index: 3, kind: input, shape index: {}]   ;;  %s7196_s4 = inlined_call_operand.vmem [shape: bf16[32,128], index: 4, kind: input, shape index: {}]   ;;  %s7197_s5 = inlined_call_operand.vmem [shape: f32[1,128], index: 5, kind: input, shape index: {}]   ;;  %s7198_s6 = inlined_call_operand.vmem [shape: bf16[128,16], index: 6, kind: input, shape index: {}]   ;;  %s7199_s7 = inlined_call_operand.vmem [shape: bf16[16,32], index: 7, kind: input, shape index: {}]   ;;  %s7200_s8 = inlined_call_operand.vmem [shape: f32[1,32], index: 8, kind: input, shape index: {}]   ;;  %s7201_s9 = inlined_call_operand.vmem [shape: bf16[32,10], index: 9, kind: input, shape index: {}]   ;;  %s7202_s10 = inlined_call_operand.vmem [shape: f32[1,10], index: 10, kind: input, shape index: {}]   ;;  %s7203_s11 = inlined_call_operand.hbm [shape: f32[2,1,10], index: 11, kind: output, shape index: {}]  }
   0x1   :  { %7236 = sst [smem:[#allocation16_spill]] %s7192_s0 }
   0x2   :  { %16 = vsyncpa [#allocation3], 0 }
   0x3   :  { %18 = vsyncpa [#allocation3 + $0x1], 0  ;;  %s5786_s17 = smov 0   ;;  %s5788_s18 = smov 0  }
   0x4   :  { %s5790_s19 = smov 0   ;;  %s5792_s20 = smov 0  }
   0x5 LB: > { %s5807_s21 = sadd.s32 4294967295, %s5721_s20   ;;  %s4543_s22 = sadd.s32 4294967294, %s5721_s20   ;;  %s5721_s20 = sphi %s5792_s20, %s7295_s20   ;;  %s5717_s19 = sphi %s5790_s19, %s7294_s19   ;;  %s5713_s18 = sphi %s5788_s18, %s7293_s18   ;;  %s5709_s17 = sphi %s5786_s17, %s7292_s17  }
   0x6   : > { %s5811_s23 = sadd.s32 1, %s5721_s20   ;;  %s267_s24 = sadd.s32 1, %s5717_s19 }
   0x7   : > { %s264_s25 = ssub.s32 %s5721_s20, %s5811_s23  ;;  %p277_p0 = scmp.ne.s32.totalorder %s5717_s19, %s5713_s18 }
   0x8   : > { %p265_p1 = scmp.eq.s32.totalorder %s264_s25, 0  ;;  %p278_p2 = scmp.eq.s32.totalorder %s5807_s21, 1 }
   0x9   : > { %p283_p3 = scmp.ne.s32.totalorder %s5713_s18, %s5709_s17  ;;  %p284_p4 = scmp.eq.s32.totalorder %s4543_s22, 1 }
   0xa   : > { %s5822_s26 = scalar_select %p265_p1, %s5717_s19, %s267_s24  }
   0xb   : > { %p5824_p5 = por %p278_p2, %p277_p0  ;;  %p5828_p6 = por %p284_p4, %p283_p3 }
   0xc   : > { %p4546_p7 = scmp.ge.s32.totalorder %s5721_s20, 1  ;;  %p340_p8 = scmp.lt.s32.totalorder %s5721_s20, 3 }
   0xe   : > { %p341_p9 = pnand %p4546_p7, %p340_p8 }
  0x10   : > { %344 = sbr.rel (%p341_p9) target bundleno = 1521 (0x5f1), region = 64 }
  0x15   : > { %v5580_v0 = vld [vmem:[%s7193_s1 + $0x8] sm:$0xff]   ;;  %p379_p10 = scmp.lt.s32.totalorder %s5807_s21, 1  ;;  %v5581_v1 = vld [vmem:[%s7193_s1] sm:$0xff]   ;;  %v5845_v2 = vld [vmem:[%s7193_s1 + $0x10] sm:$0xff]   ;;  %s7239_s0 = sld [smem:[#allocation16_spill]]  ;;  %vm547_vm0 = vcmask 130048  }
  0x16   : > { %5118 = vmatprep.subr.bf16.mxu0 %v5580_v0  ;;  %5128 = vmatprep.subr.bf16.mxu1 %v5581_v1  ;;  %v5851_v3 = vld [vmem:[%s7193_s1 + $0x18] sm:$0xff]   ;;  %vm411_vm1 = vsmask.f32 3328  ;;  %vm412_vm2 = vsmask.f32 7440  ;;  %vm736_vm4 = vcmask 1042432  }
  0x17   : > { %s380_s14 = scalar_select %p379_p10, %s5807_s21, 1  ;;  %5119 = vmatpush3.bf16.msra.mxu0 %v5580_v0  ;;  %5129 = vmatpush3.bf16.msra.mxu1 %v5581_v1  ;;  %vm5905_vm3 = vmor %vm411_vm1, %vm412_vm2  ;;  %vm737_vm5 = vcmask 1046532   ;;  %vm877_vm6 = vsmask.f32 2304  ;;  %vm878_vm7 = vsmask.f32 6416 }
  0x18   : > { %5138 = vmatprep.subr.bf16.mxu0 %v5845_v2  ;;  %5148 = vmatprep.subr.bf16.mxu1 %v5851_v3  ;;  %vm6052_vm8 = vmor %vm736_vm4, %vm737_vm5  ;;  %vm1066_vm10 = vcmask 1041408   ;;  %vm1067_vm11 = vcmask 1045508   ;;  %vm5724_vm13 = vmmov 0   ;;  %vm3166_vm14 = vcmask 261120   ;;  %s377_s30 = sand.u32 1, %s5713_s18   ;;  %s4925_s15 = sshll.u32 %s5807_s21, 4 }
  0x19   : > { %s5538_s22 = smul.u32 96, %s380_s14  ;;  %vm6076_vm9 = vmor %vm877_vm6, %vm878_vm7  ;;  %s378_s16 = scalar_lea.vmem [#allocation2], %s377_s30  ;;  %vm4473_vm15 = vcmask 73728  }
  0x1a   : > { %vm6252_vm12 = vmor %vm1066_vm10, %vm1067_vm11  ;;  %s4476_s29 = scalar_lea.sflag [#allocation3], %s377_s30  ;;  %s5725_s13 = smov [#allocation2]  }
  0x1b   : > { %s5856_s12 = scalar_lea.vmem %s7239_s0, %s5538_s22  ;;  %s4488_s22 = sshll.u32 %s378_s16, 4  ;;  %s7153_s22 = int_to_ptr.vmem [resolvable:$true] %s4488_s22 }
  0x1c   : > { %v5860_v4 = vld [vmem:[%s5856_s12] sm:$0xf]  ;;  %v5863_v5 = vld [vmem:[%s5856_s12 + $0x4] sm:$0x3]  ;;  %v5866_v6 = vld [vmem:[%s5856_s12 + $0x8] sm:$0xf] }
  0x1d   : > { %v5869_v7 = vld [vmem:[%s5856_s12 + $0xc] sm:$0x3]  ;;  %v5872_v8 = vld [vmem:[%s5856_s12 + $0x10] sm:$0xf]  ;;  %v4559_v9 = vcombine.low %v5860_v4, %v5866_v6  ;;  %v5877_v10 = vld [vmem:[%s5856_s12 + $0x14] sm:$0x3] }
  0x1e   : > { %v5880_v11 = vld [vmem:[%s5856_s12 + $0x18] sm:$0xf]  ;;  %v415_v12 = vshrl.u32 %v5860_v4, 16  ;;  %v418_v13 = vshll.u32 %v5860_v4, 16  ;;  %v424_v14 = vshll.u32 %v5863_v5, 16  ;;  %v429_v15 = vshrl.u32 %v5866_v6, 16 }
  0x1f   : > { %5130 = vmatprep.mubr.msk.bf16.mxu1 %vm547_vm0, %v4559_v9  ;;  %v5888_v16 = vld [vmem:[%s5856_s12 + $0x1c] sm:$0x3]  ;;  %v432_v17 = vshll.u32 %v5866_v6, 16  ;;  %v438_v18 = vshll.u32 %v5869_v7, 16  ;;  %v443_v19 = vshrl.u32 %v5872_v8, 16  ;;  %v446_v20 = vshll.u32 %v5872_v8, 16 }
  0x20   : > { %v5895_v21 = vld [vmem:[%s5856_s12 + $0x20] sm:$0xf]  ;;  %v417_v22 = vrot.slane %v415_v12, 4  ;;  %v420_v23 = vrot.slane %v418_v13, 5  ;;  %v426_v24 = vrot.slane %v424_v14, 5  ;;  %v431_v25 = vrot.slane %v429_v15, 4 }
  0x21   : > { %v434_v26 = vrot.slane %v432_v17, 5  ;;  %v440_v27 = vrot.slane %v438_v18, 5  ;;  %v445_v28 = vrot.slane %v443_v19, 4  ;;  %v448_v29 = vrot.slane %v446_v20, 5  ;;  %v5901_v34 = vld [vmem:[%s5856_s12 + $0x24] sm:$0x3] }
  0x22   : > { %v421_v30 = vor.u32 %v420_v23, %v417_v22  ;;  %v452_v31 = vshll.u32 %v5877_v10, 16  ;;  %v457_v32 = vshrl.u32 %v5880_v11, 16  ;;  %v460_v33 = vshll.u32 %v5880_v11, 16  ;;  %v5953_v23 = vld [vmem:[%s5856_s12 + $0x28] sm:$0xf]  ;;  %s5661_s21 = scalar_lea.vmem %s7153_s22, 16 }
  0x23   : > { %v435_v36 = vor.u32 %v434_v26, %v431_v25  ;;  %v449_v37 = vor.u32 %v448_v29, %v445_v28  ;;  %v466_v38 = vshll.u32 %v5888_v16, 16  ;;  %v471_v39 = vshrl.u32 %v5895_v21, 16  ;;  %p5662_p11 = scmp.ne.s32.totalorder %s7153_s22, %s5661_s21  ;;  %s5665_s14 = sshll.u32 %s5725_s13, 4  ;;  %s5666_s14 = int_to_ptr.vmem [resolvable:$false] %s5665_s14 }
  0x24   : > { %v422_v40 = vrot.slane %v421_v30, 4  ;;  %v454_v41 = vrot.slane %v452_v31, 5  ;;  %v459_v42 = vrot.slane %v457_v32, 4  ;;  %v462_v43 = vrot.slane %v460_v33, 5  ;;  %v5973_v30 = vld [vmem:[%s5856_s12 + $0x30] sm:$0xf]  ;;  %p5668_p0 = scmp.lt.s32.totalorder %s7153_s22, %s5666_s14 }
  0x25   : > { %v436_v44 = vrot.slane %v435_v36, 4  ;;  %v450_v45 = vrot.slane %v449_v37, 4  ;;  %v468_v46 = vrot.slane %v466_v38, 5  ;;  %v473_v47 = vrot.slane %v471_v39, 4  ;;  %v5976_v36 = vld [vmem:[%s5856_s12 + $0x34] sm:$0x3]  ;;  %p5663_p12 = pnand %p5662_p11, %p5824_p5 }
  0x26   : > { %v427_v48 = vsel %vm5905_vm3, %v422_v40, %v426_v24  ;;  %v463_v49 = vor.u32 %v462_v43, %v459_v42  ;;  %v474_v50 = vshll.u32 %v5895_v21, 16  ;;  %v7212_v51 = vshll.u32 %v5901_v34, 16  ;;  %s5667_s24 = scalar_lea.vmem %s5666_s14, 32 }
  0x27   : > { %v5919_v52 = vsel %vm5905_vm3, %v436_v44, %v440_v27  ;;  %v5923_v53 = vsel %vm5905_vm3, %v450_v45, %v454_v41  ;;  %v749_v54 = vrot.slane %v5877_v10, 5  ;;  %v753_v58 = vrot.slane %v5888_v16, 5  ;;  %v5963_v27 = vld [vmem:[%s5856_s12 + $0x2c] sm:$0x3]  ;;  %v6005_v44 = vld [vmem:[%s5856_s12 + $0x38] sm:$0xf]  ;;  %p5664_p13 = pneg %p5663_p12  ;;  %p5669_p1 = scmp.lt.s32.totalorder %s5667_s24, %s5661_s21 }
  0x28   : > { %v464_v55 = vrot.slane %v463_v49, 4  ;;  %v476_v56 = vrot.slane %v474_v50, 5  ;;  %v4550_v57 = vcombine.low %v427_v48, %v5919_v52  ;;  %v482_v59 = vrot.slane %v7212_v51, 5  ;;  %v6016_v49 = vld [vmem:[%s5856_s12 + $0x3c] sm:$0x3] }
  0x29   : > { %v5932_v60 = vrot.slane %v415_v12, 5  ;;  %v5934_v61 = vrot.slane %v418_v13, 6  ;;  %v5936_v62 = vrot.slane %v424_v14, 6  ;;  %v5943_v1 = vrot.slane %v429_v15, 5  ;;  %v5958_v15 = vld [vmem:[%s7193_s1 + $0x20] sm:$0xff]   ;;  %p5670_p2 = por %p5669_p1, %p5668_p0 }
  0x2a   : > { %v5940_v63 = vsel %vm5905_vm3, %v464_v55, %v468_v46  ;;  %v477_v0 = vor.u32 %v476_v56, %v473_v47  ;;  %5120 = vmatprep.mubr.msk.bf16.mxu0 %vm547_vm0, %v4550_v57  ;;  %v5945_v9 = vrot.slane %v432_v17, 6  ;;  %v900_v13 = vrot.slane %v443_v19, 5 }
  0x2b   : > { %v5949_v12 = vcombine.low %v5923_v53, %v5940_v63  ;;  %v901_v14 = vrot.slane %v446_v20, 6  ;;  %v904_v22 = vshrl.u32 %v5877_v10, 16  ;;  %v5960_v24 = vrot.slane %v452_v31, 6  ;;  %p5671_p3 = pnand %p5670_p2, %p5664_p13 }
  0x2c   : > { %v478_v17 = vrot.slane %v477_v0, 4  ;;  %v910_v25 = vrot.slane %v457_v32, 5  ;;  %v911_v26 = vrot.slane %v460_v33, 6  ;;  %v5965_v28 = vrot.slane %v438_v18, 6  ;;  %v5985_v18 = vld [vmem:[%s7193_s1 + $0x28] sm:$0xff]   ;;  %v5600_v33 = vld [vmem:[%s7193_s1 + $0x60] sm:$0xff]  }
  0x2d   : > { %v902_v19 = vor.u32 %v901_v14, %v900_v13  ;;  %v5967_v20 = vrot.slane %v904_v22, 5  ;;  %v914_v29 = vshrl.u32 %v5888_v16, 16  ;;  %5121 = vmatmul.mubr.msk.bf16.vlgmr.msra.gmra.mxu0 %vm547_vm0, %v5949_v12  ;;  %v5978_v32 = vrot.slane %v466_v38, 6 }
  0x2e   : > { %v912_v31 = vor.u32 %v911_v26, %v910_v25  ;;  %5139 = vmatpush3.bf16.msra.mxu0 %v5845_v2  ;;  %v5989_v37 = vsel %vm5905_vm3, %v478_v17, %v482_v59  ;;  %v6001_v42 = vcombine.low %v5872_v8, %v5880_v11  ;;  %v7211_v43 = vshrl.u32 %v5953_v23, 16 }
  0x2f   : > { %v5991_v40 = vrot.slane %v902_v19, 4  ;;  %5158 = vmatprep.subr.bf16.mxu0 %v5958_v15  ;;  %v908_v2 = vor.u32 %v5960_v24, %v5967_v20  ;;  %v5997_v41 = vrot.slane %v914_v29, 5  ;;  %v7210_v46 = vshll.u32 %v5953_v23, 16 }
  0x30   : > { %v6007_v45 = vrot.slane %v912_v31, 4  ;;  %v7209_v47 = vshll.u32 %v5963_v27, 16  ;;  %v6013_v48 = vcombine.low %v5895_v21, %v5953_v23  ;;  %5131 = vmatmul.mubr.msk.bf16.vlgmr.msra.gmra.mxu1 %vm547_vm0, %v6001_v42  ;;  %v487_v55 = vrot.slane %v7211_v43, 4 }
  0x31   : > { %v7208_v56 = vshrl.u32 %v5973_v30, 16  ;;  %v7206_v57 = vshll.u32 %v5973_v30, 16  ;;  %v7204_v59 = vshll.u32 %v5976_v36, 16  ;;  %v490_v0 = vrot.slane %v7210_v46, 5  ;;  %5149 = vmatpush3.bf16.msra.mxu1 %v5851_v3 }
  0x32   : > { %v496_v13 = vrot.slane %v7209_v47, 5  ;;  %5134 = vmatprep.mubr.msk.bf16.mxu1 %vm547_vm0, %v6013_v48  ;;  %v7205_v14 = vshrl.u32 %v6005_v44, 16  ;;  %v7207_v22 = vshll.u32 %v6005_v44, 16  ;;  %v7213_v19 = vshll.u32 %v6016_v49, 16  ;;  %5168 = vmatprep.subr.bf16.mxu1 %v5985_v18 }
  0x33   : > { %v501_v17 = vrot.slane %v7208_v56, 4  ;;  %v504_v25 = vrot.slane %v7206_v57, 5  ;;  %v510_v26 = vrot.slane %v7204_v59, 5  ;;  %v491_v29 = vor.u32 %v490_v0, %v487_v55 }
  0x34   : > { %v515_v31 = vrot.slane %v7205_v14, 4  ;;  %v518_v3 = vrot.slane %v7207_v22, 5  ;;  %v6048_v38 = vcombine.low %v5973_v30, %v6005_v44  ;;  %v524_v55 = vrot.slane %v7213_v19, 5 }
  0x35   : > { %v505_v59 = vor.u32 %v504_v25, %v501_v17  ;;  %v4568_v0 = vrot.slane %v5860_v4, 9  ;;  %v741_v14 = vrot.slane %v5863_v5, 5  ;;  %v492_v57 = vrot.slane %v491_v29, 4 }
  0x36   : > { %7242 = vst [vmem:[#allocation5_spill] sm:$0xff] %v6048_v38  ;;  %v519_v22 = vor.u32 %v518_v3, %v515_v31  ;;  %v4569_v56 = vrot.slane %v5866_v6, 9  ;;  %v745_v47 = vrot.slane %v5869_v7, 5  ;;  %v4570_v51 = vrot.slane %v5872_v8, 9 }
  0x37   : > { %v506_v46 = vrot.slane %v505_v59, 4  ;;  %v742_v43 = vsel %vm6052_vm8, %v4568_v0, %v741_v14  ;;  %v4571_v17 = vrot.slane %v5880_v11, 9  ;;  %v6068_v25 = vsel %vm5905_vm3, %v492_v57, %v496_v13 }
  0x38   : > { %v520_v19 = vrot.slane %v519_v22, 4  ;;  %v6072_v29 = vsel %vm6052_vm8, %v4569_v56, %v745_v47  ;;  %v882_v14 = vor.u32 %v5934_v61, %v5932_v60  ;;  %v918_v31 = vor.u32 %v5978_v32, %v5997_v41  ;;  %5135 = vmatmul.mubr.msk.bf16.gmra.mxu1 %vm547_vm0, %v6048_v38 }
  0x39   : > { %v6086_v57 = vcombine.low %v5989_v37, %v6068_v25  ;;  %v6090_v47 = vsel %vm5905_vm3, %v506_v46, %v510_v26  ;;  %v4578_v60 = vcombine.low %v742_v43, %v6072_v29  ;;  %v6103_v61 = vsel %vm6052_vm8, %v4570_v51, %v749_v54 }
  0x3a   : > { %v6096_v56 = vsel %vm5905_vm3, %v520_v19, %v524_v55  ;;  %v884_v32 = vshrl.u32 %v5863_v5, 16  ;;  %v883_v46 = vrot.slane %v882_v14, 4  ;;  %v892_v13 = vor.u32 %v5945_v9, %v5943_v1 }
  0x3b   : > { %7247 = vst [vmem:[#allocation6_spill] sm:$0xff] %v6086_v57  ;;  %5124 = vmatprep.mubr.msk.bf16.mxu0 %vm547_vm0, %v6086_v57  ;;  %v6110_v41 = vcombine.low %v6090_v47, %v6096_v56  ;;  %v894_v43 = vshrl.u32 %v5869_v7, 16  ;;  %v6119_v51 = vsel %vm6052_vm8, %v4571_v17, %v753_v58  ;;  %v6127_v22 = vsel %vm6076_vm9, %v5991_v40, %v908_v2 }
  0x3c   : > { %v886_v54 = vrot.slane %v884_v32, 5  ;;  %v4572_v26 = vrot.slane %v5895_v21, 9  ;;  %v893_v1 = vrot.slane %v892_v13, 4  ;;  %v6135_v58 = vsel %vm6076_vm9, %v6007_v45, %v918_v31 }
  0x3d   : > { %7248 = vst [vmem:[#allocation7_spill] sm:$0xff] %v6110_v41  ;;  %5125 = vmatmul.mubr.msk.bf16.gmra.mxu0 %vm547_vm0, %v6110_v41  ;;  %v896_v9 = vrot.slane %v894_v43, 5  ;;  %v757_v19 = vrot.slane %v5901_v34, 5  ;;  %v4573_v20 = vrot.slane %v5953_v23, 9  ;;  %v761_v40 = vrot.slane %v5963_v27, 5 }
  0x3e   : > { %5140 = vmatprep.mubr.msk.bf16.mxu0 %vm547_vm0, %v4578_v60  ;;  %v888_v24 = vor.u32 %v5936_v62, %v886_v54  ;;  %v4574_v2 = vrot.slane %v5973_v30, 9  ;;  %v765_v45 = vrot.slane %v5976_v36, 5  ;;  %v4575_v0 = vrot.slane %v6005_v44, 9 }
  0x3f   : > { %v898_v3 = vor.u32 %v5965_v28, %v896_v9  ;;  %v6146_v55 = vsel %vm6052_vm8, %v4572_v26, %v757_v19  ;;  %v6152_v17 = vcombine.low %v6103_v61, %v6119_v51  ;;  %v6158_v14 = vsel %vm6052_vm8, %v4573_v20, %v761_v40 }
  0x40   : > { %v889_v62 = vsel %vm6076_vm9, %v883_v46, %v888_v24  ;;  %v769_v28 = vrot.slane %v6016_v49, 5  ;;  %v6167_v60 = vcombine.low %v6127_v22, %v6135_v58  ;;  %v6171_v32 = vcombine.low %v6146_v55, %v6158_v14 }
  0x41   : > { %7249 = vst [vmem:[#allocation8_spill] sm:$0xff] %v6152_v17  ;;  %v6163_v31 = vsel %vm6076_vm9, %v893_v1, %v898_v3  ;;  %v920_v46 = vrot.slane %v471_v39, 5  ;;  %v6178_v43 = vsel %vm6052_vm8, %v4574_v2, %v765_v45  ;;  %v921_v54 = vrot.slane %v474_v50, 6  ;;  %v6196_v2 = vld [vmem:[%s7193_s1 + $0x30] sm:$0xff]  }
  0x42   : > { %7250 = vst [vmem:[#allocation9_spill] sm:$0xff] %v6167_v60  ;;  %v4589_v13 = vcombine.low %v889_v62, %v6163_v31  ;;  %v924_v26 = vshrl.u32 %v5901_v34, 16  ;;  %v6185_v1 = vsel %vm6052_vm8, %v4575_v0, %v769_v28  ;;  %v7251_v9 = vshll.u32 %v5901_v34, 16  ;;  %v6205_v28 = vld [vmem:[%s7193_s1 + $0x38] sm:$0xff]  }
  0x43   : > { %v7252_v39 = vshrl.u32 %v5953_v23, 16  ;;  %v7253_v20 = vshll.u32 %v5953_v23, 16  ;;  %v922_v50 = vor.u32 %v921_v54, %v920_v46  ;;  %v934_v45 = vshrl.u32 %v5963_v27, 16 }
  0x44   : > { %v927_v19 = vrot.slane %v7251_v9, 6  ;;  %5150 = vmatprep.mubr.msk.bf16.mxu1 %vm547_vm0, %v4589_v13  ;;  %v926_v3 = vrot.slane %v924_v26, 5  ;;  %v7254_v0 = vshll.u32 %v5963_v27, 16  ;;  %v7255_v46 = vshrl.u32 %v5973_v30, 16 }
  0x45   : > { %v930_v24 = vrot.slane %v7252_v39, 5  ;;  %v931_v40 = vrot.slane %v7253_v20, 6  ;;  %5141 = vmatmul.mubr.msk.bf16.vlgmr.msra.gmra.mxu0 %vm547_vm0, %v6152_v17  ;;  %5151 = vmatmul.mubr.msk.bf16.vlgmr.msra.gmra.mxu1 %vm547_vm0, %v6167_v60  ;;  %v7256_v54 = vshll.u32 %v5973_v30, 16  ;;  %v944_v39 = vshrl.u32 %v5976_v36, 16 }
  0x46   : > { %v937_v62 = vrot.slane %v7254_v0, 6  ;;  %v940_v13 = vrot.slane %v7255_v46, 5  ;;  %5159 = vmatpush3.bf16.msra.mxu0 %v5958_v15  ;;  %5144 = vmatprep.mubr.msk.bf16.mxu0 %vm547_vm0, %v6171_v32  ;;  %v923_v20 = vrot.slane %v922_v50, 4  ;;  %v928_v0 = vor.u32 %v927_v19, %v926_v3 }
  0x47   : > { %v932_v9 = vor.u32 %v931_v40, %v930_v24  ;;  %v941_v26 = vrot.slane %v7256_v54, 6  ;;  %v936_v17 = vrot.slane %v934_v45, 5  ;;  %v7257_v41 = vshll.u32 %v5976_v36, 16  ;;  %5169 = vmatpush3.bf16.msra.mxu1 %v5985_v18  ;;  %5178 = vmatprep.subr.bf16.mxu0 %v6196_v2 }
  0x48   : > { %v946_v57 = vrot.slane %v944_v39, 5  ;;  %v7258_v46 = vshrl.u32 %v6005_v44, 16  ;;  %v6227_v15 = vsel %vm6076_vm9, %v923_v20, %v928_v0  ;;  %v7259_v19 = vshll.u32 %v6005_v44, 16  ;;  %5188 = vmatprep.subr.bf16.mxu1 %v6205_v28 }
  0x49   : > { %v947_v60 = vrot.slane %v7257_v41, 6  ;;  %v933_v24 = vrot.slane %v932_v9, 4  ;;  %v942_v40 = vor.u32 %v941_v26, %v940_v13  ;;  %v938_v50 = vor.u32 %v937_v62, %v936_v17 }
  0x4a   : > { %v950_v38 = vrot.slane %v7258_v46, 5  ;;  %v951_v3 = vrot.slane %v7259_v19, 6  ;;  %v954_v41 = vshrl.u32 %v6016_v49, 16  ;;  %v6235_v45 = vcombine.low %v6178_v43, %v6185_v1 }
  0x4b   : > { %v943_v9 = vrot.slane %v942_v40, 4  ;;  %v948_v18 = vor.u32 %v947_v60, %v946_v57  ;;  %v7260_v13 = vshll.u32 %v6016_v49, 16  ;;  %v6241_v26 = vsel %vm6076_vm9, %v933_v24, %v938_v50 }
  0x4c   : > { %v952_v17 = vor.u32 %v951_v3, %v950_v38  ;;  %v956_v62 = vrot.slane %v954_v41, 5  ;;  %v6245_v39 = vcombine.low %v6227_v15, %v6241_v26  ;;  %v4598_v57 = vrot.slane %v5860_v4, 10 }
  0x4d   : > { %v957_v54 = vrot.slane %v7260_v13, 6  ;;  %v6249_v20 = vsel %vm6076_vm9, %v943_v9, %v948_v18  ;;  %v1071_v38 = vrot.slane %v5863_v5, 6  ;;  %v4599_v24 = vrot.slane %v5866_v6, 10  ;;  %5145 = vmatmul.mubr.msk.bf16.gmra.mxu0 %vm547_vm0, %v6235_v45 }
  0x4e   : > { %v953_v60 = vrot.slane %v952_v17, 4  ;;  %5154 = vmatprep.mubr.msk.bf16.mxu1 %vm547_vm0, %v6245_v39  ;;  %v1075_v46 = vrot.slane %v5869_v7, 6  ;;  %v4600_v4 = vrot.slane %v5872_v8, 10  ;;  %v4601_v50 = vrot.slane %v5880_v11, 10 }
  0x4f   : > { %v958_v0 = vor.u32 %v957_v54, %v956_v62  ;;  %v4619_v19 = vcombine.low %v5866_v6, %v5872_v8  ;;  %v1072_v3 = vsel %vm6252_vm12, %v4598_v57, %v1071_v38  ;;  %v4602_v41 = vrot.slane %v5895_v21, 10  ;;  %v6316_v38 = vld [vmem:[%s7193_s1 + $0x40] sm:$0xff]  }
  0x50   : > { %v1087_v9 = vrot.slane %v5901_v34, 6  ;;  %v6281_v18 = vsel %vm6252_vm12, %v4599_v24, %v1075_v46  ;;  %v7263_v6 = vrot.slane %v5877_v10, 6  ;;  %v7264_v13 = vrot.slane %v5888_v16, 6 }
  0x51   : > { %v6269_v5 = vsel %vm6076_vm9, %v953_v60, %v958_v0  ;;  %v4608_v54 = vcombine.low %v1072_v3, %v6281_v18  ;;  %v4603_v62 = vrot.slane %v5953_v23, 10  ;;  %v1091_v16 = vrot.slane %v5963_v27, 6  ;;  %v6311_v0 = vld [vmem:[%s5856_s12 + $0x40] sm:$0xf]  ;;  %v6323_v27 = vld [vmem:[%s5856_s12 + $0x44] sm:$0x3] }
  0x52   : > { %v6277_v7 = vcombine.low %v6249_v20, %v6269_v5  ;;  %v6287_v8 = vsel %vm6252_vm12, %v4600_v4, %v7263_v6  ;;  %v6293_v34 = vsel %vm6252_vm12, %v4601_v50, %v7264_v13  ;;  %v6305_v10 = vsel %vm6252_vm12, %v4602_v41, %v1087_v9 }
  0x53   : > { %v6298_v17 = vcombine.low %v6287_v8, %v6293_v34  ;;  %v4604_v57 = vrot.slane %v5973_v30, 10  ;;  %v1095_v60 = vrot.slane %v5976_v36, 6  ;;  %5160 = vmatprep.mubr.msk.bf16.mxu0 %vm547_vm0, %v4608_v54  ;;  %v4605_v24 = vrot.slane %v6005_v44, 10 }
  0x54   : > { %5155 = vmatmul.mubr.msk.bf16.gmra.mxu1 %vm547_vm0, %v6277_v7  ;;  %v1099_v46 = vrot.slane %v6016_v49, 6  ;;  %v6327_v36 = vsel %vm6252_vm12, %v4603_v62, %v1091_v16  ;;  %v1308_v50 = vshrl.u32 %v6311_v0, 16  ;;  %v1311_v3 = vshll.u32 %v6311_v0, 16  ;;  %v6371_v16 = vld [vmem:[%s5856_s12 + $0x48] sm:$0xf] }
  0x55   : > { %5170 = vmatprep.mubr.msk.bf16.mxu1 %vm547_vm0, %v4619_v19  ;;  %v6331_v4 = vcombine.low %v6305_v10, %v6327_v36  ;;  %5161 = vmatmul.mubr.msk.bf16.vlgmr.msra.gmra.mxu0 %vm547_vm0, %v6298_v17  ;;  %v6339_v49 = vcombine.low %v5880_v11, %v5895_v21  ;;  %v6343_v19 = vcombine.low %v5953_v23, %v5973_v30  ;;  %v6359_v23 = vld [vmem:[%s7193_s1 + $0x48] sm:$0xff]   ;;  %v1317_v30 = vshll.u32 %v6323_v27, 16 }
  0x56   : > { %5179 = vmatpush3.bf16.msra.mxu0 %v6196_v2  ;;  %v6350_v41 = vsel %vm6252_vm12, %v4604_v57, %v1095_v60  ;;  %v6354_v9 = vsel %vm6252_vm12, %v4605_v24, %v1099_v46  ;;  %v1310_v11 = vrot.slane %v1308_v50, 4  ;;  %v1313_v21 = vrot.slane %v1311_v3, 5 }
  0x57   : > { %7265 = vst [vmem:[#allocation10_spill] sm:$0xff] %v6331_v4  ;;  %7266 = vst [vmem:[#allocation11_spill] sm:$0xff] %v6343_v19  ;;  %5164 = vmatprep.mubr.msk.bf16.mxu0 %vm547_vm0, %v6331_v4  ;;  %5198 = vmatprep.subr.bf16.mxu0 %v6316_v38  ;;  %v1524_v2 = vrot.slane %v1308_v50, 5  ;;  %v1525_v13 = vrot.slane %v1311_v3, 6  ;;  %v1528_v54 = vshrl.u32 %v6323_v27, 16  ;;  %v6368_v62 = vcombine.low %v6350_v41, %v6354_v9 }
  0x58   : > { %v1314_v6 = vor.u32 %v1313_v21, %v1310_v11  ;;  %v4630_v57 = vcombine.low %v5919_v52, %v5923_v53  ;;  %v4639_v60 = vrot.slane %v6311_v0, 9  ;;  %v1423_v24 = vrot.slane %v6323_v27, 5  ;;  %v6381_v50 = vld [vmem:[%s5856_s12 + $0x4c] sm:$0x3] }
  0x59   : > { %7267 = vst [vmem:[#allocation12_spill] sm:$0xff] %v6368_v62  ;;  %v1526_v46 = vor.u32 %v1525_v13, %v1524_v2  ;;  %v1319_v11 = vrot.slane %v1317_v30, 5  ;;  %v1531_v21 = vrot.slane %v1317_v30, 6  ;;  %v4662_v4 = vrot.slane %v6311_v0, 10 }
  0x5a   : > { %v1315_v3 = vrot.slane %v1314_v6, 4  ;;  %v1530_v52 = vrot.slane %v1528_v54, 5  ;;  %v1635_v53 = vrot.slane %v6323_v27, 6  ;;  %v4642_v2 = vcombine.low %v6072_v29, %v6103_v61 }
  0x5b   : > { %v7228_v6 = vshrl.u32 %v6371_v16, 16  ;;  %v7227_v13 = vshll.u32 %v6371_v16, 16  ;;  %v1527_v30 = vrot.slane %v1526_v46, 4  ;;  %v4690_v27 = vrot.slane %v6371_v16, 9 }
  0x5c   : > { %5171 = vmatmul.mubr.msk.bf16.vlgmr.msra.gmra.mxu1 %vm547_vm0, %v6339_v49  ;;  %v6406_v29 = vsel %vm6052_vm8, %v4639_v60, %v1423_v24  ;;  %v2021_v54 = vshrl.u32 %v6381_v50, 16  ;;  %v1532_v60 = vor.u32 %v1531_v21, %v1530_v52  ;;  %v6441_v21 = vcombine.low %v6158_v14, %v6178_v43 }
  0x5d   : > { %5174 = vmatprep.mubr.msk.bf16.mxu1 %vm547_vm0, %v6343_v19  ;;  %5189 = vmatpush3.bf16.msra.mxu1 %v6205_v28  ;;  %v6390_v28 = vcombine.low %v6005_v44, %v6311_v0  ;;  %v1928_v19 = vrot.slane %v6381_v50, 5  ;;  %v6402_v44 = vcombine.low %v5940_v63, %v5989_v37  ;;  %v2017_v61 = vrot.slane %v7228_v6, 5 }
  0x5e   : > { %5208 = vmatprep.subr.bf16.mxu1 %v6359_v23  ;;  %5165 = vmatmul.mubr.msk.bf16.gmra.mxu0 %vm547_vm0, %v6368_v62  ;;  %v7270_v63 = vshll.u32 %v6381_v50, 16  ;;  %v4707_v62 = vrot.slane %v6371_v16, 10  ;;  %v2116_v6 = vrot.slane %v6381_v50, 6  ;;  %v2023_v52 = vrot.slane %v2021_v54, 5 }
  0x5f   : > { %5180 = vmatprep.mubr.msk.bf16.mxu0 %vm547_vm0, %v4630_v57  ;;  %7268 = vst [vmem:[#allocation13_spill] sm:$0xff] %v6402_v44  ;;  %v2018_v57 = vrot.slane %v7227_v13, 6  ;;  %v6414_v46 = vsel %vm6052_vm8, %v4690_v27, %v1928_v19  ;;  %v6428_v19 = vld [vmem:[%s5856_s12 + $0x50] sm:$0xf]  ;;  %v6432_v27 = vcombine.low %v6119_v51, %v6146_v55  ;;  %v6595_v59 = vcombine.low %v6327_v36, %v6350_v41 }
  0x60   : > { %7269 = vst [vmem:[#allocation14_spill] sm:$0xff] %v6414_v46  ;;  %v2024_v37 = vrot.slane %v7270_v63, 6  ;;  %v6424_v24 = vcombine.low %v6406_v29, %v6414_v46  ;;  %v6437_v63 = vcombine.low %v6068_v25, %v6090_v47  ;;  %v6453_v51 = vld [vmem:[%s7193_s1 + $0x50] sm:$0xff]   ;;  %v6457_v25 = vsel %vm6252_vm12, %v4662_v4, %v1635_v53 }
  0x61   : > { %v2019_v13 = vor.u32 %v2018_v57, %v2017_v61  ;;  %v6444_v61 = vld [vmem:[%s5856_s12 + $0x54] sm:$0x3]  ;;  %v6448_v57 = vsel %vm5905_vm3, %v1315_v3, %v1319_v11  ;;  %v6461_v55 = vsel %vm6252_vm12, %v4707_v62, %v2116_v6  ;;  %v7230_v3 = vshrl.u32 %v6428_v19, 16 }
  0x62   : > { %7271 = vst [vmem:[#allocation15_spill] sm:$0xff] %v6437_v63  ;;  %v2025_v14 = vor.u32 %v2024_v37, %v2023_v52  ;;  %v6465_v43 = vcombine.low %v6457_v25, %v6461_v55  ;;  %v7229_v11 = vshll.u32 %v6428_v19, 16  ;;  %v6473_v4 = vsel %vm6076_vm9, %v1527_v30, %v1532_v60  ;;  %v6491_v37 = vld [vmem:[%s5856_s12 + $0x58] sm:$0xf] }
  0x63   : > { %v2020_v47 = vrot.slane %v2019_v13, 4  ;;  %v7233_v62 = vshll.u32 %v6444_v61, 16  ;;  %v4732_v53 = vrot.slane %v6428_v19, 9  ;;  %v2486_v13 = vrot.slane %v7230_v3, 5 }
  0x64   : > { %5175 = vmatmul.mubr.msk.bf16.gmra.mxu1 %vm547_vm0, %v6390_v28  ;;  %v2487_v30 = vrot.slane %v7229_v11, 6  ;;  %v2490_v54 = vshrl.u32 %v6444_v61, 16  ;;  %v7273_v40 = vshll.u32 %v6371_v16, 16 }
  0x65   : > { %5190 = vmatprep.mubr.msk.bf16.mxu1 %vm547_vm0, %v4642_v2  ;;  %v2397_v2 = vrot.slane %v6444_v61, 5  ;;  %v6483_v6 = vsel %vm6076_vm9, %v2020_v47, %v2025_v14  ;;  %v2493_v47 = vrot.slane %v7233_v62, 6  ;;  %v4774_v62 = vrot.slane %v6491_v37, 9 }
  0x66   : > { %5181 = vmatmul.mubr.msk.bf16.vlgmr.msra.gmra.mxu0 %vm547_vm0, %v6402_v44  ;;  %v6499_v60 = vcombine.low %v6473_v4, %v6483_v6  ;;  %v2488_v11 = vor.u32 %v2487_v30, %v2486_v13  ;;  %v2492_v3 = vrot.slane %v2490_v54, 5  ;;  %v6514_v44 = vcombine.low %v6096_v56, %v6448_v57 }
  0x67   : > { %5199 = vmatpush3.bf16.msra.mxu0 %v6316_v38  ;;  %5184 = vmatprep.mubr.msk.bf16.mxu0 %vm547_vm0, %v6437_v63  ;;  %v5599_v38 = vld [vmem:[%s7193_s1 + $0x58] sm:$0xff]   ;;  %v6503_v52 = vsel %vm6052_vm8, %v4732_v53, %v2397_v2  ;;  %v4749_v63 = vrot.slane %v6428_v19, 10  ;;  %v2585_v53 = vrot.slane %v6444_v61, 6  ;;  %v4653_v13 = vcombine.low %v6163_v31, %v6127_v22 }
  0x68   : > { %5218 = vmatprep.subr.bf16.mxu0 %v6453_v51  ;;  %v6518_v2 = vld [vmem:[%s5856_s12 + $0x5c] sm:$0x3]  ;;  %v2489_v30 = vrot.slane %v2488_v11, 4  ;;  %v2494_v54 = vor.u32 %v2493_v47, %v2492_v3  ;;  %v7235_v56 = vshrl.u32 %v6491_v37, 16  ;;  %v2766_v22 = vshll.u32 %v6491_v37, 16  ;;  %s7151_s12 = scalar_lea.hbm %s7203_s11, %s4925_s15 }
  0x69   : > { %v6527_v14 = vsel %vm6252_vm12, %v4749_v63, %v2585_v53  ;;  %v2772_v31 = vshll.u32 %v6518_v2, 16  ;;  %v6543_v63 = vcombine.low %v6185_v1, %v6406_v29  ;;  %v2866_v11 = vrot.slane %v6518_v2, 5 }
  0x6a   : > { %v6533_v46 = vsel %vm6076_vm9, %v2489_v30, %v2494_v54  ;;  %v2955_v47 = vrot.slane %v7235_v56, 5  ;;  %v4665_v53 = vcombine.low %v6281_v18, %v6287_v8  ;;  %v2956_v30 = vrot.slane %v2766_v22, 6 }
  0x6b   : > { %v4743_v3 = vcombine.low %v6483_v6, %v6533_v46  ;;  %v2959_v54 = vshrl.u32 %v6518_v2, 16  ;;  %v2962_v1 = vrot.slane %v2772_v31, 6  ;;  %v6560_v29 = vsel %vm6052_vm8, %v4774_v62, %v2866_v11 }
  0x6c   : > { %5191 = vmatmul.mubr.msk.bf16.vlgmr.msra.gmra.mxu1 %vm547_vm0, %v6432_v27  ;;  %v2957_v56 = vor.u32 %v2956_v30, %v2955_v47  ;;  %v6566_v18 = vcombine.low %v6135_v58, %v6227_v15  ;;  %v6573_v8 = vcombine.low %v6241_v26, %v6249_v20  ;;  %v6584_v58 = vcombine.low %v6293_v34, %v6305_v10  ;;  %v5602_v26 = vld [vmem:[%s7193_s1 + $0x68] sm:$0xff]  }
  0x6d   : > { %5194 = vmatprep.mubr.msk.bf16.mxu1 %vm547_vm0, %v6441_v21  ;;  %5209 = vmatpush3.bf16.msra.mxu1 %v6359_v23  ;;  %v4777_v23 = vcombine.low %v6503_v52, %v6560_v29  ;;  %v6604_v20 = vcombine.low %v6269_v5, %v6473_v4  ;;  %v4791_v34 = vrot.slane %v6491_v37, 10  ;;  %v3054_v10 = vrot.slane %v6518_v2, 6 }
  0x6e   : > { %5228 = vmatprep.subr.bf16.mxu1 %v5599_v38  ;;  %5185 = vmatmul.mubr.msk.bf16.gmra.mxu0 %vm547_vm0, %v6514_v44  ;;  %v2958_v62 = vrot.slane %v2957_v56, 4  ;;  %v6618_v5 = vcombine.low %v6354_v9, %v6457_v25  ;;  %v5603_v25 = vld [vmem:[%s7193_s1 + $0x70] sm:$0xff]  }
  0x6f   : > { %5200 = vmatprep.mubr.msk.bf16.mxu0 %vm547_vm0, %v4653_v13  ;;  %v2961_v13 = vrot.slane %v2959_v54, 5  ;;  %v6612_v36 = vsel %vm6252_vm12, %v4791_v34, %v3054_v10  ;;  %v7276_v54 = vld [vmem:[#allocation6_spill] sm:$0xff]  ;;  %v7281_v10 = vld [vmem:[#allocation12_spill] sm:$0xff] }
  0x70   : > { %v4794_v41 = vcombine.low %v6527_v14, %v6612_v36  ;;  %v7280_v34 = vld [vmem:[#allocation10_spill] sm:$0xff] }
  0x71   : > { %v2963_v11 = vor.u32 %v2962_v1, %v2961_v13  ;;  %v6648_v1 = vcombine.low %v6311_v0, %v6371_v16  ;;  %v7277_v13 = vld [vmem:[#allocation7_spill] sm:$0xff]  ;;  %v7279_v0 = vld [vmem:[#allocation9_spill] sm:$0xff] }
  0x73   : > { %v6580_v47 = vsel %vm6076_vm9, %v2958_v62, %v2963_v11  ;;  %v7278_v62 = vld [vmem:[#allocation8_spill] sm:$0xff] }
  0x74   : > { %5195 = vmatmul.mubr.msk.bf16.gmra.mxu1 %vm547_vm0, %v6543_v63  ;;  %v4785_v15 = vcombine.low %v6533_v46, %v6580_v47  ;;  %v5605_v11 = vld [vmem:[%s7193_s1 + $0x80] sm:$0xff]  }
  0x75   : > { %5210 = vmatprep.mubr.msk.bf16.mxu1 %vm547_vm0, %v4665_v53  ;;  %v7275_v53 = vshll.u32 %v6381_v50, 16 }
  0x76   : > { %5201 = vmatmul.mubr.msk.bf16.vlgmr.msra.gmra.mxu0 %vm547_vm0, %v6566_v18 }
  0x77   : > { %5219 = vmatpush3.bf16.msra.mxu0 %v6453_v51  ;;  %5204 = vmatprep.mubr.msk.bf16.mxu0 %vm547_vm0, %v6573_v8  ;;  %v7272_v51 = vshrl.u32 %v6371_v16, 16  ;;  %v1836_v30 = vrot.slane %v7275_v53, 5  ;;  %v7286_v53 = vshll.u32 %v6444_v61, 16 }
  0x78   : > { %5238 = vmatprep.subr.bf16.mxu0 %v5600_v33 }
  0x79   : > { %v1827_v4 = vrot.slane %v7272_v51, 4  ;;  %v7282_v51 = vld [vmem:[#allocation11_spill] sm:$0xff] }
  0x7c   : > { %5211 = vmatmul.mubr.msk.bf16.vlgmr.msra.gmra.mxu1 %vm547_vm0, %v6584_v58 }
  0x7d   : > { %5214 = vmatprep.mubr.msk.bf16.mxu1 %vm547_vm0, %v6595_v59  ;;  %5229 = vmatpush3.bf16.msra.mxu1 %v5599_v38  ;;  %v1830_v38 = vrot.slane %v7273_v40, 5  ;;  %v7284_v40 = vshll.u32 %v6428_v19, 16 }
  0x7e   : > { %5248 = vmatprep.subr.bf16.mxu1 %v5602_v26  ;;  %5205 = vmatmul.mubr.msk.bf16.gmra.mxu0 %vm547_vm0, %v6604_v20 }
  0x7f   : > { %5220 = vmatprep.mubr.msk.bf16.mxu0 %vm547_vm0, %v6001_v42  ;;  %v1831_v9 = vor.u32 %v1830_v38, %v1827_v4  ;;  %v7274_v42 = vld [vmem:[#allocation5_spill] sm:$0xff]  ;;  %v2299_v38 = vrot.slane %v7284_v40, 5 }
  0x81   : > { %v1832_v56 = vrot.slane %v1831_v9, 4  ;;  %v4718_v9 = vcombine.low %v6371_v16, %v6428_v19 }
  0x84   : > { %5215 = vmatmul.mubr.msk.bf16.gmra.mxu1 %vm547_vm0, %v6618_v5 }
  0x85   : > { %5230 = vmatprep.mubr.msk.bf16.mxu1 %vm547_vm0, %v5949_v12  ;;  %v5604_v12 = vld [vmem:[%s7193_s1 + $0x78] sm:$0xff]  }
  0x86   : > { %5221 = vmatmul.mubr.msk.bf16.vlgmr.msra.gmra.mxu0 %vm547_vm0, %v6013_v48 }
  0x87   : > { %5239 = vmatpush3.bf16.msra.mxu0 %v5600_v33  ;;  %5224 = vmatprep.mubr.msk.bf16.mxu0 %vm547_vm0, %v7274_v42  ;;  %v1837_v33 = vsel %vm5905_vm3, %v1832_v56, %v1836_v30  ;;  %v2305_v30 = vrot.slane %v7286_v53, 5 }
  0x88   : > { %5258 = vmatprep.subr.bf16.mxu0 %v5603_v25  ;;  %v6657_v50 = vcombine.low %v6448_v57, %v1837_v33  ;;  %v5607_v57 = vld [vmem:[%s7193_s1 + $0x88] sm:$0xff]  }
  0x8c   : > { %5231 = vmatmul.mubr.msk.bf16.vlgmr.msra.gmra.mxu1 %vm547_vm0, %v7276_v54 }
  0x8d   : > { %5234 = vmatprep.mubr.msk.bf16.mxu1 %vm547_vm0, %v7277_v13  ;;  %5249 = vmatpush3.bf16.msra.mxu1 %v5602_v26  ;;  %v5608_v26 = vld [vmem:[%s7193_s1 + $0x90] sm:$0xff]  }
  0x8e   : > { %5268 = vmatprep.subr.bf16.mxu1 %v5604_v12  ;;  %5225 = vmatmul.mubr.msk.bf16.gmra.mxu0 %vm547_vm0, %v6648_v1 }
  0x8f   : > { %5240 = vmatprep.mubr.msk.bf16.mxu0 %vm547_vm0, %v7278_v62  ;;  %v7287_v62 = vld [vmem:[#allocation15_spill] sm:$0xff] }
  0x94   : > { %5235 = vmatmul.mubr.msk.bf16.gmra.mxu1 %vm547_vm0, %v6657_v50 }
  0x95   : > { %5250 = vmatprep.mubr.msk.bf16.mxu1 %vm547_vm0, %v7279_v0 }
  0x96   : > { %5241 = vmatmul.mubr.msk.bf16.vlgmr.msra.gmra.mxu0 %vm547_vm0, %v6171_v32 }
  0x97   : > { %5259 = vmatpush3.bf16.msra.mxu0 %v5603_v25  ;;  %5244 = vmatprep.mubr.msk.bf16.mxu0 %vm547_vm0, %v6235_v45  ;;  %v7285_v25 = vld [vmem:[#allocation13_spill] sm:$0xff] }
  0x98   : > { %5278 = vmatprep.subr.bf16.mxu0 %v5605_v11 }
  0x9c   : > { %5251 = vmatmul.mubr.msk.bf16.vlgmr.msra.gmra.mxu1 %vm547_vm0, %v6245_v39 }
  0x9d   : > { %5254 = vmatprep.mubr.msk.bf16.mxu1 %vm547_vm0, %v6277_v7  ;;  %5269 = vmatpush3.bf16.msra.mxu1 %v5604_v12  ;;  %v5610_v12 = vld [vmem:[%s7193_s1 + $0xa0] sm:$0xff]  }
  0x9e   : > { %5288 = vmatprep.subr.bf16.mxu1 %v5607_v57  ;;  %5245 = vmatmul.mubr.msk.bf16.gmra.mxu0 %vm547_vm0, %v6424_v24 }
  0x9f   : > { %5260 = vmatprep.mubr.msk.bf16.mxu0 %vm547_vm0, %v6298_v17  ;;  %v5609_v17 = vld [vmem:[%s7193_s1 + $0x98] sm:$0xff]  }
  0xa4   : > { %5255 = vmatmul.mubr.msk.bf16.gmra.mxu1 %vm547_vm0, %v6499_v60 }
  0xa5   : > { %5270 = vmatprep.mubr.msk.bf16.mxu1 %vm547_vm0, %v6339_v49  ;;  %v7283_v49 = vshrl.u32 %v6428_v19, 16 }
  0xa6   : > { %5261 = vmatmul.mubr.msk.bf16.vlgmr.msra.gmra.mxu0 %vm547_vm0, %v7280_v34 }
  0xa7   : > { %5279 = vmatpush3.bf16.msra.mxu0 %v5605_v11  ;;  %5264 = vmatprep.mubr.msk.bf16.mxu0 %vm547_vm0, %v7281_v10  ;;  %v2296_v4 = vrot.slane %v7283_v49, 4 }
  0xa8   : > { %5298 = vmatprep.subr.bf16.mxu0 %v5608_v26 }
  0xa9   : > { %v2300_v56 = vor.u32 %v2299_v38, %v2296_v4 }
  0xac   : > { %5271 = vmatmul.mubr.msk.bf16.vlgmr.msra.gmra.mxu1 %vm547_vm0, %v7282_v51 }
  0xad   : > { %5274 = vmatprep.mubr.msk.bf16.mxu1 %vm547_vm0, %v6390_v28  ;;  %5289 = vmatpush3.bf16.msra.mxu1 %v5607_v57  ;;  %v2301_v28 = vrot.slane %v2300_v56, 4 }
  0xae   : > { %5308 = vmatprep.subr.bf16.mxu1 %v5609_v17  ;;  %5265 = vmatmul.mubr.msk.bf16.gmra.mxu0 %vm547_vm0, %v6465_v43 }
  0xaf   : > { %5280 = vmatprep.mubr.msk.bf16.mxu0 %vm547_vm0, %v7285_v25  ;;  %v2306_v16 = vsel %vm5905_vm3, %v2301_v28, %v2305_v30 }
  0xb0   : > { %v4726_v61 = vcombine.low %v1837_v33, %v2306_v16 }
  0xb4   : > { %5275 = vmatmul.mubr.msk.bf16.gmra.mxu1 %vm547_vm0, %v4718_v9 }
  0xb5   : > { %5290 = vmatprep.mubr.msk.bf16.mxu1 %vm547_vm0, %v6432_v27  ;;  %v5611_v27 = vld [vmem:[%s7193_s1 + $0xa8] sm:$0xff]  }
  0xb6   : > { %5281 = vmatmul.mubr.msk.bf16.vlgmr.msra.gmra.mxu0 %vm547_vm0, %v7287_v62 }
  0xb7   : > { %5299 = vmatpush3.bf16.msra.mxu0 %v5608_v26  ;;  %5284 = vmatprep.mubr.msk.bf16.mxu0 %vm547_vm0, %v6514_v44  ;;  %v7288_v44 = vld [vmem:[#allocation14_spill] sm:$0xff] }
  0xb8   : > { %5318 = vmatprep.subr.bf16.mxu0 %v5610_v12  ;;  %v7289_v0 = vcombine.low %v7288_v44, %v6503_v52 }
  0xbc   : > { %5291 = vmatmul.mubr.msk.bf16.vlgmr.msra.gmra.mxu1 %vm547_vm0, %v6441_v21  ;;  %v5612_v21 = vld [vmem:[%s7193_s1 + $0xb0] sm:$0xff]  }
  0xbd   : > { %5294 = vmatprep.mubr.msk.bf16.mxu1 %vm547_vm0, %v6543_v63  ;;  %5309 = vmatpush3.bf16.msra.mxu1 %v5609_v17  ;;  %v5614_v63 = vld [vmem:[%s7193_s1 + $0xb8] sm:$0xff]  }
  0xbe   : > { %5328 = vmatprep.subr.bf16.mxu1 %v5611_v27  ;;  %5285 = vmatmul.mubr.msk.bf16.gmra.mxu0 %vm547_vm0, %v4726_v61 }
  0xbf   : > { %5300 = vmatprep.mubr.msk.bf16.mxu0 %vm547_vm0, %v6566_v18  ;;  %v7290_v18 = vshrl.u32 %v6491_v37, 16 }
  0xc4   : > { %5295 = vmatmul.mubr.msk.bf16.gmra.mxu1 %vm547_vm0, %v7289_v0 }
  0xc5   : > { %5310 = vmatprep.mubr.msk.bf16.mxu1 %vm547_vm0, %v6584_v58  ;;  %v2768_v58 = vrot.slane %v2766_v22, 5  ;;  %v4760_v22 = vcombine.low %v6428_v19, %v6491_v37 }
  0xc6   : > { %5301 = vmatmul.mubr.msk.bf16.vlgmr.msra.gmra.mxu0 %vm547_vm0, %v6573_v8  ;;  %v2765_v8 = vrot.slane %v7290_v18, 4 }
  0xc7   : > { %5319 = vmatpush3.bf16.msra.mxu0 %v5610_v12  ;;  %5304 = vmatprep.mubr.msk.bf16.mxu0 %vm547_vm0, %v6604_v20 }
  0xc8   : > { %5338 = vmatprep.subr.bf16.mxu0 %v5612_v21  ;;  %v2769_v6 = vor.u32 %v2768_v58, %v2765_v8 }
  0xcc   : > { %5311 = vmatmul.mubr.msk.bf16.vlgmr.msra.gmra.mxu1 %vm547_vm0, %v6595_v59  ;;  %v7291_v59 = vcombine.low %v6461_v55, %v6527_v14  ;;  %v2774_v55 = vrot.slane %v2772_v31, 5 }
  0xcd   : > { %5314 = vmatprep.mubr.msk.bf16.mxu1 %vm547_vm0, %v6618_v5  ;;  %5329 = vmatpush3.bf16.msra.mxu1 %v5611_v27 }
  0xce   : > { %5348 = vmatprep.subr.bf16.mxu1 %v5614_v63  ;;  %5305 = vmatmul.mubr.msk.bf16.gmra.mxu0 %vm547_vm0, %v4743_v3  ;;  %v5615_v3 = vld [vmem:[%s7193_s1 + $0xc0] sm:$0xff]  }
  0xcf   : > { %5320 = vmatprep.mubr.msk.bf16.mxu0 %vm547_vm0, %v6013_v48  ;;  %v2770_v48 = vrot.slane %v2769_v6, 4 }
  0xd1   : > { %v2775_v20 = vsel %vm5905_vm3, %v2770_v48, %v2774_v55 }
  0xd2   : > { %v4768_v5 = vcombine.low %v2306_v16, %v2775_v20 }
  0xd4   : > { %5315 = vmatmul.mubr.msk.bf16.gmra.mxu1 %vm547_vm0, %v7291_v59 }
  0xd5   : > { %5330 = vmatprep.mubr.msk.bf16.mxu1 %vm547_vm0, %v7276_v54 }
  0xd6   : > { %5321 = vmatmul.mubr.msk.bf16.vlgmr.msra.gmra.mxu0 %vm547_vm0, %v7274_v42 }
  0xd7   : > { %5339 = vmatpush3.bf16.msra.mxu0 %v5612_v21  ;;  %5324 = vmatprep.mubr.msk.bf16.mxu0 %vm547_vm0, %v6648_v1 }
  0xd8   : > { %5358 = vmatprep.subr.bf16.mxu0 %v5615_v3 }
  0xdc   : > { %5331 = vmatmul.mubr.msk.bf16.vlgmr.msra.gmra.mxu1 %vm547_vm0, %v7277_v13 }
  0xdd   : > { %5334 = vmatprep.mubr.msk.bf16.mxu1 %vm547_vm0, %v6657_v50  ;;  %5349 = vmatpush3.bf16.msra.mxu1 %v5614_v63 }
  0xde   : > { %5325 = vmatmul.mubr.msk.bf16.gmra.mxu0 %vm547_vm0, %v4760_v22 }
  0xdf   : > { %5340 = vmatprep.mubr.msk.bf16.mxu0 %vm547_vm0, %v6171_v32 }
  0xe4   : > { %5335 = vmatmul.mubr.msk.bf16.gmra.mxu1 %vm547_vm0, %v4768_v5 }
  0xe5   : > { %5350 = vmatprep.mubr.msk.bf16.mxu1 %vm547_vm0, %v6245_v39 }
  0xe6   : > { %5341 = vmatmul.mubr.msk.bf16.vlgmr.msra.gmra.mxu0 %vm547_vm0, %v6235_v45 }
  0xe7   : > { %5359 = vmatpush3.bf16.msra.mxu0 %v5615_v3  ;;  %5344 = vmatprep.mubr.msk.bf16.mxu0 %vm547_vm0, %v6424_v24 }
  0xec   : > { %5351 = vmatmul.mubr.msk.bf16.vlgmr.msra.gmra.mxu1 %vm547_vm0, %v6277_v7 }
  0xed   : > { %5354 = vmatprep.mubr.msk.bf16.mxu1 %vm547_vm0, %v6499_v60  ;;  %v5122_v35 = vpop.f32.mrf.mxu0 }
  0xee   : > { %5345 = vmatmul.mubr.msk.bf16.gmra.mxu0 %vm547_vm0, %v4777_v23 }
  0xef   : > { %5360 = vmatprep.mubr.msk.bf16.mxu0 %vm547_vm0, %v7280_v34  ;;  %v594_v32 = vpop.f32.mrf.mxu0 }
  0xf0   : > { %v5132_v45 = vpop.f32.mrf.mxu1 }
  0xf1   : > { %v706_v39 = vadd.f32 %v5132_v45, %v5122_v35  ;;  %v5123_v24 = vpop.f32.mrf.mxu0 }
  0xf2   : > { %v697_v7 = vpop.f32.mrf.mxu1 }
  0xf3   : > { %v698_v19 = vadd.f32 %v697_v7, %v594_v32  ;;  %v6818_v2 = vpop.f32.mrf.mxu0 }
  0xf4   : > { %5355 = vmatmul.mubr.msk.bf16.gmra.mxu1 %vm547_vm0, %v4785_v15  ;;  %v5133_v37 = vpop.f32.mrf.mxu1 }
  0xf5   : > { %v709_v60 = vadd.f32 %v5133_v37, %v5123_v24 }
  0xf6   : > { %5361 = vmatmul.mubr.msk.bf16.vlgmr.msra.gmra.mxu0 %vm547_vm0, %v7281_v10  ;;  %v6816_v52 = vpop.f32.mrf.mxu1 }
  0xf7   : > { %5364 = vmatprep.mubr.msk.bf16.mxu0 %vm547_vm0, %v6465_v43 }
  0xf8   : > { %v5136_v46 = vpop.f32.mrf.mxu1 }
  0xfa   : > { %v713_v23 = vpop.f32.mrf.mxu1 }
  0xfc   : > { %v5137_v15 = vpop.f32.mrf.mxu1 }
  0xfd   : > { %v5126_v31 = vpop.f32.mrf.mxu0 }
  0xfe   : > { %5365 = vmatmul.mubr.msk.bf16.gmra.mxu0 %vm547_vm0, %v4794_v41  ;;  %v722_v29 = vadd.f32 %v5136_v46, %v5126_v31  ;;  %v6826_v43 = vpop.f32.mrf.mxu1 }
  0xff   : > { %v610_v47 = vpop.f32.mrf.mxu0 }
 0x100   : > { %v714_v42 = vadd.f32 %v713_v23, %v610_v47 }
 0x101   : > { %v5127_v54 = vpop.f32.mrf.mxu0 }
 0x102   : > { %v725_v1 = vadd.f32 %v5137_v15, %v5127_v54 }
 0x103   : > { %v6824_v13 = vpop.f32.mrf.mxu0 }
 0x105   : > { %v5142_v33 = vpop.f32.mrf.mxu0  ;;  %v5152_v50 = vpop.f32.mrf.mxu1 }
 0x106   : > { %v871_v11 = vadd.f32 %v5142_v33, %v706_v39 }
 0x107   : > { %v838_v57 = vpop.f32.mrf.mxu0  ;;  %v1027_v26 = vpop.f32.mrf.mxu1 }
 0x108   : > { %v869_v34 = vadd.f32 %v838_v57, %v698_v19  ;;  %v1060_v10 = vadd.f32 %v5152_v50, %v871_v11 }
 0x109   : > { %v5143_v14 = vpop.f32.mrf.mxu0  ;;  %v5153_v36 = vpop.f32.mrf.mxu1 }
 0x10a   : > { %v872_v41 = vadd.f32 %v5143_v14, %v709_v60  ;;  %v1058_v17 = vadd.f32 %v1027_v26, %v869_v34 }
 0x10b   : > { %v841_v51 = vpop.f32.mrf.mxu0  ;;  %v1030_v40 = vpop.f32.mrf.mxu1 }
 0x10c   : > { %v1061_v49 = vadd.f32 %v5153_v36, %v872_v41 }
 0x10d   : > { %v5146_v4 = vpop.f32.mrf.mxu0 }
 0x10e   : > { %v875_v38 = vadd.f32 %v5146_v4, %v722_v29 }
 0x10f   : > { %v854_v9 = vpop.f32.mrf.mxu0 }
 0x110   : > { %v873_v25 = vadd.f32 %v854_v9, %v714_v42 }
 0x111   : > { %v5147_v28 = vpop.f32.mrf.mxu0 }
 0x112   : > { %v876_v30 = vadd.f32 %v5147_v28, %v725_v1  ;;  %v701_v1 = vadd.f32 %v6816_v52, %v6818_v2 }
 0x113   : > { %v857_v62 = vpop.f32.mrf.mxu0 }
 0x114   : > { %v5156_v56 = vpop.f32.mrf.mxu1  ;;  %v870_v57 = vadd.f32 %v841_v51, %v701_v1 }
 0x115   : > { %v1064_v53 = vadd.f32 %v5156_v56, %v875_v38  ;;  %v5162_v61 = vpop.f32.mrf.mxu0  ;;  %v717_v56 = vadd.f32 %v6826_v43, %v6824_v13 }
 0x116   : > { %v1043_v12 = vpop.f32.mrf.mxu1  ;;  %v1201_v0 = vadd.f32 %v5162_v61, %v1060_v10 }
 0x117   : > { %v1062_v16 = vadd.f32 %v1043_v12, %v873_v25  ;;  %v1168_v63 = vpop.f32.mrf.mxu0  ;;  %v874_v51 = vadd.f32 %v857_v62, %v717_v56 }
 0x118   : > { %v5157_v27 = vpop.f32.mrf.mxu1  ;;  %v1199_v18 = vadd.f32 %v1168_v63, %v1058_v17 }
 0x119   : > { %v1065_v44 = vadd.f32 %v5157_v27, %v876_v30  ;;  %v5163_v58 = vpop.f32.mrf.mxu0 }
 0x11a   : > { %v1046_v21 = vpop.f32.mrf.mxu1  ;;  %v1202_v6 = vadd.f32 %v5163_v58, %v1061_v49  ;;  %v1059_v49 = vadd.f32 %v1030_v40, %v870_v57 }
 0x11b   : > { %v1171_v48 = vpop.f32.mrf.mxu0  ;;  %v1063_v63 = vadd.f32 %v1046_v21, %v874_v51 }
 0x11c   : > { %v5172_v8 = vpop.f32.mrf.mxu1  ;;  %v1200_v52 = vadd.f32 %v1171_v48, %v1059_v49 }
 0x11d   : > { %v1301_v59 = vadd.f32 %v5172_v8, %v1201_v0 }
 0x11e   : > { %v1268_v3 = vpop.f32.mrf.mxu1  ;;  %v5166_v20 = vpop.f32.mrf.mxu0 }
 0x11f   : > { %v1299_v55 = vadd.f32 %v1268_v3, %v1199_v18  ;;  %v1205_v35 = vadd.f32 %v5166_v20, %v1064_v53 }
 0x120   : > { %v5173_v22 = vpop.f32.mrf.mxu1  ;;  %v1184_v45 = vpop.f32.mrf.mxu0 }
 0x121   : > { %v1302_v5 = vadd.f32 %v5173_v22, %v1202_v6  ;;  %v1203_v39 = vadd.f32 %v1184_v45, %v1062_v16 }
 0x122   : > { %v1271_v32 = vpop.f32.mrf.mxu1  ;;  %v5167_v24 = vpop.f32.mrf.mxu0 }
 0x123   : > { %v1206_v37 = vadd.f32 %v5167_v24, %v1065_v44  ;;  %v1300_v61 = vadd.f32 %v1271_v32, %v1200_v52  ;;  %v5617_v52 = vld [vmem:[%s7195_s3 + $0x10] sm:$0xff]  }
 0x124   : > { %v5176_v7 = vpop.f32.mrf.mxu1  ;;  %v1187_v46 = vpop.f32.mrf.mxu0 }
 0x125   : > { %v1305_v19 = vadd.f32 %v5176_v7, %v1205_v35  ;;  %v1204_v13 = vadd.f32 %v1187_v46, %v1063_v63 }
 0x126   : > { %v1284_v60 = vpop.f32.mrf.mxu1  ;;  %v5182_v29 = vpop.f32.mrf.mxu0 }
 0x127   : > { %v1303_v23 = vadd.f32 %v1284_v60, %v1203_v39  ;;  %v1414_v15 = vadd.f32 %v5182_v29, %v1301_v59 }
 0x128   : > { %v5177_v31 = vpop.f32.mrf.mxu1  ;;  %v1381_v54 = vpop.f32.mrf.mxu0 }
 0x129   : > { %v1306_v47 = vadd.f32 %v5177_v31, %v1206_v37  ;;  %v1412_v33 = vadd.f32 %v1381_v54, %v1299_v55 }
 0x12a   : > { %v1287_v42 = vpop.f32.mrf.mxu1  ;;  %v5183_v11 = vpop.f32.mrf.mxu0 }
 0x12b   : > { %v1415_v34 = vadd.f32 %v5183_v11, %v1302_v5  ;;  %v1304_v35 = vadd.f32 %v1287_v42, %v1204_v13 }
 0x12c   : > { %v5192_v50 = vpop.f32.mrf.mxu1  ;;  %v1384_v14 = vpop.f32.mrf.mxu0 }
 0x12d   : > { %v1518_v26 = vadd.f32 %v5192_v50, %v1414_v15  ;;  %v1413_v18 = vadd.f32 %v1384_v14, %v1300_v61  ;;  %v5618_v14 = vld [vmem:[%s7195_s3 + $0x28] sm:$0xff]  }
 0x12e   : > { %v1485_v10 = vpop.f32.mrf.mxu1  ;;  %v5186_v17 = vpop.f32.mrf.mxu0 }
 0x12f   : > { %v1516_v36 = vadd.f32 %v1485_v10, %v1412_v33  ;;  %v1418_v38 = vadd.f32 %v5186_v17, %v1305_v19  ;;  %v5616_v10 = vld [vmem:[%s7195_s3 + $0x18] sm:$0xff]   ;;  %v5723_v17 = vmov 0.0  }
 0x130   : > { %v5193_v41 = vpop.f32.mrf.mxu1  ;;  %v1397_v25 = vpop.f32.mrf.mxu0  ;;  %5368 = vmatprep.subr.bf16.mxu1 %v5723_v17  ;;  %5384 = vmatprep.subr.bf16.mxu0 %v5723_v17 }
 0x131   : > { %v1519_v4 = vadd.f32 %v5193_v41, %v1415_v34  ;;  %v1416_v2 = vadd.f32 %v1397_v25, %v1303_v23  ;;  %5369 = vmatpush3.bf16.msra.mxu1 %v5616_v10  ;;  %5385 = vmatpush3.bf16.msra.mxu0 %v5618_v14 }
 0x132   : > { %v1488_v9 = vpop.f32.mrf.mxu1  ;;  %v5187_v53 = vpop.f32.mrf.mxu0  ;;  %5370 = vmatprep.subr.bf16.mxu1 %v5723_v17  ;;  %5386 = vmatprep.subr.bf16.mxu0 %v5723_v17 }
 0x133   : > { %v1419_v12 = vadd.f32 %v5187_v53, %v1306_v47  ;;  %v1517_v55 = vadd.f32 %v1488_v9, %v1413_v18  ;;  %5372 = vmatprep.mubr.msk.bf16.mxu1 %vm5724_vm13, %v5723_v17  ;;  %5388 = vmatprep.mubr.msk.bf16.mxu0 %vm5724_vm13, %v5723_v17 }
 0x134   : > { %v5196_v28 = vpop.f32.mrf.mxu1  ;;  %v1400_v27 = vpop.f32.mrf.mxu0 }
 0x135   : > { %v1522_v30 = vadd.f32 %v5196_v28, %v1418_v38  ;;  %v1417_v21 = vadd.f32 %v1400_v27, %v1304_v35  ;;  %5371 = vmatpush3.bf16.msra.mxu1 %v5617_v52 }
 0x136   : > { %v1501_v16 = vpop.f32.mrf.mxu1  ;;  %v5202_v40 = vpop.f32.mrf.mxu0  ;;  %5376 = vmatprep.subr.bf16.mxu1 %v5723_v17 }
 0x137   : > { %v1520_v44 = vadd.f32 %v1501_v16, %v1416_v2  ;;  %v1627_v58 = vadd.f32 %v5202_v40, %v1518_v26  ;;  %v5619_v2 = vld [vmem:[%s7195_s3 + $0x20] sm:$0xff]  }
 0x138   : > { %v5197_v0 = vpop.f32.mrf.mxu1  ;;  %v1594_v6 = vpop.f32.mrf.mxu0  ;;  %5387 = vmatpush3.bf16.msra.mxu0 %v5619_v2 }
 0x139   : > { %v1523_v8 = vadd.f32 %v5197_v0, %v1419_v12  ;;  %v1625_v43 = vadd.f32 %v1594_v6, %v1516_v36  ;;  %5400 = vmatprep.subr.bf16.mxu0 %v5723_v17 }
 0x13a   : > { %v1504_v59 = vpop.f32.mrf.mxu1  ;;  %v5203_v48 = vpop.f32.mrf.mxu0 }
 0x13b   : > { %v1628_v22 = vadd.f32 %v5203_v48, %v1519_v4  ;;  %v1521_v47 = vadd.f32 %v1504_v59, %v1417_v21 }
 0x13c   : > { %v5212_v3 = vpop.f32.mrf.mxu1  ;;  %v1597_v5 = vpop.f32.mrf.mxu0 }
 0x13d   : > { %v1730_v62 = vadd.f32 %v5212_v3, %v1627_v58  ;;  %v1626_v45 = vadd.f32 %v1597_v5, %v1517_v55 }
 0x13e   : > { %v1697_v20 = vpop.f32.mrf.mxu1  ;;  %v5206_v7 = vpop.f32.mrf.mxu0 }
 0x13f   : > { %v1728_v32 = vadd.f32 %v1697_v20, %v1625_v43  ;;  %v1631_v19 = vadd.f32 %v5206_v7, %v1522_v30 }
 0x140   : > { %v5213_v39 = vpop.f32.mrf.mxu1  ;;  %v1610_v60 = vpop.f32.mrf.mxu0 }
 0x141   : > { %v1731_v24 = vadd.f32 %v5213_v39, %v1628_v22  ;;  %v1629_v46 = vadd.f32 %v1610_v60, %v1520_v44 }
 0x142   : > { %v1700_v37 = vpop.f32.mrf.mxu1  ;;  %v5207_v29 = vpop.f32.mrf.mxu0 }
 0x143   : > { %v1729_v23 = vadd.f32 %v1700_v37, %v1626_v45  ;;  %v1632_v54 = vadd.f32 %v5207_v29, %v1523_v8 }
 0x144   : > { %v5216_v31 = vpop.f32.mrf.mxu1  ;;  %v1613_v33 = vpop.f32.mrf.mxu0 }
 0x145   : > { %v1734_v15 = vadd.f32 %v5216_v31, %v1631_v19  ;;  %v1630_v42 = vadd.f32 %v1613_v33, %v1521_v47 }
 0x146   : > { %v1713_v1 = vpop.f32.mrf.mxu1  ;;  %v5222_v57 = vpop.f32.mrf.mxu0 }
 0x147   : > { %v1732_v50 = vadd.f32 %v1713_v1, %v1629_v46  ;;  %v1818_v34 = vadd.f32 %v5222_v57, %v1730_v62 }
 0x148   : > { %v5217_v11 = vpop.f32.mrf.mxu1  ;;  %v1785_v41 = vpop.f32.mrf.mxu0 }
 0x149   : > { %v1735_v26 = vadd.f32 %v5217_v11, %v1632_v54  ;;  %v1816_v4 = vadd.f32 %v1785_v41, %v1728_v32 }
 0x14a   : > { %v1716_v36 = vpop.f32.mrf.mxu1  ;;  %v5223_v9 = vpop.f32.mrf.mxu0 }
 0x14b   : > { %v1733_v49 = vadd.f32 %v1716_v36, %v1630_v42  ;;  %v1819_v56 = vadd.f32 %v5223_v9, %v1731_v24 }
 0x14c   : > { %v5232_v38 = vpop.f32.mrf.mxu1  ;;  %v1788_v53 = vpop.f32.mrf.mxu0 }
 0x14d   : > { %v1919_v25 = vadd.f32 %v5232_v38, %v1818_v34  ;;  %v1817_v30 = vadd.f32 %v1788_v53, %v1729_v23 }
 0x14e   : > { %v1886_v28 = vpop.f32.mrf.mxu1  ;;  %v5226_v16 = vpop.f32.mrf.mxu0 }
 0x14f   : > { %v1917_v51 = vadd.f32 %v1886_v28, %v1816_v4  ;;  %v1822_v61 = vadd.f32 %v5226_v16, %v1734_v15 }
 0x150   : > { %v5233_v12 = vpop.f32.mrf.mxu1  ;;  %v1801_v0 = vpop.f32.mrf.mxu0 }
 0x151   : > { %v1920_v27 = vadd.f32 %v5233_v12, %v1819_v56  ;;  %v1820_v63 = vadd.f32 %v1801_v0, %v1732_v50 }
 0x152   : > { %v1889_v44 = vpop.f32.mrf.mxu1  ;;  %v5227_v8 = vpop.f32.mrf.mxu0 }
 0x153   : > { %v1918_v40 = vadd.f32 %v1889_v44, %v1817_v30  ;;  %v1823_v59 = vadd.f32 %v5227_v8, %v1735_v26 }
 0x154   : > { %v5236_v18 = vpop.f32.mrf.mxu1  ;;  %v1804_v13 = vpop.f32.mrf.mxu0 }
 0x155   : > { %v1923_v58 = vadd.f32 %v5236_v18, %v1822_v61  ;;  %v1821_v3 = vadd.f32 %v1804_v13, %v1733_v49 }
 0x156   : > { %v1902_v6 = vpop.f32.mrf.mxu1  ;;  %v5242_v55 = vpop.f32.mrf.mxu0 }
 0x157   : > { %v1921_v43 = vadd.f32 %v1902_v6, %v1820_v63  ;;  %v2011_v22 = vadd.f32 %v5242_v55, %v1919_v25 }
 0x158   : > { %v5237_v48 = vpop.f32.mrf.mxu1  ;;  %v1978_v5 = vpop.f32.mrf.mxu0 }
 0x159   : > { %v1924_v62 = vadd.f32 %v5237_v48, %v1823_v59  ;;  %v2009_v32 = vadd.f32 %v1978_v5, %v1917_v51 }
 0x15a   : > { %v1905_v20 = vpop.f32.mrf.mxu1  ;;  %v5243_v39 = vpop.f32.mrf.mxu0 }
 0x15b   : > { %v1922_v35 = vadd.f32 %v1905_v20, %v1821_v3  ;;  %v2012_v21 = vadd.f32 %v5243_v39, %v1920_v27 }
 0x15c   : > { %v5252_v45 = vpop.f32.mrf.mxu1  ;;  %v1981_v19 = vpop.f32.mrf.mxu0 }
 0x15d   : > { %v2108_v7 = vadd.f32 %v5252_v45, %v2011_v22  ;;  %v6854_v60 = vadd.f32 %v1981_v19, %v1918_v40 }
 0x15e   : > { %v2075_v24 = vpop.f32.mrf.mxu1  ;;  %v5246_v46 = vpop.f32.mrf.mxu0 }
 0x15f   : > { %v2106_v37 = vadd.f32 %v2075_v24, %v2009_v32  ;;  %v2015_v29 = vadd.f32 %v5246_v46, %v1923_v58 }
 0x160   : > { %v5253_v23 = vpop.f32.mrf.mxu1  ;;  %v1994_v15 = vpop.f32.mrf.mxu0 }
 0x161   : > { %v2109_v31 = vadd.f32 %v5253_v23, %v2012_v21  ;;  %v2013_v54 = vadd.f32 %v1994_v15, %v1921_v43 }
 0x162   : > { %v6856_v47 = vpop.f32.mrf.mxu1  ;;  %v5247_v33 = vpop.f32.mrf.mxu0 }
 0x163   : > { %v2016_v42 = vadd.f32 %v5247_v33, %v1924_v62 }
 0x164   : > { %v5256_v1 = vpop.f32.mrf.mxu1  ;;  %v1997_v57 = vpop.f32.mrf.mxu0 }
 0x165   : > { %v2112_v50 = vadd.f32 %v5256_v1, %v2015_v29  ;;  %v2014_v34 = vadd.f32 %v1997_v57, %v1922_v35 }
 0x166   : > { %v2091_v11 = vpop.f32.mrf.mxu1  ;;  %v5262_v14 = vpop.f32.mrf.mxu0 }
 0x167   : > { %v2110_v26 = vadd.f32 %v2091_v11, %v2013_v54  ;;  %v2199_v41 = vadd.f32 %v5262_v14, %v2108_v7 }
 0x168   : > { %v5257_v10 = vpop.f32.mrf.mxu1  ;;  %v2166_v4 = vpop.f32.mrf.mxu0 }
 0x169   : > { %v2113_v36 = vadd.f32 %v5257_v10, %v2016_v42  ;;  %v6858_v9 = vadd.f32 %v2166_v4, %v2106_v37 }
 0x16a   : > { %v2094_v49 = vpop.f32.mrf.mxu1  ;;  %v5263_v56 = vpop.f32.mrf.mxu0 }
 0x16b   : > { %v2111_v38 = vadd.f32 %v2094_v49, %v2014_v34  ;;  %v6860_v2 = vadd.f32 %v5263_v56, %v2109_v31 }
 0x16c   : > { %v5272_v25 = vpop.f32.mrf.mxu1  ;;  %v6864_v53 = vpop.f32.mrf.mxu0 }
 0x16d   : > { %v2287_v52 = vadd.f32 %v5272_v25, %v2199_v41 }
 0x16e   : > { %v6862_v28 = vpop.f32.mrf.mxu1  ;;  %v5266_v30 = vpop.f32.mrf.mxu0 }
 0x16f   : > { %v2203_v12 = vadd.f32 %v5266_v30, %v2112_v50 }
 0x170   : > { %v6866_v51 = vpop.f32.mrf.mxu1  ;;  %v2182_v27 = vpop.f32.mrf.mxu0 }
 0x171   : > { %v2201_v61 = vadd.f32 %v2182_v27, %v2110_v26 }
 0x172   : > { %v6868_v16 = vpop.f32.mrf.mxu1  ;;  %v5267_v0 = vpop.f32.mrf.mxu0 }
 0x173   : > { %v2204_v63 = vadd.f32 %v5267_v0, %v2113_v36 }
 0x174   : > { %v5276_v44 = vpop.f32.mrf.mxu1  ;;  %v2185_v8 = vpop.f32.mrf.mxu0 }
 0x175   : > { %v2291_v40 = vadd.f32 %v5276_v44, %v2203_v12  ;;  %v2202_v59 = vadd.f32 %v2185_v8, %v2111_v38  ;;  %v2107_v8 = vadd.f32 %v6856_v47, %v6854_v60 }
 0x176   : > { %v2270_v18 = vpop.f32.mrf.mxu1  ;;  %v5282_v13 = vpop.f32.mrf.mxu0 }
 0x177   : > { %v2289_v58 = vadd.f32 %v2270_v18, %v2201_v61  ;;  %v2388_v3 = vadd.f32 %v5282_v13, %v2287_v52  ;;  %v2198_v13 = vadd.f32 %v6864_v53, %v2107_v8 }
 0x178   : > { %v5277_v6 = vpop.f32.mrf.mxu1  ;;  %v2355_v55 = vpop.f32.mrf.mxu0 }
 0x179   : > { %v2292_v43 = vadd.f32 %v5277_v6, %v2204_v63  ;;  %v2285_v6 = vadd.f32 %v6862_v28, %v6858_v9 }
 0x17a   : > { %v2273_v48 = vpop.f32.mrf.mxu1  ;;  %v5283_v20 = vpop.f32.mrf.mxu0 }
 0x17b   : > { %v2290_v62 = vadd.f32 %v2273_v48, %v2202_v59 }
 0x17c   : > { %v5292_v22 = vpop.f32.mrf.mxu1  ;;  %v2358_v35 = vpop.f32.mrf.mxu0 }
 0x17e   : > { %v2447_v5 = vpop.f32.mrf.mxu1  ;;  %v5286_v45 = vpop.f32.mrf.mxu0 }
 0x17f   : > { %v2392_v39 = vadd.f32 %v5286_v45, %v2291_v40  ;;  %v2288_v45 = vadd.f32 %v6866_v51, %v6860_v2 }
 0x180   : > { %v6870_v32 = vpop.f32.mrf.mxu1  ;;  %v2371_v21 = vpop.f32.mrf.mxu0 }
 0x181   : > { %v6874_v24 = vadd.f32 %v2371_v21, %v2289_v58  ;;  %v2389_v60 = vadd.f32 %v5283_v20, %v2288_v45 }
 0x182   : > { %v6872_v7 = vpop.f32.mrf.mxu1  ;;  %v5287_v37 = vpop.f32.mrf.mxu0 }
 0x183   : > { %v2393_v46 = vadd.f32 %v5287_v37, %v2292_v43  ;;  %v2286_v37 = vadd.f32 %v6868_v16, %v2198_v13 }
 0x184   : > { %v5296_v19 = vpop.f32.mrf.mxu1  ;;  %v2374_v29 = vpop.f32.mrf.mxu0 }
 0x185   : > { %v2484_v23 = vadd.f32 %v5296_v19, %v2392_v39  ;;  %v6878_v15 = vadd.f32 %v2374_v29, %v2290_v62  ;;  %v2386_v39 = vadd.f32 %v2355_v55, %v2285_v6 }
 0x186   : > { %v6876_v31 = vpop.f32.mrf.mxu1  ;;  %v5302_v1 = vpop.f32.mrf.mxu0 }
 0x187   : > { %v2478_v29 = vadd.f32 %v2447_v5, %v2386_v39  ;;  %v2482_v5 = vadd.f32 %v6876_v31, %v6874_v24 }
 0x188   : > { %v5297_v54 = vpop.f32.mrf.mxu1  ;;  %v2544_v42 = vpop.f32.mrf.mxu0 }
 0x189   : > { %v2485_v33 = vadd.f32 %v5297_v54, %v2393_v46  ;;  %v2387_v54 = vadd.f32 %v2358_v35, %v2286_v37 }
 0x18a   : > { %v6880_v50 = vpop.f32.mrf.mxu1  ;;  %v5303_v57 = vpop.f32.mrf.mxu0 }
 0x18b   : > { %v2479_v2 = vadd.f32 %v6872_v7, %v2387_v54 }
 0x18c   : > { %v5312_v11 = vpop.f32.mrf.mxu1  ;;  %v2547_v34 = vpop.f32.mrf.mxu0 }
 0x18e   : > { %v2635_v26 = vpop.f32.mrf.mxu1  ;;  %v5306_v14 = vpop.f32.mrf.mxu0 }
 0x18f   : > { %v2581_v36 = vadd.f32 %v5306_v14, %v2484_v23  ;;  %v2480_v23 = vadd.f32 %v5292_v22, %v2388_v3  ;;  %v2575_v14 = vadd.f32 %v2544_v42, %v2478_v29  ;;  %v2576_v22 = vadd.f32 %v2547_v34, %v2479_v2 }
 0x190   : > { %v5313_v10 = vpop.f32.mrf.mxu1  ;;  %v2560_v49 = vpop.f32.mrf.mxu0 }
 0x191   : > { %v2577_v9 = vadd.f32 %v5302_v1, %v2480_v23  ;;  %v2666_v3 = vadd.f32 %v2635_v26, %v2575_v14 }
 0x192   : > { %v2638_v41 = vpop.f32.mrf.mxu1  ;;  %v5307_v38 = vpop.f32.mrf.mxu0 }
 0x193   : > { %v6882_v56 = vadd.f32 %v5307_v38, %v2485_v33  ;;  %v2481_v33 = vadd.f32 %v6870_v32, %v2389_v60  ;;  %v2668_v51 = vadd.f32 %v5312_v11, %v2577_v9  ;;  %v2579_v32 = vadd.f32 %v2560_v49, %v2482_v5 }
 0x194   : > { %v5316_v4 = vpop.f32.mrf.mxu1  ;;  %v2563_v30 = vpop.f32.mrf.mxu0  ;;  %v2667_v6 = vadd.f32 %v2638_v41, %v2576_v22  ;;  %v2483_v11 = vadd.f32 %v6880_v50, %v6878_v15 }
 0x195   : > { %v2672_v25 = vadd.f32 %v5316_v4, %v2581_v36  ;;  %v2578_v55 = vadd.f32 %v5303_v57, %v2481_v33 }
 0x196   : > { %v2651_v52 = vpop.f32.mrf.mxu1  ;;  %v5322_v27 = vpop.f32.mrf.mxu0  ;;  %v2580_v24 = vadd.f32 %v2563_v30, %v2483_v11 }
 0x197   : > { %v2756_v20 = vadd.f32 %v5322_v27, %v2668_v51  ;;  %v2670_v39 = vadd.f32 %v2651_v52, %v2579_v32  ;;  %v4800_v52 = vld [vmem:[%s7194_s2] ss:$0 sm:$0xff] }
 0x198   : > { %v6884_v12 = vpop.f32.mrf.mxu1  ;;  %v2723_v44 = vpop.f32.mrf.mxu0 }
 0x199   : > { %v2754_v8 = vadd.f32 %v2723_v44, %v2666_v3  ;;  %v2673_v49 = vadd.f32 %v6884_v12, %v6882_v56 }
 0x19a   : > { %v6886_v61 = vpop.f32.mrf.mxu1  ;;  %v5323_v40 = vpop.f32.mrf.mxu0 }
 0x19b   : > { %v2671_v15 = vadd.f32 %v6886_v61, %v2580_v24 }
 0x19c   : > { %v5332_v0 = vpop.f32.mrf.mxu1  ;;  %v2726_v18 = vpop.f32.mrf.mxu0 }
 0x19d   : > { %v2857_v13 = vadd.f32 %v5332_v0, %v2756_v20  ;;  %v2755_v27 = vadd.f32 %v2726_v18, %v2667_v6 }
 0x19e   : > { %v2824_v63 = vpop.f32.mrf.mxu1  ;;  %v5326_v59 = vpop.f32.mrf.mxu0 }
 0x19f   : > { %v2760_v43 = vadd.f32 %v5326_v59, %v2672_v25  ;;  %v2669_v25 = vadd.f32 %v5313_v10, %v2578_v55  ;;  %v2855_v34 = vadd.f32 %v2824_v63, %v2754_v8 }
 0x1a0   : > { %v5333_v58 = vpop.f32.mrf.mxu1  ;;  %v2739_v62 = vpop.f32.mrf.mxu0 }
 0x1a1   : > { %v2757_v7 = vadd.f32 %v5323_v40, %v2669_v25  ;;  %v2758_v41 = vadd.f32 %v2739_v62, %v2670_v39 }
 0x1a2   : > { %v2827_v48 = vpop.f32.mrf.mxu1  ;;  %v5327_v19 = vpop.f32.mrf.mxu0 }
 0x1a3   : > { %v2858_v37 = vadd.f32 %v5333_v58, %v2757_v7  ;;  %v2856_v40 = vadd.f32 %v2827_v48, %v2755_v27  ;;  %v2761_v50 = vadd.f32 %v5327_v19, %v2673_v49 }
 0x1a4   : > { %v5336_v21 = vpop.f32.mrf.mxu1  ;;  %v2742_v46 = vpop.f32.mrf.mxu0 }
 0x1a5   : > { %v2861_v30 = vadd.f32 %v5336_v21, %v2760_v43  ;;  %v2759_v56 = vadd.f32 %v2742_v46, %v2671_v15 }
 0x1a6   : > { %v2840_v47 = vpop.f32.mrf.mxu1  ;;  %v5342_v53 = vpop.f32.mrf.mxu0 }
 0x1a7   : > { %v2949_v45 = vadd.f32 %v5342_v53, %v2857_v13  ;;  %v2859_v9 = vadd.f32 %v2840_v47, %v2758_v41 }
 0x1a8   : > { %v5337_v28 = vpop.f32.mrf.mxu1  ;;  %v2916_v4 = vpop.f32.mrf.mxu0 }
 0x1a9   : > { %v2947_v10 = vadd.f32 %v2916_v4, %v2855_v34  ;;  %v2862_v14 = vadd.f32 %v5337_v28, %v2761_v50 }
 0x1aa   : > { %v2843_v36 = vpop.f32.mrf.mxu1  ;;  %v5343_v16 = vpop.f32.mrf.mxu0 }
 0x1ab   : > { %v2950_v60 = vadd.f32 %v5343_v16, %v2858_v37 }
 0x1ac   : > { %v5352_v38 = vpop.f32.mrf.mxu1  ;;  %v2919_v1 = vpop.f32.mrf.mxu0 }
 0x1ad   : > { %v3046_v23 = vadd.f32 %v5352_v38, %v2949_v45  ;;  %v2948_v58 = vadd.f32 %v2919_v1, %v2856_v40  ;;  %v2860_v38 = vadd.f32 %v2843_v36, %v2759_v56 }
 0x1ae   : > { %v3013_v35 = vpop.f32.mrf.mxu1  ;;  %v5346_v59 = vpop.f32.mrf.mxu0 }
 0x1af   : > { %v3044_v18 = vadd.f32 %v3013_v35, %v2947_v10  ;;  %v2953_v48 = vadd.f32 %v5346_v59, %v2861_v30 }
 0x1b0   : > { %v5353_v42 = vpop.f32.mrf.mxu1  ;;  %v2932_v26 = vpop.f32.mrf.mxu0 }
 0x1b1   : > { %v3047_v62 = vadd.f32 %v5353_v42, %v2950_v60  ;;  %v2951_v61 = vadd.f32 %v2932_v26, %v2859_v9 }
 0x1b2   : > { %v3016_v57 = vpop.f32.mrf.mxu1  ;;  %v5347_v31 = vpop.f32.mrf.mxu0 }
 0x1b3   : > { %v3045_v4 = vadd.f32 %v3016_v57, %v2948_v58  ;;  %v2954_v43 = vadd.f32 %v5347_v31, %v2862_v14  ;;  %v5625_v14 = vld [vmem:[%s7195_s3 + $0x68] sm:$0xff]  }
 0x1b4   : > { %v5356_v44 = vpop.f32.mrf.mxu1  ;;  %v2935_v0 = vpop.f32.mrf.mxu0 }
 0x1b5   : > { %v3050_v3 = vadd.f32 %v5356_v44, %v2953_v48  ;;  %v2952_v20 = vadd.f32 %v2935_v0, %v2860_v38  ;;  %v5623_v48 = vld [vmem:[%s7195_s3 + $0x40] sm:$0xff]  }
 0x1b6   : > { %v5362_v63 = vpop.f32.mrf.mxu0  ;;  %v3029_v29 = vpop.f32.mrf.mxu1 }
 0x1b7   : > { %v3137_v54 = vadd.f32 %v5362_v63, %v3046_v23  ;;  %v3048_v22 = vadd.f32 %v3029_v29, %v2951_v61  ;;  %v5620_v29 = vld [vmem:[%s7195_s3 + $0x8] sm:$0xff]  }
 0x1b8   : > { %v3104_v12 = vpop.f32.mrf.mxu0  ;;  %v5357_v2 = vpop.f32.mrf.mxu1 }
 0x1b9   : > { %v3152_v53 = vadd.f32 %v4800_v52, %v3137_v54  ;;  %v3135_v33 = vadd.f32 %v3104_v12, %v3044_v18  ;;  %v3051_v32 = vadd.f32 %v5357_v2, %v2954_v43  ;;  %v5628_v2 = vld [vmem:[%s7195_s3 + $0x58] sm:$0xff]  }
 0x1ba   : > { %v5363_v19 = vpop.f32.mrf.mxu0  ;;  %v3032_v35 = vpop.f32.mrf.mxu1 }
 0x1bb   : > { %v3150_v51 = vadd.f32 %v4800_v52, %v3135_v33  ;;  %v3138_v55 = vadd.f32 %v5363_v19, %v3047_v62  ;;  %v3160_v21 = vmax.f32 %v3152_v53, 0.0  ;;  %v3049_v11 = vadd.f32 %v3032_v35, %v2952_v20  ;;  %v5622_v62 = vld [vmem:[%s7195_s3] sm:$0xff]   ;;  %v5624_v33 = vld [vmem:[%s7195_s3 + $0x38] sm:$0xff]   ;;  %v5626_v19 = vld [vmem:[%s7195_s3 + $0x30] sm:$0xff]  }
 0x1bc   : > { %v3107_v16 = vpop.f32.mrf.mxu0  ;;  %v5635_v35 = vld [vmem:[%s7195_s3 + $0xa0] sm:$0xff]  }
 0x1bd   : > { %v3153_v47 = vadd.f32 %v4800_v52, %v3138_v55  ;;  %v3136_v46 = vadd.f32 %v3107_v16, %v3045_v4  ;;  %v3158_v1 = vmax.f32 %v3150_v51, 0.0  ;;  %v3170_v42 = vsel %vm3166_vm14, %v3160_v21, -inf  ;;  %v5627_v4 = vld [vmem:[%s7195_s3 + $0x60] sm:$0xff]   ;;  %v5629_v51 = vld [vmem:[%s7195_s3 + $0x88] sm:$0xff]   ;;  %v5630_v21 = vld [vmem:[%s7195_s3 + $0x50] sm:$0xff]  }
 0x1be   : > { %v5366_v5 = vpop.f32.mrf.mxu0  ;;  %v5631_v16 = vld [vmem:[%s7195_s3 + $0x80] sm:$0xff]  }
 0x1bf   : > { %v3161_v28 = vmax.f32 %v3153_v47, 0.0  ;;  %v3151_v25 = vadd.f32 %v4800_v52, %v3136_v46  ;;  %v3141_v8 = vadd.f32 %v5366_v5, %v3050_v3  ;;  %v3167_v34 = vsel %vm3166_vm14, %v3158_v1, -inf  ;;  %v5632_v47 = vld [vmem:[%s7195_s3 + $0x78] sm:$0xff]   ;;  %v5633_v46 = vld [vmem:[%s7195_s3 + $0xa8] sm:$0xff]   ;;  %v5634_v5 = vld [vmem:[%s7195_s3 + $0x70] sm:$0xff]  }
 0x1c0   : > { %v3120_v59 = vpop.f32.mrf.mxu0  ;;  %v5636_v1 = vld [vmem:[%s7195_s3 + $0x98] sm:$0xff]  }
 0x1c1   : > { %v3171_v36 = vsel %vm3166_vm14, %v3161_v28, -inf  ;;  %v3159_v6 = vmax.f32 %v3151_v25, 0.0  ;;  %v3156_v13 = vadd.f32 %v4800_v52, %v3141_v8  ;;  %v3139_v7 = vadd.f32 %v3120_v59, %v3048_v22  ;;  %v5637_v28 = vld [vmem:[%s7195_s3 + $0xc8] sm:$0xff]   ;;  %v5639_v59 = vld [vmem:[%s7195_s3 + $0xc0] sm:$0xff]  }
 0x1c2   : > { %v3172_v57 = vmax.f32 %v3170_v42, %v3171_v36  ;;  %v5367_v26 = vpop.f32.mrf.mxu0  ;;  %v5638_v42 = vld [vmem:[%s7195_s3 + $0x90] sm:$0xff]  }
 0x1c3   : > { %v3168_v27 = vsel %vm3166_vm14, %v3159_v6, -inf  ;;  %v3154_v45 = vadd.f32 %v4800_v52, %v3139_v7  ;;  %v3142_v39 = vadd.f32 %v5367_v26, %v3051_v32  ;;  %v3164_v37 = vmax.f32 %v3156_v13, 0.0  ;;  %v5640_v6 = vld [vmem:[%s7195_s3 + $0xb8] sm:$0xff]   ;;  %v5641_v13 = vld [vmem:[%s7195_s3 + $0xe8] sm:$0xff]   ;;  %v5643_v26 = vld [vmem:[%s7195_s3 + $0xe0] sm:$0xff]  }
 0x1c4   : > { %v3169_v24 = vmax.f32 %v3167_v34, %v3168_v27  ;;  %v3123_v31 = vpop.f32.mrf.mxu0  ;;  %v3184_v54 = vrot.slane %v3172_v57, 1  ;;  %v5644_v34 = vld [vmem:[%s7195_s3 + $0xd8] sm:$0xff]  }
 0x1c5   : > { %v3157_v10 = vadd.f32 %v4800_v52, %v3142_v39  ;;  %v3140_v44 = vadd.f32 %v3123_v31, %v3049_v11  ;;  %v3162_v41 = vmax.f32 %v3154_v45, 0.0  ;;  %v3176_v60 = vsel %vm3166_vm14, %v3164_v37, -inf  ;;  %v5645_v39 = vld [vmem:[%s7195_s3 + $0xd0] sm:$0xff]  }
 0x1c6   : > { %v3183_v49 = vrot.slane %v3169_v24, 1  ;;  %v3197_v53 = vmax.f32 %v3172_v57, %v3184_v54  ;;  %v5642_v57 = vld [vmem:[%s7195_s3 + $0xb0] sm:$0xff]  }
 0x1c7   : > { %v3165_v0 = vmax.f32 %v3157_v10, 0.0  ;;  %v3155_v40 = vadd.f32 %v4800_v52, %v3140_v44  ;;  %v3173_v18 = vsel %vm3166_vm14, %v3162_v41, -inf  ;;  %v5621_v52 = vld [vmem:[%s7195_s3 + $0x48] sm:$0xff]   ;;  %v5647_v37 = vld [vmem:[%s7195_s3 + $0xf0] sm:$0xff]   ;;  %v5650_v41 = vld [vmem:[%s7198_s6 + $0x38] sm:$0xff]  }
 0x1c8   : > { %v3196_v23 = vmax.f32 %v3169_v24, %v3183_v49  ;;  %v3446_v61 = vpack.c.bf16 %v3197_v53, %v3197_v53  ;;  %v5646_v24 = vld [vmem:[%s7195_s3 + $0xf8] sm:$0xff]   ;;  %v5648_v44 = vld [vmem:[%s7196_s4 + $0x8] sm:$0xff]   ;;  %v5649_v49 = vld [vmem:[%s7196_s4] sm:$0xff]  }
 0x1c9   : > { %v3177_v15 = vsel %vm3166_vm14, %v3165_v0, -inf  ;;  %v3163_v50 = vmax.f32 %v3155_v40, 0.0  ;;  %v5651_v0 = vld [vmem:[%s7198_s6 + $0x30] sm:$0xff]   ;;  %v5652_v40 = vld [vmem:[%s7198_s6 + $0x28] sm:$0xff]  }
 0x1ca   : > { %v3200_v63 = vpack.c.bf16 %v3196_v23, %v3196_v23  ;;  %v6914_v30 = vmax.f32 %v3176_v60, %v3177_v15  ;;  %v3576_v55 = vrot.slane %v3446_v61, 2  ;;  %v3514_v20 = vrot.slane %v3446_v61, 1  ;;  %v5653_v23 = vld [vmem:[%s7198_s6 + $0x20] sm:$0xff]   ;;  %v5654_v60 = vld [vmem:[%s7198_s6 + $0x18] sm:$0xff]   ;;  %v5655_v15 = vld [vmem:[%s7198_s6 + $0x10] sm:$0xff]  }
 0x1cb   : > { %v3174_v58 = vsel %vm3166_vm14, %v3163_v50, -inf  ;;  %v3638_v25 = vrot.slane %v3446_v61, 3  ;;  %v5656_v50 = vld [vmem:[%s7198_s6 + $0x8] sm:$0xff]  }
 0x1cc   : > { %v3211_v9 = vrot.slane %v3200_v63, 1  ;;  %v3327_v56 = vrot.slane %v3200_v63, 2  ;;  %v3175_v12 = vmax.f32 %v3173_v18, %v3174_v58  ;;  %v3389_v43 = vrot.slane %v3200_v63, 3 }
 0x1cd   : > { %v3186_v8 = vrot.slane %v6914_v30, 1 }
 0x1ce   : > { %5373 = vmatmul.mubr.msk.bf16.vlgmr.msra.gmra.mxu1 %vm3166_vm14, %v3211_v9  ;;  %5389 = vmatmul.mubr.msk.bf16.vlgmr.msra.gmra.mxu0 %vm3166_vm14, %v3327_v56  ;;  %v3185_v38 = vrot.slane %v3175_v12, 1 }
 0x1cf   : > { %5377 = vmatpush3.bf16.msra.mxu1 %v5620_v29  ;;  %5401 = vmatpush3.bf16.msra.mxu0 %v5621_v52  ;;  %v3199_v36 = vmax.f32 %v6914_v30, %v3186_v8 }
 0x1d0   : > { %5378 = vmatprep.subr.bf16.mxu1 %v5723_v17  ;;  %5402 = vmatprep.subr.bf16.mxu0 %v5723_v17  ;;  %v3198_v3 = vmax.f32 %v3175_v12, %v3185_v38 }
 0x1d1   : > { %5380 = vmatprep.mubr.msk.bf16.mxu1 %vm5724_vm13, %v5723_v17  ;;  %5404 = vmatprep.mubr.msk.bf16.mxu0 %vm5724_vm13, %v5723_v17  ;;  %v3944_v7 = vpack.c.bf16 %v3199_v36, %v3199_v36 }
 0x1d2   : > { %v3695_v22 = vpack.c.bf16 %v3198_v3, %v3198_v3 }
 0x1d3   : > { %5379 = vmatpush3.bf16.msra.mxu1 %v5622_v62  ;;  %5403 = vmatpush3.bf16.msra.mxu0 %v5623_v48  ;;  %v4074_v27 = vrot.slane %v3944_v7, 2  ;;  %v4012_v31 = vrot.slane %v3944_v7, 1  ;;  %v4136_v10 = vrot.slane %v3944_v7, 3 }
 0x1d4   : > { %5392 = vmatprep.subr.bf16.mxu1 %v5723_v17  ;;  %5416 = vmatprep.subr.bf16.mxu0 %v5723_v17  ;;  %v3825_v32 = vrot.slane %v3695_v22, 2  ;;  %v3763_v11 = vrot.slane %v3695_v22, 1  ;;  %v3887_v45 = vrot.slane %v3695_v22, 3 }
 0x1d6   : > { %5381 = vmatmul.mubr.msk.bf16.vlgmr.msra.gmra.mxu1 %vm3166_vm14, %v3200_v63  ;;  %5405 = vmatmul.mubr.msk.bf16.vlgmr.msra.gmra.mxu0 %vm3166_vm14, %v3446_v61 }
 0x1d7   : > { %5393 = vmatpush3.bf16.msra.mxu1 %v5624_v33  ;;  %5417 = vmatpush3.bf16.msra.mxu0 %v5625_v14 }
 0x1d8   : > { %5394 = vmatprep.subr.bf16.mxu1 %v5723_v17  ;;  %5418 = vmatprep.subr.bf16.mxu0 %v5723_v17 }
 0x1d9   : > { %5396 = vmatprep.mubr.msk.bf16.mxu1 %vm5724_vm13, %v5723_v17  ;;  %5420 = vmatprep.mubr.msk.bf16.mxu0 %vm5724_vm13, %v5723_v17 }
 0x1db   : > { %5395 = vmatpush3.bf16.msra.mxu1 %v5626_v19  ;;  %5419 = vmatpush3.bf16.msra.mxu0 %v5627_v4 }
 0x1dc   : > { %5408 = vmatprep.subr.bf16.mxu1 %v5723_v17  ;;  %5432 = vmatprep.subr.bf16.mxu0 %v5723_v17 }
 0x1de   : > { %5397 = vmatmul.mubr.msk.bf16.vlgmr.msra.gmra.mxu1 %vm3166_vm14, %v3389_v43  ;;  %5421 = vmatmul.mubr.msk.bf16.vlgmr.msra.gmra.mxu0 %vm3166_vm14, %v3576_v55 }
 0x1df   : > { %5409 = vmatpush3.bf16.msra.mxu1 %v5628_v2  ;;  %5433 = vmatpush3.bf16.msra.mxu0 %v5629_v51 }
 0x1e0   : > { %5410 = vmatprep.subr.bf16.mxu1 %v5723_v17  ;;  %5434 = vmatprep.subr.bf16.mxu0 %v5723_v17 }
 0x1e1   : > { %5412 = vmatprep.mubr.msk.bf16.mxu1 %vm5724_vm13, %v5723_v17  ;;  %5436 = vmatprep.mubr.msk.bf16.mxu0 %vm5724_vm13, %v5723_v17 }
 0x1e3   : > { %5411 = vmatpush3.bf16.msra.mxu1 %v5630_v21  ;;  %5435 = vmatpush3.bf16.msra.mxu0 %v5631_v16 }
 0x1e4   : > { %5424 = vmatprep.subr.bf16.mxu1 %v5723_v17  ;;  %5448 = vmatprep.subr.bf16.mxu0 %v5723_v17 }
 0x1e6   : > { %5413 = vmatmul.mubr.msk.bf16.vlgmr.msra.gmra.mxu1 %vm3166_vm14, %v3514_v20  ;;  %5437 = vmatmul.mubr.msk.bf16.vlgmr.msra.gmra.mxu0 %vm3166_vm14, %v3695_v22 }
 0x1e7   : > { %5425 = vmatpush3.bf16.msra.mxu1 %v5632_v47  ;;  %5449 = vmatpush3.bf16.msra.mxu0 %v5633_v46 }
 0x1e8   : > { %5426 = vmatprep.subr.bf16.mxu1 %v5723_v17  ;;  %5450 = vmatprep.subr.bf16.mxu0 %v5723_v17 }
 0x1e9   : > { %5428 = vmatprep.mubr.msk.bf16.mxu1 %vm5724_vm13, %v5723_v17  ;;  %5452 = vmatprep.mubr.msk.bf16.mxu0 %vm5724_vm13, %v5723_v17 }
 0x1eb   : > { %5427 = vmatpush3.bf16.msra.mxu1 %v5634_v5  ;;  %5451 = vmatpush3.bf16.msra.mxu0 %v5635_v35 }
 0x1ec   : > { %5440 = vmatprep.subr.bf16.mxu1 %v5723_v17  ;;  %5464 = vmatprep.subr.bf16.mxu0 %v5723_v17 }
 0x1ee   : > { %5429 = vmatmul.mubr.msk.bf16.vlgmr.msra.gmra.mxu1 %vm3166_vm14, %v3638_v25  ;;  %5453 = vmatmul.mubr.msk.bf16.vlgmr.msra.gmra.mxu0 %vm3166_vm14, %v3825_v32 }
 0x1ef   : > { %5441 = vmatpush3.bf16.msra.mxu1 %v5636_v1  ;;  %5465 = vmatpush3.bf16.msra.mxu0 %v5637_v28 }
 0x1f0   : > { %5442 = vmatprep.subr.bf16.mxu1 %v5723_v17  ;;  %5466 = vmatprep.subr.bf16.mxu0 %v5723_v17 }
 0x1f1   : > { %5444 = vmatprep.mubr.msk.bf16.mxu1 %vm5724_vm13, %v5723_v17  ;;  %5468 = vmatprep.mubr.msk.bf16.mxu0 %vm5724_vm13, %v5723_v17 }
 0x1f3   : > { %5443 = vmatpush3.bf16.msra.mxu1 %v5638_v42  ;;  %5467 = vmatpush3.bf16.msra.mxu0 %v5639_v59 }
 0x1f4   : > { %5456 = vmatprep.subr.bf16.mxu1 %v5723_v17  ;;  %5480 = vmatprep.subr.bf16.mxu0 %v5723_v17 }
 0x1f6   : > { %5445 = vmatmul.mubr.msk.bf16.vlgmr.msra.gmra.mxu1 %vm3166_vm14, %v3763_v11  ;;  %5469 = vmatmul.mubr.msk.bf16.vlgmr.msra.gmra.mxu0 %vm3166_vm14, %v3944_v7 }
 0x1f7   : > { %5457 = vmatpush3.bf16.msra.mxu1 %v5640_v6  ;;  %5481 = vmatpush3.bf16.msra.mxu0 %v5641_v13 }
 0x1f8   : > { %5458 = vmatprep.subr.bf16.mxu1 %v5723_v17  ;;  %5482 = vmatprep.subr.bf16.mxu0 %v5723_v17 }
 0x1f9   : > { %5460 = vmatprep.mubr.msk.bf16.mxu1 %vm5724_vm13, %v5723_v17  ;;  %5484 = vmatprep.mubr.msk.bf16.mxu0 %vm5724_vm13, %v5723_v17 }
 0x1fb   : > { %5459 = vmatpush3.bf16.msra.mxu1 %v5642_v57  ;;  %5483 = vmatpush3.bf16.msra.mxu0 %v5643_v26 }
 0x1fc   : > { %5472 = vmatprep.subr.bf16.mxu1 %v5723_v17  ;;  %5496 = vmatprep.subr.bf16.mxu0 %v5723_v17 }
 0x1fe   : > { %5461 = vmatmul.mubr.msk.bf16.vlgmr.msra.gmra.mxu1 %vm3166_vm14, %v3887_v45  ;;  %5485 = vmatmul.mubr.msk.bf16.vlgmr.msra.gmra.mxu0 %vm3166_vm14, %v4074_v27 }
 0x1ff   : > { %5473 = vmatpush3.bf16.msra.mxu1 %v5644_v34  ;;  %5476 = vmatprep.mubr.msk.bf16.mxu1 %vm5724_vm13, %v5723_v17 }
 0x200   : > { %5474 = vmatprep.subr.bf16.mxu1 %v5723_v17  ;;  %5500 = vmatprep.mubr.msk.bf16.mxu0 %vm5724_vm13, %v5723_v17 }
 0x201   : > { %5497 = vmatpush3.bf16.msra.mxu0 %v5648_v44 }
 0x202   : > { %5498 = vmatprep.subr.bf16.mxu0 %v5723_v17 }
 0x203   : > { %5475 = vmatpush3.bf16.msra.mxu1 %v5645_v39 }
 0x204   : > { %5488 = vmatprep.subr.bf16.mxu1 %v5723_v17 }
 0x205   : > { %5499 = vmatpush3.bf16.msra.mxu0 %v5649_v49 }
 0x206   : > { %5477 = vmatmul.mubr.msk.bf16.vlgmr.msra.gmra.mxu1 %vm3166_vm14, %v4012_v31  ;;  %5524 = vmatprep.subr.bf16.mxu0 %v5723_v17 }
 0x207   : > { %5489 = vmatpush3.bf16.msra.mxu1 %v5646_v24  ;;  %5492 = vmatprep.mubr.msk.bf16.mxu1 %vm5724_vm13, %v5723_v17 }
 0x208   : > { %5490 = vmatprep.subr.bf16.mxu1 %v5723_v17 }
 0x20b   : > { %5491 = vmatpush3.bf16.msra.mxu1 %v5647_v37 }
 0x20c   : > { %5504 = vmatprep.subr.bf16.mxu1 %v5723_v17 }
 0x20e   : > { %5493 = vmatmul.mubr.msk.bf16.vlgmr.msra.gmra.mxu1 %vm3166_vm14, %v4136_v10 }
 0x20f   : > { %5520 = vmatprep.mubr.msk.bf16.mxu1 %vm5724_vm13, %v5723_v17  ;;  %5505 = vmatpush3.bf16.msra.mxu1 %v5650_v41 }
 0x210   : > { %5506 = vmatprep.subr.bf16.mxu1 %v5723_v17 }
 0x213   : > { %5507 = vmatpush3.bf16.msra.mxu1 %v5651_v0 }
 0x214   : > { %5508 = vmatprep.subr.bf16.mxu1 %v5723_v17 }
 0x217   : > { %5509 = vmatpush3.bf16.msra.mxu1 %v5652_v40 }
 0x218   : > { %5510 = vmatprep.subr.bf16.mxu1 %v5723_v17 }
 0x21b   : > { %5511 = vmatpush3.bf16.msra.mxu1 %v5653_v23 }
 0x21c   : > { %5512 = vmatprep.subr.bf16.mxu1 %v5723_v17 }
 0x21f   : > { %5513 = vmatpush3.bf16.msra.mxu1 %v5654_v60 }
 0x220   : > { %5514 = vmatprep.subr.bf16.mxu1 %v5723_v17 }
 0x223   : > { %5515 = vmatpush3.bf16.msra.mxu1 %v5655_v15 }
 0x224   : > { %5516 = vmatprep.subr.bf16.mxu1 %v5723_v17 }
 0x227   : > { %5517 = vmatpush3.bf16.msra.mxu1 %v5656_v50 }
 0x228   : > { %5518 = vmatprep.subr.bf16.mxu1 %v5723_v17 }
 0x28e   : > { %v3261_v63 = vpop.f32.mrf.mxu1  ;;  %v3377_v30 = vpop.f32.mrf.mxu0 }
 0x290   : > { %v5374_v18 = vpop.f32.mrf.mxu1  ;;  %v5390_v58 = vpop.f32.mrf.mxu0 }
 0x292   : > { %v3264_v29 = vpop.f32.mrf.mxu1  ;;  %v3380_v52 = vpop.f32.mrf.mxu0 }
 0x294   : > { %v5375_v54 = vpop.f32.mrf.mxu1  ;;  %v5391_v9 = vpop.f32.mrf.mxu0 }
 0x296   : > { %v3316_v56 = vpop.f32.mrf.mxu1  ;;  %v3501_v12 = vpop.f32.mrf.mxu0 }
 0x297   : > { %v3317_v16 = vadd.f32 %v3316_v56, %v3261_v63 }
 0x298   : > { %v5382_v62 = vpop.f32.mrf.mxu1  ;;  %v5406_v48 = vpop.f32.mrf.mxu0 }
 0x299   : > { %v3383_v20 = vadd.f32 %v3377_v30, %v3317_v16 }
 0x29a   : > { %v3319_v53 = vpop.f32.mrf.mxu1  ;;  %v3504_v33 = vpop.f32.mrf.mxu0 }
 0x29c   : > { %v5383_v14 = vpop.f32.mrf.mxu1  ;;  %v5407_v61 = vpop.f32.mrf.mxu0 }
 0x29e   : > { %v3439_v19 = vpop.f32.mrf.mxu1  ;;  %v3626_v4 = vpop.f32.mrf.mxu0 }
 0x29f   : > { %v3445_v1 = vadd.f32 %v3439_v19, %v3383_v20 }
 0x2a0   : > { %v5398_v2 = vpop.f32.mrf.mxu1  ;;  %v5422_v51 = vpop.f32.mrf.mxu0 }
 0x2a1   : > { %v3507_v42 = vadd.f32 %v3501_v12, %v3445_v1  ;;  %v5658_v2 = vld [vmem:[%s7199_s7] sm:$0xff]  }
 0x2a2   : > { %v3442_v55 = vpop.f32.mrf.mxu1  ;;  %v3629_v38 = vpop.f32.mrf.mxu0  ;;  %v4198_v51 = vld [vmem:[%s7197_s5] sm:$0x1] }
 0x2a3   : > { %v5660_v1 = vld [vmem:[%s7201_s9] sm:$0xff]  }
 0x2a4   : > { %v5399_v43 = vpop.f32.mrf.mxu1  ;;  %v5423_v21 = vpop.f32.mrf.mxu0 }
 0x2a6   : > { %v3564_v3 = vpop.f32.mrf.mxu1  ;;  %v3750_v47 = vpop.f32.mrf.mxu0 }
 0x2a7   : > { %v3570_v6 = vadd.f32 %v3564_v3, %v3507_v42 }
 0x2a8   : > { %v5414_v46 = vpop.f32.mrf.mxu1  ;;  %v5438_v22 = vpop.f32.mrf.mxu0 }
 0x2a9   : > { %v3632_v26 = vadd.f32 %v3626_v4, %v3570_v6  ;;  %v5657_v4 = vld [vmem:[%s7198_s6] sm:$0xff]   ;;  %v5659_v46 = vld [vmem:[%s7201_s9 + $0x8] sm:$0xff]  }
 0x2aa   : > { %v3567_v5 = vpop.f32.mrf.mxu1  ;;  %v3753_v35 = vpop.f32.mrf.mxu0  ;;  %5519 = vmatpush3.bf16.msra.mxu1 %v5657_v4 }
 0x2ac   : > { %v5415_v28 = vpop.f32.mrf.mxu1  ;;  %v5439_v25 = vpop.f32.mrf.mxu0 }
 0x2ad   : > { %v4362_v28 = vld [vmem:[%s7200_s8] sm:$0x1] }
 0x2ae   : > { %v3688_v8 = vpop.f32.mrf.mxu1  ;;  %v3875_v32 = vpop.f32.mrf.mxu0 }
 0x2af   : > { %v3694_v45 = vadd.f32 %v3688_v8, %v3632_v26 }
 0x2b0   : > { %v5430_v59 = vpop.f32.mrf.mxu1  ;;  %v5454_v36 = vpop.f32.mrf.mxu0 }
 0x2b1   : > { %v3756_v10 = vadd.f32 %v3750_v47, %v3694_v45 }
 0x2b2   : > { %v3691_v13 = vpop.f32.mrf.mxu1  ;;  %v3878_v7 = vpop.f32.mrf.mxu0 }
 0x2b4   : > { %v5431_v11 = vpop.f32.mrf.mxu1  ;;  %v5455_v57 = vpop.f32.mrf.mxu0 }
 0x2b6   : > { %v3813_v34 = vpop.f32.mrf.mxu1  ;;  %v3999_v27 = vpop.f32.mrf.mxu0 }
 0x2b7   : > { %v3819_v41 = vadd.f32 %v3813_v34, %v3756_v10 }
 0x2b8   : > { %v5446_v39 = vpop.f32.mrf.mxu1  ;;  %v5470_v24 = vpop.f32.mrf.mxu0 }
 0x2b9   : > { %v3881_v15 = vadd.f32 %v3875_v32, %v3819_v41 }
 0x2ba   : > { %v3816_v31 = vpop.f32.mrf.mxu1  ;;  %v4002_v37 = vpop.f32.mrf.mxu0 }
 0x2bc   : > { %v5447_v44 = vpop.f32.mrf.mxu1  ;;  %v5471_v49 = vpop.f32.mrf.mxu0 }
 0x2be   : > { %v3937_v0 = vpop.f32.mrf.mxu1  ;;  %v4124_v40 = vpop.f32.mrf.mxu0 }
 0x2bf   : > { %v3943_v30 = vadd.f32 %v3937_v0, %v3881_v15 }
 0x2c0   : > { %v5462_v23 = vpop.f32.mrf.mxu1  ;;  %v5486_v60 = vpop.f32.mrf.mxu0 }
 0x2c1   : > { %v4005_v52 = vadd.f32 %v3999_v27, %v3943_v30 }
 0x2c2   : > { %v3940_v50 = vpop.f32.mrf.mxu1  ;;  %v4127_v63 = vpop.f32.mrf.mxu0 }
 0x2c4   : > { %v5463_v18 = vpop.f32.mrf.mxu1  ;;  %v5487_v58 = vpop.f32.mrf.mxu0 }
 0x2c6   : > { %v4062_v29 = vpop.f32.mrf.mxu1 }
 0x2c7   : > { %v4068_v9 = vadd.f32 %v4062_v29, %v4005_v52 }
 0x2c8   : > { %v5478_v54 = vpop.f32.mrf.mxu1 }
 0x2c9   : > { %v4130_v62 = vadd.f32 %v4124_v40, %v4068_v9 }
 0x2ca   : > { %v4065_v56 = vpop.f32.mrf.mxu1 }
 0x2cc   : > { %v5479_v12 = vpop.f32.mrf.mxu1 }
 0x2ce   : > { %v4186_v48 = vpop.f32.mrf.mxu1 }
 0x2cf   : > { %v4192_v53 = vadd.f32 %v4186_v48, %v4130_v62 }
 0x2d0   : > { %v5494_v33 = vpop.f32.mrf.mxu1 }
 0x2d1   : > { %v4193_v14 = vpack.c.bf16 %v4192_v53, %v4192_v53 }
 0x2d2   : > { %v4189_v61 = vpop.f32.mrf.mxu1 }
 0x2d3   : > { %5501 = vmatmul.mubr.msk.bf16.vlgmr.msra.gmra.mxu0 %vm3166_vm14, %v4193_v14 }
 0x2d4   : > { %v5495_v19 = vpop.f32.mrf.mxu1  ;;  %5526 = vmatprep.mubr.msk.bf16.mxu0 %vm5724_vm13, %v5723_v17  ;;  %5525 = vmatpush3.bf16.msra.mxu0 %v5658_v2 }
 0x2d5   : > { %5530 = vmatprep.subr.bf16.mxu0 %v5723_v17 }
 0x393   : > { %v4248_v55 = vpop.f32.mrf.mxu0 }
 0x394   : > { %v4249_v38 = vadd.f32 %v4248_v55, %v4198_v51 }
 0x395   : > { %v5502_v43 = vpop.f32.mrf.mxu0 }
 0x396   : > { %v4254_v21 = vpack.c.bf16 %v4249_v38, %v4249_v38 }
 0x397   : > { %v4251_v16 = vpop.f32.mrf.mxu0 }
 0x398   : > { %5521 = vmatmul.mubr.bf16.vlgmr.msra.gmra.mxu1 %v4254_v21 }
 0x399   : > { %v5503_v3 = vpop.f32.mrf.mxu0 }
 0x458   : > { %v4353_v47 = vpop.f32.mrf.mxu1 }
 0x459   : > { %v4359_v22 = vpack.c.bf16 %v4353_v47, %v4353_v47 }
 0x45a   : > { %v5522_v20 = vpop.f32.mrf.mxu1 }
 0x45b   : > { %5527 = vmatmul.mubr.msk.bf16.vlgmr.msra.gmra.mxu0 %vm547_vm0, %v4359_v22 }
 0x45c   : > { %v4356_v5 = vpop.f32.mrf.mxu1  ;;  %5531 = vmatpush3.bf16.msra.mxu0 %v5659_v46  ;;  %5534 = vmatprep.mubr.msk.bf16.mxu0 %vm5724_vm13, %v5723_v17 }
 0x45d   : > { %5532 = vmatprep.subr.bf16.mxu0 %v5723_v17  ;;  %v4417_v17 = vld [vmem:[%s7202_s10] sm:$0x1] }
 0x45e   : > { %v5523_v35 = vpop.f32.mrf.mxu1 }
 0x460   : > { %5533 = vmatpush3.bf16.msra.mxu0 %v5660_v1 }
 0x51b   : > { %v4406_v25 = vpop.f32.mrf.mxu0 }
 0x51c   : > { %v4407_v8 = vadd.f32 %v4406_v25, %v4362_v28 }
 0x51d   : > { %v5528_v32 = vpop.f32.mrf.mxu0 }
 0x51e   : > { %v4412_v42 = vpack.c.bf16 %v4407_v8, %v4407_v8 }
 0x51f   : > { %v4409_v59 = vpop.f32.mrf.mxu0 }
 0x520   : > { %5535 = vmatmul.mubr.msk.bf16.vlgmr.msra.gmra.mxu0 %vm3166_vm14, %v4412_v42 }
 0x521   : > { %v5529_v36 = vpop.f32.mrf.mxu0 }
 0x5e0   : > { %v4467_v6 = vpop.f32.mrf.mxu0 }
 0x5e1   : > { %v4468_v13 = vadd.f32 %v4467_v6, %v4417_v17 }
 0x5e2   : > { %v5536_v7 = vpop.f32.mrf.mxu0 }
 0x5e3   : > { %4474 = vst.msk [vmem:[%s378_s16] sm:$0x1] %vm4473_vm15, %v4468_v13 }
 0x5e4   : > { %v4470_v11 = vpop.f32.mrf.mxu0 }
 0x5e5   : > { %5674 = shalt.err (!%p5671_p3)
}
 0x5e6   : > { %s5675_s15 = scalar_lea.hbm %s7151_s12, 16  ;;  %s5679_s25 = scalar_lea.hbm %s7203_s11, 32 }
 0x5e7   : > { %p5676_p4 = scmp.ne.s32.totalorder %s7151_s12, %s5675_s15  ;;  %p5680_p9 = scmp.lt.s32.totalorder %s7151_s12, %s7203_s11 }
 0x5e8   : > { %p5681_p10 = scmp.lt.s32.totalorder %s5679_s25, %s5675_s15 }
 0x5e9   : > { %p5677_p7 = pnand %p5676_p4, %p5824_p5 }
 0x5ea   : > { %p5682_p11 = por %p5681_p10, %p5680_p9 }
 0x5eb   : > { %p5678_p8 = pneg %p5677_p7 }
 0x5ed   : > { %p5683_p12 = pnand %p5682_p11, %p5678_p8 }
 0x5ef   : > { %5686 = shalt.err (!%p5683_p12)
}
 0x5f0   : > { %5539 = dma.vmem_to_hbm [thread:$0]  (%p5824_p5), %s7153_s22, 16, %s7151_s12, %s4476_s29   ;;  %v5537_v57 = vpop.f32.mrf.mxu0 }
 0x5f1 PF: > { %p5545_p13 = scmp.ge.s32.totalorder %s5721_s20, 2  ;;  %s4500_s21 = sand.u32 1, %s5709_s17  }
 0x5f2   : > { %s4501_s0 = scalar_lea.sflag [#allocation3], %s4500_s21 }
 0x5f3   : > { %p5542_p0 = pnand %p5545_p13, %p5828_p6 }
 0x5f5   : > { %p5543_p1 = pneg %p5542_p0 }
 0x5f7   : > { %5704 = dma.done.wait (%p5543_p1), %s4501_s0, 16  }
 0x5f8   : > { %5706 = vsyncadd (%p5543_p1), %s4501_s0, 4294967280  ;;  %p21_p2 = scmp.ge.s32.totalorder %s5811_s23, 4   ;;  %s7292_s17 = smov %s5713_s18 }
 0x5f9   : > { %s7293_s18 = smov %s5717_s19  ;;  %s7294_s19 = smov %s5822_s26 }
 0x5fa   : > { %s7295_s20 = smov %s5811_s23  ;;  %23 = sbr.rel (!%p21_p2) target bundleno = 5 (0x5), region = 138 }
 0x5ff   :  { %4505 = vsyncpa [#allocation3], 1 }
 0x600   :  { %4507 = vsyncpa [#allocation3 + $0x1], 1 }

// kernel: forward_pallas.2
= control target key start
LH: loop header
LB: loop body
LE: loop exit
PB: predicated region body
PF: predicated region fallthrough
CT: control target
= control target key end

     0   :  { %s6569_s15 = smov 0   ;;  %s10704_s0 = inlined_call_operand.vmem [shape: f32[2,20,20,1], index: 0, kind: input, shape index: {}]   ;;  %s10705_s1 = inlined_call_operand.vmem [shape: f32[25,32], index: 1, kind: input, shape index: {}]   ;;  %s10706_s2 = inlined_call_operand.vmem [shape: f32[1,32], index: 2, kind: input, shape index: {}]   ;;  %s10707_s3 = inlined_call_operand.vmem [shape: bf16[32,16], index: 3, kind: input, shape index: {}]   ;;  %s10708_s4 = inlined_call_operand.vmem [shape: bf16[2,128,16], index: 4, kind: output, shape index: {}]  }
   0x1 LB: > { %s6297_s16 = sadd.s32 4294967295, %s6541_s15   ;;  %p6301_p0 = scmp.ge.s32.totalorder %s6541_s15, 1  ;;  %s6541_s15 = sphi %s6569_s15, %s14_s15  }
   0x2   : > { %p162_p1 = scmp.lt.s32.totalorder %s6541_s15, 3 }
   0x4   : > { %p163_p2 = pnand %p6301_p0, %p162_p1 }
   0x6   : > { %166 = sbr.rel (%p163_p2) target bundleno = 1279 (0x4ff), region = 36 }
   0xb   : > { %p188_p3 = scmp.lt.s32.totalorder %s6297_s16, 1  ;;  %v6543_v0 = vmov 0   ;;  %v6648_v61 = vld [vmem:[%s10705_s1 + $0x1] ss:$0 sm:$0xff]  ;;  %v6653_v62 = vld [vmem:[%s10705_s1 + $0x2] ss:$0 sm:$0xff] }
   0xc   : > { %6421 = vset.pattern.permute.xlu1 %v6543_v0  ;;  %6420 = vset.pattern.permute.xlu0 %v6543_v0  ;;  %v6658_v63 = vld [vmem:[%s10705_s1 + $0x3] ss:$0 sm:$0xff]  ;;  %v6663_v0 = vld [vmem:[%s10705_s1 + $0x4] ss:$0 sm:$0xff]  ;;  %vm669_vm0 = vcmask 1046528   ;;  %vm1407_vm1 = vcmask 1043456  }
   0xd   : > { %s11097_s16 = smov (!%p188_p3, %s6297_s16), 1  ;;  %vm915_vm2 = vcmask 1045504   ;;  %vm1161_vm3 = vcmask 1044480   ;;  %vm5879_vm4 = vcmask 261120   ;;  %vm6225_vm5 = vcmask 125952  }
   0xe   : > { %s6410_s17 = smul.u32 480, %s11097_s16  ;;  %s6359_s7 = sshll.u32 %s11097_s16, 6 }
   0xf   : > { %s10648_s11 = scalar_lea.vmem %s10708_s4, %s6359_s7 }
  0x10   : > { %s6583_s20 = scalar_lea.vmem %s10704_s0, %s6410_s17 }
  0x11   : > { %v202_v1 = vld [vmem:[%s6583_s20 + $0x18] sm:$0xff]  ;;  %v199_v2 = vld [vmem:[%s6583_s20] sm:$0xff]  ;;  %v200_v4 = vld [vmem:[%s6583_s20 + $0x8] sm:$0xff] }
  0x12   : > { %272 = vperm.xlu1 %6421, %v202_v1   ;;  %262 = vperm.xlu0 %6420, %v199_v2   ;;  %v203_v3 = vld [vmem:[%s6583_s20 + $0x20] sm:$0xff]  ;;  %v224_v5 = vld [vmem:[%s6583_s20 + $0xc8] sm:$0xff]  ;;  %v226_v8 = vld [vmem:[%s6583_s20 + $0xd8] sm:$0xff] }
  0x13   : > { %v223_v6 = vld [vmem:[%s6583_s20 + $0xc0] sm:$0xff]  ;;  %v204_v9 = vld [vmem:[%s6583_s20 + $0x28] sm:$0xf]  ;;  %v201_v10 = vld [vmem:[%s6583_s20 + $0x10] sm:$0xf] }
  0x14   : > { %v227_v7 = vld [vmem:[%s6583_s20 + $0xe0] sm:$0xff]  ;;  %v228_v11 = vld [vmem:[%s6583_s20 + $0xe8] sm:$0xf]  ;;  %v225_v12 = vld [vmem:[%s6583_s20 + $0xd0] sm:$0xf] }
  0x15   : > { %v206_v13 = vld [vmem:[%s6583_s20 + $0x38] sm:$0xff]  ;;  %v205_v14 = vld [vmem:[%s6583_s20 + $0x30] sm:$0xff]  ;;  %v208_v16 = vld [vmem:[%s6583_s20 + $0x48] sm:$0xff] }
  0x16   : > { %277 = vperm.xlu1 %6421, %v203_v3   ;;  %267 = vperm.xlu0 %6420, %v200_v4   ;;  %v209_v15 = vld [vmem:[%s6583_s20 + $0x50] sm:$0xff]  ;;  %v230_v17 = vld [vmem:[%s6583_s20 + $0xf8] sm:$0xff]  ;;  %v232_v20 = vld [vmem:[%s6583_s20 + $0x108] sm:$0xff] }
  0x17   : > { %v229_v18 = vld [vmem:[%s6583_s20 + $0xf0] sm:$0xff]  ;;  %v210_v21 = vld [vmem:[%s6583_s20 + $0x58] sm:$0xf]  ;;  %v207_v22 = vld [vmem:[%s6583_s20 + $0x40] sm:$0xf] }
  0x18   : > { %v233_v19 = vld [vmem:[%s6583_s20 + $0x110] sm:$0xff]  ;;  %v234_v23 = vld [vmem:[%s6583_s20 + $0x118] sm:$0xf]  ;;  %v231_v24 = vld [vmem:[%s6583_s20 + $0x100] sm:$0xf] }
  0x19   : > { %v212_v25 = vld [vmem:[%s6583_s20 + $0x68] sm:$0xff]  ;;  %v211_v26 = vld [vmem:[%s6583_s20 + $0x60] sm:$0xff]  ;;  %v214_v28 = vld [vmem:[%s6583_s20 + $0x78] sm:$0xff] }
  0x1a   : > { %347 = vperm.xlu1 %6421, %v224_v5   ;;  %342 = vperm.xlu0 %6420, %v223_v6   ;;  %v215_v27 = vld [vmem:[%s6583_s20 + $0x80] sm:$0xff]  ;;  %v236_v29 = vld [vmem:[%s6583_s20 + $0x128] sm:$0xff]  ;;  %v238_v32 = vld [vmem:[%s6583_s20 + $0x138] sm:$0xff] }
  0x1b   : > { %v235_v30 = vld [vmem:[%s6583_s20 + $0x120] sm:$0xff]  ;;  %v216_v33 = vld [vmem:[%s6583_s20 + $0x88] sm:$0xf]  ;;  %v213_v34 = vld [vmem:[%s6583_s20 + $0x70] sm:$0xf] }
  0x1c   : > { %v239_v31 = vld [vmem:[%s6583_s20 + $0x140] sm:$0xff]  ;;  %v240_v35 = vld [vmem:[%s6583_s20 + $0x148] sm:$0xf]  ;;  %v237_v36 = vld [vmem:[%s6583_s20 + $0x130] sm:$0xf] }
  0x1d   : > { %v218_v37 = vld [vmem:[%s6583_s20 + $0x98] sm:$0xff]  ;;  %v217_v38 = vld [vmem:[%s6583_s20 + $0x90] sm:$0xff]  ;;  %v220_v40 = vld [vmem:[%s6583_s20 + $0xa8] sm:$0xff] }
  0x1e   : > { %357 = vperm.xlu1 %6421, %v227_v7   ;;  %352 = vperm.xlu0 %6420, %v226_v8   ;;  %v221_v39 = vld [vmem:[%s6583_s20 + $0xb0] sm:$0xff]  ;;  %v242_v41 = vld [vmem:[%s6583_s20 + $0x158] sm:$0xff]  ;;  %v244_v44 = vld [vmem:[%s6583_s20 + $0x168] sm:$0xff] }
  0x1f   : > { %v241_v42 = vld [vmem:[%s6583_s20 + $0x150] sm:$0xff]  ;;  %v222_v45 = vld [vmem:[%s6583_s20 + $0xb8] sm:$0xf]  ;;  %v219_v46 = vld [vmem:[%s6583_s20 + $0xa0] sm:$0xf] }
  0x20   : > { %v245_v43 = vld [vmem:[%s6583_s20 + $0x170] sm:$0xff]  ;;  %v246_v47 = vld [vmem:[%s6583_s20 + $0x178] sm:$0xf]  ;;  %v243_v48 = vld [vmem:[%s6583_s20 + $0x160] sm:$0xf] }
  0x21   : > { %v248_v49 = vld [vmem:[%s6583_s20 + $0x188] sm:$0xff]  ;;  %v247_v50 = vld [vmem:[%s6583_s20 + $0x180] sm:$0xff]  ;;  %v250_v51 = vld [vmem:[%s6583_s20 + $0x198] sm:$0xff] }
  0x22   : > { %496 = vperm.xlu1 %6421, %v204_v9   ;;  %491 = vperm.xlu0 %6420, %v201_v10   ;;  %v249_v52 = vld [vmem:[%s6583_s20 + $0x190] sm:$0xf]  ;;  %v252_v53 = vld [vmem:[%s6583_s20 + $0x1a8] sm:$0xf]  ;;  %v251_v54 = vld [vmem:[%s6583_s20 + $0x1a0] sm:$0xff] }
  0x23   : > { %v254_v55 = vld [vmem:[%s6583_s20 + $0x1b8] sm:$0xff]  ;;  %v253_v56 = vld [vmem:[%s6583_s20 + $0x1b0] sm:$0xff]  ;;  %v256_v57 = vld [vmem:[%s6583_s20 + $0x1c8] sm:$0xff] }
  0x24   : > { %v255_v58 = vld [vmem:[%s6583_s20 + $0x1c0] sm:$0xf]  ;;  %v258_v59 = vld [vmem:[%s6583_s20 + $0x1d8] sm:$0xf]  ;;  %v257_v60 = vld [vmem:[%s6583_s20 + $0x1d0] sm:$0xff] }
  0x25   : > { %v6668_v1 = vld [vmem:[%s10705_s1] ss:$0 sm:$0xff]  ;;  %v6673_v2 = vld [vmem:[%s10705_s1 + $0x9] ss:$0 sm:$0xff]  ;;  %v6691_v10 = vld [vmem:[%s10705_s1 + $0x6] ss:$0 sm:$0xff] }
  0x26   : > { %536 = vperm.xlu1 %6421, %v228_v11   ;;  %531 = vperm.xlu0 %6420, %v225_v12  }
  0x2a   : > { %287 = vperm.xlu1 %6421, %v206_v13   ;;  %282 = vperm.xlu0 %6420, %v205_v14  }
  0x2e   : > { %297 = vperm.xlu1 %6421, %v209_v15   ;;  %292 = vperm.xlu0 %6420, %v208_v16   ;;  %v6702_v15 = vld [vmem:[%s10705_s1 + $0x7] ss:$0 sm:$0xff] }
  0x32   : > { %367 = vperm.xlu1 %6421, %v230_v17   ;;  %362 = vperm.xlu0 %6420, %v229_v18  }
  0x36   : > { %377 = vperm.xlu1 %6421, %v233_v19   ;;  %372 = vperm.xlu0 %6420, %v232_v20  }
  0x3a   : > { %506 = vperm.xlu1 %6421, %v210_v21   ;;  %501 = vperm.xlu0 %6420, %v207_v22   ;;  %v6713_v21 = vld [vmem:[%s10705_s1 + $0x5] ss:$0 sm:$0xff]  ;;  %v6718_v22 = vld [vmem:[%s10705_s1 + $0x8] ss:$0 sm:$0xff] }
  0x3e   : > { %546 = vperm.xlu1 %6421, %v234_v23   ;;  %541 = vperm.xlu0 %6420, %v231_v24  }
  0x42   : > { %307 = vperm.xlu1 %6421, %v212_v25   ;;  %302 = vperm.xlu0 %6420, %v211_v26  }
  0x46   : > { %317 = vperm.xlu1 %6421, %v215_v27   ;;  %312 = vperm.xlu0 %6420, %v214_v28  }
  0x4a   : > { %387 = vperm.xlu1 %6421, %v236_v29   ;;  %382 = vperm.xlu0 %6420, %v235_v30  }
  0x4e   : > { %397 = vperm.xlu1 %6421, %v239_v31   ;;  %392 = vperm.xlu0 %6420, %v238_v32  }
  0x52   : > { %516 = vperm.xlu1 %6421, %v216_v33   ;;  %511 = vperm.xlu0 %6420, %v213_v34  }
  0x56   : > { %556 = vperm.xlu1 %6421, %v240_v35   ;;  %551 = vperm.xlu0 %6420, %v237_v36  }
  0x5a   : > { %327 = vperm.xlu1 %6421, %v218_v37   ;;  %322 = vperm.xlu0 %6420, %v217_v38  }
  0x5e   : > { %337 = vperm.xlu1 %6421, %v221_v39   ;;  %332 = vperm.xlu0 %6420, %v220_v40  }
  0x62   : > { %407 = vperm.xlu1 %6421, %v242_v41   ;;  %402 = vperm.xlu0 %6420, %v241_v42  }
  0x66   : > { %417 = vperm.xlu1 %6421, %v245_v43   ;;  %412 = vperm.xlu0 %6420, %v244_v44  }
  0x6a   : > { %526 = vperm.xlu1 %6421, %v222_v45   ;;  %521 = vperm.xlu0 %6420, %v219_v46  }
  0x6e   : > { %566 = vperm.xlu1 %6421, %v246_v47   ;;  %561 = vperm.xlu0 %6420, %v243_v48  }
  0x72   : > { %1560 = vperm.xlu1 %6421, %v248_v49   ;;  %1555 = vperm.xlu0 %6420, %v247_v50  }
  0x76   : > { %2619 = vperm.xlu1 %6421, %v250_v51   ;;  %1634 = vperm.xlu0 %6420, %v249_v52  }
  0x7a   : > { %2698 = vperm.xlu1 %6421, %v252_v53   ;;  %2624 = vperm.xlu0 %6420, %v251_v54  }
  0x7e   : > { %3688 = vperm.xlu1 %6421, %v254_v55   ;;  %3683 = vperm.xlu0 %6420, %v253_v56  }
  0x82   : > { %4747 = vperm.xlu1 %6421, %v256_v57   ;;  %3762 = vperm.xlu0 %6420, %v255_v58  }
  0x86   : > { %4826 = vperm.xlu1 %6421, %v258_v59   ;;  %4752 = vperm.xlu0 %6420, %v257_v60  }
  0x8d   : > { %v273_v3 = vpop.permute.xlu1 %272  ;;  %v263_v4 = vpop.permute.xlu0 %262 }
  0x8e   : > { %v6676_v5 = vmul.f32 %v6648_v61, %v273_v3  ;;  %v6679_v6 = vmul.f32 %v6653_v62, %v273_v3  ;;  %v6682_v7 = vmul.f32 %v6658_v63, %v273_v3  ;;  %v6685_v8 = vmul.f32 %v6663_v0, %v273_v3 }
  0x8f   : > { %v573_v9 = vmul.f32 %v6648_v61, %v263_v4  ;;  %v6694_v11 = vmul.f32 %v6668_v1, %v273_v3  ;;  %v2376_v12 = vmul.f32 %v6673_v2, %v273_v3  ;;  %v424_v13 = vmul.f32 %v6668_v1, %v263_v4 }
  0x90   : > { %v819_v14 = vmul.f32 %v6653_v62, %v263_v4  ;;  %v675_v16 = vrot.slane %v6676_v5, 1  ;;  %v921_v17 = vrot.slane %v6679_v6, 2  ;;  %v1065_v18 = vmul.f32 %v6658_v63, %v263_v4 }
  0x91   : > { %v1311_v19 = vmul.f32 %v6663_v0, %v263_v4  ;;  %v6708_v20 = vpop.permute.xlu1 %277  ;;  %v268_v23 = vpop.permute.xlu0 %267  ;;  %v1167_v24 = vrot.slane %v6682_v7, 3  ;;  %v1413_v25 = vrot.slane %v6685_v8, 4  ;;  %v1641_v27 = vmul.f32 %v6691_v10, %v273_v3 }
  0x92   : > { %v6724_v26 = vmul.f32 %v6673_v2, %v6708_v20  ;;  %v670_v28 = vrot.slane %v573_v9, 1  ;;  %v916_v29 = vrot.slane %v819_v14, 2  ;;  %v6729_v30 = vmul.f32 %v6691_v10, %v6708_v20 }
  0x93   : > { %v1886_v31 = vmul.f32 %v6702_v15, %v273_v3  ;;  %v6733_v32 = vmul.f32 %v6713_v21, %v273_v3  ;;  %v6737_v33 = vmul.f32 %v6702_v15, %v6708_v20  ;;  %v6740_v34 = vmul.f32 %v6718_v22, %v273_v3 }
  0x94   : > { %v6744_v35 = vmul.f32 %v6718_v22, %v6708_v20  ;;  %v1162_v36 = vrot.slane %v1065_v18, 3  ;;  %v1408_v37 = vrot.slane %v1311_v19, 4  ;;  %v1738_v38 = vrot.slane %v6729_v30, 1 }
  0x95   : > { %v10709_v39 = vrot.slane %v6724_v26, 4  ;;  %v6748_v40 = vpop.permute.xlu1 %347  ;;  %v6750_v41 = vpop.permute.xlu0 %342  ;;  %v1737_v42 = vrot.slane %v1641_v27, 1  ;;  %v1982_v43 = vrot.slane %v1886_v31, 2  ;;  %v1983_v44 = vrot.slane %v6737_v33, 2 }
  0x96   : > { %10861 = vst [vmem:[#allocation2_spill] sm:$0xff] %v6748_v40  ;;  %10862 = vst [vmem:[#allocation3_spill] sm:$0xff] %v6750_v41  ;;  %v2472_v45 = vrot.slane %v2376_v12, 4  ;;  %v2227_v46 = vrot.slane %v6740_v34, 3  ;;  %v2228_v47 = vrot.slane %v6744_v35, 3  ;;  %v6756_v48 = vmul.f32 %v6648_v61, %v268_v23 }
  0x97   : > { %v6759_v49 = vmul.f32 %v6653_v62, %v268_v23  ;;  %v6764_v50 = vsel %vm669_vm0, %v1737_v42, %v1738_v38  ;;  %v6767_v51 = vmul.f32 %v6668_v1, %v268_v23  ;;  %v6770_v52 = vmul.f32 %v6658_v63, %v268_v23 }
  0x98   : > { %v6773_v53 = vmul.f32 %v6663_v0, %v268_v23  ;;  %v6778_v54 = vsel %vm1407_vm1, %v2472_v45, %v10709_v39  ;;  %v671_v55 = vrot.slane %v6756_v48, 1  ;;  %v577_v59 = vmul.f32 %v6648_v61, %v6708_v20 }
  0x99   : > { %v10712_v56 = vrot.slane %v6759_v49, 2  ;;  %v6782_v57 = vpop.permute.xlu1 %357  ;;  %v6784_v58 = vpop.permute.xlu0 %352  ;;  %v10711_v60 = vrot.slane %v6770_v52, 3  ;;  %v823_v4 = vmul.f32 %v6653_v62, %v6708_v20  ;;  %v1069_v5 = vmul.f32 %v6658_v63, %v6708_v20 }
  0x9a   : > { %10863 = vst [vmem:[#allocation4_spill] sm:$0xff] %v6782_v57  ;;  %10864 = vst [vmem:[#allocation5_spill] sm:$0xff] %v6784_v58  ;;  %v10710_v3 = vrot.slane %v6773_v53, 4  ;;  %v1984_v7 = vsel %vm915_vm2, %v1982_v43, %v1983_v44  ;;  %v672_v9 = vsel %vm669_vm0, %v670_v28, %v671_v55  ;;  %v676_v12 = vrot.slane %v577_v59, 1 }
  0x9b   : > { %v1315_v14 = vmul.f32 %v6663_v0, %v6708_v20  ;;  %v782_v18 = vadd.f32 %v672_v9, %v424_v13  ;;  %v918_v19 = vsel %vm915_vm2, %v916_v29, %v10712_v56  ;;  %v427_v23 = vmul.f32 %v6668_v1, %v6708_v20 }
  0x9c   : > { %v922_v27 = vrot.slane %v823_v4, 2  ;;  %v1164_v31 = vsel %vm1161_vm3, %v1162_v36, %v10711_v60  ;;  %v1410_v28 = vsel %vm1407_vm1, %v1408_v37, %v10710_v3  ;;  %v677_v34 = vsel %vm669_vm0, %v675_v16, %v676_v12 }
  0x9d   : > { %v1168_v42 = vrot.slane %v1069_v5, 3  ;;  %v497_v13 = vpop.permute.xlu1 %496  ;;  %v492_v43 = vpop.permute.xlu0 %491  ;;  %v1028_v45 = vadd.f32 %v918_v19, %v782_v18  ;;  %v784_v29 = vadd.f32 %v677_v34, %v6694_v11  ;;  %v1414_v59 = vrot.slane %v1315_v14, 4 }
  0x9e   : > { %v578_v9 = vmul.f32 %v6648_v61, %v497_v13  ;;  %v923_v4 = vsel %vm915_vm2, %v921_v17, %v922_v27  ;;  %v824_v39 = vmul.f32 %v6653_v62, %v497_v13  ;;  %v1070_v37 = vmul.f32 %v6658_v63, %v497_v13 }
  0x9f   : > { %v1169_v36 = vsel %vm1161_vm3, %v1167_v24, %v1168_v42  ;;  %v1274_v16 = vadd.f32 %v1164_v31, %v1028_v45  ;;  %v1030_v5 = vadd.f32 %v923_v4, %v784_v29  ;;  %v1316_v18 = vmul.f32 %v6663_v0, %v497_v13 }
  0xa0   : > { %v678_v3 = vrot.slane %v578_v9, 1  ;;  %v924_v19 = vrot.slane %v824_v39, 2  ;;  %v1170_v11 = vrot.slane %v1070_v37, 3  ;;  %v1643_v14 = vmul.f32 %v6691_v10, %v497_v13 }
  0xa1   : > { %v1888_v34 = vmul.f32 %v6702_v15, %v497_v13  ;;  %v6825_v6 = vpop.permute.xlu1 %536  ;;  %v6827_v17 = vpop.permute.xlu0 %531  ;;  %v2229_v24 = vsel %vm1161_vm3, %v2227_v46, %v2228_v47  ;;  %v1520_v60 = vadd.f32 %v1410_v28, %v1274_v16  ;;  %v1276_v31 = vadd.f32 %v1169_v36, %v1030_v5 }
  0xa2   : > { %10865 = vst [vmem:[#allocation6_spill] sm:$0xff] %v6825_v6  ;;  %10866 = vst [vmem:[#allocation7_spill] sm:$0xff] %v6827_v17  ;;  %v679_v45 = vsel %vm669_vm0, %v676_v12, %v678_v3  ;;  %v1415_v39 = vsel %vm1407_vm1, %v1413_v25, %v1414_v59  ;;  %v1416_v9 = vrot.slane %v1316_v18, 4  ;;  %v6838_v4 = vmul.f32 %v6713_v21, %v6708_v20 }
  0xa3   : > { %v785_v29 = vadd.f32 %v679_v45, %v427_v23  ;;  %v1599_v37 = vadd.f32 %v6733_v32, %v1520_v60  ;;  %v925_v56 = vsel %vm915_vm2, %v922_v27, %v924_v19  ;;  %v1171_v46 = vsel %vm1161_vm3, %v1168_v42, %v1170_v11 }
  0xa4   : > { %v1740_v28 = vrot.slane %v1643_v14, 1  ;;  %v1985_v16 = vrot.slane %v1888_v34, 2  ;;  %v2133_v3 = vmul.f32 %v6718_v22, %v497_v13  ;;  %v2378_v8 = vmul.f32 %v6673_v2, %v497_v13 }
  0xa5   : > { %v1031_v36 = vadd.f32 %v925_v56, %v785_v29  ;;  %v6845_v25 = vpop.permute.xlu1 %287  ;;  %v6847_v12 = vpop.permute.xlu0 %282  ;;  %v1849_v20 = vadd.f32 %v6764_v50, %v1599_v37  ;;  %v6850_v23 = vadd.f32 %v1415_v39, %v1276_v31  ;;  %v575_v32 = vmul.f32 %v6648_v61, %v492_v43 }
  0xa6   : > { %v821_v60 = vmul.f32 %v6653_v62, %v492_v43  ;;  %v1417_v56 = vsel %vm1407_vm1, %v1414_v59, %v1416_v9  ;;  %v2230_v42 = vrot.slane %v2133_v3, 3  ;;  %v1067_v5 = vmul.f32 %v6658_v63, %v492_v43 }
  0xa7   : > { %v1277_v27 = vadd.f32 %v1171_v46, %v1031_v36  ;;  %v2094_v18 = vadd.f32 %v1984_v7, %v1849_v20  ;;  %v673_v13 = vrot.slane %v575_v32, 1  ;;  %v1313_v11 = vmul.f32 %v6663_v0, %v492_v43 }
  0xa8   : > { %v919_v19 = vrot.slane %v821_v60, 2  ;;  %v2475_v14 = vrot.slane %v2378_v8, 4  ;;  %v1741_v50 = vsel %vm669_vm0, %v1738_v38, %v1740_v28  ;;  %v1986_v34 = vsel %vm915_vm2, %v1983_v44, %v1985_v16 }
  0xa9   : > { %v1165_v31 = vrot.slane %v1067_v5, 3  ;;  %v6863_v45 = vpop.permute.xlu1 %297  ;;  %v6865_v59 = vpop.permute.xlu0 %292  ;;  %v6867_v39 = vadd.f32 %v1417_v56, %v1277_v27  ;;  %v6872_v7 = vsel %vm1161_vm3, %v2228_v47, %v2230_v42  ;;  %v674_v30 = vsel %vm669_vm0, %v671_v55, %v673_v13 }
  0xaa   : > { %10867 = vst [vmem:[#allocation8_spill] sm:$0xff] %v6863_v45  ;;  %10868 = vst [vmem:[#allocation9_spill] sm:$0xff] %v6865_v59  ;;  %v1411_v38 = vrot.slane %v1313_v11, 4  ;;  %v2339_v33 = vadd.f32 %v2229_v24, %v2094_v18  ;;  %v783_v44 = vadd.f32 %v674_v30, %v6767_v51  ;;  %v10869_v43 = vrot.slane %v6759_v49, 2 }
  0xab   : > { %v10870_v9 = vrot.slane %v6770_v52, 3  ;;  %v10871_v35 = vrot.slane %v6773_v53, 4  ;;  %v428_v48 = vmul.f32 %v6668_v1, %v6847_v12  ;;  %v579_v55 = vmul.f32 %v6648_v61, %v6847_v12 }
  0xac   : > { %v920_v29 = vsel %vm915_vm2, %v10869_v43, %v919_v19  ;;  %v580_v51 = vmul.f32 %v6648_v61, %v6845_v25  ;;  %v825_v52 = vmul.f32 %v6653_v62, %v6847_v12  ;;  %v826_v53 = vmul.f32 %v6653_v62, %v6845_v25 }
  0xad   : > { %v1166_v37 = vsel %vm1161_vm3, %v10870_v9, %v1165_v31  ;;  %v1412_v47 = vsel %vm1407_vm1, %v10871_v35, %v1411_v38  ;;  %v1029_v49 = vadd.f32 %v920_v29, %v783_v44  ;;  %v6893_v24 = vpop.permute.xlu1 %367  ;;  %v6895_v46 = vpop.permute.xlu0 %362  ;;  %v1071_v28 = vmul.f32 %v6658_v63, %v6847_v12 }
  0xae   : > { %10872 = vst [vmem:[#allocation10_spill] sm:$0xff] %v6893_v24  ;;  %10873 = vst [vmem:[#allocation11_spill] sm:$0xff] %v6895_v46  ;;  %v680_v36 = vrot.slane %v579_v55, 1  ;;  %v681_v16 = vrot.slane %v580_v51, 1  ;;  %v1072_v3 = vmul.f32 %v6658_v63, %v6845_v25  ;;  %v1317_v8 = vmul.f32 %v6663_v0, %v6847_v12 }
  0xaf   : > { %v1275_v20 = vadd.f32 %v1166_v37, %v1029_v49  ;;  %v926_v32 = vrot.slane %v825_v52, 2  ;;  %v927_v60 = vrot.slane %v826_v53, 2  ;;  %v1172_v27 = vrot.slane %v1071_v28, 3 }
  0xb0   : > { %v682_v56 = vsel %vm669_vm0, %v680_v36, %v681_v16  ;;  %v1173_v42 = vrot.slane %v1072_v3, 3  ;;  %v1318_v5 = vmul.f32 %v6663_v0, %v6845_v25  ;;  %v1418_v18 = vrot.slane %v1317_v8, 4 }
  0xb1   : > { %v10874_v13 = vrot.slane %v6724_v26, 4  ;;  %v1521_v11 = vadd.f32 %v1412_v47, %v1275_v20  ;;  %v6913_v31 = vpop.permute.xlu0 %372  ;;  %v786_v30 = vadd.f32 %v682_v56, %v428_v48  ;;  %v928_v38 = vsel %vm915_vm2, %v926_v32, %v927_v60  ;;  %v6916_v44 = vpop.permute.xlu1 %377 }
  0xb2   : > { %10875 = vst [vmem:[#allocation12_spill] sm:$0xff] %v6913_v31  ;;  %10876 = vst [vmem:[#allocation13_spill] sm:$0xff] %v6916_v44  ;;  %v1174_v43 = vsel %vm1161_vm3, %v1172_v27, %v1173_v42  ;;  %v1419_v29 = vrot.slane %v1318_v5, 4  ;;  %v1645_v9 = vmul.f32 %v6691_v10, %v6845_v25  ;;  %v6923_v37 = vmul.f32 %v6691_v10, %v6863_v45 }
  0xb3   : > { %v2476_v19 = vsel %vm1407_vm1, %v10874_v13, %v2475_v14  ;;  %v6926_v26 = vadd.f32 %v6778_v54, %v2339_v33  ;;  %v1600_v14 = vadd.f32 %v6838_v4, %v1521_v11  ;;  %v429_v35 = vmul.f32 %v6668_v1, %v6845_v25 }
  0xb4   : > { %10877 = vst [vmem:[#allocation14_spill] sm:$0xff] %v6923_v37  ;;  %v1032_v47 = vadd.f32 %v928_v38, %v786_v30  ;;  %v1420_v48 = vsel %vm1407_vm1, %v1418_v18, %v1419_v29  ;;  %v6934_v55 = vmul.f32 %v6713_v21, %v6863_v45  ;;  %v1569_v51 = vmul.f32 %v6713_v21, %v6847_v12 }
  0xb5   : > { %v1570_v49 = vmul.f32 %v6713_v21, %v6845_v25  ;;  %v1850_v54 = vadd.f32 %v1741_v50, %v1600_v14  ;;  %v1743_v52 = vrot.slane %v1645_v9, 1  ;;  %v6941_v53 = vpop.permute.xlu0 %501  ;;  %v1644_v3 = vmul.f32 %v6691_v10, %v6847_v12  ;;  %v6957_v32 = vpop.permute.xlu1 %506 }
  0xb6   : > { %v1278_v33 = vadd.f32 %v1174_v43, %v1032_v47  ;;  %v581_v1 = vmul.f32 %v6648_v61, %v6941_v53  ;;  %v827_v28 = vmul.f32 %v6653_v62, %v6941_v53  ;;  %v1073_v36 = vmul.f32 %v6658_v63, %v6941_v53  ;;  %10879 = vst [vmem:[#allocation16_spill] sm:$0xff] %v6957_v32 }
  0xb7   : > { %v2095_v21 = vadd.f32 %v1986_v34, %v1850_v54  ;;  %v1319_v8 = vmul.f32 %v6663_v0, %v6941_v53  ;;  %v1646_v20 = vmul.f32 %v6691_v10, %v6941_v53  ;;  %v1601_v56 = vadd.f32 %v1569_v51, %v6850_v23 }
  0xb8   : > { %v6951_v50 = vadd.f32 %v1420_v48, %v1278_v33  ;;  %v683_v61 = vrot.slane %v581_v1, 1  ;;  %v929_v27 = vrot.slane %v827_v28, 2  ;;  %v1175_v62 = vrot.slane %v1073_v36, 3 }
  0xb9   : > { %v2340_v63 = vadd.f32 %v6872_v7, %v2095_v21  ;;  %v1421_v5 = vrot.slane %v1319_v8, 4  ;;  %v1745_v18 = vrot.slane %v1646_v20, 1  ;;  %v1891_v34 = vmul.f32 %v6702_v15, %v6941_v53  ;;  %v6999_v20 = vld [vmem:[%s10705_s1 + $0xa] ss:$0 sm:$0xff] }
  0xba   : > { %10878 = vst [vmem:[#allocation15_spill] sm:$0xff] %v6951_v50  ;;  %v684_v13 = vsel %vm669_vm0, %v681_v16, %v683_v61  ;;  %v930_v0 = vsel %vm915_vm2, %v927_v60, %v929_v27  ;;  %v1176_v11 = vsel %vm1161_vm3, %v1173_v42, %v1175_v62  ;;  %v1602_v30 = vadd.f32 %v1570_v49, %v6867_v39  ;;  %v6316_v16 = vld [vmem:[%s10705_s1 + $0xb] ss:$0 sm:$0xff] }
  0xbb   : > { %v6969_v38 = vmul.f32 %v6691_v10, %v6957_v32  ;;  %v787_v23 = vadd.f32 %v684_v13, %v429_v35  ;;  %v1422_v7 = vsel %vm1407_vm1, %v1419_v29, %v1421_v5  ;;  %v1746_v43 = vsel %vm669_vm0, %v1743_v52, %v1745_v18  ;;  %v6983_v35 = vpop.permute.xlu0 %541 }
  0xbc   : > { %v2585_v9 = vadd.f32 %v2476_v19, %v2340_v63  ;;  %v1990_v14 = vrot.slane %v1891_v34, 2  ;;  %v2136_v60 = vmul.f32 %v6718_v22, %v6941_v53  ;;  %v2381_v39 = vmul.f32 %v6673_v2, %v6941_v53  ;;  %10880 = vst [vmem:[#allocation17_spill] sm:$0xff] %v6983_v35 }
  0xbd   : > { %v1033_v42 = vadd.f32 %v930_v0, %v787_v23  ;;  %v6981_v10 = vmul.f32 %v6316_v16, %v6941_v53  ;;  %v1742_v29 = vrot.slane %v1644_v3, 1  ;;  %v1889_v19 = vmul.f32 %v6702_v15, %v6847_v12 }
  0xbe   : > { %v2235_v47 = vrot.slane %v2136_v60, 3  ;;  %v2480_v48 = vrot.slane %v2381_v39, 4  ;;  %v1852_v51 = vadd.f32 %v1746_v43, %v1602_v30  ;;  %v1890_v49 = vmul.f32 %v6702_v15, %v6845_v25 }
  0xbf   : > { %v1279_v54 = vadd.f32 %v1176_v11, %v1033_v42  ;;  %v1744_v33 = vsel %vm669_vm0, %v1742_v29, %v1743_v52  ;;  %v1987_v1 = vrot.slane %v1889_v19, 2  ;;  %v2134_v28 = vmul.f32 %v6718_v22, %v6847_v12  ;;  %v7010_v18 = vpop.permute.xlu0 %302 }
  0xc0   : > { %v1851_v36 = vadd.f32 %v1744_v33, %v1601_v56  ;;  %v1988_v21 = vrot.slane %v1890_v49, 2  ;;  %v2135_v3 = vmul.f32 %v6718_v22, %v6845_v25  ;;  %v2379_v8 = vmul.f32 %v6673_v2, %v6847_v12  ;;  %10881 = vst [vmem:[#allocation18_spill] sm:$0xff] %v7010_v18 }
  0xc1   : > { %v7001_v15 = vadd.f32 %v1422_v7, %v1279_v54  ;;  %v2232_v52 = vrot.slane %v2134_v28, 3  ;;  %v2380_v61 = vmul.f32 %v6673_v2, %v6845_v25  ;;  %v2631_v27 = vmul.f32 %v6999_v20, %v6847_v12  ;;  %v7029_v54 = vld [vmem:[%s10705_s1 + $0xc] ss:$0 sm:$0xff] }
  0xc2   : > { %v1989_v62 = vsel %vm915_vm2, %v1987_v1, %v1988_v21  ;;  %v1991_v22 = vsel %vm915_vm2, %v1988_v21, %v1990_v14  ;;  %v2233_v56 = vrot.slane %v2135_v3, 3  ;;  %v2477_v63 = vrot.slane %v2379_v8, 4 }
  0xc3   : > { %v2096_v34 = vadd.f32 %v1989_v62, %v1851_v36  ;;  %v2097_v13 = vadd.f32 %v1991_v22, %v1852_v51  ;;  %v2478_v0 = vrot.slane %v2380_v61, 4  ;;  %v2804_v11 = vrot.slane %v6981_v10, 1 }
  0xc4   : > { %v2234_v2 = vsel %vm1161_vm3, %v2232_v52, %v2233_v56  ;;  %v2236_v30 = vsel %vm1161_vm3, %v2233_v56, %v2235_v47  ;;  %v2632_v23 = vmul.f32 %v6999_v20, %v6845_v25  ;;  %v2633_v60 = vmul.f32 %v6999_v20, %v6865_v59 }
  0xc5   : > { %v2341_v7 = vadd.f32 %v2234_v2, %v2096_v34  ;;  %v2342_v43 = vadd.f32 %v2236_v30, %v2097_v13  ;;  %v2479_v14 = vsel %vm1407_vm1, %v2477_v63, %v2478_v0  ;;  %v2481_v39 = vsel %vm1407_vm1, %v2478_v0, %v2480_v48 }
  0xc6   : > { %v2634_v42 = vmul.f32 %v6999_v20, %v6863_v45  ;;  %v2663_v10 = vadd.f32 %v2631_v27, %v6926_v26  ;;  %v2664_v29 = vadd.f32 %v2632_v23, %v2585_v9  ;;  %v2705_v51 = vmul.f32 %v6316_v16, %v6847_v12  ;;  %v7036_v9 = vpop.permute.xlu0 %312 }
  0xc7   : > { %v2586_v19 = vadd.f32 %v2479_v14, %v2341_v7  ;;  %v2587_v47 = vadd.f32 %v2481_v39, %v2342_v43  ;;  %v2706_v49 = vmul.f32 %v6316_v16, %v6845_v25  ;;  %v2708_v33 = vmul.f32 %v6316_v16, %v6865_v59  ;;  %10882 = vst [vmem:[#allocation19_spill] sm:$0xff] %v7036_v9  ;;  %v7055_v39 = vld [vmem:[%s10705_s1 + $0xd] ss:$0 sm:$0xff] }
  0xc8   : > { %v2709_v48 = vmul.f32 %v6316_v16, %v6863_v45  ;;  %v2710_v1 = vmul.f32 %v6316_v16, %v6957_v32  ;;  %v2950_v26 = vmul.f32 %v7029_v54, %v6847_v12  ;;  %v2801_v21 = vrot.slane %v2705_v51, 1 }
  0xc9   : > { %v2665_v28 = vadd.f32 %v2633_v60, %v2586_v19  ;;  %v2666_v36 = vadd.f32 %v2634_v42, %v2587_v47  ;;  %v2802_v3 = vrot.slane %v2706_v49, 1  ;;  %v2806_v8 = vrot.slane %v2708_v33, 1 }
  0xca   : > { %v2807_v52 = vrot.slane %v2709_v48, 1  ;;  %v2809_v61 = vrot.slane %v2710_v1, 1  ;;  %v2951_v27 = vmul.f32 %v7029_v54, %v6845_v25  ;;  %v2952_v16 = vmul.f32 %v7029_v54, %v6941_v53  ;;  %v7057_v42 = vpop.permute.xlu0 %382  ;;  %v7069_v1 = vpop.permute.xlu1 %546 }
  0xcb   : > { %v2803_v62 = vsel %vm669_vm0, %v2801_v21, %v2802_v3  ;;  %v2805_v22 = vsel %vm669_vm0, %v2802_v3, %v2804_v11  ;;  %v2953_v56 = vmul.f32 %v7029_v54, %v6865_v59  ;;  %v2954_v23 = vmul.f32 %v7029_v54, %v6863_v45  ;;  %10883 = vst [vmem:[#allocation20_spill] sm:$0xff] %v7057_v42 }
  0xcc   : > { %v2808_v63 = vsel %vm669_vm0, %v2806_v8, %v2807_v52  ;;  %v2810_v34 = vsel %vm669_vm0, %v2807_v52, %v2809_v61  ;;  %v2913_v13 = vadd.f32 %v2803_v62, %v2663_v10  ;;  %v2914_v0 = vadd.f32 %v2805_v22, %v2664_v29  ;;  %10884 = vst [vmem:[#allocation21_spill] sm:$0xff] %v7069_v1 }
  0xcd   : > { %v2915_v2 = vadd.f32 %v2808_v63, %v2665_v28  ;;  %v2916_v30 = vadd.f32 %v2810_v34, %v2666_v36  ;;  %v2955_v11 = vmul.f32 %v7029_v54, %v6957_v32  ;;  %v3046_v7 = vrot.slane %v2950_v26, 2 }
  0xce   : > { %v3047_v43 = vrot.slane %v2951_v27, 2  ;;  %v3049_v14 = vrot.slane %v2952_v16, 2  ;;  %v3051_v60 = vrot.slane %v2953_v56, 2  ;;  %v3052_v10 = vrot.slane %v2954_v23, 2  ;;  %v7080_v56 = vld [vmem:[%s10705_s1 + $0xe] ss:$0 sm:$0xff] }
  0xcf   : > { %v3054_v29 = vrot.slane %v2955_v11, 2  ;;  %v3195_v19 = vmul.f32 %v7055_v39, %v6847_v12  ;;  %v3196_v47 = vmul.f32 %v7055_v39, %v6845_v25  ;;  %v3197_v33 = vmul.f32 %v7055_v39, %v6941_v53 }
  0xd0   : > { %v3048_v51 = vsel %vm915_vm2, %v3046_v7, %v3047_v43  ;;  %v3050_v49 = vsel %vm915_vm2, %v3047_v43, %v3049_v14  ;;  %v3198_v48 = vmul.f32 %v7055_v39, %v6865_v59  ;;  %v3053_v26 = vsel %vm915_vm2, %v3051_v60, %v3052_v10 }
  0xd1   : > { %v3055_v28 = vsel %vm915_vm2, %v3052_v10, %v3054_v29  ;;  %v3158_v36 = vadd.f32 %v3048_v51, %v2913_v13  ;;  %v3159_v21 = vadd.f32 %v3050_v49, %v2914_v0  ;;  %v3160_v3 = vadd.f32 %v3053_v26, %v2915_v2  ;;  %v7086_v2 = vpop.permute.xlu0 %392  ;;  %v7096_v10 = vpop.permute.xlu1 %307 }
  0xd2   : > { %v3161_v8 = vadd.f32 %v3055_v28, %v2916_v30  ;;  %v3199_v52 = vmul.f32 %v7055_v39, %v6863_v45  ;;  %v3200_v61 = vmul.f32 %v7055_v39, %v6957_v32  ;;  %v3291_v27 = vrot.slane %v3195_v19, 3  ;;  %10885 = vst [vmem:[#allocation22_spill] sm:$0xff] %v7086_v2  ;;  %10886 = vst [vmem:[#allocation23_spill] sm:$0xff] %v7096_v10 }
  0xd3   : > { %v3292_v62 = vrot.slane %v3196_v47, 3  ;;  %v3294_v22 = vrot.slane %v3197_v33, 3  ;;  %v3296_v16 = vrot.slane %v3198_v48, 3  ;;  %v3440_v13 = vmul.f32 %v7080_v56, %v6847_v12  ;;  %v7105_v48 = vld [vmem:[%s10705_s1 + $0xf] ss:$0 sm:$0xff] }
  0xd4   : > { %v3297_v63 = vrot.slane %v3199_v52, 3  ;;  %v3299_v34 = vrot.slane %v3200_v61, 3  ;;  %v3441_v0 = vmul.f32 %v7080_v56, %v6845_v25  ;;  %v3442_v11 = vmul.f32 %v7080_v56, %v6941_v53 }
  0xd5   : > { %v3293_v30 = vsel %vm1161_vm3, %v3291_v27, %v3292_v62  ;;  %v3295_v23 = vsel %vm1161_vm3, %v3292_v62, %v3294_v22  ;;  %v3443_v7 = vmul.f32 %v7080_v56, %v6865_v59  ;;  %v3444_v19 = vmul.f32 %v7080_v56, %v6863_v45  ;;  %v7117_v27 = vpop.permute.xlu0 %511 }
  0xd6   : > { %v3298_v43 = vsel %vm1161_vm3, %v3296_v16, %v3297_v63  ;;  %v3300_v14 = vsel %vm1161_vm3, %v3297_v63, %v3299_v34  ;;  %v3403_v12 = vadd.f32 %v3293_v30, %v3158_v36  ;;  %v3404_v60 = vadd.f32 %v3295_v23, %v3159_v21  ;;  %10887 = vst [vmem:[#allocation24_spill] sm:$0xff] %v7117_v27  ;;  %v7124_v34 = vld [vmem:[%s10705_s1 + $0x10] ss:$0 sm:$0xff] }
  0xd7   : > { %v3405_v25 = vadd.f32 %v3298_v43, %v3160_v3  ;;  %v3406_v29 = vadd.f32 %v3300_v14, %v3161_v8  ;;  %v3445_v47 = vmul.f32 %v7080_v56, %v6957_v32  ;;  %v3536_v53 = vrot.slane %v3440_v13, 4 }
  0xd8   : > { %v3537_v51 = vrot.slane %v3441_v0, 4  ;;  %v3539_v49 = vrot.slane %v3442_v11, 4  ;;  %v3541_v33 = vrot.slane %v3443_v7, 4  ;;  %v3542_v26 = vrot.slane %v3444_v19, 4  ;;  %v7138_v19 = vpop.permute.xlu1 %317 }
  0xd9   : > { %v3544_v28 = vrot.slane %v3445_v47, 4  ;;  %v3695_v36 = vmul.f32 %v7105_v48, %v6865_v59  ;;  %v3696_v21 = vmul.f32 %v7105_v48, %v6863_v45  ;;  %v3697_v52 = vmul.f32 %v7105_v48, %v7010_v18  ;;  %10888 = vst [vmem:[#allocation25_spill] sm:$0xff] %v7138_v19 }
  0xda   : > { %v3538_v3 = vsel %vm1407_vm1, %v3536_v53, %v3537_v51  ;;  %v3540_v8 = vsel %vm1407_vm1, %v3537_v51, %v3539_v49  ;;  %v3698_v61 = vmul.f32 %v7105_v48, %v7096_v10  ;;  %v3543_v62 = vsel %vm1407_vm1, %v3541_v33, %v3542_v26  ;;  %v7143_v33 = vld [vmem:[%s10705_s1 + $0x11] ss:$0 sm:$0xff] }
  0xdb   : > { %v3545_v22 = vsel %vm1407_vm1, %v3542_v26, %v3544_v28  ;;  %v3648_v16 = vadd.f32 %v3538_v3, %v3403_v12  ;;  %v3649_v63 = vadd.f32 %v3540_v8, %v3404_v60  ;;  %v3650_v13 = vadd.f32 %v3543_v62, %v3405_v25 }
  0xdc   : > { %v3651_v0 = vadd.f32 %v3545_v22, %v3406_v29  ;;  %v3769_v30 = vmul.f32 %v7124_v34, %v6865_v59  ;;  %v3770_v23 = vmul.f32 %v7124_v34, %v6863_v45  ;;  %v3771_v43 = vmul.f32 %v7124_v34, %v6957_v32 }
  0xdd   : > { %v3727_v11 = vadd.f32 %v3695_v36, %v3648_v16  ;;  %v3728_v7 = vadd.f32 %v3696_v21, %v3649_v63  ;;  %v3772_v14 = vmul.f32 %v7124_v34, %v7010_v18  ;;  %v3729_v12 = vadd.f32 %v3697_v52, %v3650_v13 }
  0xde   : > { %v3730_v60 = vadd.f32 %v3698_v61, %v3651_v0  ;;  %v3773_v25 = vmul.f32 %v7124_v34, %v7096_v10  ;;  %v3774_v29 = vmul.f32 %v7124_v34, %v7117_v27  ;;  %v3865_v47 = vrot.slane %v3769_v30, 1 }
  0xdf   : > { %v3866_v53 = vrot.slane %v3770_v23, 1  ;;  %v3868_v51 = vrot.slane %v3771_v43, 1  ;;  %v3870_v49 = vrot.slane %v3772_v14, 1  ;;  %v4014_v36 = vmul.f32 %v7143_v33, %v6865_v59 }
  0xe0   : > { %v3871_v26 = vrot.slane %v3773_v25, 1  ;;  %v3873_v28 = vrot.slane %v3774_v29, 1  ;;  %v4015_v21 = vmul.f32 %v7143_v33, %v6863_v45  ;;  %v4016_v52 = vmul.f32 %v7143_v33, %v6957_v32 }
  0xe1   : > { %v3867_v3 = vsel %vm669_vm0, %v3865_v47, %v3866_v53  ;;  %v3869_v8 = vsel %vm669_vm0, %v3866_v53, %v3868_v51  ;;  %v4017_v61 = vmul.f32 %v7143_v33, %v7010_v18  ;;  %v4018_v30 = vmul.f32 %v7143_v33, %v7096_v10  ;;  %v7164_v47 = vld [vmem:[%s10705_s1 + $0x12] ss:$0 sm:$0xff]  ;;  %v7166_v53 = vpop.permute.xlu1 %387 }
  0xe2   : > { %v3872_v62 = vsel %vm669_vm0, %v3870_v49, %v3871_v26  ;;  %v3874_v22 = vsel %vm669_vm0, %v3871_v26, %v3873_v28  ;;  %v3977_v16 = vadd.f32 %v3867_v3, %v3727_v11  ;;  %v3978_v63 = vadd.f32 %v3869_v8, %v3728_v7  ;;  %10889 = vst [vmem:[#allocation26_spill] sm:$0xff] %v7166_v53 }
  0xe3   : > { %v3979_v13 = vadd.f32 %v3872_v62, %v3729_v12  ;;  %v3980_v0 = vadd.f32 %v3874_v22, %v3730_v60  ;;  %v4019_v23 = vmul.f32 %v7143_v33, %v7117_v27  ;;  %v4110_v43 = vrot.slane %v4014_v36, 2 }
  0xe4   : > { %v4111_v14 = vrot.slane %v4015_v21, 2  ;;  %v4113_v25 = vrot.slane %v4016_v52, 2  ;;  %v4115_v29 = vrot.slane %v4017_v61, 2  ;;  %v4116_v11 = vrot.slane %v4018_v30, 2 }
  0xe5   : > { %v4118_v7 = vrot.slane %v4019_v23, 2  ;;  %v4259_v12 = vmul.f32 %v7164_v47, %v6865_v59  ;;  %v4260_v60 = vmul.f32 %v7164_v47, %v6863_v45  ;;  %v4261_v26 = vmul.f32 %v7164_v47, %v6957_v32 }
  0xe6   : > { %v4112_v51 = vsel %vm915_vm2, %v4110_v43, %v4111_v14  ;;  %v4114_v49 = vsel %vm915_vm2, %v4111_v14, %v4113_v25  ;;  %v4262_v28 = vmul.f32 %v7164_v47, %v7010_v18  ;;  %v4117_v36 = vsel %vm915_vm2, %v4115_v29, %v4116_v11  ;;  %v7187_v25 = vld [vmem:[%s10705_s1 + $0x13] ss:$0 sm:$0xff] }
  0xe7   : > { %v4119_v21 = vsel %vm915_vm2, %v4116_v11, %v4118_v7  ;;  %v4222_v3 = vadd.f32 %v4112_v51, %v3977_v16  ;;  %v4223_v8 = vadd.f32 %v4114_v49, %v3978_v63  ;;  %v4224_v52 = vadd.f32 %v4117_v36, %v3979_v13 }
  0xe8   : > { %v4225_v61 = vadd.f32 %v4119_v21, %v3980_v0  ;;  %v4263_v62 = vmul.f32 %v7164_v47, %v7096_v10  ;;  %v4264_v22 = vmul.f32 %v7164_v47, %v7117_v27  ;;  %v4355_v30 = vrot.slane %v4259_v12, 3  ;;  %v7193_v0 = vpop.permute.xlu1 %397 }
  0xe9   : > { %v4356_v23 = vrot.slane %v4260_v60, 3  ;;  %v4358_v43 = vrot.slane %v4261_v26, 3  ;;  %v4360_v14 = vrot.slane %v4262_v28, 3  ;;  %v4504_v63 = vmul.f32 %v7187_v25, %v6865_v59  ;;  %10890 = vst [vmem:[#allocation27_spill] sm:$0xff] %v7193_v0 }
  0xea   : > { %v4361_v29 = vrot.slane %v4263_v62, 3  ;;  %v4363_v16 = vrot.slane %v4264_v22, 3  ;;  %v4505_v13 = vmul.f32 %v7187_v25, %v6863_v45  ;;  %v4506_v12 = vmul.f32 %v7187_v25, %v6957_v32 }
  0xeb   : > { %v4357_v11 = vsel %vm1161_vm3, %v4355_v30, %v4356_v23  ;;  %v4359_v7 = vsel %vm1161_vm3, %v4356_v23, %v4358_v43  ;;  %v4507_v60 = vmul.f32 %v7187_v25, %v7010_v18  ;;  %v4508_v62 = vmul.f32 %v7187_v25, %v7096_v10 }
  0xec   : > { %v4362_v51 = vsel %vm1161_vm3, %v4360_v14, %v4361_v29  ;;  %v4364_v49 = vsel %vm1161_vm3, %v4361_v29, %v4363_v16  ;;  %v4467_v26 = vadd.f32 %v4357_v11, %v4222_v3  ;;  %v4468_v28 = vadd.f32 %v4359_v7, %v4223_v8  ;;  %v7210_v14 = vld [vmem:[%s10705_s1 + $0x14] ss:$0 sm:$0xff]  ;;  %v7222_v11 = vpop.permute.xlu1 %516 }
  0xed   : > { %v4469_v36 = vadd.f32 %v4362_v51, %v4224_v52  ;;  %v4470_v21 = vadd.f32 %v4364_v49, %v4225_v61  ;;  %v4509_v22 = vmul.f32 %v7187_v25, %v7117_v27  ;;  %v4600_v30 = vrot.slane %v4504_v63, 4  ;;  %10891 = vst [vmem:[#allocation28_spill] sm:$0xff] %v7222_v11  ;;  %v7229_v49 = vld [vmem:[%s10705_s1 + $0x15] ss:$0 sm:$0xff] }
  0xee   : > { %v4601_v23 = vrot.slane %v4505_v13, 4  ;;  %v4603_v43 = vrot.slane %v4506_v12, 4  ;;  %v4605_v4 = vrot.slane %v4507_v60, 4  ;;  %v4606_v29 = vrot.slane %v4508_v62, 4 }
  0xef   : > { %v4608_v3 = vrot.slane %v4509_v22, 4  ;;  %v4759_v8 = vmul.f32 %v7210_v14, %v7010_v18  ;;  %v4760_v52 = vmul.f32 %v7210_v14, %v7096_v10  ;;  %v4761_v63 = vmul.f32 %v7210_v14, %v7036_v9 }
  0xf0   : > { %v4602_v61 = vsel %vm1407_vm1, %v4600_v30, %v4601_v23  ;;  %v4604_v16 = vsel %vm1407_vm1, %v4601_v23, %v4603_v43  ;;  %v4762_v13 = vmul.f32 %v7210_v14, %v7138_v19  ;;  %v4607_v7 = vsel %vm1407_vm1, %v4605_v4, %v4606_v29 }
  0xf1   : > { %v4609_v12 = vsel %vm1407_vm1, %v4606_v29, %v4608_v3  ;;  %v4712_v60 = vadd.f32 %v4602_v61, %v4467_v26  ;;  %v4713_v51 = vadd.f32 %v4604_v16, %v4468_v28  ;;  %v4714_v62 = vadd.f32 %v4607_v7, %v4469_v36 }
  0xf2   : > { %v4715_v22 = vadd.f32 %v4609_v12, %v4470_v21  ;;  %v4833_v30 = vmul.f32 %v7229_v49, %v7010_v18  ;;  %v4834_v23 = vmul.f32 %v7229_v49, %v7096_v10  ;;  %v4835_v4 = vmul.f32 %v7229_v49, %v7117_v27 }
  0xf3   : > { %v4791_v43 = vadd.f32 %v4759_v8, %v4712_v60  ;;  %v4792_v5 = vadd.f32 %v4760_v52, %v4713_v51  ;;  %v4836_v26 = vmul.f32 %v7229_v49, %v7036_v9  ;;  %v4793_v28 = vadd.f32 %v4761_v63, %v4714_v62  ;;  %v7246_v8 = vld [vmem:[%s10705_s1 + $0x16] ss:$0 sm:$0xff] }
  0xf4   : > { %v4794_v29 = vadd.f32 %v4762_v13, %v4715_v22  ;;  %v4837_v36 = vmul.f32 %v7229_v49, %v7138_v19  ;;  %v4838_v21 = vmul.f32 %v7229_v49, %v7222_v11  ;;  %v4929_v3 = vrot.slane %v4833_v30, 1 }
  0xf5   : > { %v4930_v61 = vrot.slane %v4834_v23, 1  ;;  %v4932_v16 = vrot.slane %v4835_v4, 1  ;;  %v4934_v7 = vrot.slane %v4836_v26, 1  ;;  %v5078_v63 = vmul.f32 %v7246_v8, %v7010_v18 }
  0xf6   : > { %v4935_v52 = vrot.slane %v4837_v36, 1  ;;  %v4937_v12 = vrot.slane %v4838_v21, 1  ;;  %v5079_v13 = vmul.f32 %v7246_v8, %v7096_v10  ;;  %v5080_v62 = vmul.f32 %v7246_v8, %v7117_v27 }
  0xf7   : > { %v4931_v60 = vsel %vm669_vm0, %v4929_v3, %v4930_v61  ;;  %v4933_v51 = vsel %vm669_vm0, %v4930_v61, %v4932_v16  ;;  %v5081_v22 = vmul.f32 %v7246_v8, %v7036_v9  ;;  %v5082_v50 = vmul.f32 %v7246_v8, %v7138_v19 }
  0xf8   : > { %v4936_v30 = vsel %vm669_vm0, %v4934_v7, %v4935_v52  ;;  %v4938_v23 = vsel %vm669_vm0, %v4935_v52, %v4937_v12  ;;  %v5041_v4 = vadd.f32 %v4931_v60, %v4791_v43  ;;  %v5042_v26 = vadd.f32 %v4933_v51, %v4792_v5  ;;  %v7267_v7 = vld [vmem:[%s10705_s1 + $0x17] ss:$0 sm:$0xff] }
  0xf9   : > { %v5043_v36 = vadd.f32 %v4936_v30, %v4793_v28  ;;  %v5044_v21 = vadd.f32 %v4938_v23, %v4794_v29  ;;  %v5083_v3 = vmul.f32 %v7246_v8, %v7222_v11  ;;  %v5174_v61 = vrot.slane %v5078_v63, 2 }
  0xfa   : > { %v5175_v16 = vrot.slane %v5079_v13, 2  ;;  %v5177_v32 = vrot.slane %v5080_v62, 2  ;;  %v5179_v45 = vrot.slane %v5081_v22, 2  ;;  %v5180_v52 = vrot.slane %v5082_v50, 2 }
  0xfb   : > { %v5182_v43 = vrot.slane %v5083_v3, 2  ;;  %v5323_v5 = vmul.f32 %v7267_v7, %v7010_v18  ;;  %v5324_v28 = vmul.f32 %v7267_v7, %v7096_v10  ;;  %v5325_v63 = vmul.f32 %v7267_v7, %v7117_v27 }
  0xfc   : > { %v5176_v29 = vsel %vm915_vm2, %v5174_v61, %v5175_v16  ;;  %v5178_v12 = vsel %vm915_vm2, %v5175_v16, %v5177_v32  ;;  %v5326_v13 = vmul.f32 %v7267_v7, %v7036_v9  ;;  %v5181_v60 = vsel %vm915_vm2, %v5179_v45, %v5180_v52  ;;  %v7288_v45 = vld [vmem:[%s10705_s1 + $0x18] ss:$0 sm:$0xff] }
  0xfd   : > { %v5183_v50 = vsel %vm915_vm2, %v5180_v52, %v5182_v43  ;;  %v5286_v51 = vadd.f32 %v5176_v29, %v5041_v4  ;;  %v5287_v62 = vadd.f32 %v5178_v12, %v5042_v26  ;;  %v5288_v22 = vadd.f32 %v5181_v60, %v5043_v36 }
  0xfe   : > { %v5289_v30 = vadd.f32 %v5183_v50, %v5044_v21  ;;  %v5327_v23 = vmul.f32 %v7267_v7, %v7138_v19  ;;  %v5328_v32 = vmul.f32 %v7267_v7, %v7222_v11  ;;  %v5419_v3 = vrot.slane %v5323_v5, 3 }
  0xff   : > { %v5420_v61 = vrot.slane %v5324_v28, 3  ;;  %v5422_v16 = vrot.slane %v5325_v63, 3  ;;  %v5424_v59 = vrot.slane %v5326_v13, 3  ;;  %v5568_v26 = vmul.f32 %v7288_v45, %v7010_v18 }
 0x100   : > { %v5425_v52 = vrot.slane %v5327_v23, 3  ;;  %v5427_v4 = vrot.slane %v5328_v32, 3  ;;  %v5569_v36 = vmul.f32 %v7288_v45, %v7096_v10  ;;  %v5570_v5 = vmul.f32 %v7288_v45, %v7117_v27 }
 0x101   : > { %v5421_v21 = vsel %vm1161_vm3, %v5419_v3, %v5420_v61  ;;  %v5423_v43 = vsel %vm1161_vm3, %v5420_v61, %v5422_v16  ;;  %v5571_v28 = vmul.f32 %v7288_v45, %v7036_v9  ;;  %v5572_v23 = vmul.f32 %v7288_v45, %v7138_v19 }
 0x102   : > { %v5426_v29 = vsel %vm1161_vm3, %v5424_v59, %v5425_v52  ;;  %v5428_v12 = vsel %vm1161_vm3, %v5425_v52, %v5427_v4  ;;  %v5531_v63 = vadd.f32 %v5421_v21, %v5286_v51  ;;  %v5532_v13 = vadd.f32 %v5423_v43, %v5287_v62  ;;  %v6424_v59 = vld [vmem:[%s10705_s1] ss:$0 sm:$0xff] }
 0x103   : > { %v5533_v60 = vadd.f32 %v5426_v29, %v5288_v22  ;;  %v5534_v50 = vadd.f32 %v5428_v12, %v5289_v30  ;;  %v5573_v32 = vmul.f32 %v7288_v45, %v7222_v11  ;;  %v5664_v3 = vrot.slane %v5568_v26, 4  ;;  %v7316_v52 = vld [vmem:[%s10706_s2] ss:$0 sm:$0xff]  ;;  %v7325_v12 = vld [vmem:[%s10705_s1 + $0x1] ss:$0 sm:$0xff] }
 0x104   : > { %v5665_v61 = vrot.slane %v5569_v36, 4  ;;  %v5667_v16 = vrot.slane %v5570_v5, 4  ;;  %v5669_v27 = vrot.slane %v5571_v28, 4  ;;  %v5670_v9 = vrot.slane %v5572_v23, 4  ;;  %10892 = vst [vmem:[#allocation29_spill] sm:$0xff] %v7316_v52 }
 0x105   : > { %v5672_v10 = vrot.slane %v5573_v32, 4  ;;  %v440_v51 = vmul.f32 %v6424_v59, %v6750_v41  ;;  %v441_v62 = vmul.f32 %v6424_v59, %v6748_v40  ;;  %v442_v4 = vmul.f32 %v6424_v59, %v6784_v58 }
 0x106   : > { %v5666_v22 = vsel %vm1407_vm1, %v5664_v3, %v5665_v61  ;;  %v5668_v30 = vsel %vm1407_vm1, %v5665_v61, %v5667_v16  ;;  %v443_v26 = vmul.f32 %v6424_v59, %v6782_v57  ;;  %v5671_v36 = vsel %vm1407_vm1, %v5669_v27, %v5670_v9 }
 0x107   : > { %v5673_v21 = vsel %vm1407_vm1, %v5670_v9, %v5672_v10  ;;  %v5776_v43 = vadd.f32 %v5666_v22, %v5531_v63  ;;  %v5777_v5 = vadd.f32 %v5668_v30, %v5532_v13  ;;  %v5778_v28 = vadd.f32 %v5671_v36, %v5533_v60 }
 0x108   : > { %v5779_v29 = vadd.f32 %v5673_v21, %v5534_v50  ;;  %v597_v23 = vmul.f32 %v7325_v12, %v6750_v41  ;;  %v598_v32 = vmul.f32 %v7325_v12, %v6748_v40  ;;  %v599_v9 = vmul.f32 %v7325_v12, %v6827_v17 }
 0x109   : > { %v5815_v3 = vadd.f32 %v7316_v52, %v5776_v43  ;;  %v5816_v27 = vadd.f32 %v7316_v52, %v5777_v5  ;;  %v600_v10 = vmul.f32 %v7325_v12, %v6784_v58  ;;  %v5817_v63 = vadd.f32 %v7316_v52, %v5778_v28 }
 0x10a   : > { %v5818_v13 = vadd.f32 %v7316_v52, %v5779_v29  ;;  %v601_v60 = vmul.f32 %v7325_v12, %v6782_v57  ;;  %v602_v50 = vmul.f32 %v7325_v12, %v6825_v6  ;;  %v710_v59 = vrot.slane %v597_v23, 1 }
 0x10b   : > { %v5847_v61 = vmax.f32 %v5815_v3, 0.0  ;;  %v5848_v16 = vmax.f32 %v5816_v27, 0.0  ;;  %v711_v22 = vrot.slane %v598_v32, 1  ;;  %v5849_v30 = vmax.f32 %v5817_v63, 0.0 }
 0x10c   : > { %v5850_v36 = vmax.f32 %v5818_v13, 0.0  ;;  %v713_v21 = vrot.slane %v599_v9, 1  ;;  %v715_v43 = vrot.slane %v600_v10, 1  ;;  %v716_v11 = vrot.slane %v601_v60, 1  ;;  %v7354_v60 = vld [vmem:[%s10705_s1 + $0x2] ss:$0 sm:$0xff] }
 0x10d   : > { %v5880_v5 = vsel %vm5879_vm4, %v5847_v61, -inf  ;;  %v5883_v28 = vsel %vm5879_vm4, %v5848_v16, -inf  ;;  %v712_v29 = vsel %vm669_vm0, %v710_v59, %v711_v22  ;;  %v5881_v19 = vsel %vm5879_vm4, %v5849_v30, -inf }
 0x10e   : > { %v5884_v18 = vsel %vm5879_vm4, %v5850_v36, -inf  ;;  %v714_v3 = vsel %vm669_vm0, %v711_v22, %v713_v21  ;;  %v718_v27 = vrot.slane %v602_v50, 1  ;;  %v5882_v23 = vmax.f32 %v5880_v5, %v5881_v19 }
 0x10f   : > { %v5885_v32 = vmax.f32 %v5883_v28, %v5884_v18  ;;  %v717_v63 = vsel %vm669_vm0, %v715_v43, %v716_v11  ;;  %v798_v9 = vadd.f32 %v712_v29, %v440_v51  ;;  %v799_v13 = vadd.f32 %v714_v3, %v441_v62 }
 0x110   : > { %v719_v10 = vsel %vm669_vm0, %v716_v11, %v718_v27  ;;  %v800_v61 = vadd.f32 %v717_v63, %v442_v4  ;;  %v843_v16 = vmul.f32 %v7354_v60, %v6750_v41  ;;  %v5944_v59 = vrot.slane %v5882_v23, 1  ;;  %v7374_v63 = vld [vmem:[%s10705_s1 + $0x3] ss:$0 sm:$0xff] }
 0x111   : > { %v5945_v22 = vrot.slane %v5885_v32, 1  ;;  %v801_v50 = vadd.f32 %v719_v10, %v443_v26  ;;  %v844_v18 = vmul.f32 %v7354_v60, %v6748_v40  ;;  %v845_v19 = vmul.f32 %v7354_v60, %v6827_v17 }
 0x112   : > { %v846_v11 = vmul.f32 %v7354_v60, %v6784_v58  ;;  %v847_v51 = vmul.f32 %v7354_v60, %v6782_v57  ;;  %v848_v62 = vmul.f32 %v7354_v60, %v6825_v6  ;;  %v956_v26 = vrot.slane %v843_v16, 2 }
 0x113   : > { %v5946_v4 = vsel %vm669_vm0, %v5944_v59, %v5945_v22  ;;  %v5992_v30 = vsel %vm669_vm0, %v5945_v22, %v5944_v59  ;;  %v957_v36 = vrot.slane %v844_v18, 2  ;;  %v959_v5 = vrot.slane %v845_v19, 2 }
 0x114   : > { %v6000_v21 = vmax.f32 %v5882_v23, %v5946_v4  ;;  %v6001_v43 = vmax.f32 %v5885_v32, %v5992_v30  ;;  %v961_v28 = vrot.slane %v846_v11, 2  ;;  %v962_v3 = vrot.slane %v847_v51, 2 }
 0x115   : > { %v958_v29 = vsel %vm915_vm2, %v956_v26, %v957_v36  ;;  %v964_v27 = vrot.slane %v848_v62, 2  ;;  %v1089_v10 = vmul.f32 %v7374_v63, %v6750_v41  ;;  %v960_v16 = vsel %vm915_vm2, %v957_v36, %v959_v5 }
 0x116   : > { %v6016_v52 = vpack.c.bf16 %v6001_v43, %v6000_v21  ;;  %v1044_v59 = vadd.f32 %v958_v29, %v798_v9  ;;  %v1090_v23 = vmul.f32 %v7374_v63, %v6748_v40  ;;  %v963_v32 = vsel %vm915_vm2, %v961_v28, %v962_v3 }
 0x117   : > { %v965_v22 = vsel %vm915_vm2, %v962_v3, %v964_v27  ;;  %v1045_v18 = vadd.f32 %v960_v16, %v799_v13  ;;  %v1091_v19 = vmul.f32 %v7374_v63, %v6827_v17  ;;  %v1046_v11 = vadd.f32 %v963_v32, %v800_v61 }
 0x118   : > { %6390 = vmatprep.mubr.msk.bf16.mxu0 %vm5879_vm4, %v6016_v52  ;;  %v1047_v51 = vadd.f32 %v965_v22, %v801_v50  ;;  %v1092_v62 = vmul.f32 %v7374_v63, %v6784_v58  ;;  %v1093_v9 = vmul.f32 %v7374_v63, %v6782_v57  ;;  %v1094_v4 = vmul.f32 %v7374_v63, %v6825_v6  ;;  %v7395_v52 = vld [vmem:[%s10705_s1 + $0x4] ss:$0 sm:$0xff] }
 0x119   : > { %v1202_v30 = vrot.slane %v1089_v10, 3  ;;  %v1203_v26 = vrot.slane %v1090_v23, 3  ;;  %v1205_v36 = vrot.slane %v1091_v19, 3  ;;  %v1335_v61 = vmul.f32 %v7395_v52, %v6750_v41 }
 0x11a   : > { %v1207_v13 = vrot.slane %v1092_v62, 3  ;;  %v1208_v21 = vrot.slane %v1093_v9, 3  ;;  %v1336_v50 = vmul.f32 %v7395_v52, %v6748_v40  ;;  %v1210_v28 = vrot.slane %v1094_v4, 3 }
 0x11b   : > { %v1204_v43 = vsel %vm1161_vm3, %v1202_v30, %v1203_v26  ;;  %v1206_v5 = vsel %vm1161_vm3, %v1203_v26, %v1205_v36  ;;  %v1337_v29 = vmul.f32 %v7395_v52, %v6827_v17  ;;  %v1338_v16 = vmul.f32 %v7395_v52, %v6784_v58 }
 0x11c   : > { %v1209_v3 = vsel %vm1161_vm3, %v1207_v13, %v1208_v21  ;;  %v1290_v27 = vadd.f32 %v1204_v43, %v1044_v59  ;;  %v1291_v10 = vadd.f32 %v1206_v5, %v1045_v18  ;;  %v1211_v23 = vsel %vm1161_vm3, %v1208_v21, %v1210_v28  ;;  %v7416_v18 = vld [vmem:[%s10705_s1 + $0x5] ss:$0 sm:$0xff] }
 0x11d   : > { %v1292_v32 = vadd.f32 %v1209_v3, %v1046_v11  ;;  %v1339_v22 = vmul.f32 %v7395_v52, %v6782_v57  ;;  %v1340_v19 = vmul.f32 %v7395_v52, %v6825_v6  ;;  %v1293_v62 = vadd.f32 %v1211_v23, %v1047_v51  ;;  %v7433_v23 = vld [vmem:[%s10705_s1 + $0x6] ss:$0 sm:$0xff] }
 0x11e   : > { %v1448_v9 = vrot.slane %v1335_v61, 4  ;;  %v1449_v4 = vrot.slane %v1336_v50, 4  ;;  %v1451_v30 = vrot.slane %v1337_v29, 4  ;;  %v1453_v26 = vrot.slane %v1338_v16, 4 }
 0x11f   : > { %v1454_v36 = vrot.slane %v1339_v22, 4  ;;  %v1456_v59 = vrot.slane %v1340_v19, 4  ;;  %v1583_v11 = vmul.f32 %v7416_v18, %v6784_v58  ;;  %v1584_v51 = vmul.f32 %v7416_v18, %v6782_v57 }
 0x120   : > { %v1450_v13 = vsel %vm1407_vm1, %v1448_v9, %v1449_v4  ;;  %v1452_v21 = vsel %vm1407_vm1, %v1449_v4, %v1451_v30  ;;  %v1585_v61 = vmul.f32 %v7416_v18, %v6895_v46  ;;  %v1586_v16 = vmul.f32 %v7416_v18, %v6893_v24 }
 0x121   : > { %v1455_v50 = vsel %vm1407_vm1, %v1453_v26, %v1454_v36  ;;  %v1457_v43 = vsel %vm1407_vm1, %v1454_v36, %v1456_v59  ;;  %v1536_v5 = vadd.f32 %v1450_v13, %v1290_v27  ;;  %v1537_v28 = vadd.f32 %v1452_v21, %v1291_v10 }
 0x122   : > { %v1538_v29 = vadd.f32 %v1455_v50, %v1292_v32  ;;  %v1539_v3 = vadd.f32 %v1457_v43, %v1293_v62  ;;  %v1665_v22 = vmul.f32 %v7433_v23, %v6784_v58  ;;  %v1666_v4 = vmul.f32 %v7433_v23, %v6782_v57 }
 0x123   : > { %v1615_v19 = vadd.f32 %v1583_v11, %v1536_v5  ;;  %v1616_v9 = vadd.f32 %v1584_v51, %v1537_v28  ;;  %v1667_v27 = vmul.f32 %v7433_v23, %v6825_v6  ;;  %v1668_v62 = vmul.f32 %v7433_v23, %v6895_v46  ;;  %v7450_v51 = vld [vmem:[%s10705_s1 + $0x7] ss:$0 sm:$0xff] }
 0x124   : > { %v1617_v10 = vadd.f32 %v1585_v61, %v1538_v29  ;;  %v1618_v32 = vadd.f32 %v1586_v16, %v1539_v3  ;;  %v1669_v30 = vmul.f32 %v7433_v23, %v6893_v24  ;;  %v1670_v26 = vmul.f32 %v7433_v23, %v6983_v35 }
 0x125   : > { %v1777_v36 = vrot.slane %v1665_v22, 1  ;;  %v1778_v59 = vrot.slane %v1666_v4, 1  ;;  %v1780_v11 = vrot.slane %v1667_v27, 1  ;;  %v1782_v13 = vrot.slane %v1668_v62, 1 }
 0x126   : > { %v1783_v21 = vrot.slane %v1669_v30, 1  ;;  %v1910_v61 = vmul.f32 %v7450_v51, %v6784_v58  ;;  %v1911_v50 = vmul.f32 %v7450_v51, %v6782_v57  ;;  %v1785_v28 = vrot.slane %v1670_v26, 1 }
 0x127   : > { %v1779_v43 = vsel %vm669_vm0, %v1777_v36, %v1778_v59  ;;  %v1781_v5 = vsel %vm669_vm0, %v1778_v59, %v1780_v11  ;;  %v1912_v29 = vmul.f32 %v7450_v51, %v6825_v6  ;;  %v1913_v4 = vmul.f32 %v7450_v51, %v6895_v46 }
 0x128   : > { %v1784_v3 = vsel %vm669_vm0, %v1782_v13, %v1783_v21  ;;  %v1865_v16 = vadd.f32 %v1779_v43, %v1615_v19  ;;  %v1866_v22 = vadd.f32 %v1781_v5, %v1616_v9  ;;  %v1786_v27 = vsel %vm669_vm0, %v1783_v21, %v1785_v28  ;;  %v7471_v9 = vld [vmem:[%s10705_s1 + $0x8] ss:$0 sm:$0xff] }
 0x129   : > { %v1867_v62 = vadd.f32 %v1784_v3, %v1617_v10  ;;  %v1914_v30 = vmul.f32 %v7450_v51, %v6893_v24  ;;  %v1915_v36 = vmul.f32 %v7450_v51, %v6983_v35  ;;  %v1868_v26 = vadd.f32 %v1786_v27, %v1618_v32 }
 0x12a   : > { %v2022_v59 = vrot.slane %v1910_v61, 2  ;;  %v2023_v11 = vrot.slane %v1911_v50, 2  ;;  %v2025_v17 = vrot.slane %v1912_v29, 2  ;;  %v2027_v40 = vrot.slane %v1913_v4, 2 }
 0x12b   : > { %v2028_v13 = vrot.slane %v1914_v30, 2  ;;  %v2030_v19 = vrot.slane %v1915_v36, 2  ;;  %v2155_v10 = vmul.f32 %v7471_v9, %v6784_v58  ;;  %v2156_v32 = vmul.f32 %v7471_v9, %v6782_v57 }
 0x12c   : > { %v2024_v21 = vsel %vm915_vm2, %v2022_v59, %v2023_v11  ;;  %v2026_v43 = vsel %vm915_vm2, %v2023_v11, %v2025_v17  ;;  %v2157_v61 = vmul.f32 %v7471_v9, %v6825_v6  ;;  %v2158_v27 = vmul.f32 %v7471_v9, %v6895_v46 }
 0x12d   : > { %v2029_v50 = vsel %vm915_vm2, %v2027_v40, %v2028_v13  ;;  %v2031_v5 = vsel %vm915_vm2, %v2028_v13, %v2030_v19  ;;  %v2110_v28 = vadd.f32 %v2024_v21, %v1865_v16  ;;  %v2111_v29 = vadd.f32 %v2026_v43, %v1866_v22  ;;  %v7492_v16 = vld [vmem:[%s10705_s1 + $0x9] ss:$0 sm:$0xff] }
 0x12e   : > { %v2112_v3 = vadd.f32 %v2029_v50, %v1867_v62  ;;  %v2113_v4 = vadd.f32 %v2031_v5, %v1868_v26  ;;  %v2159_v17 = vmul.f32 %v7471_v9, %v6893_v24  ;;  %v2160_v30 = vmul.f32 %v7471_v9, %v6983_v35 }
 0x12f   : > { %v2267_v36 = vrot.slane %v2155_v10, 3  ;;  %v2268_v59 = vrot.slane %v2156_v32, 3  ;;  %v2270_v11 = vrot.slane %v2157_v61, 3  ;;  %v2272_v41 = vrot.slane %v2158_v27, 3 }
 0x130   : > { %v2273_v40 = vrot.slane %v2159_v17, 3  ;;  %v2400_v22 = vmul.f32 %v7492_v16, %v6784_v58  ;;  %v2401_v62 = vmul.f32 %v7492_v16, %v6782_v57  ;;  %v2275_v19 = vrot.slane %v2160_v30, 3 }
 0x131   : > { %v2269_v26 = vsel %vm1161_vm3, %v2267_v36, %v2268_v59  ;;  %v2271_v13 = vsel %vm1161_vm3, %v2268_v59, %v2270_v11  ;;  %v2402_v10 = vmul.f32 %v7492_v16, %v6825_v6  ;;  %v2403_v61 = vmul.f32 %v7492_v16, %v6895_v46 }
 0x132   : > { %v2274_v21 = vsel %vm1161_vm3, %v2272_v41, %v2273_v40  ;;  %v2355_v43 = vadd.f32 %v2269_v26, %v2110_v28  ;;  %v2356_v32 = vadd.f32 %v2271_v13, %v2111_v29  ;;  %v2276_v50 = vsel %vm1161_vm3, %v2273_v40, %v2275_v19 }
 0x133   : > { %v2357_v5 = vadd.f32 %v2274_v21, %v2112_v3  ;;  %v2404_v27 = vmul.f32 %v7492_v16, %v6893_v24  ;;  %v2405_v17 = vmul.f32 %v7492_v16, %v6983_v35  ;;  %v2358_v30 = vadd.f32 %v2276_v50, %v2113_v4  ;;  %v7525_v50 = vld [vmem:[%s10705_s1 + $0xb] ss:$0 sm:$0xff] }
 0x134   : > { %v2512_v36 = vrot.slane %v2400_v22, 4  ;;  %v2513_v59 = vrot.slane %v2401_v62, 4  ;;  %v2515_v11 = vrot.slane %v2402_v10, 4  ;;  %v2517_v6 = vrot.slane %v2403_v61, 4 }
 0x135   : > { %v2518_v41 = vrot.slane %v2404_v27, 4  ;;  %v2520_v28 = vrot.slane %v2405_v17, 4  ;;  %v2647_v29 = vmul.f32 %v6999_v20, %v6895_v46  ;;  %v2648_v40 = vmul.f32 %v6999_v20, %v6893_v24 }
 0x136   : > { %v2514_v26 = vsel %vm1407_vm1, %v2512_v36, %v2513_v59  ;;  %v2516_v3 = vsel %vm1407_vm1, %v2513_v59, %v2515_v11  ;;  %v2649_v13 = vmul.f32 %v6999_v20, %v6913_v31  ;;  %v2650_v61 = vmul.f32 %v6999_v20, %v6916_v44 }
 0x137   : > { %v2519_v4 = vsel %vm1407_vm1, %v2517_v6, %v2518_v41  ;;  %v2521_v22 = vsel %vm1407_vm1, %v2518_v41, %v2520_v28  ;;  %v2600_v62 = vadd.f32 %v2514_v26, %v2355_v43  ;;  %v2601_v19 = vadd.f32 %v2516_v3, %v2356_v32 }
 0x138   : > { %v2602_v10 = vadd.f32 %v2519_v4, %v2357_v5  ;;  %v2603_v21 = vadd.f32 %v2521_v22, %v2358_v30  ;;  %v2729_v27 = vmul.f32 %v7525_v50, %v6895_v46  ;;  %v2730_v6 = vmul.f32 %v7525_v50, %v6893_v24 }
 0x139   : > { %v2679_v17 = vadd.f32 %v2647_v29, %v2600_v62  ;;  %v2680_v36 = vadd.f32 %v2648_v40, %v2601_v19  ;;  %v2731_v43 = vmul.f32 %v7525_v50, %v6983_v35  ;;  %v2732_v20 = vmul.f32 %v7525_v50, %v6913_v31  ;;  %v6422_v29 = vld [vmem:[%s10707_s3 + $0x8] sm:$0xff]  }
 0x13a   : > { %v2681_v32 = vadd.f32 %v2649_v13, %v2602_v10  ;;  %v2682_v5 = vadd.f32 %v2650_v61, %v2603_v21  ;;  %v2733_v30 = vmul.f32 %v7525_v50, %v6916_v44  ;;  %v2734_v59 = vmul.f32 %v7525_v50, %v7069_v1  ;;  %6386 = vmatprep.subr.bf16.mxu0 %v6422_v29 }
 0x13b   : > { %v2841_v11 = vrot.slane %v2729_v27, 1  ;;  %v2842_v41 = vrot.slane %v2730_v6, 1  ;;  %v2844_v28 = vrot.slane %v2731_v43, 1  ;;  %v2846_v26 = vrot.slane %v2732_v20, 1  ;;  %6406 = vmatprep.subr.bf16.mxu1 %v6422_v29  ;;  %6387 = vmatpush3.bf16.msra.mxu0 %v6422_v29 }
 0x13c   : > { %v2847_v3 = vrot.slane %v2733_v30, 1  ;;  %v2974_v40 = vmul.f32 %v7029_v54, %v6895_v46  ;;  %v2975_v13 = vmul.f32 %v7029_v54, %v6893_v24  ;;  %v2849_v62 = vrot.slane %v2734_v59, 1  ;;  %v6423_v59 = vld [vmem:[%s10707_s3] sm:$0xff]   ;;  %6408 = vmatpush3.bf16.msra.mxu1 %v6422_v29  ;;  %v7569_v29 = vpop.permute.xlu1 %556 }
 0x13d   : > { %v2843_v4 = vsel %vm669_vm0, %v2841_v11, %v2842_v41  ;;  %v2845_v22 = vsel %vm669_vm0, %v2842_v41, %v2844_v28  ;;  %v2976_v19 = vmul.f32 %v7029_v54, %v6983_v35  ;;  %v2977_v27 = vmul.f32 %v7029_v54, %v6913_v31  ;;  %6388 = vmatprep.subr.bf16.mxu0 %v6423_v59 }
 0x13e   : > { %v2848_v10 = vsel %vm669_vm0, %v2846_v26, %v2847_v3  ;;  %v2929_v21 = vadd.f32 %v2843_v4, %v2679_v17  ;;  %v2930_v61 = vadd.f32 %v2845_v22, %v2680_v36  ;;  %v2850_v6 = vsel %vm669_vm0, %v2847_v3, %v2849_v62  ;;  %6407 = vmatprep.subr.bf16.mxu1 %v6423_v59 }
 0x13f   : > { %v2931_v43 = vadd.f32 %v2848_v10, %v2681_v32  ;;  %v2978_v20 = vmul.f32 %v7029_v54, %v6916_v44  ;;  %v2979_v30 = vmul.f32 %v7029_v54, %v7069_v1  ;;  %v2932_v17 = vadd.f32 %v2850_v6, %v2682_v5  ;;  %6389 = vmatpush3.bf16.msra.mxu0 %v6423_v59 }
 0x140   : > { %v3086_v36 = vrot.slane %v2974_v40, 2  ;;  %v3087_v11 = vrot.slane %v2975_v13, 2  ;;  %v3089_v41 = vrot.slane %v2976_v19, 2  ;;  %v3091_v28 = vrot.slane %v2977_v27, 2  ;;  %10893 = vst [vmem:[#allocation30_spill] sm:$0xff] %v7569_v29  ;;  %6409 = vmatpush3.bf16.msra.mxu1 %v6423_v59 }
 0x141   : > { %v3092_v26 = vrot.slane %v2978_v20, 2  ;;  %v3094_v4 = vrot.slane %v2979_v30, 2  ;;  %v3219_v32 = vmul.f32 %v7055_v39, %v6895_v46  ;;  %v3220_v22 = vmul.f32 %v7055_v39, %v6893_v24 }
 0x142   : > { %v3088_v3 = vsel %vm915_vm2, %v3086_v36, %v3087_v11  ;;  %v3090_v54 = vsel %vm915_vm2, %v3087_v11, %v3089_v41  ;;  %v3221_v5 = vmul.f32 %v7055_v39, %v6983_v35  ;;  %v3222_v6 = vmul.f32 %v7055_v39, %v6913_v31 }
 0x143   : > { %v3093_v40 = vsel %vm915_vm2, %v3091_v28, %v3092_v26  ;;  %v3095_v13 = vsel %vm915_vm2, %v3092_v26, %v3094_v4  ;;  %v3174_v62 = vadd.f32 %v3088_v3, %v2929_v21  ;;  %v3175_v19 = vadd.f32 %v3090_v54, %v2930_v61  ;;  %v7590_v54 = vpop.permute.xlu1 %327 }
 0x144   : > { %v3176_v10 = vadd.f32 %v3093_v40, %v2931_v43  ;;  %v3177_v27 = vadd.f32 %v3095_v13, %v2932_v17  ;;  %v3223_v20 = vmul.f32 %v7055_v39, %v6916_v44  ;;  %v3224_v30 = vmul.f32 %v7055_v39, %v7069_v1  ;;  %10894 = vst [vmem:[#allocation31_spill] sm:$0xff] %v7590_v54 }
 0x145   : > { %v3331_v36 = vrot.slane %v3219_v32, 3  ;;  %v3332_v11 = vrot.slane %v3220_v22, 3  ;;  %v3334_v41 = vrot.slane %v3221_v5, 3  ;;  %v3336_v28 = vrot.slane %v3222_v6, 3 }
 0x146   : > { %v3337_v57 = vrot.slane %v3223_v20, 3  ;;  %v3464_v21 = vmul.f32 %v7080_v56, %v6895_v46  ;;  %v3465_v61 = vmul.f32 %v7080_v56, %v6893_v24  ;;  %v3339_v17 = vrot.slane %v3224_v30, 3 }
 0x147   : > { %v3333_v43 = vsel %vm1161_vm3, %v3331_v36, %v3332_v11  ;;  %v3335_v59 = vsel %vm1161_vm3, %v3332_v11, %v3334_v41  ;;  %v3466_v26 = vmul.f32 %v7080_v56, %v6983_v35  ;;  %v3467_v3 = vmul.f32 %v7080_v56, %v6913_v31  ;;  %v7929_v35 = vld [vmem:[%s10705_s1 + $0x13] ss:$0 sm:$0xff] }
 0x148   : > { %v3338_v39 = vsel %vm1161_vm3, %v3336_v28, %v3337_v57  ;;  %v3419_v4 = vadd.f32 %v3333_v43, %v3174_v62  ;;  %v3420_v32 = vadd.f32 %v3335_v59, %v3175_v19  ;;  %v3340_v22 = vsel %vm1161_vm3, %v3337_v57, %v3339_v17  ;;  %v7607_v59 = vpop.permute.xlu0 %551 }
 0x149   : > { %v3421_v5 = vadd.f32 %v3338_v39, %v3176_v10  ;;  %v3468_v40 = vmul.f32 %v7080_v56, %v6916_v44  ;;  %v3469_v13 = vmul.f32 %v7080_v56, %v7069_v1  ;;  %v3422_v6 = vadd.f32 %v3340_v22, %v3177_v27  ;;  %10895 = vst [vmem:[#allocation32_spill] sm:$0xff] %v7607_v59  ;;  %v7613_v22 = vpop.permute.xlu1 %337 }
 0x14a   : > { %v3576_v20 = vrot.slane %v3464_v21, 4  ;;  %v3577_v30 = vrot.slane %v3465_v61, 4  ;;  %v3579_v36 = vrot.slane %v3466_v26, 4  ;;  %v3581_v62 = vrot.slane %v3467_v3, 4  ;;  %10896 = vst [vmem:[#allocation33_spill] sm:$0xff] %v7613_v22 }
 0x14b   : > { %v3582_v19 = vrot.slane %v3468_v40, 4  ;;  %v3584_v11 = vrot.slane %v3469_v13, 4  ;;  %v3711_v41 = vmul.f32 %v7105_v48, %v6913_v31  ;;  %v3712_v10 = vmul.f32 %v7105_v48, %v6916_v44 }
 0x14c   : > { %v3578_v28 = vsel %vm1407_vm1, %v3576_v20, %v3577_v30  ;;  %v3580_v57 = vsel %vm1407_vm1, %v3577_v30, %v3579_v36  ;;  %v3713_v56 = vmul.f32 %v7105_v48, %v7057_v42  ;;  %v3714_v39 = vmul.f32 %v7105_v48, %v7166_v53 }
 0x14d   : > { %v3583_v27 = vsel %vm1407_vm1, %v3581_v62, %v3582_v19  ;;  %v3585_v21 = vsel %vm1407_vm1, %v3582_v19, %v3584_v11  ;;  %v3664_v61 = vadd.f32 %v3578_v28, %v3419_v4  ;;  %v3665_v43 = vadd.f32 %v3580_v57, %v3420_v32 }
 0x14e   : > { %v3666_v17 = vadd.f32 %v3583_v27, %v3421_v5  ;;  %v3667_v26 = vadd.f32 %v3585_v21, %v3422_v6  ;;  %v3793_v3 = vmul.f32 %v7124_v34, %v6913_v31  ;;  %v3794_v20 = vmul.f32 %v7124_v34, %v6916_v44 }
 0x14f   : > { %v3743_v40 = vadd.f32 %v3711_v41, %v3664_v61  ;;  %v3744_v13 = vadd.f32 %v3712_v10, %v3665_v43  ;;  %v3795_v4 = vmul.f32 %v7124_v34, %v7069_v1  ;;  %v3796_v5 = vmul.f32 %v7124_v34, %v7057_v42 }
 0x150   : > { %v3745_v32 = vadd.f32 %v3713_v56, %v3666_v17  ;;  %v3746_v30 = vadd.f32 %v3714_v39, %v3667_v26  ;;  %v3797_v48 = vmul.f32 %v7124_v34, %v7166_v53  ;;  %v3798_v6 = vmul.f32 %v7124_v34, %v7607_v59  ;;  %v7636_v26 = vpop.permute.xlu1 %407 }
 0x151   : > { %v3905_v36 = vrot.slane %v3793_v3, 1  ;;  %v3906_v62 = vrot.slane %v3794_v20, 1  ;;  %v3908_v19 = vrot.slane %v3795_v4, 1  ;;  %v3910_v11 = vrot.slane %v3796_v5, 1  ;;  %10897 = vst [vmem:[#allocation34_spill] sm:$0xff] %v7636_v26 }
 0x152   : > { %v3911_v41 = vrot.slane %v3797_v48, 1  ;;  %v4038_v28 = vmul.f32 %v7143_v33, %v6913_v31  ;;  %v4039_v57 = vmul.f32 %v7143_v33, %v6916_v44  ;;  %v3913_v27 = vrot.slane %v3798_v6, 1 }
 0x153   : > { %v3907_v10 = vsel %vm669_vm0, %v3905_v36, %v3906_v62  ;;  %v3909_v56 = vsel %vm669_vm0, %v3906_v62, %v3908_v19  ;;  %v4040_v21 = vmul.f32 %v7143_v33, %v7069_v1  ;;  %v4041_v17 = vmul.f32 %v7143_v33, %v7057_v42 }
 0x154   : > { %v3912_v34 = vsel %vm669_vm0, %v3910_v11, %v3911_v41  ;;  %v3993_v61 = vadd.f32 %v3907_v10, %v3743_v40  ;;  %v3994_v43 = vadd.f32 %v3909_v56, %v3744_v13  ;;  %v3914_v39 = vsel %vm669_vm0, %v3911_v41, %v3913_v27  ;;  %v7643_v40 = vpop.permute.xlu0 %322 }
 0x155   : > { %v3995_v3 = vadd.f32 %v3912_v34, %v3745_v32  ;;  %v4042_v20 = vmul.f32 %v7143_v33, %v7166_v53  ;;  %v4043_v4 = vmul.f32 %v7143_v33, %v7607_v59  ;;  %v3996_v5 = vadd.f32 %v3914_v39, %v3746_v30  ;;  %10898 = vst [vmem:[#allocation35_spill] sm:$0xff] %v7643_v40  ;;  %v7659_v39 = vpop.permute.xlu1 %417 }
 0x156   : > { %v4150_v48 = vrot.slane %v4038_v28, 2  ;;  %v4151_v6 = vrot.slane %v4039_v57, 2  ;;  %v4153_v36 = vrot.slane %v4040_v21, 2  ;;  %v4155_v13 = vrot.slane %v4041_v17, 2  ;;  %10899 = vst [vmem:[#allocation36_spill] sm:$0xff] %v7659_v39 }
 0x157   : > { %v4156_v62 = vrot.slane %v4042_v20, 2  ;;  %v4158_v19 = vrot.slane %v4043_v4, 2  ;;  %v4283_v11 = vmul.f32 %v7164_v47, %v6913_v31  ;;  %v4284_v10 = vmul.f32 %v7164_v47, %v6916_v44 }
 0x158   : > { %v4152_v32 = vsel %vm915_vm2, %v4150_v48, %v4151_v6  ;;  %v4154_v41 = vsel %vm915_vm2, %v4151_v6, %v4153_v36  ;;  %v4285_v33 = vmul.f32 %v7164_v47, %v7069_v1  ;;  %v4286_v34 = vmul.f32 %v7164_v47, %v7057_v42 }
 0x159   : > { %v4157_v30 = vsel %vm915_vm2, %v4155_v13, %v4156_v62  ;;  %v4159_v28 = vsel %vm915_vm2, %v4156_v62, %v4158_v19  ;;  %v4238_v57 = vadd.f32 %v4152_v32, %v3993_v61  ;;  %v4239_v56 = vadd.f32 %v4154_v41, %v3994_v43 }
 0x15a   : > { %v4240_v27 = vadd.f32 %v4157_v30, %v3995_v3  ;;  %v4241_v21 = vadd.f32 %v4159_v28, %v3996_v5  ;;  %v4287_v17 = vmul.f32 %v7164_v47, %v7166_v53  ;;  %v4288_v20 = vmul.f32 %v7164_v47, %v7607_v59  ;;  %v7667_v3 = vpop.permute.xlu0 %332 }
 0x15b   : > { %v4395_v4 = vrot.slane %v4283_v11, 3  ;;  %v4396_v48 = vrot.slane %v4284_v10, 3  ;;  %v4398_v6 = vrot.slane %v4285_v33, 3  ;;  %v4400_v36 = vrot.slane %v4286_v34, 3  ;;  %10900 = vst [vmem:[#allocation37_spill] sm:$0xff] %v7667_v3 }
 0x15c   : > { %v4401_v13 = vrot.slane %v4287_v17, 3  ;;  %v4528_v61 = vmul.f32 %v7187_v25, %v6913_v31  ;;  %v4529_v43 = vmul.f32 %v7187_v25, %v6916_v44  ;;  %v4403_v19 = vrot.slane %v4288_v20, 3 }
 0x15d   : > { %v4397_v5 = vsel %vm1161_vm3, %v4395_v4, %v4396_v48  ;;  %v4399_v62 = vsel %vm1161_vm3, %v4396_v48, %v4398_v6  ;;  %v4530_v47 = vmul.f32 %v7187_v25, %v7069_v1  ;;  %v4531_v10 = vmul.f32 %v7187_v25, %v7057_v42  ;;  %v7681_v6 = vpop.permute.xlu1 %526 }
 0x15e   : > { %v4402_v11 = vsel %vm1161_vm3, %v4400_v36, %v4401_v13  ;;  %v4483_v32 = vadd.f32 %v4397_v5, %v4238_v57  ;;  %v4484_v41 = vadd.f32 %v4399_v62, %v4239_v56  ;;  %v4404_v33 = vsel %vm1161_vm3, %v4401_v13, %v4403_v19  ;;  %10901 = vst [vmem:[#allocation38_spill] sm:$0xff] %v7681_v6 }
 0x15f   : > { %v4485_v30 = vadd.f32 %v4402_v11, %v4240_v27  ;;  %v4532_v28 = vmul.f32 %v7187_v25, %v7166_v53  ;;  %v4533_v34 = vmul.f32 %v7187_v25, %v7607_v59  ;;  %v4486_v17 = vadd.f32 %v4404_v33, %v4241_v21  ;;  %v7691_v21 = vpop.permute.xlu0 %402 }
 0x160   : > { %v4640_v20 = vrot.slane %v4528_v61, 4  ;;  %v4641_v4 = vrot.slane %v4529_v43, 4  ;;  %v4643_v48 = vrot.slane %v4530_v47, 4  ;;  %v4645_v57 = vrot.slane %v4531_v10, 4  ;;  %10902 = vst [vmem:[#allocation39_spill] sm:$0xff] %v7691_v21 }
 0x161   : > { %v4646_v56 = vrot.slane %v4532_v28, 4  ;;  %v4648_v36 = vrot.slane %v4533_v34, 4  ;;  %v4775_v5 = vmul.f32 %v7210_v14, %v7057_v42  ;;  %v4776_v62 = vmul.f32 %v7210_v14, %v7166_v53  ;;  %v7890_v21 = vld [vmem:[%s10705_s1 + $0xa] ss:$0 sm:$0xff] }
 0x162   : > { %v4642_v27 = vsel %vm1407_vm1, %v4640_v20, %v4641_v4  ;;  %v4644_v13 = vsel %vm1407_vm1, %v4641_v4, %v4643_v48  ;;  %v4777_v25 = vmul.f32 %v7210_v14, %v7086_v2  ;;  %v4778_v33 = vmul.f32 %v7210_v14, %v7193_v0  ;;  %v7707_v14 = vpop.permute.xlu1 %566 }
 0x163   : > { %v4647_v61 = vsel %vm1407_vm1, %v4645_v57, %v4646_v56  ;;  %v4649_v43 = vsel %vm1407_vm1, %v4646_v56, %v4648_v36  ;;  %v4728_v19 = vadd.f32 %v4642_v27, %v4483_v32  ;;  %v4729_v47 = vadd.f32 %v4644_v13, %v4484_v41  ;;  %10903 = vst [vmem:[#allocation40_spill] sm:$0xff] %v7707_v14 }
 0x164   : > { %v4730_v11 = vadd.f32 %v4647_v61, %v4485_v30  ;;  %v4731_v10 = vadd.f32 %v4649_v43, %v4486_v17  ;;  %v4857_v28 = vmul.f32 %v7229_v49, %v7057_v42  ;;  %v4858_v4 = vmul.f32 %v7229_v49, %v7166_v53  ;;  %v7715_v61 = vpop.permute.xlu0 %412 }
 0x165   : > { %v4807_v34 = vadd.f32 %v4775_v5, %v4728_v19  ;;  %v4808_v20 = vadd.f32 %v4776_v62, %v4729_v47  ;;  %v4859_v48 = vmul.f32 %v7229_v49, %v7607_v59  ;;  %v4860_v32 = vmul.f32 %v7229_v49, %v7086_v2  ;;  %10904 = vst [vmem:[#allocation41_spill] sm:$0xff] %v7715_v61 }
 0x166   : > { %v4809_v57 = vadd.f32 %v4777_v25, %v4730_v11  ;;  %v4810_v56 = vadd.f32 %v4778_v33, %v4731_v10  ;;  %v4861_v41 = vmul.f32 %v7229_v49, %v7193_v0  ;;  %v4862_v30 = vmul.f32 %v7229_v49, %v7569_v29  ;;  %v7729_v58 = vpop.permute.xlu1 %1560 }
 0x167   : > { %v4969_v17 = vrot.slane %v4857_v28, 1  ;;  %v4970_v36 = vrot.slane %v4858_v4, 1  ;;  %v4972_v5 = vrot.slane %v4859_v48, 1  ;;  %v4974_v27 = vrot.slane %v4860_v32, 1  ;;  %10905 = vst [vmem:[#allocation42_spill] sm:$0xff] %v7729_v58 }
 0x168   : > { %v4975_v13 = vrot.slane %v4861_v41, 1  ;;  %v5102_v62 = vmul.f32 %v7246_v8, %v7057_v42  ;;  %v5103_v25 = vmul.f32 %v7246_v8, %v7166_v53  ;;  %v4977_v47 = vrot.slane %v4862_v30, 1 }
 0x169   : > { %v4971_v43 = vsel %vm669_vm0, %v4969_v17, %v4970_v36  ;;  %v4973_v19 = vsel %vm669_vm0, %v4970_v36, %v4972_v5  ;;  %v5104_v49 = vmul.f32 %v7246_v8, %v7607_v59  ;;  %v5105_v28 = vmul.f32 %v7246_v8, %v7086_v2 }
 0x16a   : > { %v4976_v11 = vsel %vm669_vm0, %v4974_v27, %v4975_v13  ;;  %v5057_v10 = vadd.f32 %v4971_v43, %v4807_v34  ;;  %v5058_v33 = vadd.f32 %v4973_v19, %v4808_v20  ;;  %v4978_v4 = vsel %vm669_vm0, %v4975_v13, %v4977_v47 }
 0x16b   : > { %v5059_v48 = vadd.f32 %v4976_v11, %v4809_v57  ;;  %v5106_v32 = vmul.f32 %v7246_v8, %v7193_v0  ;;  %v5107_v41 = vmul.f32 %v7246_v8, %v7569_v29  ;;  %v5060_v30 = vadd.f32 %v4978_v4, %v4810_v56  ;;  %v7739_v56 = vpop.permute.xlu0 %521 }
 0x16c   : > { %v5214_v17 = vrot.slane %v5102_v62, 2  ;;  %v5215_v36 = vrot.slane %v5103_v25, 2  ;;  %v5217_v5 = vrot.slane %v5104_v49, 2  ;;  %v5219_v34 = vrot.slane %v5105_v28, 2  ;;  %10906 = vst [vmem:[#allocation43_spill] sm:$0xff] %v7739_v56 }
 0x16d   : > { %v5220_v20 = vrot.slane %v5106_v32, 2  ;;  %v5222_v27 = vrot.slane %v5107_v41, 2  ;;  %v5347_v43 = vmul.f32 %v7267_v7, %v7057_v42  ;;  %v5348_v19 = vmul.f32 %v7267_v7, %v7166_v53 }
 0x16e   : > { %v5216_v57 = vsel %vm915_vm2, %v5214_v17, %v5215_v36  ;;  %v5218_v13 = vsel %vm915_vm2, %v5215_v36, %v5217_v5  ;;  %v5349_v8 = vmul.f32 %v7267_v7, %v7607_v59  ;;  %v5350_v4 = vmul.f32 %v7267_v7, %v7086_v2 }
 0x16f   : > { %v5221_v62 = vsel %vm915_vm2, %v5219_v34, %v5220_v20  ;;  %v5223_v25 = vsel %vm915_vm2, %v5220_v20, %v5222_v27  ;;  %v5302_v47 = vadd.f32 %v5216_v57, %v5057_v10  ;;  %v5303_v49 = vadd.f32 %v5218_v13, %v5058_v33 }
 0x170   : > { %v5304_v11 = vadd.f32 %v5221_v62, %v5059_v48  ;;  %v5305_v28 = vadd.f32 %v5223_v25, %v5060_v30  ;;  %v5351_v32 = vmul.f32 %v7267_v7, %v7193_v0  ;;  %v5352_v41 = vmul.f32 %v7267_v7, %v7569_v29  ;;  %v7753_v48 = vpop.permute.xlu1 %2619 }
 0x171   : > { %v5459_v17 = vrot.slane %v5347_v43, 3  ;;  %v5460_v36 = vrot.slane %v5348_v19, 3  ;;  %v5462_v5 = vrot.slane %v5349_v8, 3  ;;  %v5464_v26 = vrot.slane %v5350_v4, 3  ;;  %10907 = vst [vmem:[#allocation44_spill] sm:$0xff] %v7753_v48  ;;  %v7762_v8 = vpop.permute.xlu0 %561 }
 0x172   : > { %v5465_v34 = vrot.slane %v5351_v32, 3  ;;  %v5592_v10 = vmul.f32 %v7288_v45, %v7057_v42  ;;  %v5593_v33 = vmul.f32 %v7288_v45, %v7166_v53  ;;  %v5467_v27 = vrot.slane %v5352_v41, 3  ;;  %10908 = vst [vmem:[#allocation45_spill] sm:$0xff] %v7762_v8 }
 0x173   : > { %v5461_v30 = vsel %vm1161_vm3, %v5459_v17, %v5460_v36  ;;  %v5463_v20 = vsel %vm1161_vm3, %v5460_v36, %v5462_v5  ;;  %v5594_v7 = vmul.f32 %v7288_v45, %v7607_v59  ;;  %v5595_v19 = vmul.f32 %v7288_v45, %v7086_v2 }
 0x174   : > { %v5466_v43 = vsel %vm1161_vm3, %v5464_v26, %v5465_v34  ;;  %v5547_v57 = vadd.f32 %v5461_v30, %v5302_v47  ;;  %v5548_v13 = vadd.f32 %v5463_v20, %v5303_v49  ;;  %v5468_v62 = vsel %vm1161_vm3, %v5465_v34, %v5467_v27 }
 0x175   : > { %v5549_v25 = vadd.f32 %v5466_v43, %v5304_v11  ;;  %v5596_v4 = vmul.f32 %v7288_v45, %v7193_v0  ;;  %v5597_v32 = vmul.f32 %v7288_v45, %v7569_v29  ;;  %v5550_v41 = vadd.f32 %v5468_v62, %v5305_v28  ;;  %v7781_v28 = vpop.permute.xlu1 %2698 }
 0x176   : > { %v5704_v17 = vrot.slane %v5592_v10, 4  ;;  %v5705_v36 = vrot.slane %v5593_v33, 4  ;;  %v5707_v26 = vrot.slane %v5594_v7, 4  ;;  %v1604_v47 = vadd.f32 %v6934_v55, %v7001_v15  ;;  %10909 = vst [vmem:[#allocation46_spill] sm:$0xff] %v7781_v28 }
 0x177   : > { %v5709_v49 = vrot.slane %v5595_v19, 4  ;;  %v5710_v5 = vrot.slane %v5596_v4, 4  ;;  %v5712_v30 = vrot.slane %v5597_v32, 4  ;;  %v7775_v34 = vmul.f32 %v7325_v12, %v7659_v39  ;;  %v7794_v4 = vpop.permute.xlu0 %1555  ;;  %v10913_v32 = vld [vmem:[#allocation29_spill] sm:$0xff] }
 0x178   : > { %v5706_v20 = vsel %vm1407_vm1, %v5704_v17, %v5705_v36  ;;  %v5708_v11 = vsel %vm1407_vm1, %v5705_v36, %v5707_v26  ;;  %v7779_v45 = vmul.f32 %v7354_v60, %v7659_v39  ;;  %v7787_v43 = vmul.f32 %v7374_v63, %v7659_v39  ;;  %10912 = vst [vmem:[#allocation47_spill] sm:$0xff] %v7794_v4 }
 0x179   : > { %v5711_v10 = vsel %vm1407_vm1, %v5709_v49, %v5710_v5  ;;  %v5713_v55 = vsel %vm1407_vm1, %v5710_v5, %v5712_v30  ;;  %v5792_v15 = vadd.f32 %v5706_v20, %v5547_v57  ;;  %v5793_v33 = vadd.f32 %v5708_v11, %v5548_v13  ;;  %v7880_v5 = vld [vmem:[%s10705_s1 + $0x11] ss:$0 sm:$0xff] }
 0x17a   : > { %v5794_v27 = vadd.f32 %v5711_v10, %v5549_v25  ;;  %v5795_v7 = vadd.f32 %v5713_v55, %v5550_v41  ;;  %v10910_v12 = vrot.slane %v6969_v38, 1  ;;  %v10911_v19 = vrot.slane %v6923_v37, 1 }
 0x17b   : > { %v5831_v17 = vadd.f32 %v10913_v32, %v5792_v15  ;;  %v5832_v36 = vadd.f32 %v10913_v32, %v5793_v33  ;;  %v7800_v57 = vmul.f32 %v7395_v52, %v7659_v39  ;;  %v7810_v30 = vmul.f32 %v7433_v23, %v7729_v58  ;;  %v7819_v33 = vpop.permute.xlu1 %3688 }
 0x17c   : > { %v1751_v62 = vsel %vm669_vm0, %v10911_v19, %v10910_v12  ;;  %v5833_v25 = vadd.f32 %v10913_v32, %v5794_v27  ;;  %v5834_v38 = vadd.f32 %v10913_v32, %v5795_v7  ;;  %10915 = vst [vmem:[#allocation48_spill] sm:$0xff] %v7819_v33  ;;  %v7824_v7 = vmul.f32 %v7471_v9, %v7729_v58 }
 0x17d   : > { %v7802_v13 = vadd.f32 %v1751_v62, %v1604_v47  ;;  %v5863_v26 = vmax.f32 %v5831_v17, 0.0  ;;  %v5864_v49 = vmax.f32 %v5832_v36, 0.0  ;;  %v7815_v47 = vmul.f32 %v7450_v51, %v7729_v58  ;;  %v7836_v17 = vpop.permute.xlu0 %1634 }
 0x17e   : > { %v5865_v20 = vmax.f32 %v5833_v25, 0.0  ;;  %v5866_v11 = vmax.f32 %v5834_v38, 0.0  ;;  %v7830_v62 = vmul.f32 %v7492_v16, %v7729_v58  ;;  %v7834_v32 = vmul.f32 %v7525_v50, %v7753_v48  ;;  %10916 = vst [vmem:[#allocation49_spill] sm:$0xff] %v7836_v17 }
 0x17f   : > { %10914 = vst [vmem:[#allocation29_spill] sm:$0xff] %v7802_v13  ;;  %v5904_v55 = vsel %vm5879_vm4, %v5863_v26, -inf  ;;  %v5907_v15 = vsel %vm5879_vm4, %v5864_v49, -inf  ;;  %v7842_v26 = vld [vmem:[%s10705_s1 + $0xc] ss:$0 sm:$0xff]  ;;  %v7884_v41 = vmul.f32 %v7880_v5, %v7819_v33  ;;  %v7894_v29 = vmul.f32 %v7890_v21, %v7753_v48 }
 0x180   : > { %v5905_v12 = vsel %vm5879_vm4, %v5865_v20, -inf  ;;  %v5908_v19 = vsel %vm5879_vm4, %v5866_v11, -inf  ;;  %v7846_v49 = vmul.f32 %v7842_v26, %v7753_v48  ;;  %v7852_v11 = vld [vmem:[%s10705_s1 + $0xd] ss:$0 sm:$0xff]  ;;  %v1356_v8 = vmul.f32 %v7395_v52, %v7715_v61 }
 0x181   : > { %v5906_v36 = vmax.f32 %v5904_v55, %v5905_v12  ;;  %v5909_v25 = vmax.f32 %v5907_v15, %v5908_v19  ;;  %v7856_v55 = vmul.f32 %v7852_v11, %v7753_v48  ;;  %v7861_v15 = vld [vmem:[%s10705_s1 + $0xe] ss:$0 sm:$0xff]  ;;  %v7870_v19 = vld [vmem:[%s10705_s1 + $0x10] ss:$0 sm:$0xff]  ;;  %10919 = vst [vmem:[#allocation52_spill] sm:$0xff] %v7884_v41  ;;  %v7912_v10 = vpop.permute.xlu0 %2624  ;;  %v1686_v53 = vmul.f32 %v7433_v23, %v7794_v4 }
 0x182   : > { %v7865_v12 = vmul.f32 %v7861_v15, %v7753_v48  ;;  %10917 = vst [vmem:[#allocation50_spill] sm:$0xff] %v7870_v19  ;;  %v7874_v20 = vmul.f32 %v7870_v19, %v7819_v33  ;;  %v7906_v48 = vld [vmem:[%s10705_s1 + $0x12] ss:$0 sm:$0xff]  ;;  %10922 = vst [vmem:[#allocation55_spill] sm:$0xff] %v7912_v10  ;;  %v2176_v23 = vmul.f32 %v7471_v9, %v7794_v4  ;;  %v10926_v6 = vrot.slane %v7779_v45, 2 }
 0x183   : > { %v5956_v38 = vrot.slane %v5906_v36, 1  ;;  %v5957_v27 = vrot.slane %v5909_v25, 1  ;;  %10920 = vst [vmem:[#allocation53_spill] sm:$0xff] %v7906_v48  ;;  %v7910_v0 = vmul.f32 %v7906_v48, %v7819_v33  ;;  %v1597_v22 = vmul.f32 %v7416_v18, %v7794_v4 }
 0x184   : > { %10918 = vst [vmem:[#allocation51_spill] sm:$0xff] %v7874_v20  ;;  %v10928_v56 = vrot.slane %v7787_v43, 3  ;;  %v7978_v18 = vmul.f32 %v7852_v11, %v7912_v10  ;;  %v10939_v37 = vrot.slane %v7846_v49, 2 }
 0x185   : > { %v5958_v2 = vsel %vm669_vm0, %v5956_v38, %v5957_v27  ;;  %v5996_v59 = vsel %vm669_vm0, %v5957_v27, %v5956_v38  ;;  %10921 = vst [vmem:[#allocation54_spill] sm:$0xff] %v7910_v0  ;;  %v7933_v27 = vmul.f32 %v7929_v35, %v7819_v33  ;;  %v7963_v3 = vpop.permute.xlu0 %3683 }
 0x186   : > { %v6008_v42 = vmax.f32 %v5906_v36, %v5958_v2  ;;  %v6009_v1 = vmax.f32 %v5909_v25, %v5996_v59  ;;  %v7918_v2 = vld [vmem:[%s10705_s1 + $0x1] ss:$0 sm:$0xff]  ;;  %v864_v36 = vmul.f32 %v7354_v60, %v7715_v61  ;;  %v1110_v25 = vmul.f32 %v7374_v63, %v7715_v61  ;;  %v7946_v63 = vld [vmem:[%s10705_s1] ss:$0 sm:$0xff]  ;;  %10927 = vst [vmem:[#allocation58_spill] sm:$0xff] %v7963_v3 }
 0x187   : > { %v618_v59 = vmul.f32 %v7918_v2, %v7715_v61  ;;  %10923 = vst [vmem:[#allocation56_spill] sm:$0xff] %v7933_v27  ;;  %10924 = vst [vmem:[#allocation57_spill] sm:$0xff] %v7946_v63  ;;  %v454_v52 = vmul.f32 %v7946_v63, %v7715_v61  ;;  %v3814_v40 = vmul.f32 %v7870_v19, %v7963_v3 }
 0x188   : > { %v6020_v38 = vpack.c.bf16 %v6009_v1, %v6008_v42  ;;  %v991_v44 = vrot.slane %v864_v36, 2  ;;  %v1237_v31 = vrot.slane %v1110_v25, 3  ;;  %v1931_v42 = vmul.f32 %v7450_v51, %v7794_v4  ;;  %10930 = vst [vmem:[#allocation60_spill] sm:$0xff] %v7978_v18 }
 0x189   : > { %v745_v60 = vrot.slane %v618_v59, 1  ;;  %v2421_v59 = vmul.f32 %v7492_v16, %v7794_v4  ;;  %v10925_v51 = vrot.slane %v7775_v34, 1  ;;  %v1483_v25 = vrot.slane %v1356_v8, 4  ;;  %v8012_v4 = vld [vmem:[%s10705_s1 + $0xf] ss:$0 sm:$0xff] }
 0x18a   : > { %6398 = vmatprep.mubr.msk.bf16.mxu1 %vm5879_vm4, %v6020_v38  ;;  %v1812_v38 = vrot.slane %v1686_v53, 1  ;;  %v2057_v1 = vrot.slane %v1931_v42, 2  ;;  %v993_v61 = vsel %vm915_vm2, %v991_v44, %v10926_v6  ;;  %v1239_v54 = vsel %vm1161_vm3, %v1237_v31, %v10928_v56 }
 0x18b   : > { %v747_v36 = vsel %vm669_vm0, %v745_v60, %v10925_v51  ;;  %v2302_v60 = vrot.slane %v2176_v23, 3  ;;  %v7970_v53 = vmul.f32 %v7525_v50, %v7912_v10  ;;  %v7974_v8 = vmul.f32 %v7842_v26, %v7912_v10 }
 0x18c   : > { %v812_v46 = vadd.f32 %v747_v36, %v454_v52  ;;  %v2547_v44 = vrot.slane %v2421_v59, 4  ;;  %v7982_v6 = vmul.f32 %v7861_v15, %v7912_v10  ;;  %v10932_v31 = vrot.slane %v7800_v57, 4  ;;  %v4748_v59 = vpop.permute.xlu1 %4747 }
 0x18d   : > { %10929 = vst [vmem:[#allocation59_spill] sm:$0xff] %v7974_v8  ;;  %v10933_v52 = vrot.slane %v7810_v30, 1  ;;  %v10934_v51 = vrot.slane %v7815_v47, 2  ;;  %v10938_v13 = vrot.slane %v7974_v8, 2 }
 0x18e   : > { %v1058_v42 = vadd.f32 %v993_v61, %v812_v46  ;;  %10931 = vst [vmem:[#allocation61_spill] sm:$0xff] %v7982_v6  ;;  %v1485_v56 = vsel %vm1407_vm1, %v1483_v25, %v10932_v31  ;;  %v10787_v61 = vrot.slane %v7970_v53, 1  ;;  %v10935_v25 = vrot.slane %v7824_v7, 3 }
 0x18f   : > { %v1814_v23 = vsel %vm669_vm0, %v1812_v38, %v10933_v52  ;;  %v2059_v46 = vsel %vm915_vm2, %v2057_v1, %v10934_v51  ;;  %v4059_v1 = vmul.f32 %v7880_v5, %v7963_v3  ;;  %v4304_v52 = vmul.f32 %v7906_v48, %v7963_v3 }
 0x190   : > { %v1304_v36 = vadd.f32 %v1239_v54, %v1058_v42  ;;  %v2304_v31 = vsel %vm1161_vm3, %v2302_v60, %v10935_v25  ;;  %v10936_v42 = vrot.slane %v7830_v62, 4  ;;  %v8016_v60 = vmul.f32 %v8012_v4, %v7963_v3 }
 0x191   : > { %v3940_v25 = vrot.slane %v3814_v40, 1  ;;  %v10937_v38 = vrot.slane %v7834_v32, 1  ;;  %v4430_v24 = vrot.slane %v4304_v52, 3  ;;  %v8032_v48 = vsel %vm915_vm2, %v10939_v37, %v10938_v13  ;;  %v8049_v52 = vpop.permute.xlu0 %3762 }
 0x192   : > { %v1550_v54 = vadd.f32 %v1485_v56, %v1304_v36  ;;  %v2549_v51 = vsel %vm1407_vm1, %v2547_v44, %v10936_v42  ;;  %v4185_v36 = vrot.slane %v4059_v1, 2  ;;  %v4549_v44 = vmul.f32 %v7929_v35, %v7963_v3  ;;  %v8044_v1 = vld [vmem:[%s10705_s1 + $0x15] ss:$0 sm:$0xff] }
 0x193   : > { %v8023_v56 = vsel %vm669_vm0, %v10937_v38, %v10787_v61  ;;  %v10940_v40 = vrot.slane %v7978_v18, 3  ;;  %v10941_v32 = vrot.slane %v7856_v55, 3  ;;  %v10943_v37 = vrot.slane %v7982_v6, 4 }
 0x194   : > { %v1629_v42 = vadd.f32 %v1597_v22, %v1550_v54  ;;  %v8047_v22 = vmul.f32 %v8044_v1, %v4748_v59  ;;  %v10944_v13 = vrot.slane %v7865_v12, 4  ;;  %v4675_v55 = vrot.slane %v4549_v44, 4  ;;  %v8061_v54 = vld [vmem:[%s10705_s1 + $0x14] ss:$0 sm:$0xff] }
 0x195   : > { %v8039_v38 = vsel %vm1161_vm3, %v10941_v32, %v10940_v40  ;;  %10945 = vst [vmem:[#allocation63_spill] sm:$0xff] %v8061_v54  ;;  %v8064_v40 = vmul.f32 %v8061_v54, %v4748_v59  ;;  %v8069_v32 = vld [vmem:[%s10705_s1 + $0x16] ss:$0 sm:$0xff]  ;;  %v10951_v54 = vrot.slane %v7910_v0, 3  ;;  %v8107_v18 = vmul.f32 %v7870_v19, %v8049_v52 }
 0x196   : > { %10942 = vst [vmem:[#allocation62_spill] sm:$0xff] %v8047_v22  ;;  %v8056_v49 = vsel %vm1407_vm1, %v10944_v13, %v10943_v37  ;;  %v8072_v61 = vmul.f32 %v8069_v32, %v4748_v59  ;;  %v1879_v12 = vadd.f32 %v1814_v23, %v1629_v42  ;;  %v10948_v37 = vrot.slane %v7874_v20, 1  ;;  %v8082_v13 = vld [vmem:[%s10705_s1 + $0x17] ss:$0 sm:$0xff]  ;;  %v4827_v42 = vpop.permute.xlu1 %4826 }
 0x197   : > { %10946 = vst [vmem:[#allocation64_spill] sm:$0xff] %v8064_v40  ;;  %v8085_v3 = vmul.f32 %v8082_v13, %v4748_v59  ;;  %v8090_v40 = vld [vmem:[%s10705_s1 + $0x18] ss:$0 sm:$0xff]  ;;  %v8103_v6 = vsel %vm1161_vm3, %v4430_v24, %v10951_v54  ;;  %v8111_v8 = vmul.f32 %v8044_v1, %v8049_v52  ;;  %v10955_v24 = vrot.slane %v7933_v27, 4 }
 0x198   : > { %10947 = vst [vmem:[#allocation65_spill] sm:$0xff] %v8072_v61  ;;  %v8077_v44 = vsel %vm669_vm0, %v3940_v25, %v10948_v37  ;;  %v8093_v23 = vmul.f32 %v8090_v40, %v4748_v59  ;;  %v10950_v25 = vrot.slane %v7884_v41, 2  ;;  %v2124_v59 = vadd.f32 %v2059_v46, %v1879_v12 }
 0x199   : > { %10952 = vst [vmem:[#allocation67_spill] sm:$0xff] %v8111_v8  ;;  %v8125_v54 = vsel %vm1407_vm1, %v4675_v55, %v10955_v24  ;;  %v8130_v46 = vmul.f32 %v8090_v40, %v8049_v52  ;;  %v8133_v12 = vmul.f32 %v8044_v1, %v4827_v42  ;;  %v8142_v19 = vmul.f32 %v8069_v32, %v4827_v42  ;;  %v8157_v24 = vld [vmem:[%s10705_s1 + $0x2] ss:$0 sm:$0xff] }
 0x19a   : > { %10949 = vst [vmem:[#allocation66_spill] sm:$0xff] %v8093_v23  ;;  %v8098_v37 = vsel %vm915_vm2, %v4185_v36, %v10950_v25  ;;  %v8116_v36 = vmul.f32 %v8069_v32, %v8049_v52  ;;  %v8120_v25 = vmul.f32 %v8082_v13, %v8049_v52  ;;  %10956 = vst [vmem:[#allocation70_spill] sm:$0xff] %v8125_v54 }
 0x19b   : > { %10957 = vst [vmem:[#allocation71_spill] sm:$0xff] %v8130_v46  ;;  %v2369_v20 = vadd.f32 %v2304_v31, %v2124_v59  ;;  %v620_v59 = vmul.f32 %v7918_v2, %v7707_v14  ;;  %v8149_v0 = vmul.f32 %v8082_v13, %v4827_v42  ;;  %v8152_v27 = vmul.f32 %v8090_v40, %v4827_v42  ;;  %v8174_v31 = vld [vmem:[%s10705_s1 + $0x4] ss:$0 sm:$0xff] }
 0x19c   : > { %10953 = vst [vmem:[#allocation68_spill] sm:$0xff] %v8116_v36  ;;  %10954 = vst [vmem:[#allocation69_spill] sm:$0xff] %v8120_v25  ;;  %v455_v42 = vmul.f32 %v7946_v63, %v7659_v39  ;;  %v1358_v41 = vmul.f32 %v8174_v31, %v7707_v14  ;;  %v8181_v36 = vld [vmem:[%s10705_s1 + $0x6] ss:$0 sm:$0xff]  ;;  %v2178_v39 = vmul.f32 %v7471_v9, %v7836_v17 }
 0x19d   : > { %v2614_v61 = vadd.f32 %v2549_v51, %v2369_v20  ;;  %v866_v20 = vmul.f32 %v8157_v24, %v7707_v14  ;;  %v8164_v51 = vld [vmem:[%s10705_s1 + $0x3] ss:$0 sm:$0xff]  ;;  %v748_v22 = vrot.slane %v620_v59, 1  ;;  %10959 = vst [vmem:[#allocation73_spill] sm:$0xff] %v8174_v31  ;;  %10960 = vst [vmem:[#allocation74_spill] sm:$0xff] %v8181_v36  ;;  %v5497_v31 = vrot.slane %v8149_v0, 3 }
 0x19e   : > { %10958 = vst [vmem:[#allocation72_spill] sm:$0xff] %v8164_v51  ;;  %v1112_v54 = vmul.f32 %v8164_v51, %v7707_v14  ;;  %v1486_v14 = vrot.slane %v1358_v41, 4  ;;  %v10999_v0 = vld [vmem:[#allocation57_spill] sm:$0xff] }
 0x19f   : > { %v2693_v55 = vadd.f32 %v7894_v29, %v2614_v61  ;;  %v994_v46 = vrot.slane %v866_v20, 2  ;;  %v1688_v29 = vmul.f32 %v8181_v36, %v7836_v17  ;;  %v8188_v61 = vld [vmem:[%s10705_s1 + $0x7] ss:$0 sm:$0xff]  ;;  %v5252_v36 = vrot.slane %v8142_v19, 2 }
 0x1a0   : > { %v1240_v25 = vrot.slane %v1112_v54, 3  ;;  %10961 = vst [vmem:[#allocation75_spill] sm:$0xff] %v8188_v61  ;;  %v1933_v59 = vmul.f32 %v8188_v61, %v7836_v17  ;;  %v10962_v54 = vrot.slane %v7775_v34, 1  ;;  %v10963_v61 = vrot.slane %v7779_v45, 2  ;;  %v8208_v34 = vld [vmem:[%s10705_s1 + $0x5] ss:$0 sm:$0xff] }
 0x1a1   : > { %v2943_v8 = vadd.f32 %v8023_v56, %v2693_v55  ;;  %v1598_v9 = vmul.f32 %v8208_v34, %v7729_v58  ;;  %v1815_v41 = vrot.slane %v1688_v29, 1  ;;  %v10964_v45 = vrot.slane %v7787_v43, 3 }
 0x1a2   : > { %v749_v20 = vsel %vm669_vm0, %v10962_v54, %v748_v22  ;;  %v995_v56 = vsel %vm915_vm2, %v10963_v61, %v994_v46  ;;  %v2060_v55 = vrot.slane %v1933_v59, 2  ;;  %v2305_v54 = vrot.slane %v2178_v39, 3 }
 0x1a3   : > { %v813_v51 = vadd.f32 %v749_v20, %v455_v42  ;;  %v3188_v63 = vadd.f32 %v8032_v48, %v2943_v8  ;;  %v2423_v42 = vmul.f32 %v7492_v16, %v7836_v17  ;;  %v1241_v8 = vsel %vm1161_vm3, %v10964_v45, %v1240_v25 }
 0x1a4   : > { %v10965_v46 = vrot.slane %v7800_v57, 4  ;;  %v2752_v20 = vmul.f32 %v7525_v50, %v7781_v28  ;;  %v2997_v39 = vmul.f32 %v7842_v26, %v7781_v28  ;;  %v3242_v16 = vmul.f32 %v7852_v11, %v7781_v28 }
 0x1a5   : > { %v1059_v22 = vadd.f32 %v995_v56, %v813_v51  ;;  %v3433_v48 = vadd.f32 %v8039_v38, %v3188_v63  ;;  %v2550_v51 = vrot.slane %v2423_v42, 4  ;;  %v10966_v43 = vrot.slane %v7810_v30, 1 }
 0x1a6   : > { %v1487_v61 = vsel %vm1407_vm1, %v10965_v46, %v1486_v14  ;;  %v2879_v57 = vrot.slane %v2752_v20, 1  ;;  %v3487_v14 = vmul.f32 %v7861_v15, %v7781_v28  ;;  %v10967_v50 = vrot.slane %v7815_v47, 2  ;;  %v4753_v47 = vpop.permute.xlu0 %4752 }
 0x1a7   : > { %v1305_v29 = vadd.f32 %v1241_v8, %v1059_v22  ;;  %v3678_v63 = vadd.f32 %v8056_v49, %v3433_v48  ;;  %v1816_v38 = vsel %vm669_vm0, %v10966_v43, %v1815_v41  ;;  %v10968_v56 = vrot.slane %v7824_v7, 3 }
 0x1a8   : > { %v2061_v59 = vsel %vm915_vm2, %v10967_v50, %v2060_v55  ;;  %v2662_v49 = vmul.f32 %v7890_v21, %v7912_v10  ;;  %v10969_v41 = vrot.slane %v7830_v62, 4  ;;  %v3124_v48 = vrot.slane %v2997_v39, 2  ;;  %v10973_v39 = vld [vmem:[#allocation51_spill] sm:$0xff] }
 0x1a9   : > { %v1551_v25 = vadd.f32 %v1487_v61, %v1305_v29  ;;  %v2306_v22 = vsel %vm1161_vm3, %v10968_v56, %v2305_v54  ;;  %v3757_v30 = vadd.f32 %v8016_v60, %v3678_v63  ;;  %v8247_v45 = vmul.f32 %v8012_v4, %v7819_v33  ;;  %v10971_v61 = vld [vmem:[#allocation53_spill] sm:$0xff]  ;;  %v10975_v56 = vld [vmem:[#allocation59_spill] sm:$0xff] }
 0x1aa   : > { %v2551_v42 = vsel %vm1407_vm1, %v10969_v41, %v2550_v51  ;;  %v10970_v7 = vrot.slane %v7970_v53, 1  ;;  %v3369_v8 = vrot.slane %v3242_v16, 3  ;;  %v4061_v46 = vmul.f32 %v7880_v5, %v8049_v52 }
 0x1ab   : > { %v1630_v55 = vadd.f32 %v1598_v9, %v1551_v25  ;;  %v4007_v60 = vadd.f32 %v8077_v44, %v3757_v30  ;;  %v3614_v62 = vrot.slane %v3487_v14, 4  ;;  %v4306_v20 = vmul.f32 %v10971_v61, %v8049_v52 }
 0x1ac   : > { %v2880_v54 = vsel %vm669_vm0, %v10970_v7, %v2879_v57  ;;  %v4551_v29 = vmul.f32 %v7929_v35, %v8049_v52  ;;  %v10972_v9 = vrot.slane %v8107_v18, 1  ;;  %v10974_v53 = vrot.slane %v10973_v39, 1 }
 0x1ad   : > { %v1880_v51 = vadd.f32 %v1816_v38, %v1630_v55  ;;  %v4188_v16 = vrot.slane %v4061_v46, 2  ;;  %v4879_v43 = vmul.f32 %v8044_v1, %v4753_v47  ;;  %v4252_v44 = vadd.f32 %v8098_v37, %v4007_v60  ;;  %v10977_v55 = vld [vmem:[#allocation60_spill] sm:$0xff] }
 0x1ae   : > { %v8264_v63 = vsel %vm669_vm0, %v10974_v53, %v10972_v9  ;;  %v4433_v57 = vrot.slane %v4306_v20, 3  ;;  %v4678_v14 = vrot.slane %v4551_v29, 4  ;;  %v5124_v25 = vmul.f32 %v8069_v32, %v4753_v47  ;;  %v10979_v9 = vld [vmem:[#allocation61_spill] sm:$0xff] }
 0x1af   : > { %v2125_v50 = vadd.f32 %v2061_v59, %v1880_v51  ;;  %v10976_v52 = vrot.slane %v10975_v56, 2  ;;  %v5005_v18 = vrot.slane %v4879_v43, 1  ;;  %v5369_v30 = vmul.f32 %v8082_v13, %v4753_v47  ;;  %v10981_v59 = vld [vmem:[#allocation52_spill] sm:$0xff]  ;;  %v10985_v56 = vld [vmem:[#allocation54_spill] sm:$0xff] }
 0x1b0   : > { %v4497_v41 = vadd.f32 %v8103_v6, %v4252_v44  ;;  %v10978_v7 = vrot.slane %v10977_v55, 3  ;;  %v10980_v37 = vrot.slane %v10979_v9, 4  ;;  %v5250_v20 = vrot.slane %v5124_v25, 2  ;;  %v10984_v6 = vld [vmem:[#allocation70_spill] sm:$0xff]  ;;  %v10987_v55 = vld [vmem:[#allocation56_spill] sm:$0xff] }
 0x1b1   : > { %v3125_v38 = vsel %vm915_vm2, %v10976_v52, %v3124_v48  ;;  %v2370_v29 = vadd.f32 %v2306_v22, %v2125_v50  ;;  %v10982_v51 = vrot.slane %v10981_v59, 2  ;;  %v10983_v48 = vld [vmem:[#allocation63_spill] sm:$0xff]  ;;  %v5495_v43 = vrot.slane %v5369_v30, 3  ;;  %v10989_v50 = vld [vmem:[#allocation62_spill] sm:$0xff] }
 0x1b2   : > { %v3370_v46 = vsel %vm1161_vm3, %v10978_v7, %v3369_v8  ;;  %v3615_v60 = vsel %vm1407_vm1, %v10980_v37, %v3614_v62  ;;  %v8286_v53 = vmul.f32 %v10983_v48, %v4753_v47  ;;  %v4742_v44 = vadd.f32 %v10984_v6, %v4497_v41  ;;  %v10992_v37 = vld [vmem:[#allocation65_spill] sm:$0xff]  ;;  %v10996_v6 = vld [vmem:[#allocation8_spill] sm:$0xff] }
 0x1b3   : > { %v8283_v39 = vsel %vm915_vm2, %v10982_v51, %v4188_v16  ;;  %v10986_v52 = vrot.slane %v10985_v56, 3  ;;  %v10988_v62 = vrot.slane %v10987_v55, 4  ;;  %v5614_v25 = vmul.f32 %v8090_v40, %v4753_v47  ;;  %v10997_v56 = vld [vmem:[#allocation16_spill] sm:$0xff] }
 0x1b4   : > { %v2615_v16 = vadd.f32 %v2551_v42, %v2370_v29  ;;  %v10990_v7 = vrot.slane %v10989_v50, 1  ;;  %v10991_v30 = vrot.slane %v8133_v12, 1  ;;  %v10994_v42 = vrot.slane %v8085_v3, 3 }
 0x1b5   : > { %v8292_v8 = vsel %vm1161_vm3, %v10986_v52, %v4433_v57  ;;  %v8297_v22 = vsel %vm1407_vm1, %v10988_v62, %v4678_v14  ;;  %v10993_v57 = vrot.slane %v10992_v37, 2  ;;  %v8314_v14 = vsel %vm915_vm2, %v5250_v20, %v5252_v36 }
 0x1b6   : > { %v5006_v9 = vsel %vm669_vm0, %v10990_v7, %v5005_v18  ;;  %v8306_v41 = vsel %vm669_vm0, %v5005_v18, %v10991_v30  ;;  %v8319_v47 = vsel %vm1161_vm3, %v10994_v42, %v5495_v43  ;;  %v8324_v12 = vsel %vm1161_vm3, %v5495_v43, %v5497_v31  ;;  %v10995_v18 = vld [vmem:[#allocation9_spill] sm:$0xff] }
 0x1b7   : > { %v5251_v59 = vsel %vm915_vm2, %v10993_v57, %v5250_v20  ;;  %v582_v29 = vmul.f32 %v7918_v2, %v10995_v18  ;;  %v2694_v51 = vadd.f32 %v2662_v49, %v2615_v16  ;;  %v583_v19 = vmul.f32 %v7918_v2, %v10996_v6  ;;  %v10998_v20 = vld [vmem:[#allocation64_spill] sm:$0xff] }
 0x1b8   : > { %v584_v36 = vmul.f32 %v7918_v2, %v10997_v56  ;;  %v828_v3 = vmul.f32 %v8157_v24, %v10995_v18  ;;  %v4821_v52 = vadd.f32 %v10998_v20, %v4742_v44  ;;  %v5740_v55 = vrot.slane %v5614_v25, 4  ;;  %v11000_v44 = vld [vmem:[#allocation72_spill] sm:$0xff] }
 0x1b9   : > { %v430_v31 = vmul.f32 %v10999_v0, %v10995_v18  ;;  %v685_v43 = vrot.slane %v582_v29, 1  ;;  %v2944_v62 = vadd.f32 %v2880_v54, %v2694_v51  ;;  %v686_v50 = vrot.slane %v583_v19, 1 }
 0x1ba   : > { %v688_v7 = vrot.slane %v584_v36, 1  ;;  %v829_v49 = vmul.f32 %v8157_v24, %v10996_v6  ;;  %v431_v16 = vmul.f32 %v10999_v0, %v10996_v6  ;;  %v830_v2 = vmul.f32 %v8157_v24, %v10997_v56 }
 0x1bb   : > { %v931_v30 = vrot.slane %v828_v3, 2  ;;  %v1074_v25 = vmul.f32 %v11000_v44, %v10995_v18  ;;  %v3189_v37 = vadd.f32 %v3125_v38, %v2944_v62  ;;  %v687_v57 = vsel %vm669_vm0, %v685_v43, %v686_v50 }
 0x1bc   : > { %v689_v54 = vsel %vm669_vm0, %v686_v50, %v688_v7  ;;  %v932_v42 = vrot.slane %v829_v49, 2  ;;  %v5071_v29 = vadd.f32 %v5006_v9, %v4821_v52  ;;  %v788_v51 = vadd.f32 %v687_v57, %v430_v31 }
 0x1bd   : > { %v789_v19 = vadd.f32 %v689_v54, %v431_v16  ;;  %v934_v36 = vrot.slane %v830_v2, 2  ;;  %v3434_v20 = vadd.f32 %v3370_v46, %v3189_v37  ;;  %v1075_v24 = vmul.f32 %v11000_v44, %v10996_v6  ;;  %v11003_v2 = vld [vmem:[#allocation73_spill] sm:$0xff] }
 0x1be   : > { %v933_v0 = vsel %vm915_vm2, %v931_v30, %v932_v42  ;;  %v1076_v3 = vmul.f32 %v11000_v44, %v10997_v56  ;;  %v11001_v38 = vrot.slane %v8093_v23, 4  ;;  %v1177_v52 = vrot.slane %v1074_v25, 3 }
 0x1bf   : > { %v935_v62 = vsel %vm915_vm2, %v932_v42, %v934_v36  ;;  %v1034_v9 = vadd.f32 %v933_v0, %v788_v51  ;;  %v3679_v31 = vadd.f32 %v3615_v60, %v3434_v20  ;;  %v1178_v46 = vrot.slane %v1075_v24, 3  ;;  %v11004_v20 = vld [vmem:[#allocation18_spill] sm:$0xff]  ;;  %v11005_v24 = vld [vmem:[#allocation23_spill] sm:$0xff] }
 0x1c0   : > { %v8355_v43 = vsel %vm1407_vm1, %v11001_v38, %v5740_v55  ;;  %v1035_v50 = vadd.f32 %v935_v62, %v789_v19  ;;  %v1180_v7 = vrot.slane %v1076_v3, 3  ;;  %v11002_v49 = vrot.slane %v8152_v27, 4  ;;  %v11007_v3 = vld [vmem:[#allocation74_spill] sm:$0xff] }
 0x1c1   : > { %v1320_v30 = vmul.f32 %v11003_v2, %v10995_v18  ;;  %v1321_v23 = vmul.f32 %v11003_v2, %v10996_v6  ;;  %v1322_v44 = vmul.f32 %v11003_v2, %v10997_v56  ;;  %v3758_v25 = vadd.f32 %v8247_v45, %v3679_v31 }
 0x1c2   : > { %v8361_v16 = vsel %vm1407_vm1, %v5740_v55, %v11002_v49  ;;  %v5316_v60 = vadd.f32 %v5251_v59, %v5071_v29  ;;  %v1179_v37 = vsel %vm1161_vm3, %v1177_v52, %v1178_v46  ;;  %v1181_v57 = vsel %vm1161_vm3, %v1178_v46, %v1180_v7  ;;  %v11006_v59 = vld [vmem:[#allocation15_spill] sm:$0xff] }
 0x1c3   : > { %v1280_v27 = vadd.f32 %v1179_v37, %v1034_v9  ;;  %v1281_v54 = vadd.f32 %v1181_v57, %v1035_v50  ;;  %v1423_v55 = vrot.slane %v1320_v30, 4  ;;  %v1571_v42 = vmul.f32 %v8208_v34, %v10995_v18  ;;  %v11009_v57 = vld [vmem:[#allocation75_spill] sm:$0xff] }
 0x1c4   : > { %v4008_v51 = vadd.f32 %v8264_v63, %v3758_v25  ;;  %v1424_v19 = vrot.slane %v1321_v23, 4  ;;  %v1426_v36 = vrot.slane %v1322_v44, 4  ;;  %v1573_v0 = vmul.f32 %v8208_v34, %v11004_v20 }
 0x1c5   : > { %v1574_v45 = vmul.f32 %v8208_v34, %v11005_v24  ;;  %v1603_v29 = vadd.f32 %v1571_v42, %v11006_v59  ;;  %v1647_v38 = vmul.f32 %v11007_v3, %v10995_v18  ;;  %v1650_v62 = vmul.f32 %v11007_v3, %v11004_v20  ;;  %v11008_v34 = vld [vmem:[#allocation24_spill] sm:$0xff] }
 0x1c6   : > { %v4253_v9 = vadd.f32 %v8283_v39, %v4008_v51  ;;  %v1425_v63 = vsel %vm1407_vm1, %v1423_v55, %v1424_v19  ;;  %v1427_v52 = vsel %vm1407_vm1, %v1424_v19, %v1426_v36  ;;  %v1651_v31 = vmul.f32 %v11007_v3, %v11005_v24 }
 0x1c7   : > { %v1526_v50 = vadd.f32 %v1425_v63, %v1280_v27  ;;  %v1527_v46 = vadd.f32 %v1427_v52, %v1281_v54  ;;  %v1652_v7 = vmul.f32 %v11007_v3, %v11008_v34  ;;  %v1747_v49 = vrot.slane %v1647_v38, 1  ;;  %v11010_v27 = vld [vmem:[#allocation14_spill] sm:$0xff] }
 0x1c8   : > { %v4498_v2 = vadd.f32 %v8292_v8, %v4253_v9  ;;  %v5561_v30 = vadd.f32 %v8319_v47, %v5316_v60  ;;  %v1752_v23 = vrot.slane %v1650_v62, 1  ;;  %v1753_v44 = vrot.slane %v1651_v31, 1 }
 0x1c9   : > { %v1605_v39 = vadd.f32 %v1573_v0, %v1526_v50  ;;  %v1606_v25 = vadd.f32 %v1574_v45, %v1527_v46  ;;  %v1755_v37 = vrot.slane %v1652_v7, 1  ;;  %v1892_v55 = vmul.f32 %v11009_v57, %v10995_v18  ;;  %v8416_v50 = vld [vmem:[%s10705_s1 + $0x8] ss:$0 sm:$0xff] }
 0x1ca   : > { %v4743_v42 = vadd.f32 %v8297_v22, %v4498_v2  ;;  %v11011_v54 = vrot.slane %v11010_v27, 1  ;;  %v1754_v19 = vsel %vm669_vm0, %v1752_v23, %v1753_v44  ;;  %v1893_v8 = vmul.f32 %v11009_v57, %v10996_v6 }
 0x1cb   : > { %v1756_v47 = vsel %vm669_vm0, %v1753_v44, %v1755_v37  ;;  %v1894_v36 = vmul.f32 %v11009_v57, %v10997_v56  ;;  %v1895_v0 = vmul.f32 %v11009_v57, %v11004_v20  ;;  %v1855_v45 = vadd.f32 %v1754_v19, %v1605_v39 }
 0x1cc   : > { %v1749_v51 = vsel %vm669_vm0, %v1747_v49, %v11011_v54  ;;  %v4822_v22 = vadd.f32 %v8286_v53, %v4743_v42  ;;  %v1896_v59 = vmul.f32 %v11009_v57, %v11005_v24  ;;  %v1897_v3 = vmul.f32 %v11009_v57, %v11008_v34  ;;  %v11012_v57 = vld [vmem:[#allocation29_spill] sm:$0xff] }
 0x1cd   : > { %v1853_v60 = vadd.f32 %v1749_v51, %v1603_v29  ;;  %v1992_v38 = vrot.slane %v1892_v55, 2  ;;  %v1993_v62 = vrot.slane %v1893_v8, 2  ;;  %v1995_v9 = vrot.slane %v1894_v36, 2 }
 0x1ce   : > { %v1997_v63 = vrot.slane %v1895_v0, 2  ;;  %v5072_v29 = vadd.f32 %v8306_v41, %v4822_v22  ;;  %v1998_v52 = vrot.slane %v1896_v59, 2  ;;  %v2000_v31 = vrot.slane %v1897_v3, 2  ;;  %v8440_v22 = vld [vmem:[%s10705_s1 + $0x9] ss:$0 sm:$0xff] }
 0x1cf   : > { %v2137_v53 = vmul.f32 %v8416_v50, %v10995_v18  ;;  %v1856_v46 = vadd.f32 %v1756_v47, %v1606_v25  ;;  %v1994_v7 = vsel %vm915_vm2, %v1992_v38, %v1993_v62  ;;  %v2138_v49 = vmul.f32 %v8416_v50, %v10996_v6 }
 0x1d0   : > { %v2139_v2 = vmul.f32 %v8416_v50, %v10997_v56  ;;  %v5317_v41 = vadd.f32 %v8314_v14, %v5072_v29  ;;  %v1996_v23 = vsel %vm915_vm2, %v1993_v62, %v1995_v9  ;;  %v1999_v44 = vsel %vm915_vm2, %v1997_v63, %v1998_v52 }
 0x1d1   : > { %v2001_v39 = vsel %vm915_vm2, %v1998_v52, %v2000_v31  ;;  %v2098_v37 = vadd.f32 %v1994_v7, %v1853_v60  ;;  %v2099_v55 = vadd.f32 %v1996_v23, %v11012_v57  ;;  %v2100_v25 = vadd.f32 %v1999_v44, %v1855_v45 }
 0x1d2   : > { %v2140_v42 = vmul.f32 %v8416_v50, %v11004_v20  ;;  %v5562_v27 = vadd.f32 %v8324_v12, %v5317_v41  ;;  %v2141_v54 = vmul.f32 %v8416_v50, %v11005_v24  ;;  %v2142_v14 = vmul.f32 %v8416_v50, %v11008_v34 }
 0x1d3   : > { %v2237_v51 = vrot.slane %v2137_v53, 3  ;;  %v2101_v19 = vadd.f32 %v2001_v39, %v1856_v46  ;;  %v2238_v8 = vrot.slane %v2138_v49, 3  ;;  %v2240_v47 = vrot.slane %v2139_v2, 3  ;;  %v11015_v39 = vld [vmem:[#allocation19_spill] sm:$0xff] }
 0x1d4   : > { %v2242_v36 = vrot.slane %v2140_v42, 3  ;;  %v2243_v60 = vrot.slane %v2141_v54, 3  ;;  %v2245_v0 = vrot.slane %v2142_v14, 3  ;;  %v2382_v12 = vmul.f32 %v8440_v22, %v10995_v18  ;;  %v11016_v42 = vld [vmem:[#allocation25_spill] sm:$0xff] }
 0x1d5   : > { %v2383_v45 = vmul.f32 %v8440_v22, %v10996_v6  ;;  %v8447_v59 = vadd.f32 %v8355_v43, %v5561_v30  ;;  %v8450_v3 = vadd.f32 %v8361_v16, %v5562_v27  ;;  %v2384_v38 = vmul.f32 %v8440_v22, %v10997_v56 }
 0x1d6   : > { %v2385_v62 = vmul.f32 %v8440_v22, %v11004_v20  ;;  %v2239_v9 = vsel %vm1161_vm3, %v2237_v51, %v2238_v8  ;;  %v2241_v63 = vsel %vm1161_vm3, %v2238_v8, %v2240_v47  ;;  %v2244_v18 = vsel %vm1161_vm3, %v2242_v36, %v2243_v60 }
 0x1d7   : > { %11013 = vst [vmem:[#allocation53_spill] sm:$0xff] %v8447_v59  ;;  %11014 = vst [vmem:[#allocation51_spill] sm:$0xff] %v8450_v3  ;;  %v2246_v6 = vsel %vm1161_vm3, %v2243_v60, %v2245_v0  ;;  %v2343_v29 = vadd.f32 %v2239_v9, %v2098_v37  ;;  %v2344_v43 = vadd.f32 %v2241_v63, %v2099_v55  ;;  %v2482_v31 = vrot.slane %v2382_v12, 4  ;;  %v11017_v9 = vld [vmem:[#allocation28_spill] sm:$0xff] }
 0x1d8   : > { %v2345_v30 = vadd.f32 %v2244_v18, %v2100_v25  ;;  %v2386_v16 = vmul.f32 %v8440_v22, %v11005_v24  ;;  %v2346_v52 = vadd.f32 %v2246_v6, %v2101_v19  ;;  %v2387_v56 = vmul.f32 %v8440_v22, %v11008_v34  ;;  %v8479_v19 = vld [vmem:[%s10705_s1 + $0xb] ss:$0 sm:$0xff] }
 0x1d9   : > { %v2483_v53 = vrot.slane %v2383_v45, 4  ;;  %v2485_v46 = vrot.slane %v2384_v38, 4  ;;  %v2487_v7 = vrot.slane %v2385_v62, 4  ;;  %v2635_v2 = vmul.f32 %v7890_v21, %v11004_v20 }
 0x1da   : > { %v2488_v49 = vrot.slane %v2386_v16, 4  ;;  %v2490_v23 = vrot.slane %v2387_v56, 4  ;;  %v2636_v44 = vmul.f32 %v7890_v21, %v11005_v24  ;;  %v2637_v37 = vmul.f32 %v7890_v21, %v11015_v39 }
 0x1db   : > { %v2484_v41 = vsel %vm1407_vm1, %v2482_v31, %v2483_v53  ;;  %v2486_v57 = vsel %vm1407_vm1, %v2483_v53, %v2485_v46  ;;  %v2638_v27 = vmul.f32 %v7890_v21, %v11016_v42  ;;  %v2711_v8 = vmul.f32 %v8479_v19, %v11004_v20 }
 0x1dc   : > { %v2489_v55 = vsel %vm1407_vm1, %v2487_v7, %v2488_v49  ;;  %v2588_v25 = vadd.f32 %v2484_v41, %v2343_v29  ;;  %v2491_v54 = vsel %vm1407_vm1, %v2488_v49, %v2490_v23  ;;  %v2589_v14 = vadd.f32 %v2486_v57, %v2344_v43 }
 0x1dd   : > { %v2590_v51 = vadd.f32 %v2489_v55, %v2345_v30  ;;  %v2591_v47 = vadd.f32 %v2491_v54, %v2346_v52  ;;  %v2712_v60 = vmul.f32 %v8479_v19, %v11005_v24  ;;  %v2713_v21 = vmul.f32 %v8479_v19, %v11008_v34 }
 0x1de   : > { %v2667_v36 = vadd.f32 %v2635_v2, %v2588_v25  ;;  %v2668_v0 = vadd.f32 %v2636_v44, %v2589_v14  ;;  %v2714_v45 = vmul.f32 %v8479_v19, %v11015_v39  ;;  %v2715_v38 = vmul.f32 %v8479_v19, %v11016_v42 }
 0x1df   : > { %v2669_v12 = vadd.f32 %v2637_v37, %v2590_v51  ;;  %v2670_v62 = vadd.f32 %v2638_v27, %v2591_v47  ;;  %v2716_v63 = vmul.f32 %v8479_v19, %v11017_v9  ;;  %v2811_v18 = vrot.slane %v2711_v8, 1 }
 0x1e0   : > { %v2812_v6 = vrot.slane %v2712_v60, 1  ;;  %v2814_v29 = vrot.slane %v2713_v21, 1  ;;  %v2816_v43 = vrot.slane %v2714_v45, 1  ;;  %v2817_v30 = vrot.slane %v2715_v38, 1 }
 0x1e1   : > { %v2956_v16 = vmul.f32 %v7842_v26, %v11004_v20  ;;  %v2819_v56 = vrot.slane %v2716_v63, 1  ;;  %v2957_v31 = vmul.f32 %v7842_v26, %v11005_v24  ;;  %v2958_v53 = vmul.f32 %v7842_v26, %v11008_v34 }
 0x1e2   : > { %v2813_v52 = vsel %vm669_vm0, %v2811_v18, %v2812_v6  ;;  %v2815_v46 = vsel %vm669_vm0, %v2812_v6, %v2814_v29  ;;  %v2818_v7 = vsel %vm669_vm0, %v2816_v43, %v2817_v30  ;;  %v2959_v2 = vmul.f32 %v7842_v26, %v11015_v39 }
 0x1e3   : > { %v2917_v49 = vadd.f32 %v2813_v52, %v2667_v36  ;;  %v2820_v41 = vsel %vm669_vm0, %v2817_v30, %v2819_v56  ;;  %v2918_v23 = vadd.f32 %v2815_v46, %v2668_v0  ;;  %v2919_v44 = vadd.f32 %v2818_v7, %v2669_v12 }
 0x1e4   : > { %v2960_v37 = vmul.f32 %v7842_v26, %v11016_v42  ;;  %v2920_v57 = vadd.f32 %v2820_v41, %v2670_v62  ;;  %v2961_v55 = vmul.f32 %v7842_v26, %v11017_v9  ;;  %v3056_v25 = vrot.slane %v2956_v16, 2 }
 0x1e5   : > { %v3057_v27 = vrot.slane %v2957_v31, 2  ;;  %v3059_v54 = vrot.slane %v2958_v53, 2  ;;  %v3061_v14 = vrot.slane %v2959_v2, 2  ;;  %v3201_v8 = vmul.f32 %v7852_v11, %v11004_v20 }
 0x1e6   : > { %v3062_v51 = vrot.slane %v2960_v37, 2  ;;  %v3064_v36 = vrot.slane %v2961_v55, 2  ;;  %v3202_v60 = vmul.f32 %v7852_v11, %v11005_v24  ;;  %v3203_v21 = vmul.f32 %v7852_v11, %v11008_v34 }
 0x1e7   : > { %v3058_v47 = vsel %vm915_vm2, %v3056_v25, %v3057_v27  ;;  %v3060_v0 = vsel %vm915_vm2, %v3057_v27, %v3059_v54  ;;  %v3204_v45 = vmul.f32 %v7852_v11, %v11015_v39  ;;  %v3205_v18 = vmul.f32 %v7852_v11, %v11016_v42 }
 0x1e8   : > { %v3063_v26 = vsel %vm915_vm2, %v3061_v14, %v3062_v51  ;;  %v3162_v12 = vadd.f32 %v3058_v47, %v2917_v49  ;;  %v3065_v38 = vsel %vm915_vm2, %v3062_v51, %v3064_v36  ;;  %v3163_v62 = vadd.f32 %v3060_v0, %v2918_v23 }
 0x1e9   : > { %v3164_v63 = vadd.f32 %v3063_v26, %v2919_v44  ;;  %v3165_v6 = vadd.f32 %v3065_v38, %v2920_v57  ;;  %v3206_v29 = vmul.f32 %v7852_v11, %v11017_v9  ;;  %v3301_v43 = vrot.slane %v3201_v8, 3  ;;  %v11018_v26 = vld [vmem:[#allocation35_spill] sm:$0xff] }
 0x1ea   : > { %v3302_v30 = vrot.slane %v3202_v60, 3  ;;  %v3304_v16 = vrot.slane %v3203_v21, 3  ;;  %v3306_v52 = vrot.slane %v3204_v45, 3  ;;  %v3307_v56 = vrot.slane %v3205_v18, 3 }
 0x1eb   : > { %v3446_v31 = vmul.f32 %v7861_v15, %v11004_v20  ;;  %v3309_v46 = vrot.slane %v3206_v29, 3  ;;  %v3447_v7 = vmul.f32 %v7861_v15, %v11005_v24  ;;  %v3448_v49 = vmul.f32 %v7861_v15, %v11008_v34 }
 0x1ec   : > { %v3303_v53 = vsel %vm1161_vm3, %v3301_v43, %v3302_v30  ;;  %v3305_v2 = vsel %vm1161_vm3, %v3302_v30, %v3304_v16  ;;  %v3308_v11 = vsel %vm1161_vm3, %v3306_v52, %v3307_v56  ;;  %v3449_v23 = vmul.f32 %v7861_v15, %v11015_v39  ;;  %v11020_v43 = vld [vmem:[#allocation50_spill] sm:$0xff] }
 0x1ed   : > { %v3407_v41 = vadd.f32 %v3303_v53, %v3162_v12  ;;  %v3310_v44 = vsel %vm1161_vm3, %v3307_v56, %v3309_v46  ;;  %v3408_v37 = vadd.f32 %v3305_v2, %v3163_v62  ;;  %v3409_v57 = vadd.f32 %v3308_v11, %v3164_v63  ;;  %v11019_v62 = vld [vmem:[#allocation31_spill] sm:$0xff] }
 0x1ee   : > { %v3450_v55 = vmul.f32 %v7861_v15, %v11016_v42  ;;  %v3410_v25 = vadd.f32 %v3310_v44, %v3165_v6  ;;  %v3451_v27 = vmul.f32 %v7861_v15, %v11017_v9  ;;  %v3546_v54 = vrot.slane %v3446_v31, 4  ;;  %v11021_v2 = vld [vmem:[#allocation43_spill] sm:$0xff] }
 0x1ef   : > { %v3547_v14 = vrot.slane %v3447_v7, 4  ;;  %v3549_v51 = vrot.slane %v3448_v49, 4  ;;  %v3551_v8 = vrot.slane %v3449_v23, 4  ;;  %v3699_v36 = vmul.f32 %v8012_v4, %v11015_v39 }
 0x1f0   : > { %v3552_v47 = vrot.slane %v3450_v55, 4  ;;  %v3554_v21 = vrot.slane %v3451_v27, 4  ;;  %v3700_v0 = vmul.f32 %v8012_v4, %v11016_v42  ;;  %v3701_v12 = vmul.f32 %v8012_v4, %v11018_v26 }
 0x1f1   : > { %v3548_v60 = vsel %vm1407_vm1, %v3546_v54, %v3547_v14  ;;  %v3550_v45 = vsel %vm1407_vm1, %v3547_v14, %v3549_v51  ;;  %v3702_v63 = vmul.f32 %v8012_v4, %v11019_v62  ;;  %v3775_v30 = vmul.f32 %v11020_v43, %v11015_v39 }
 0x1f2   : > { %v3553_v15 = vsel %vm1407_vm1, %v3551_v8, %v3552_v47  ;;  %v3652_v38 = vadd.f32 %v3548_v60, %v3407_v41  ;;  %v3555_v18 = vsel %vm1407_vm1, %v3552_v47, %v3554_v21  ;;  %v3653_v6 = vadd.f32 %v3550_v45, %v3408_v37 }
 0x1f3   : > { %v3654_v29 = vadd.f32 %v3553_v15, %v3409_v57  ;;  %v3655_v16 = vadd.f32 %v3555_v18, %v3410_v25  ;;  %v3776_v56 = vmul.f32 %v11020_v43, %v11016_v42  ;;  %v3777_v31 = vmul.f32 %v11020_v43, %v11017_v9 }
 0x1f4   : > { %v3731_v52 = vadd.f32 %v3699_v36, %v3652_v38  ;;  %v3732_v53 = vadd.f32 %v3700_v0, %v3653_v6  ;;  %v3778_v4 = vmul.f32 %v11020_v43, %v11018_v26  ;;  %v3779_v7 = vmul.f32 %v11020_v43, %v11019_v62 }
 0x1f5   : > { %v3733_v46 = vadd.f32 %v3701_v12, %v3654_v29  ;;  %v3734_v49 = vadd.f32 %v3702_v63, %v3655_v16  ;;  %v3780_v11 = vmul.f32 %v11020_v43, %v11021_v2  ;;  %v3875_v41 = vrot.slane %v3775_v30, 1 }
 0x1f6   : > { %v3876_v23 = vrot.slane %v3776_v56, 1  ;;  %v3878_v44 = vrot.slane %v3777_v31, 1  ;;  %v3880_v37 = vrot.slane %v3778_v4, 1  ;;  %v3881_v57 = vrot.slane %v3779_v7, 1 }
 0x1f7   : > { %v4020_v55 = vmul.f32 %v7880_v5, %v11015_v39  ;;  %v3883_v27 = vrot.slane %v3780_v11, 1  ;;  %v4021_v54 = vmul.f32 %v7880_v5, %v11016_v42  ;;  %v4022_v14 = vmul.f32 %v7880_v5, %v11017_v9 }
 0x1f8   : > { %v3877_v25 = vsel %vm669_vm0, %v3875_v41, %v3876_v23  ;;  %v3879_v51 = vsel %vm669_vm0, %v3876_v23, %v3878_v44  ;;  %v3882_v8 = vsel %vm669_vm0, %v3880_v37, %v3881_v57  ;;  %v4023_v36 = vmul.f32 %v7880_v5, %v11018_v26 }
 0x1f9   : > { %v3981_v47 = vadd.f32 %v3877_v25, %v3731_v52  ;;  %v3884_v60 = vsel %vm669_vm0, %v3881_v57, %v3883_v27  ;;  %v3982_v21 = vadd.f32 %v3879_v51, %v3732_v53  ;;  %v3983_v0 = vadd.f32 %v3882_v8, %v3733_v46 }
 0x1fa   : > { %v4024_v12 = vmul.f32 %v7880_v5, %v11019_v62  ;;  %v3984_v45 = vadd.f32 %v3884_v60, %v3734_v49  ;;  %v4025_v15 = vmul.f32 %v7880_v5, %v11021_v2  ;;  %v4120_v38 = vrot.slane %v4020_v55, 2 }
 0x1fb   : > { %v4121_v63 = vrot.slane %v4021_v54, 2  ;;  %v4123_v18 = vrot.slane %v4022_v14, 2  ;;  %v4125_v6 = vrot.slane %v4023_v36, 2  ;;  %v4265_v43 = vmul.f32 %v10971_v61, %v11015_v39 }
 0x1fc   : > { %v4126_v29 = vrot.slane %v4024_v12, 2  ;;  %v4128_v16 = vrot.slane %v4025_v15, 2  ;;  %v4266_v52 = vmul.f32 %v10971_v61, %v11016_v42  ;;  %v4267_v56 = vmul.f32 %v10971_v61, %v11017_v9 }
 0x1fd   : > { %v4122_v30 = vsel %vm915_vm2, %v4120_v38, %v4121_v63  ;;  %v4124_v31 = vsel %vm915_vm2, %v4121_v63, %v4123_v18  ;;  %v4268_v46 = vmul.f32 %v10971_v61, %v11018_v26  ;;  %v4269_v11 = vmul.f32 %v10971_v61, %v11019_v62 }
 0x1fe   : > { %v4127_v5 = vsel %vm915_vm2, %v4125_v6, %v4126_v29  ;;  %v4226_v53 = vadd.f32 %v4122_v30, %v3981_v47  ;;  %v4129_v4 = vsel %vm915_vm2, %v4126_v29, %v4128_v16  ;;  %v4227_v7 = vadd.f32 %v4124_v31, %v3982_v21  ;;  %v11022_v31 = vld [vmem:[#allocation37_spill] sm:$0xff] }
 0x1ff   : > { %v4228_v49 = vadd.f32 %v4127_v5, %v3983_v0  ;;  %v4229_v41 = vadd.f32 %v4129_v4, %v3984_v45  ;;  %v4270_v23 = vmul.f32 %v10971_v61, %v11021_v2  ;;  %v4365_v44 = vrot.slane %v4265_v43, 3  ;;  %v11023_v4 = vld [vmem:[#allocation33_spill] sm:$0xff] }
 0x200   : > { %v4366_v37 = vrot.slane %v4266_v52, 3  ;;  %v4368_v57 = vrot.slane %v4267_v56, 3  ;;  %v4370_v55 = vrot.slane %v4268_v46, 3  ;;  %v4371_v25 = vrot.slane %v4269_v11, 3 }
 0x201   : > { %v4510_v27 = vmul.f32 %v7929_v35, %v11015_v39  ;;  %v4373_v14 = vrot.slane %v4270_v23, 3  ;;  %v4511_v51 = vmul.f32 %v7929_v35, %v11016_v42  ;;  %v4512_v8 = vmul.f32 %v7929_v35, %v11017_v9 }
 0x202   : > { %v4367_v54 = vsel %vm1161_vm3, %v4365_v44, %v4366_v37  ;;  %v4369_v47 = vsel %vm1161_vm3, %v4366_v37, %v4368_v57  ;;  %v4372_v61 = vsel %vm1161_vm3, %v4370_v55, %v4371_v25  ;;  %v4513_v60 = vmul.f32 %v7929_v35, %v11018_v26 }
 0x203   : > { %v4471_v36 = vadd.f32 %v4367_v54, %v4226_v53  ;;  %v4374_v21 = vsel %vm1161_vm3, %v4371_v25, %v4373_v14  ;;  %v4472_v0 = vadd.f32 %v4369_v47, %v4227_v7  ;;  %v4473_v12 = vadd.f32 %v4372_v61, %v4228_v49 }
 0x204   : > { %v4514_v45 = vmul.f32 %v7929_v35, %v11019_v62  ;;  %v4474_v15 = vadd.f32 %v4374_v21, %v4229_v41  ;;  %v4515_v38 = vmul.f32 %v7929_v35, %v11021_v2  ;;  %v4610_v63 = vrot.slane %v4510_v27, 4 }
 0x205   : > { %v4611_v18 = vrot.slane %v4511_v51, 4  ;;  %v4613_v6 = vrot.slane %v4512_v8, 4  ;;  %v4615_v29 = vrot.slane %v4513_v60, 4  ;;  %v4763_v30 = vmul.f32 %v10983_v48, %v11018_v26  ;;  %v11024_v51 = vld [vmem:[#allocation38_spill] sm:$0xff] }
 0x206   : > { %v4616_v43 = vrot.slane %v4514_v45, 4  ;;  %v4618_v52 = vrot.slane %v4515_v38, 4  ;;  %v4764_v56 = vmul.f32 %v10983_v48, %v11019_v62  ;;  %v4765_v5 = vmul.f32 %v10983_v48, %v11022_v31 }
 0x207   : > { %v4612_v16 = vsel %vm1407_vm1, %v4610_v63, %v4611_v18  ;;  %v4614_v53 = vsel %vm1407_vm1, %v4611_v18, %v4613_v6  ;;  %v4766_v7 = vmul.f32 %v10983_v48, %v11023_v4  ;;  %v4839_v23 = vmul.f32 %v8044_v1, %v11018_v26 }
 0x208   : > { %v4617_v35 = vsel %vm1407_vm1, %v4615_v29, %v4616_v43  ;;  %v4716_v46 = vadd.f32 %v4612_v16, %v4471_v36  ;;  %v4619_v49 = vsel %vm1407_vm1, %v4616_v43, %v4618_v52  ;;  %v4717_v11 = vadd.f32 %v4614_v53, %v4472_v0 }
 0x209   : > { %v4718_v41 = vadd.f32 %v4617_v35, %v4473_v12  ;;  %v4719_v44 = vadd.f32 %v4619_v49, %v4474_v15  ;;  %v4840_v57 = vmul.f32 %v8044_v1, %v11019_v62  ;;  %v4841_v55 = vmul.f32 %v8044_v1, %v11021_v2 }
 0x20a   : > { %v4795_v37 = vadd.f32 %v4763_v30, %v4716_v46  ;;  %v4796_v25 = vadd.f32 %v4764_v56, %v4717_v11  ;;  %v4842_v48 = vmul.f32 %v8044_v1, %v11022_v31  ;;  %v4843_v54 = vmul.f32 %v8044_v1, %v11023_v4 }
 0x20b   : > { %v4797_v27 = vadd.f32 %v4765_v5, %v4718_v41  ;;  %v4798_v14 = vadd.f32 %v4766_v7, %v4719_v44  ;;  %v4844_v8 = vmul.f32 %v8044_v1, %v11024_v51  ;;  %v4939_v47 = vrot.slane %v4839_v23, 1 }
 0x20c   : > { %v4940_v61 = vrot.slane %v4840_v57, 1  ;;  %v4942_v36 = vrot.slane %v4841_v55, 1  ;;  %v4944_v60 = vrot.slane %v4842_v48, 1  ;;  %v4945_v21 = vrot.slane %v4843_v54, 1 }
 0x20d   : > { %v5084_v0 = vmul.f32 %v8069_v32, %v11018_v26  ;;  %v4947_v45 = vrot.slane %v4844_v8, 1  ;;  %v5085_v15 = vmul.f32 %v8069_v32, %v11019_v62  ;;  %v5086_v38 = vmul.f32 %v8069_v32, %v11021_v2 }
 0x20e   : > { %v4941_v12 = vsel %vm669_vm0, %v4939_v47, %v4940_v61  ;;  %v4943_v63 = vsel %vm669_vm0, %v4940_v61, %v4942_v36  ;;  %v4946_v1 = vsel %vm669_vm0, %v4944_v60, %v4945_v21  ;;  %v5087_v6 = vmul.f32 %v8069_v32, %v11022_v31 }
 0x20f   : > { %v5045_v18 = vadd.f32 %v4941_v12, %v4795_v37  ;;  %v4948_v29 = vsel %vm669_vm0, %v4945_v21, %v4947_v45  ;;  %v5046_v43 = vadd.f32 %v4943_v63, %v4796_v25  ;;  %v5047_v30 = vadd.f32 %v4946_v1, %v4797_v27 }
 0x210   : > { %v5088_v16 = vmul.f32 %v8069_v32, %v11023_v4  ;;  %v5048_v52 = vadd.f32 %v4948_v29, %v4798_v14  ;;  %v5089_v56 = vmul.f32 %v8069_v32, %v11024_v51  ;;  %v5184_v5 = vrot.slane %v5084_v0, 2 }
 0x211   : > { %v5185_v53 = vrot.slane %v5085_v15, 2  ;;  %v5187_v35 = vrot.slane %v5086_v38, 2  ;;  %v5189_v46 = vrot.slane %v5087_v6, 2  ;;  %v5329_v49 = vmul.f32 %v8082_v13, %v11018_v26 }
 0x212   : > { %v5190_v7 = vrot.slane %v5088_v16, 2  ;;  %v5192_v41 = vrot.slane %v5089_v56, 2  ;;  %v5330_v23 = vmul.f32 %v8082_v13, %v11019_v62  ;;  %v5331_v44 = vmul.f32 %v8082_v13, %v11021_v2 }
 0x213   : > { %v5186_v11 = vsel %vm915_vm2, %v5184_v5, %v5185_v53  ;;  %v5188_v37 = vsel %vm915_vm2, %v5185_v53, %v5187_v35  ;;  %v5332_v55 = vmul.f32 %v8082_v13, %v11022_v31  ;;  %v5333_v54 = vmul.f32 %v8082_v13, %v11023_v4 }
 0x214   : > { %v5191_v32 = vsel %vm915_vm2, %v5189_v46, %v5190_v7  ;;  %v5290_v57 = vadd.f32 %v5186_v11, %v5045_v18  ;;  %v5193_v25 = vsel %vm915_vm2, %v5190_v7, %v5192_v41  ;;  %v5291_v27 = vadd.f32 %v5188_v37, %v5046_v43  ;;  %v8688_v7 = vld [vmem:[%s10705_s1] ss:$0 sm:$0xff] }
 0x215   : > { %v5292_v48 = vadd.f32 %v5191_v32, %v5047_v30  ;;  %v5293_v14 = vadd.f32 %v5193_v25, %v5048_v52  ;;  %v5334_v8 = vmul.f32 %v8082_v13, %v11024_v51  ;;  %v5429_v47 = vrot.slane %v5329_v49, 3  ;;  %v11025_v49 = vld [vmem:[#allocation11_spill] sm:$0xff] }
 0x216   : > { %v5430_v61 = vrot.slane %v5330_v23, 3  ;;  %v5432_v36 = vrot.slane %v5331_v44, 3  ;;  %v5434_v60 = vrot.slane %v5332_v55, 3  ;;  %v5435_v21 = vrot.slane %v5333_v54, 3  ;;  %v11026_v44 = vld [vmem:[#allocation10_spill] sm:$0xff] }
 0x217   : > { %v5574_v0 = vmul.f32 %v8090_v40, %v11018_v26  ;;  %v5437_v45 = vrot.slane %v5334_v8, 3  ;;  %v5575_v15 = vmul.f32 %v8090_v40, %v11019_v62  ;;  %v5576_v38 = vmul.f32 %v8090_v40, %v11021_v2 }
 0x218   : > { %v5431_v12 = vsel %vm1161_vm3, %v5429_v47, %v5430_v61  ;;  %v5433_v63 = vsel %vm1161_vm3, %v5430_v61, %v5432_v36  ;;  %v5436_v13 = vsel %vm1161_vm3, %v5434_v60, %v5435_v21  ;;  %v5577_v18 = vmul.f32 %v8090_v40, %v11022_v31  ;;  %v8705_v47 = vld [vmem:[%s10705_s1 + $0x1] ss:$0 sm:$0xff]  ;;  %v8712_v60 = vld [vmem:[%s10706_s2] ss:$0 sm:$0xff] }
 0x219   : > { %v5535_v1 = vadd.f32 %v5431_v12, %v5290_v57  ;;  %v5438_v6 = vsel %vm1161_vm3, %v5435_v21, %v5437_v45  ;;  %v5536_v29 = vadd.f32 %v5433_v63, %v5291_v27  ;;  %v5537_v43 = vadd.f32 %v5436_v13, %v5292_v48  ;;  %v11028_v27 = vld [vmem:[#allocation13_spill] sm:$0xff] }
 0x21a   : > { %v5578_v30 = vmul.f32 %v8090_v40, %v11023_v4  ;;  %v5538_v16 = vadd.f32 %v5438_v6, %v5293_v14  ;;  %v5579_v52 = vmul.f32 %v8090_v40, %v11024_v51  ;;  %v5674_v56 = vrot.slane %v5574_v0, 4  ;;  %v11027_v40 = vld [vmem:[#allocation12_spill] sm:$0xff]  ;;  %v11029_v12 = vld [vmem:[#allocation17_spill] sm:$0xff] }
 0x21b   : > { %v5675_v5 = vrot.slane %v5575_v15, 4  ;;  %v5677_v53 = vrot.slane %v5576_v38, 4  ;;  %v5679_v35 = vrot.slane %v5577_v18, 4  ;;  %v444_v11 = vmul.f32 %v8688_v7, %v11025_v49  ;;  %v11030_v6 = vld [vmem:[#allocation21_spill] sm:$0xff] }
 0x21c   : > { %v5680_v46 = vrot.slane %v5578_v30, 4  ;;  %v5682_v23 = vrot.slane %v5579_v52, 4  ;;  %v445_v37 = vmul.f32 %v8688_v7, %v11026_v44  ;;  %v446_v32 = vmul.f32 %v8688_v7, %v11027_v40 }
 0x21d   : > { %v5676_v41 = vsel %vm1407_vm1, %v5674_v56, %v5675_v5  ;;  %v5678_v57 = vsel %vm1407_vm1, %v5675_v5, %v5677_v53  ;;  %v447_v48 = vmul.f32 %v8688_v7, %v11028_v27  ;;  %v603_v61 = vmul.f32 %v8705_v47, %v11025_v49 }
 0x21e   : > { %v5681_v55 = vsel %vm1407_vm1, %v5679_v35, %v5680_v46  ;;  %v5780_v25 = vadd.f32 %v5676_v41, %v5535_v1  ;;  %v5683_v54 = vsel %vm1407_vm1, %v5680_v46, %v5682_v23  ;;  %v5781_v14 = vadd.f32 %v5678_v57, %v5536_v29 }
 0x21f   : > { %v5782_v8 = vadd.f32 %v5681_v55, %v5537_v43  ;;  %v5783_v36 = vadd.f32 %v5683_v54, %v5538_v16  ;;  %v604_v0 = vmul.f32 %v8705_v47, %v11026_v44  ;;  %v605_v45 = vmul.f32 %v8705_v47, %v11029_v12 }
 0x220   : > { %v5819_v21 = vadd.f32 %v8712_v60, %v5780_v25  ;;  %v5820_v15 = vadd.f32 %v8712_v60, %v5781_v14  ;;  %v606_v63 = vmul.f32 %v8705_v47, %v11027_v40  ;;  %v607_v13 = vmul.f32 %v8705_v47, %v11028_v27 }
 0x221   : > { %v5821_v38 = vadd.f32 %v8712_v60, %v5782_v8  ;;  %v5822_v1 = vadd.f32 %v8712_v60, %v5783_v36  ;;  %v608_v29 = vmul.f32 %v8705_v47, %v11030_v6  ;;  %v720_v43 = vrot.slane %v603_v61, 1 }
 0x222   : > { %v5851_v18 = vmax.f32 %v5819_v21, 0.0  ;;  %v5852_v30 = vmax.f32 %v5820_v15, 0.0  ;;  %v721_v52 = vrot.slane %v604_v0, 1  ;;  %v723_v56 = vrot.slane %v605_v45, 1 }
 0x223   : > { %v5853_v16 = vmax.f32 %v5821_v38, 0.0  ;;  %v5854_v5 = vmax.f32 %v5822_v1, 0.0  ;;  %v725_v35 = vrot.slane %v606_v63, 1  ;;  %v726_v46 = vrot.slane %v607_v13, 1  ;;  %v8739_v38 = vld [vmem:[%s10705_s1 + $0x2] ss:$0 sm:$0xff] }
 0x224   : > { %v5886_v53 = vsel %vm5879_vm4, %v5851_v18, -inf  ;;  %v5889_v23 = vsel %vm5879_vm4, %v5852_v30, -inf  ;;  %v722_v57 = vsel %vm669_vm0, %v720_v43, %v721_v52  ;;  %v724_v55 = vsel %vm669_vm0, %v721_v52, %v723_v56 }
 0x225   : > { %v5887_v41 = vsel %vm5879_vm4, %v5853_v16, -inf  ;;  %v5890_v54 = vsel %vm5879_vm4, %v5854_v5, -inf  ;;  %v727_v14 = vsel %vm669_vm0, %v725_v35, %v726_v46  ;;  %v728_v8 = vrot.slane %v608_v29, 1 }
 0x226   : > { %v5888_v25 = vmax.f32 %v5886_v53, %v5887_v41  ;;  %v5891_v61 = vmax.f32 %v5889_v23, %v5890_v54  ;;  %v802_v36 = vadd.f32 %v722_v57, %v444_v11  ;;  %v803_v21 = vadd.f32 %v724_v55, %v445_v37  ;;  %v8760_v55 = vld [vmem:[%s10705_s1 + $0x3] ss:$0 sm:$0xff] }
 0x227   : > { %v804_v0 = vadd.f32 %v727_v14, %v446_v32  ;;  %v729_v15 = vsel %vm669_vm0, %v726_v46, %v728_v8  ;;  %v849_v63 = vmul.f32 %v8739_v38, %v11025_v49  ;;  %v850_v13 = vmul.f32 %v8739_v38, %v11026_v44 }
 0x228   : > { %v5947_v45 = vrot.slane %v5888_v25, 1  ;;  %v5948_v1 = vrot.slane %v5891_v61, 1  ;;  %v805_v18 = vadd.f32 %v729_v15, %v447_v48  ;;  %v851_v11 = vmul.f32 %v8739_v38, %v11029_v12 }
 0x229   : > { %v852_v37 = vmul.f32 %v8739_v38, %v11027_v40  ;;  %v853_v32 = vmul.f32 %v8739_v38, %v11028_v27  ;;  %v854_v29 = vmul.f32 %v8739_v38, %v11030_v6  ;;  %v966_v43 = vrot.slane %v849_v63, 2 }
 0x22a   : > { %v967_v30 = vrot.slane %v850_v13, 2  ;;  %v5949_v16 = vsel %vm669_vm0, %v5947_v45, %v5948_v1  ;;  %v5993_v52 = vsel %vm669_vm0, %v5948_v1, %v5947_v45  ;;  %v969_v56 = vrot.slane %v851_v11, 2 }
 0x22b   : > { %v971_v48 = vrot.slane %v852_v37, 2  ;;  %v6002_v5 = vmax.f32 %v5888_v25, %v5949_v16  ;;  %v6003_v53 = vmax.f32 %v5891_v61, %v5993_v52  ;;  %v972_v46 = vrot.slane %v853_v32, 2 }
 0x22c   : > { %v968_v35 = vsel %vm915_vm2, %v966_v43, %v967_v30  ;;  %v970_v41 = vsel %vm915_vm2, %v967_v30, %v969_v56  ;;  %v974_v23 = vrot.slane %v854_v29, 2  ;;  %v1095_v54 = vmul.f32 %v8760_v55, %v11025_v49 }
 0x22d   : > { %v1048_v57 = vadd.f32 %v968_v35, %v802_v36  ;;  %v6017_v14 = vpack.c.bf16 %v6003_v53, %v6002_v5  ;;  %v973_v8 = vsel %vm915_vm2, %v971_v48, %v972_v46  ;;  %v1049_v25 = vadd.f32 %v970_v41, %v803_v21 }
 0x22e   : > { %v1096_v61 = vmul.f32 %v8760_v55, %v11026_v44  ;;  %v975_v45 = vsel %vm915_vm2, %v972_v46, %v974_v23  ;;  %v1050_v15 = vadd.f32 %v973_v8, %v804_v0  ;;  %v1097_v36 = vmul.f32 %v8760_v55, %v11029_v12  ;;  %v8780_v0 = vld [vmem:[%s10705_s1 + $0x4] ss:$0 sm:$0xff] }
 0x22f   : > { %v1098_v63 = vmul.f32 %v8760_v55, %v11027_v40  ;;  %6391 = vmatmul.mubr.msk.bf16.vlgmr.msra.gmra.mxu0 %vm5879_vm4, %v6017_v14  ;;  %v1051_v13 = vadd.f32 %v975_v45, %v805_v18  ;;  %v1099_v1 = vmul.f32 %v8760_v55, %v11028_v27  ;;  %v1100_v21 = vmul.f32 %v8760_v55, %v11030_v6 }
 0x230   : > { %v1212_v11 = vrot.slane %v1095_v54, 3  ;;  %v1213_v37 = vrot.slane %v1096_v61, 3  ;;  %v1215_v32 = vrot.slane %v1097_v36, 3  ;;  %v1341_v43 = vmul.f32 %v8780_v0, %v11025_v49 }
 0x231   : > { %v1217_v29 = vrot.slane %v1098_v63, 3  ;;  %v1218_v30 = vrot.slane %v1099_v1, 3  ;;  %v1220_v18 = vrot.slane %v1100_v21, 3  ;;  %v1342_v16 = vmul.f32 %v8780_v0, %v11026_v44  ;;  %v8980_v44 = vld [vmem:[%s10705_s1 + $0xf] ss:$0 sm:$0xff] }
 0x232   : > { %v1343_v52 = vmul.f32 %v8780_v0, %v11029_v12  ;;  %v1214_v56 = vsel %vm1161_vm3, %v1212_v11, %v1213_v37  ;;  %v1216_v48 = vsel %vm1161_vm3, %v1213_v37, %v1215_v32  ;;  %v1344_v5 = vmul.f32 %v8780_v0, %v11027_v40  ;;  %v8801_v11 = vld [vmem:[%s10705_s1 + $0x5] ss:$0 sm:$0xff] }
 0x233   : > { %v1345_v53 = vmul.f32 %v8780_v0, %v11028_v27  ;;  %v1219_v35 = vsel %vm1161_vm3, %v1217_v29, %v1218_v30  ;;  %v1221_v46 = vsel %vm1161_vm3, %v1218_v30, %v1220_v18  ;;  %v1294_v41 = vadd.f32 %v1214_v56, %v1048_v57 }
 0x234   : > { %v1295_v23 = vadd.f32 %v1216_v48, %v1049_v25  ;;  %v1296_v54 = vadd.f32 %v1219_v35, %v1050_v15  ;;  %v1297_v14 = vadd.f32 %v1221_v46, %v1051_v13  ;;  %v1346_v8 = vmul.f32 %v8780_v0, %v11030_v6  ;;  %v11031_v15 = vld [vmem:[#allocation20_spill] sm:$0xff] }
 0x235   : > { %v1458_v61 = vrot.slane %v1341_v43, 4  ;;  %v1459_v45 = vrot.slane %v1342_v16, 4  ;;  %v1461_v36 = vrot.slane %v1343_v52, 4  ;;  %v1463_v63 = vrot.slane %v1344_v5, 4  ;;  %v11032_v43 = vld [vmem:[#allocation26_spill] sm:$0xff] }
 0x236   : > { %v1464_v1 = vrot.slane %v1345_v53, 4  ;;  %v1466_v21 = vrot.slane %v1346_v8, 4  ;;  %v1587_v57 = vmul.f32 %v8801_v11, %v11027_v40  ;;  %v1588_v25 = vmul.f32 %v8801_v11, %v11028_v27  ;;  %v8818_v5 = vld [vmem:[%s10705_s1 + $0x6] ss:$0 sm:$0xff] }
 0x237   : > { %v1589_v13 = vmul.f32 %v8801_v11, %v11031_v15  ;;  %v1460_v37 = vsel %vm1407_vm1, %v1458_v61, %v1459_v45  ;;  %v1462_v32 = vsel %vm1407_vm1, %v1459_v45, %v1461_v36  ;;  %v1590_v30 = vmul.f32 %v8801_v11, %v11032_v43  ;;  %v11033_v45 = vld [vmem:[#allocation32_spill] sm:$0xff] }
 0x238   : > { %v1465_v29 = vsel %vm1407_vm1, %v1463_v63, %v1464_v1  ;;  %v1467_v18 = vsel %vm1407_vm1, %v1464_v1, %v1466_v21  ;;  %v1540_v16 = vadd.f32 %v1460_v37, %v1294_v41  ;;  %v1541_v52 = vadd.f32 %v1462_v32, %v1295_v23 }
 0x239   : > { %v1542_v56 = vadd.f32 %v1465_v29, %v1296_v54  ;;  %v1543_v48 = vadd.f32 %v1467_v18, %v1297_v14  ;;  %v1671_v53 = vmul.f32 %v8818_v5, %v11027_v40  ;;  %v1672_v35 = vmul.f32 %v8818_v5, %v11028_v27 }
 0x23a   : > { %v1673_v46 = vmul.f32 %v8818_v5, %v11030_v6  ;;  %v1619_v8 = vadd.f32 %v1587_v57, %v1540_v16  ;;  %v1620_v61 = vadd.f32 %v1588_v25, %v1541_v52  ;;  %v1674_v23 = vmul.f32 %v8818_v5, %v11031_v15  ;;  %v8835_v57 = vld [vmem:[%s10705_s1 + $0x7] ss:$0 sm:$0xff] }
 0x23b   : > { %v1621_v41 = vadd.f32 %v1589_v13, %v1542_v56  ;;  %v1622_v54 = vadd.f32 %v1590_v30, %v1543_v48  ;;  %v1675_v14 = vmul.f32 %v8818_v5, %v11032_v43  ;;  %v1676_v36 = vmul.f32 %v8818_v5, %v11033_v45 }
 0x23c   : > { %v1787_v63 = vrot.slane %v1671_v53, 1  ;;  %v1788_v1 = vrot.slane %v1672_v35, 1  ;;  %v1790_v21 = vrot.slane %v1673_v46, 1  ;;  %v1792_v37 = vrot.slane %v1674_v23, 1 }
 0x23d   : > { %v1916_v25 = vmul.f32 %v8835_v57, %v11027_v40  ;;  %v1793_v13 = vrot.slane %v1675_v14, 1  ;;  %v1795_v32 = vrot.slane %v1676_v36, 1  ;;  %v1917_v29 = vmul.f32 %v8835_v57, %v11028_v27 }
 0x23e   : > { %v1918_v30 = vmul.f32 %v8835_v57, %v11030_v6  ;;  %v1789_v18 = vsel %vm669_vm0, %v1787_v63, %v1788_v1  ;;  %v1791_v16 = vsel %vm669_vm0, %v1788_v1, %v1790_v21  ;;  %v1919_v52 = vmul.f32 %v8835_v57, %v11031_v15 }
 0x23f   : > { %v1920_v56 = vmul.f32 %v8835_v57, %v11032_v43  ;;  %v1794_v48 = vsel %vm669_vm0, %v1792_v37, %v1793_v13  ;;  %v1796_v53 = vsel %vm669_vm0, %v1793_v13, %v1795_v32  ;;  %v1869_v35 = vadd.f32 %v1789_v18, %v1619_v8 }
 0x240   : > { %v1870_v46 = vadd.f32 %v1791_v16, %v1620_v61  ;;  %v1871_v23 = vadd.f32 %v1794_v48, %v1621_v41  ;;  %v1872_v14 = vadd.f32 %v1796_v53, %v1622_v54  ;;  %v1921_v36 = vmul.f32 %v8835_v57, %v11033_v45 }
 0x241   : > { %v2032_v63 = vrot.slane %v1916_v25, 2  ;;  %v2033_v3 = vrot.slane %v1917_v29, 2  ;;  %v2035_v1 = vrot.slane %v1918_v30, 2  ;;  %v2037_v21 = vrot.slane %v1919_v52, 2 }
 0x242   : > { %v2038_v59 = vrot.slane %v1920_v56, 2  ;;  %v2040_v33 = vrot.slane %v1921_v36, 2  ;;  %v2161_v12 = vmul.f32 %v8416_v50, %v11027_v40  ;;  %v2162_v37 = vmul.f32 %v8416_v50, %v11028_v27 }
 0x243   : > { %v2163_v8 = vmul.f32 %v8416_v50, %v11030_v6  ;;  %v2034_v61 = vsel %vm915_vm2, %v2032_v63, %v2033_v3  ;;  %v2036_v41 = vsel %vm915_vm2, %v2033_v3, %v2035_v1  ;;  %v2164_v25 = vmul.f32 %v8416_v50, %v11031_v15 }
 0x244   : > { %v2039_v54 = vsel %vm915_vm2, %v2037_v21, %v2038_v59  ;;  %v2041_v13 = vsel %vm915_vm2, %v2038_v59, %v2040_v33  ;;  %v2114_v32 = vadd.f32 %v2034_v61, %v1869_v35  ;;  %v2115_v29 = vadd.f32 %v2036_v41, %v1870_v46 }
 0x245   : > { %v2116_v30 = vadd.f32 %v2039_v54, %v1871_v23  ;;  %v2117_v18 = vadd.f32 %v2041_v13, %v1872_v14  ;;  %v2165_v16 = vmul.f32 %v8416_v50, %v11032_v43  ;;  %v2166_v52 = vmul.f32 %v8416_v50, %v11033_v45 }
 0x246   : > { %v2277_v56 = vrot.slane %v2161_v12, 3  ;;  %v2278_v48 = vrot.slane %v2162_v37, 3  ;;  %v2280_v3 = vrot.slane %v2163_v8, 3  ;;  %v2282_v53 = vrot.slane %v2164_v25, 3 }
 0x247   : > { %v2406_v36 = vmul.f32 %v8440_v22, %v11027_v40  ;;  %v2283_v63 = vrot.slane %v2165_v16, 3  ;;  %v2285_v1 = vrot.slane %v2166_v52, 3  ;;  %v2407_v33 = vmul.f32 %v8440_v22, %v11028_v27  ;;  %v8938_v27 = vld [vmem:[%s10705_s1 + $0xd] ss:$0 sm:$0xff] }
 0x248   : > { %v2408_v59 = vmul.f32 %v8440_v22, %v11030_v6  ;;  %v2279_v35 = vsel %vm1161_vm3, %v2277_v56, %v2278_v48  ;;  %v2281_v46 = vsel %vm1161_vm3, %v2278_v48, %v2280_v3  ;;  %v2409_v50 = vmul.f32 %v8440_v22, %v11031_v15  ;;  %v8888_v48 = vld [vmem:[%s10705_s1 + $0xa] ss:$0 sm:$0xff] }
 0x249   : > { %v2410_v12 = vmul.f32 %v8440_v22, %v11032_v43  ;;  %v2284_v23 = vsel %vm1161_vm3, %v2282_v53, %v2283_v63  ;;  %v2286_v14 = vsel %vm1161_vm3, %v2283_v63, %v2285_v1  ;;  %v2359_v21 = vadd.f32 %v2279_v35, %v2114_v32 }
 0x24a   : > { %v2360_v37 = vadd.f32 %v2281_v46, %v2115_v29  ;;  %v2361_v8 = vadd.f32 %v2284_v23, %v2116_v30  ;;  %v2362_v61 = vadd.f32 %v2286_v14, %v2117_v18  ;;  %v2411_v41 = vmul.f32 %v8440_v22, %v11033_v45  ;;  %v11034_v30 = vld [vmem:[#allocation22_spill] sm:$0xff] }
 0x24b   : > { %v2522_v54 = vrot.slane %v2406_v36, 4  ;;  %v2523_v25 = vrot.slane %v2407_v33, 4  ;;  %v2525_v13 = vrot.slane %v2408_v59, 4  ;;  %v2527_v16 = vrot.slane %v2409_v50, 4  ;;  %v11035_v36 = vld [vmem:[#allocation27_spill] sm:$0xff] }
 0x24c   : > { %v2528_v52 = vrot.slane %v2410_v12, 4  ;;  %v2530_v56 = vrot.slane %v2411_v41, 4  ;;  %v2651_v32 = vmul.f32 %v8888_v48, %v11031_v15  ;;  %v2652_v29 = vmul.f32 %v8888_v48, %v11032_v43 }
 0x24d   : > { %v2653_v22 = vmul.f32 %v8888_v48, %v11034_v30  ;;  %v2524_v18 = vsel %vm1407_vm1, %v2522_v54, %v2523_v25  ;;  %v2526_v3 = vsel %vm1407_vm1, %v2523_v25, %v2525_v13  ;;  %v2654_v63 = vmul.f32 %v8888_v48, %v11035_v36 }
 0x24e   : > { %v2529_v53 = vsel %vm1407_vm1, %v2527_v16, %v2528_v52  ;;  %v2531_v1 = vsel %vm1407_vm1, %v2528_v52, %v2530_v56  ;;  %v2604_v33 = vadd.f32 %v2524_v18, %v2359_v21  ;;  %v2605_v59 = vadd.f32 %v2526_v3, %v2360_v37  ;;  %v11036_v37 = vld [vmem:[#allocation30_spill] sm:$0xff] }
 0x24f   : > { %v2606_v35 = vadd.f32 %v2529_v53, %v2361_v8  ;;  %v2607_v46 = vadd.f32 %v2531_v1, %v2362_v61  ;;  %v2735_v50 = vmul.f32 %v8479_v19, %v11031_v15  ;;  %v2736_v12 = vmul.f32 %v8479_v19, %v11032_v43 }
 0x250   : > { %v2737_v23 = vmul.f32 %v8479_v19, %v11033_v45  ;;  %v2683_v14 = vadd.f32 %v2651_v32, %v2604_v33  ;;  %v2684_v41 = vadd.f32 %v2652_v29, %v2605_v59  ;;  %v2738_v25 = vmul.f32 %v8479_v19, %v11034_v30  ;;  %v8917_v32 = vld [vmem:[%s10705_s1 + $0xc] ss:$0 sm:$0xff] }
 0x251   : > { %v2685_v54 = vadd.f32 %v2653_v22, %v2606_v35  ;;  %v2686_v13 = vadd.f32 %v2654_v63, %v2607_v46  ;;  %v2739_v21 = vmul.f32 %v8479_v19, %v11035_v36  ;;  %v2740_v8 = vmul.f32 %v8479_v19, %v11036_v37 }
 0x252   : > { %v2851_v61 = vrot.slane %v2735_v50, 1  ;;  %v2852_v16 = vrot.slane %v2736_v12, 1  ;;  %v2854_v52 = vrot.slane %v2737_v23, 1  ;;  %v2856_v56 = vrot.slane %v2738_v25, 1 }
 0x253   : > { %v2980_v29 = vmul.f32 %v8917_v32, %v11031_v15  ;;  %v2857_v22 = vrot.slane %v2739_v21, 1  ;;  %v2859_v18 = vrot.slane %v2740_v8, 1  ;;  %v2981_v3 = vmul.f32 %v8917_v32, %v11032_v43 }
 0x254   : > { %v2982_v19 = vmul.f32 %v8917_v32, %v11033_v45  ;;  %v2853_v53 = vsel %vm669_vm0, %v2851_v61, %v2852_v16  ;;  %v2855_v63 = vsel %vm669_vm0, %v2852_v16, %v2854_v52  ;;  %v2983_v1 = vmul.f32 %v8917_v32, %v11034_v30 }
 0x255   : > { %v2984_v33 = vmul.f32 %v8917_v32, %v11035_v36  ;;  %v2858_v59 = vsel %vm669_vm0, %v2856_v56, %v2857_v22  ;;  %v2860_v35 = vsel %vm669_vm0, %v2857_v22, %v2859_v18  ;;  %v2933_v46 = vadd.f32 %v2853_v53, %v2683_v14 }
 0x256   : > { %v2934_v50 = vadd.f32 %v2855_v63, %v2684_v41  ;;  %v2935_v12 = vadd.f32 %v2858_v59, %v2685_v54  ;;  %v2936_v23 = vadd.f32 %v2860_v35, %v2686_v13  ;;  %v2985_v25 = vmul.f32 %v8917_v32, %v11036_v37 }
 0x257   : > { %v3096_v21 = vrot.slane %v2980_v29, 2  ;;  %v3097_v8 = vrot.slane %v2981_v3, 2  ;;  %v3099_v61 = vrot.slane %v2982_v19, 2  ;;  %v3101_v16 = vrot.slane %v2983_v1, 2 }
 0x258   : > { %v3102_v52 = vrot.slane %v2984_v33, 2  ;;  %v3104_v6 = vrot.slane %v2985_v25, 2  ;;  %v3225_v14 = vmul.f32 %v8938_v27, %v11031_v15  ;;  %v3226_v41 = vmul.f32 %v8938_v27, %v11032_v43 }
 0x259   : > { %v3227_v54 = vmul.f32 %v8938_v27, %v11033_v45  ;;  %v3098_v13 = vsel %vm915_vm2, %v3096_v21, %v3097_v8  ;;  %v3100_v56 = vsel %vm915_vm2, %v3097_v8, %v3099_v61  ;;  %v3228_v22 = vmul.f32 %v8938_v27, %v11034_v30  ;;  %v8959_v8 = vld [vmem:[%s10705_s1 + $0xe] ss:$0 sm:$0xff] }
 0x25a   : > { %v3103_v29 = vsel %vm915_vm2, %v3101_v16, %v3102_v52  ;;  %v3105_v18 = vsel %vm915_vm2, %v3102_v52, %v3104_v6  ;;  %v3178_v3 = vadd.f32 %v3098_v13, %v2933_v46  ;;  %v3179_v19 = vadd.f32 %v3100_v56, %v2934_v50 }
 0x25b   : > { %v3180_v53 = vadd.f32 %v3103_v29, %v2935_v12  ;;  %v3181_v63 = vadd.f32 %v3105_v18, %v2936_v23  ;;  %v3229_v1 = vmul.f32 %v8938_v27, %v11035_v36  ;;  %v3230_v33 = vmul.f32 %v8938_v27, %v11036_v37 }
 0x25c   : > { %v3341_v59 = vrot.slane %v3225_v14, 3  ;;  %v3342_v35 = vrot.slane %v3226_v41, 3  ;;  %v3344_v25 = vrot.slane %v3227_v54, 3  ;;  %v3346_v21 = vrot.slane %v3228_v22, 3 }
 0x25d   : > { %v3470_v6 = vmul.f32 %v8959_v8, %v11031_v15  ;;  %v3347_v46 = vrot.slane %v3229_v1, 3  ;;  %v3349_v50 = vrot.slane %v3230_v33, 3  ;;  %v3471_v12 = vmul.f32 %v8959_v8, %v11032_v43 }
 0x25e   : > { %v3472_v23 = vmul.f32 %v8959_v8, %v11033_v45  ;;  %v3343_v61 = vsel %vm1161_vm3, %v3341_v59, %v3342_v35  ;;  %v3345_v16 = vsel %vm1161_vm3, %v3342_v35, %v3344_v25  ;;  %v3473_v52 = vmul.f32 %v8959_v8, %v11034_v30  ;;  %v9035_v45 = vld [vmem:[%s10705_s1 + $0x12] ss:$0 sm:$0xff] }
 0x25f   : > { %v3474_v14 = vmul.f32 %v8959_v8, %v11035_v36  ;;  %v3348_v41 = vsel %vm1161_vm3, %v3346_v21, %v3347_v46  ;;  %v3350_v54 = vsel %vm1161_vm3, %v3347_v46, %v3349_v50  ;;  %v3423_v13 = vadd.f32 %v3343_v61, %v3178_v3  ;;  %v11038_v50 = vld [vmem:[#allocation34_spill] sm:$0xff] }
 0x260   : > { %v3424_v56 = vadd.f32 %v3345_v16, %v3179_v19  ;;  %v3425_v29 = vadd.f32 %v3348_v41, %v3180_v53  ;;  %v3426_v22 = vadd.f32 %v3350_v54, %v3181_v63  ;;  %v3475_v18 = vmul.f32 %v8959_v8, %v11036_v37  ;;  %v11037_v53 = vld [vmem:[#allocation39_spill] sm:$0xff]  ;;  %v8997_v41 = vld [vmem:[%s10705_s1 + $0x10] ss:$0 sm:$0xff] }
 0x261   : > { %v3586_v1 = vrot.slane %v3470_v6, 4  ;;  %v3587_v33 = vrot.slane %v3471_v12, 4  ;;  %v3589_v59 = vrot.slane %v3472_v23, 4  ;;  %v3591_v35 = vrot.slane %v3473_v52, 4 }
 0x262   : > { %v3592_v25 = vrot.slane %v3474_v14, 4  ;;  %v3594_v40 = vrot.slane %v3475_v18, 4  ;;  %v3715_v3 = vmul.f32 %v8980_v44, %v11034_v30  ;;  %v3716_v19 = vmul.f32 %v8980_v44, %v11035_v36 }
 0x263   : > { %v3717_v63 = vmul.f32 %v8980_v44, %v11037_v53  ;;  %v3588_v21 = vsel %vm1407_vm1, %v3586_v1, %v3587_v33  ;;  %v3590_v6 = vsel %vm1407_vm1, %v3587_v33, %v3589_v59  ;;  %v3718_v12 = vmul.f32 %v8980_v44, %v11038_v50  ;;  %v11039_v59 = vld [vmem:[#allocation45_spill] sm:$0xff] }
 0x264   : > { %v3593_v46 = vsel %vm1407_vm1, %v3591_v35, %v3592_v25  ;;  %v3595_v23 = vsel %vm1407_vm1, %v3592_v25, %v3594_v40  ;;  %v3668_v61 = vadd.f32 %v3588_v21, %v3423_v13  ;;  %v3669_v16 = vadd.f32 %v3590_v6, %v3424_v56 }
 0x265   : > { %v3670_v52 = vadd.f32 %v3593_v46, %v3425_v29  ;;  %v3671_v14 = vadd.f32 %v3595_v23, %v3426_v22  ;;  %v3799_v54 = vmul.f32 %v8997_v41, %v11034_v30  ;;  %v3800_v18 = vmul.f32 %v8997_v41, %v11035_v36 }
 0x266   : > { %v3801_v1 = vmul.f32 %v8997_v41, %v11036_v37  ;;  %v3747_v33 = vadd.f32 %v3715_v3, %v3668_v61  ;;  %v3748_v40 = vadd.f32 %v3716_v19, %v3669_v16  ;;  %v3802_v56 = vmul.f32 %v8997_v41, %v11037_v53  ;;  %v9014_v3 = vld [vmem:[%s10705_s1 + $0x11] ss:$0 sm:$0xff] }
 0x267   : > { %v3749_v13 = vadd.f32 %v3717_v63, %v3670_v52  ;;  %v3750_v29 = vadd.f32 %v3718_v12, %v3671_v14  ;;  %v3803_v22 = vmul.f32 %v8997_v41, %v11038_v50  ;;  %v3804_v35 = vmul.f32 %v8997_v41, %v11039_v59 }
 0x268   : > { %v3915_v25 = vrot.slane %v3799_v54, 1  ;;  %v3916_v21 = vrot.slane %v3800_v18, 1  ;;  %v3918_v6 = vrot.slane %v3801_v1, 1  ;;  %v3920_v46 = vrot.slane %v3802_v56, 1 }
 0x269   : > { %v4044_v19 = vmul.f32 %v9014_v3, %v11034_v30  ;;  %v3921_v63 = vrot.slane %v3803_v22, 1  ;;  %v3923_v12 = vrot.slane %v3804_v35, 1  ;;  %v4045_v23 = vmul.f32 %v9014_v3, %v11035_v36 }
 0x26a   : > { %v4046_v61 = vmul.f32 %v9014_v3, %v11036_v37  ;;  %v3917_v16 = vsel %vm669_vm0, %v3915_v25, %v3916_v21  ;;  %v3919_v52 = vsel %vm669_vm0, %v3916_v21, %v3918_v6  ;;  %v4047_v14 = vmul.f32 %v9014_v3, %v11037_v53 }
 0x26b   : > { %v4048_v54 = vmul.f32 %v9014_v3, %v11038_v50  ;;  %v3922_v18 = vsel %vm669_vm0, %v3920_v46, %v3921_v63  ;;  %v3924_v1 = vsel %vm669_vm0, %v3921_v63, %v3923_v12  ;;  %v3997_v56 = vadd.f32 %v3917_v16, %v3747_v33 }
 0x26c   : > { %v3998_v22 = vadd.f32 %v3919_v52, %v3748_v40  ;;  %v3999_v35 = vadd.f32 %v3922_v18, %v3749_v13  ;;  %v4000_v49 = vadd.f32 %v3924_v1, %v3750_v29  ;;  %v4049_v28 = vmul.f32 %v9014_v3, %v11039_v59 }
 0x26d   : > { %v4160_v25 = vrot.slane %v4044_v19, 2  ;;  %v4161_v10 = vrot.slane %v4045_v23, 2  ;;  %v4163_v21 = vrot.slane %v4046_v61, 2  ;;  %v4165_v6 = vrot.slane %v4047_v14, 2 }
 0x26e   : > { %v4166_v17 = vrot.slane %v4048_v54, 2  ;;  %v4168_v58 = vrot.slane %v4049_v28, 2  ;;  %v4289_v33 = vmul.f32 %v9035_v45, %v11034_v30  ;;  %v4290_v40 = vmul.f32 %v9035_v45, %v11035_v36 }
 0x26f   : > { %v4291_v13 = vmul.f32 %v9035_v45, %v11036_v37  ;;  %v4162_v29 = vsel %vm915_vm2, %v4160_v25, %v4161_v10  ;;  %v4164_v46 = vsel %vm915_vm2, %v4161_v10, %v4163_v21  ;;  %v4292_v19 = vmul.f32 %v9035_v45, %v11037_v53  ;;  %v9056_v25 = vld [vmem:[%s10705_s1 + $0x13] ss:$0 sm:$0xff] }
 0x270   : > { %v4167_v28 = vsel %vm915_vm2, %v4165_v6, %v4166_v17  ;;  %v4169_v63 = vsel %vm915_vm2, %v4166_v17, %v4168_v58  ;;  %v4242_v12 = vadd.f32 %v4162_v29, %v3997_v56  ;;  %v4243_v23 = vadd.f32 %v4164_v46, %v3998_v22  ;;  %11040 = vst [vmem:[#allocation59_spill] sm:$0xff] %v9056_v25 }
 0x271   : > { %v4244_v61 = vadd.f32 %v4167_v28, %v3999_v35  ;;  %v4245_v16 = vadd.f32 %v4169_v63, %v4000_v49  ;;  %v4293_v52 = vmul.f32 %v9035_v45, %v11038_v50  ;;  %v4294_v14 = vmul.f32 %v9035_v45, %v11039_v59 }
 0x272   : > { %v4405_v54 = vrot.slane %v4289_v33, 3  ;;  %v4406_v18 = vrot.slane %v4290_v40, 3  ;;  %v4408_v10 = vrot.slane %v4291_v13, 3  ;;  %v4410_v1 = vrot.slane %v4292_v19, 3 }
 0x273   : > { %v4534_v58 = vmul.f32 %v9056_v25, %v11034_v30  ;;  %v4411_v17 = vrot.slane %v4293_v52, 3  ;;  %v4413_v49 = vrot.slane %v4294_v14, 3  ;;  %v4535_v56 = vmul.f32 %v9056_v25, %v11035_v36  ;;  %v9077_v36 = vld [vmem:[%s10705_s1 + $0x14] ss:$0 sm:$0xff] }
 0x274   : > { %v4536_v22 = vmul.f32 %v9056_v25, %v11036_v37  ;;  %v4407_v35 = vsel %vm1161_vm3, %v4405_v54, %v4406_v18  ;;  %v4409_v21 = vsel %vm1161_vm3, %v4406_v18, %v4408_v10  ;;  %v4537_v6 = vmul.f32 %v9056_v25, %v11037_v53  ;;  %11041 = vst [vmem:[#allocation60_spill] sm:$0xff] %v9077_v36 }
 0x275   : > { %v4538_v33 = vmul.f32 %v9056_v25, %v11038_v50  ;;  %v4412_v40 = vsel %vm1161_vm3, %v4410_v1, %v4411_v17  ;;  %v4414_v13 = vsel %vm1161_vm3, %v4411_v17, %v4413_v49  ;;  %v4487_v29 = vadd.f32 %v4407_v35, %v4242_v12  ;;  %v11043_v49 = vld [vmem:[#allocation36_spill] sm:$0xff] }
 0x276   : > { %v4488_v46 = vadd.f32 %v4409_v21, %v4243_v23  ;;  %v4489_v28 = vadd.f32 %v4412_v40, %v4244_v61  ;;  %v4490_v19 = vadd.f32 %v4414_v13, %v4245_v16  ;;  %v4539_v63 = vmul.f32 %v9056_v25, %v11039_v59  ;;  %v11042_v61 = vld [vmem:[#allocation41_spill] sm:$0xff]  ;;  %v9094_v40 = vld [vmem:[%s10705_s1 + $0x15] ss:$0 sm:$0xff]  ;;  %v9132_v25 = vld [vmem:[%s10705_s1 + $0x17] ss:$0 sm:$0xff] }
 0x277   : > { %v4650_v52 = vrot.slane %v4534_v58, 4  ;;  %v4651_v14 = vrot.slane %v4535_v56, 4  ;;  %v4653_v54 = vrot.slane %v4536_v22, 4  ;;  %v4655_v18 = vrot.slane %v4537_v6, 4  ;;  %11044 = vst [vmem:[#allocation61_spill] sm:$0xff] %v9094_v40 }
 0x278   : > { %v4656_v10 = vrot.slane %v4538_v33, 4  ;;  %v4658_v37 = vrot.slane %v4539_v63, 4  ;;  %v4779_v12 = vmul.f32 %v9077_v36, %v11037_v53  ;;  %v4780_v23 = vmul.f32 %v9077_v36, %v11038_v50 }
 0x279   : > { %v4781_v16 = vmul.f32 %v9077_v36, %v11042_v61  ;;  %v4652_v1 = vsel %vm1407_vm1, %v4650_v52, %v4651_v14  ;;  %v4654_v58 = vsel %vm1407_vm1, %v4651_v14, %v4653_v54  ;;  %v4782_v56 = vmul.f32 %v9077_v36, %v11043_v49  ;;  %v11045_v54 = vld [vmem:[#allocation40_spill] sm:$0xff] }
 0x27a   : > { %v4657_v17 = vsel %vm1407_vm1, %v4655_v18, %v4656_v10  ;;  %v4659_v22 = vsel %vm1407_vm1, %v4656_v10, %v4658_v37  ;;  %v4732_v35 = vadd.f32 %v4652_v1, %v4487_v29  ;;  %v4733_v21 = vadd.f32 %v4654_v58, %v4488_v46 }
 0x27b   : > { %v4734_v6 = vadd.f32 %v4657_v17, %v4489_v28  ;;  %v4735_v33 = vadd.f32 %v4659_v22, %v4490_v19  ;;  %v4863_v13 = vmul.f32 %v9094_v40, %v11037_v53  ;;  %v4864_v63 = vmul.f32 %v9094_v40, %v11038_v50 }
 0x27c   : > { %v4865_v52 = vmul.f32 %v9094_v40, %v11039_v59  ;;  %v4811_v14 = vadd.f32 %v4779_v12, %v4732_v35  ;;  %v4812_v37 = vadd.f32 %v4780_v23, %v4733_v21  ;;  %v4866_v46 = vmul.f32 %v9094_v40, %v11042_v61  ;;  %v9111_v12 = vld [vmem:[%s10705_s1 + $0x16] ss:$0 sm:$0xff] }
 0x27d   : > { %v4813_v29 = vadd.f32 %v4781_v16, %v4734_v6  ;;  %v4814_v28 = vadd.f32 %v4782_v56, %v4735_v33  ;;  %v4867_v19 = vmul.f32 %v9094_v40, %v11043_v49  ;;  %v4868_v18 = vmul.f32 %v9094_v40, %v11045_v54 }
 0x27e   : > { %v4979_v10 = vrot.slane %v4863_v13, 1  ;;  %v4980_v1 = vrot.slane %v4864_v63, 1  ;;  %v4982_v58 = vrot.slane %v4865_v52, 1  ;;  %v4984_v17 = vrot.slane %v4866_v46, 1 }
 0x27f   : > { %v5108_v23 = vmul.f32 %v9111_v12, %v11037_v53  ;;  %v4985_v16 = vrot.slane %v4867_v19, 1  ;;  %v4987_v56 = vrot.slane %v4868_v18, 1  ;;  %v5109_v22 = vmul.f32 %v9111_v12, %v11038_v50 }
 0x280   : > { %v5110_v35 = vmul.f32 %v9111_v12, %v11039_v59  ;;  %v4981_v21 = vsel %vm669_vm0, %v4979_v10, %v4980_v1  ;;  %v4983_v6 = vsel %vm669_vm0, %v4980_v1, %v4982_v58  ;;  %v5111_v33 = vmul.f32 %v9111_v12, %v11042_v61 }
 0x281   : > { %v5112_v13 = vmul.f32 %v9111_v12, %v11043_v49  ;;  %v4986_v63 = vsel %vm669_vm0, %v4984_v17, %v4985_v16  ;;  %v4988_v52 = vsel %vm669_vm0, %v4985_v16, %v4987_v56  ;;  %v5061_v46 = vadd.f32 %v4981_v21, %v4811_v14 }
 0x282   : > { %v5062_v19 = vadd.f32 %v4983_v6, %v4812_v37  ;;  %v5063_v18 = vadd.f32 %v4986_v63, %v4813_v29  ;;  %v5064_v30 = vadd.f32 %v4988_v52, %v4814_v28  ;;  %v5113_v43 = vmul.f32 %v9111_v12, %v11045_v54 }
 0x283   : > { %v5224_v10 = vrot.slane %v5108_v23, 2  ;;  %v5225_v15 = vrot.slane %v5109_v22, 2  ;;  %v5227_v1 = vrot.slane %v5110_v35, 2  ;;  %v5229_v58 = vrot.slane %v5111_v33, 2 }
 0x284   : > { %v5230_v40 = vrot.slane %v5112_v13, 2  ;;  %v5232_v36 = vrot.slane %v5113_v43, 2  ;;  %v5353_v14 = vmul.f32 %v9132_v25, %v11037_v53  ;;  %v5354_v37 = vmul.f32 %v9132_v25, %v11038_v50 }
 0x285   : > { %v5355_v29 = vmul.f32 %v9132_v25, %v11039_v59  ;;  %v5226_v28 = vsel %vm915_vm2, %v5224_v10, %v5225_v15  ;;  %v5228_v17 = vsel %vm915_vm2, %v5225_v15, %v5227_v1  ;;  %v5356_v23 = vmul.f32 %v9132_v25, %v11042_v61  ;;  %v9153_v10 = vld [vmem:[%s10705_s1 + $0x18] ss:$0 sm:$0xff] }
 0x286   : > { %v5231_v43 = vsel %vm915_vm2, %v5229_v58, %v5230_v40  ;;  %v5233_v16 = vsel %vm915_vm2, %v5230_v40, %v5232_v36  ;;  %v5306_v56 = vadd.f32 %v5226_v28, %v5061_v46  ;;  %v5307_v22 = vadd.f32 %v5228_v17, %v5062_v19 }
 0x287   : > { %v5308_v35 = vadd.f32 %v5231_v43, %v5063_v18  ;;  %v5309_v21 = vadd.f32 %v5233_v16, %v5064_v30  ;;  %v5357_v6 = vmul.f32 %v9132_v25, %v11043_v49  ;;  %v5358_v33 = vmul.f32 %v9132_v25, %v11045_v54 }
 0x288   : > { %v5469_v13 = vrot.slane %v5353_v14, 3  ;;  %v5470_v63 = vrot.slane %v5354_v37, 3  ;;  %v5472_v15 = vrot.slane %v5355_v29, 3  ;;  %v5474_v52 = vrot.slane %v5356_v23, 3 }
 0x289   : > { %v5598_v36 = vmul.f32 %v9153_v10, %v11037_v53  ;;  %v5475_v40 = vrot.slane %v5357_v6, 3  ;;  %v5477_v30 = vrot.slane %v5358_v33, 3  ;;  %v5599_v46 = vmul.f32 %v9153_v10, %v11038_v50 }
 0x28a   : > { %v5600_v19 = vmul.f32 %v9153_v10, %v11039_v59  ;;  %v5471_v18 = vsel %vm1161_vm3, %v5469_v13, %v5470_v63  ;;  %v5473_v1 = vsel %vm1161_vm3, %v5470_v63, %v5472_v15  ;;  %v5601_v58 = vmul.f32 %v9153_v10, %v11042_v61 }
 0x28b   : > { %v5602_v14 = vmul.f32 %v9153_v10, %v11043_v49  ;;  %v5476_v37 = vsel %vm1161_vm3, %v5474_v52, %v5475_v40  ;;  %v5478_v29 = vsel %vm1161_vm3, %v5475_v40, %v5477_v30  ;;  %v5551_v28 = vadd.f32 %v5471_v18, %v5306_v56 }
 0x28c   : > { %v5552_v17 = vadd.f32 %v5473_v1, %v5307_v22  ;;  %v5553_v43 = vadd.f32 %v5476_v37, %v5308_v35  ;;  %v5554_v23 = vadd.f32 %v5478_v29, %v5309_v21  ;;  %v5603_v16 = vmul.f32 %v9153_v10, %v11045_v54 }
 0x28d   : > { %v5714_v6 = vrot.slane %v5598_v36, 4  ;;  %v5715_v33 = vrot.slane %v5599_v46, 4  ;;  %v5717_v13 = vrot.slane %v5600_v19, 4  ;;  %v5719_v63 = vrot.slane %v5601_v58, 4 }
 0x28e   : > { %v5720_v15 = vrot.slane %v5602_v14, 4  ;;  %v5722_v61 = vrot.slane %v5603_v16, 4  ;;  %v432_v49 = vmul.f32 %v8688_v7, %v11004_v20  ;;  %v433_v52 = vmul.f32 %v8688_v7, %v11005_v24 }
 0x28f   : > { %v434_v56 = vmul.f32 %v8688_v7, %v11015_v39  ;;  %v5716_v22 = vsel %vm1407_vm1, %v5714_v6, %v5715_v33  ;;  %v5718_v35 = vsel %vm1407_vm1, %v5715_v33, %v5717_v13  ;;  %v435_v36 = vmul.f32 %v8688_v7, %v11016_v42 }
 0x290   : > { %v5721_v21 = vsel %vm1407_vm1, %v5719_v63, %v5720_v15  ;;  %v5723_v40 = vsel %vm1407_vm1, %v5720_v15, %v5722_v61  ;;  %v5796_v30 = vadd.f32 %v5716_v22, %v5551_v28  ;;  %v5797_v46 = vadd.f32 %v5718_v35, %v5552_v17 }
 0x291   : > { %v5798_v19 = vadd.f32 %v5721_v21, %v5553_v43  ;;  %v5799_v18 = vadd.f32 %v5723_v40, %v5554_v23  ;;  %v585_v1 = vmul.f32 %v8705_v47, %v11004_v20  ;;  %v586_v58 = vmul.f32 %v8705_v47, %v11005_v24 }
 0x292   : > { %v587_v14 = vmul.f32 %v8705_v47, %v11008_v34  ;;  %v5835_v37 = vadd.f32 %v8712_v60, %v5796_v30  ;;  %v5836_v29 = vadd.f32 %v8712_v60, %v5797_v46  ;;  %v588_v61 = vmul.f32 %v8705_v47, %v11015_v39 }
 0x293   : > { %v5837_v7 = vadd.f32 %v8712_v60, %v5798_v19  ;;  %v5838_v28 = vadd.f32 %v8712_v60, %v5799_v18  ;;  %v589_v17 = vmul.f32 %v8705_v47, %v11016_v42  ;;  %v590_v43 = vmul.f32 %v8705_v47, %v11017_v9 }
 0x294   : > { %v690_v23 = vrot.slane %v585_v1, 1  ;;  %v5867_v16 = vmax.f32 %v5835_v37, 0.0  ;;  %v5868_v6 = vmax.f32 %v5836_v29, 0.0  ;;  %v691_v13 = vrot.slane %v586_v58, 1 }
 0x295   : > { %v5869_v33 = vmax.f32 %v5837_v7, 0.0  ;;  %v5870_v63 = vmax.f32 %v5838_v28, 0.0  ;;  %v693_v15 = vrot.slane %v587_v14, 1  ;;  %v695_v22 = vrot.slane %v588_v61, 1 }
 0x296   : > { %v696_v35 = vrot.slane %v589_v17, 1  ;;  %v5910_v21 = vsel %vm5879_vm4, %v5867_v16, -inf  ;;  %v5913_v60 = vsel %vm5879_vm4, %v5868_v6, -inf  ;;  %v692_v30 = vsel %vm669_vm0, %v690_v23, %v691_v13 }
 0x297   : > { %v5911_v40 = vsel %vm5879_vm4, %v5869_v33, -inf  ;;  %v5914_v47 = vsel %vm5879_vm4, %v5870_v63, -inf  ;;  %v694_v19 = vsel %vm669_vm0, %v691_v13, %v693_v15  ;;  %v698_v58 = vrot.slane %v590_v43, 1 }
 0x298   : > { %v5912_v46 = vmax.f32 %v5910_v21, %v5911_v40  ;;  %v697_v18 = vsel %vm669_vm0, %v695_v22, %v696_v35  ;;  %v5915_v1 = vmax.f32 %v5913_v60, %v5914_v47  ;;  %v790_v14 = vadd.f32 %v692_v30, %v432_v49 }
 0x299   : > { %v791_v37 = vadd.f32 %v694_v19, %v433_v52  ;;  %v792_v7 = vadd.f32 %v697_v18, %v434_v56  ;;  %v831_v61 = vmul.f32 %v8739_v38, %v11004_v20  ;;  %v832_v28 = vmul.f32 %v8739_v38, %v11005_v24 }
 0x29a   : > { %v5959_v29 = vrot.slane %v5912_v46, 1  ;;  %v5960_v17 = vrot.slane %v5915_v1, 1  ;;  %v699_v23 = vsel %vm669_vm0, %v696_v35, %v698_v58  ;;  %v833_v16 = vmul.f32 %v8739_v38, %v11008_v34 }
 0x29b   : > { %v834_v6 = vmul.f32 %v8739_v38, %v11015_v39  ;;  %v793_v43 = vadd.f32 %v699_v23, %v435_v36  ;;  %v835_v49 = vmul.f32 %v8739_v38, %v11016_v42  ;;  %v836_v52 = vmul.f32 %v8739_v38, %v11017_v9 }
 0x29c   : > { %v936_v56 = vrot.slane %v831_v61, 2  ;;  %v5961_v33 = vsel %vm669_vm0, %v5959_v29, %v5960_v17  ;;  %v5997_v13 = vsel %vm669_vm0, %v5960_v17, %v5959_v29  ;;  %v937_v63 = vrot.slane %v832_v28, 2 }
 0x29d   : > { %v939_v15 = vrot.slane %v833_v16, 2  ;;  %v6010_v22 = vmax.f32 %v5912_v46, %v5961_v33  ;;  %v6011_v35 = vmax.f32 %v5915_v1, %v5997_v13  ;;  %v941_v21 = vrot.slane %v834_v6, 2 }
 0x29e   : > { %v942_v40 = vrot.slane %v835_v49, 2  ;;  %v938_v60 = vsel %vm915_vm2, %v936_v56, %v937_v63  ;;  %v944_v30 = vrot.slane %v836_v52, 2  ;;  %v1077_v47 = vmul.f32 %v8760_v55, %v11004_v20 }
 0x29f   : > { %v940_v36 = vsel %vm915_vm2, %v937_v63, %v939_v15  ;;  %v6021_v38 = vpack.c.bf16 %v6011_v35, %v6010_v22  ;;  %v1036_v18 = vadd.f32 %v938_v60, %v790_v14  ;;  %v1078_v46 = vmul.f32 %v8760_v55, %v11005_v24 }
 0x2a0   : > { %v943_v19 = vsel %vm915_vm2, %v941_v21, %v942_v40  ;;  %v1037_v58 = vadd.f32 %v940_v36, %v791_v37  ;;  %v945_v29 = vsel %vm915_vm2, %v942_v40, %v944_v30  ;;  %v1079_v1 = vmul.f32 %v8760_v55, %v11008_v34 }
 0x2a1   : > { %v1038_v61 = vadd.f32 %v943_v19, %v792_v7  ;;  %6399 = vmatmul.mubr.msk.bf16.vlgmr.msra.gmra.mxu1 %vm5879_vm4, %v6021_v38  ;;  %v1039_v28 = vadd.f32 %v945_v29, %v793_v43  ;;  %v1080_v17 = vmul.f32 %v8760_v55, %v11015_v39  ;;  %v1081_v23 = vmul.f32 %v8760_v55, %v11016_v42 }
 0x2a2   : > { %v1082_v14 = vmul.f32 %v8760_v55, %v11017_v9  ;;  %v1182_v37 = vrot.slane %v1077_v47, 3  ;;  %v1183_v7 = vrot.slane %v1078_v46, 3  ;;  %v1185_v16 = vrot.slane %v1079_v1, 3 }
 0x2a3   : > { %v1323_v6 = vmul.f32 %v8780_v0, %v11004_v20  ;;  %v1187_v49 = vrot.slane %v1080_v17, 3  ;;  %v1188_v52 = vrot.slane %v1081_v23, 3  ;;  %v1324_v43 = vmul.f32 %v8780_v0, %v11005_v24 }
 0x2a4   : > { %v1190_v56 = vrot.slane %v1082_v14, 3  ;;  %v1184_v33 = vsel %vm1161_vm3, %v1182_v37, %v1183_v7  ;;  %v1186_v13 = vsel %vm1161_vm3, %v1183_v7, %v1185_v16  ;;  %v1325_v63 = vmul.f32 %v8780_v0, %v11008_v34 }
 0x2a5   : > { %v1326_v55 = vmul.f32 %v8780_v0, %v11015_v39  ;;  %v1189_v15 = vsel %vm1161_vm3, %v1187_v49, %v1188_v52  ;;  %v1282_v22 = vadd.f32 %v1184_v33, %v1036_v18  ;;  %v1283_v35 = vadd.f32 %v1186_v13, %v1037_v58 }
 0x2a6   : > { %v1191_v20 = vsel %vm1161_vm3, %v1188_v52, %v1190_v56  ;;  %v1284_v21 = vadd.f32 %v1189_v15, %v1038_v61  ;;  %v1327_v24 = vmul.f32 %v8780_v0, %v11016_v42  ;;  %v1328_v60 = vmul.f32 %v8780_v0, %v11017_v9 }
 0x2a7   : > { %v1285_v40 = vadd.f32 %v1191_v20, %v1039_v28  ;;  %v1428_v36 = vrot.slane %v1323_v6, 4  ;;  %v1429_v30 = vrot.slane %v1324_v43, 4  ;;  %v1431_v34 = vrot.slane %v1325_v63, 4 }
 0x2a8   : > { %v1433_v47 = vrot.slane %v1326_v55, 4  ;;  %v1434_v38 = vrot.slane %v1327_v24, 4  ;;  %v1436_v19 = vrot.slane %v1328_v60, 4  ;;  %v1575_v29 = vmul.f32 %v8801_v11, %v11015_v39 }
 0x2a9   : > { %v1576_v18 = vmul.f32 %v8801_v11, %v11016_v42  ;;  %v1430_v58 = vsel %vm1407_vm1, %v1428_v36, %v1429_v30  ;;  %v1432_v61 = vsel %vm1407_vm1, %v1429_v30, %v1431_v34  ;;  %v1577_v46 = vmul.f32 %v8801_v11, %v11018_v26 }
 0x2aa   : > { %v1578_v0 = vmul.f32 %v8801_v11, %v11019_v62  ;;  %v1435_v1 = vsel %vm1407_vm1, %v1433_v47, %v1434_v38  ;;  %v1437_v28 = vsel %vm1407_vm1, %v1434_v38, %v1436_v19  ;;  %v1528_v17 = vadd.f32 %v1430_v58, %v1282_v22 }
 0x2ab   : > { %v1529_v23 = vadd.f32 %v1432_v61, %v1283_v35  ;;  %v1530_v14 = vadd.f32 %v1435_v1, %v1284_v21  ;;  %v1531_v37 = vadd.f32 %v1437_v28, %v1285_v40  ;;  %v1653_v7 = vmul.f32 %v8818_v5, %v11015_v39 }
 0x2ac   : > { %v1654_v16 = vmul.f32 %v8818_v5, %v11016_v42  ;;  %v1607_v6 = vadd.f32 %v1575_v29, %v1528_v17  ;;  %v1655_v52 = vmul.f32 %v8818_v5, %v11017_v9  ;;  %v1656_v11 = vmul.f32 %v8818_v5, %v11018_v26 }
 0x2ad   : > { %v1608_v49 = vadd.f32 %v1576_v18, %v1529_v23  ;;  %v1609_v56 = vadd.f32 %v1577_v46, %v1530_v14  ;;  %v1610_v43 = vadd.f32 %v1578_v0, %v1531_v37  ;;  %v1657_v33 = vmul.f32 %v8818_v5, %v11019_v62  ;;  %v9297_v23 = vld [vmem:[%s10705_s1 + $0x8] ss:$0 sm:$0xff] }
 0x2ae   : > { %v1658_v13 = vmul.f32 %v8818_v5, %v11021_v2  ;;  %v1757_v63 = vrot.slane %v1653_v7, 1  ;;  %v1758_v55 = vrot.slane %v1654_v16, 1  ;;  %v1760_v15 = vrot.slane %v1655_v52, 1 }
 0x2af   : > { %v1762_v20 = vrot.slane %v1656_v11, 1  ;;  %v1763_v22 = vrot.slane %v1657_v33, 1  ;;  %v1898_v21 = vmul.f32 %v8835_v57, %v11015_v39  ;;  %v1899_v40 = vmul.f32 %v8835_v57, %v11016_v42 }
 0x2b0   : > { %v1765_v35 = vrot.slane %v1658_v13, 1  ;;  %v1759_v24 = vsel %vm669_vm0, %v1757_v63, %v1758_v55  ;;  %v1761_v60 = vsel %vm669_vm0, %v1758_v55, %v1760_v15  ;;  %v1900_v36 = vmul.f32 %v8835_v57, %v11017_v9 }
 0x2b1   : > { %v1901_v5 = vmul.f32 %v8835_v57, %v11018_v26  ;;  %v1764_v30 = vsel %vm669_vm0, %v1762_v20, %v1763_v22  ;;  %v1857_v47 = vadd.f32 %v1759_v24, %v1607_v6  ;;  %v1858_v38 = vadd.f32 %v1761_v60, %v1608_v49 }
 0x2b2   : > { %v1766_v34 = vsel %vm669_vm0, %v1763_v22, %v1765_v35  ;;  %v1859_v19 = vadd.f32 %v1764_v30, %v1609_v56  ;;  %v1902_v18 = vmul.f32 %v8835_v57, %v11019_v62  ;;  %v1903_v58 = vmul.f32 %v8835_v57, %v11021_v2 }
 0x2b3   : > { %v1860_v29 = vadd.f32 %v1766_v34, %v1610_v43  ;;  %v2002_v61 = vrot.slane %v1898_v21, 2  ;;  %v2003_v46 = vrot.slane %v1899_v40, 2  ;;  %v2005_v0 = vrot.slane %v1900_v36, 2  ;;  %v9318_v40 = vld [vmem:[%s10705_s1 + $0x9] ss:$0 sm:$0xff] }
 0x2b4   : > { %v2007_v1 = vrot.slane %v1901_v5, 2  ;;  %v2008_v28 = vrot.slane %v1902_v18, 2  ;;  %v2010_v17 = vrot.slane %v1903_v58, 2  ;;  %v2143_v14 = vmul.f32 %v9297_v23, %v11015_v39 }
 0x2b5   : > { %v2144_v37 = vmul.f32 %v9297_v23, %v11016_v42  ;;  %v2004_v7 = vsel %vm915_vm2, %v2002_v61, %v2003_v46  ;;  %v2006_v57 = vsel %vm915_vm2, %v2003_v46, %v2005_v0  ;;  %v2145_v16 = vmul.f32 %v9297_v23, %v11017_v9 }
 0x2b6   : > { %v2146_v6 = vmul.f32 %v9297_v23, %v11018_v26  ;;  %v2009_v49 = vsel %vm915_vm2, %v2007_v1, %v2008_v28  ;;  %v2011_v52 = vsel %vm915_vm2, %v2008_v28, %v2010_v17  ;;  %v2102_v11 = vadd.f32 %v2004_v7, %v1857_v47 }
 0x2b7   : > { %v2103_v56 = vadd.f32 %v2006_v57, %v1858_v38  ;;  %v2104_v43 = vadd.f32 %v2009_v49, %v1859_v19  ;;  %v2105_v33 = vadd.f32 %v2011_v52, %v1860_v29  ;;  %v2147_v13 = vmul.f32 %v9297_v23, %v11019_v62 }
 0x2b8   : > { %v2148_v63 = vmul.f32 %v9297_v23, %v11021_v2  ;;  %v2247_v55 = vrot.slane %v2143_v14, 3  ;;  %v2248_v15 = vrot.slane %v2144_v37, 3  ;;  %v2250_v20 = vrot.slane %v2145_v16, 3 }
 0x2b9   : > { %v2252_v22 = vrot.slane %v2146_v6, 3  ;;  %v2253_v35 = vrot.slane %v2147_v13, 3  ;;  %v2388_v24 = vmul.f32 %v9318_v40, %v11015_v39  ;;  %v2389_v60 = vmul.f32 %v9318_v40, %v11016_v42 }
 0x2ba   : > { %v2255_v21 = vrot.slane %v2148_v63, 3  ;;  %v2249_v36 = vsel %vm1161_vm3, %v2247_v55, %v2248_v15  ;;  %v2251_v5 = vsel %vm1161_vm3, %v2248_v15, %v2250_v20  ;;  %v2390_v30 = vmul.f32 %v9318_v40, %v11017_v9 }
 0x2bb   : > { %v2391_v34 = vmul.f32 %v9318_v40, %v11018_v26  ;;  %v2254_v47 = vsel %vm1161_vm3, %v2252_v22, %v2253_v35  ;;  %v2347_v19 = vadd.f32 %v2249_v36, %v2102_v11  ;;  %v2348_v29 = vadd.f32 %v2251_v5, %v2103_v56 }
 0x2bc   : > { %v2256_v38 = vsel %vm1161_vm3, %v2253_v35, %v2255_v21  ;;  %v2349_v39 = vadd.f32 %v2254_v47, %v2104_v43  ;;  %v2392_v42 = vmul.f32 %v9318_v40, %v11019_v62  ;;  %v2393_v58 = vmul.f32 %v9318_v40, %v11021_v2 }
 0x2bd   : > { %v2350_v18 = vadd.f32 %v2256_v38, %v2105_v33  ;;  %v2492_v61 = vrot.slane %v2388_v24, 4  ;;  %v2493_v46 = vrot.slane %v2389_v60, 4  ;;  %v2495_v9 = vrot.slane %v2390_v30, 4  ;;  %v9351_v33 = vld [vmem:[%s10705_s1 + $0xb] ss:$0 sm:$0xff] }
 0x2be   : > { %v2497_v0 = vrot.slane %v2391_v34, 4  ;;  %v2498_v1 = vrot.slane %v2392_v42, 4  ;;  %v2500_v28 = vrot.slane %v2393_v58, 4  ;;  %v2639_v17 = vmul.f32 %v8888_v48, %v11018_v26 }
 0x2bf   : > { %v2640_v14 = vmul.f32 %v8888_v48, %v11019_v62  ;;  %v2494_v37 = vsel %vm1407_vm1, %v2492_v61, %v2493_v46  ;;  %v2496_v7 = vsel %vm1407_vm1, %v2493_v46, %v2495_v9  ;;  %v2641_v57 = vmul.f32 %v8888_v48, %v11022_v31 }
 0x2c0   : > { %v2642_v16 = vmul.f32 %v8888_v48, %v11023_v4  ;;  %v2499_v6 = vsel %vm1407_vm1, %v2497_v0, %v2498_v1  ;;  %v2501_v49 = vsel %vm1407_vm1, %v2498_v1, %v2500_v28  ;;  %v2592_v52 = vadd.f32 %v2494_v37, %v2347_v19 }
 0x2c1   : > { %v2593_v11 = vadd.f32 %v2496_v7, %v2348_v29  ;;  %v2594_v56 = vadd.f32 %v2499_v6, %v2349_v39  ;;  %v2595_v43 = vadd.f32 %v2501_v49, %v2350_v18  ;;  %v2717_v13 = vmul.f32 %v9351_v33, %v11018_v26 }
 0x2c2   : > { %v2718_v63 = vmul.f32 %v9351_v33, %v11019_v62  ;;  %v2671_v48 = vadd.f32 %v2639_v17, %v2592_v52  ;;  %v2719_v15 = vmul.f32 %v9351_v33, %v11021_v2  ;;  %v2720_v20 = vmul.f32 %v9351_v33, %v11022_v31 }
 0x2c3   : > { %v2672_v55 = vadd.f32 %v2640_v14, %v2593_v11  ;;  %v2673_v22 = vadd.f32 %v2641_v57, %v2594_v56  ;;  %v2674_v35 = vadd.f32 %v2642_v16, %v2595_v43  ;;  %v2721_v21 = vmul.f32 %v9351_v33, %v11023_v4 }
 0x2c4   : > { %v2722_v24 = vmul.f32 %v9351_v33, %v11024_v51  ;;  %v2821_v60 = vrot.slane %v2717_v13, 1  ;;  %v2822_v36 = vrot.slane %v2718_v63, 1  ;;  %v2824_v5 = vrot.slane %v2719_v15, 1 }
 0x2c5   : > { %v2826_v30 = vrot.slane %v2720_v20, 1  ;;  %v2827_v34 = vrot.slane %v2721_v21, 1  ;;  %v2962_v38 = vmul.f32 %v8917_v32, %v11018_v26  ;;  %v2963_v19 = vmul.f32 %v8917_v32, %v11019_v62 }
 0x2c6   : > { %v2829_v47 = vrot.slane %v2722_v24, 1  ;;  %v2823_v29 = vsel %vm669_vm0, %v2821_v60, %v2822_v36  ;;  %v2825_v39 = vsel %vm669_vm0, %v2822_v36, %v2824_v5  ;;  %v2964_v18 = vmul.f32 %v8917_v32, %v11021_v2 }
 0x2c7   : > { %v2965_v42 = vmul.f32 %v8917_v32, %v11022_v31  ;;  %v2828_v58 = vsel %vm669_vm0, %v2826_v30, %v2827_v34  ;;  %v2921_v46 = vadd.f32 %v2823_v29, %v2671_v48  ;;  %v2922_v9 = vadd.f32 %v2825_v39, %v2672_v55 }
 0x2c8   : > { %v2830_v61 = vsel %vm669_vm0, %v2827_v34, %v2829_v47  ;;  %v2923_v0 = vadd.f32 %v2828_v58, %v2673_v22  ;;  %v2966_v28 = vmul.f32 %v8917_v32, %v11023_v4  ;;  %v2967_v17 = vmul.f32 %v8917_v32, %v11024_v51 }
 0x2c9   : > { %v2924_v1 = vadd.f32 %v2830_v61, %v2674_v35  ;;  %v3066_v14 = vrot.slane %v2962_v38, 2  ;;  %v3067_v37 = vrot.slane %v2963_v19, 2  ;;  %v3069_v7 = vrot.slane %v2964_v18, 2 }
 0x2ca   : > { %v3071_v57 = vrot.slane %v2965_v42, 2  ;;  %v3072_v16 = vrot.slane %v2966_v28, 2  ;;  %v3074_v6 = vrot.slane %v2967_v17, 2  ;;  %v3207_v49 = vmul.f32 %v8938_v27, %v11018_v26 }
 0x2cb   : > { %v3208_v52 = vmul.f32 %v8938_v27, %v11019_v62  ;;  %v3068_v11 = vsel %vm915_vm2, %v3066_v14, %v3067_v37  ;;  %v3070_v56 = vsel %vm915_vm2, %v3067_v37, %v3069_v7  ;;  %v3209_v43 = vmul.f32 %v8938_v27, %v11021_v2 }
 0x2cc   : > { %v3210_v32 = vmul.f32 %v8938_v27, %v11022_v31  ;;  %v3073_v13 = vsel %vm915_vm2, %v3071_v57, %v3072_v16  ;;  %v3075_v63 = vsel %vm915_vm2, %v3072_v16, %v3074_v6  ;;  %v3166_v48 = vadd.f32 %v3068_v11, %v2921_v46 }
 0x2cd   : > { %v3167_v55 = vadd.f32 %v3070_v56, %v2922_v9  ;;  %v3168_v15 = vadd.f32 %v3073_v13, %v2923_v0  ;;  %v3169_v20 = vadd.f32 %v3075_v63, %v2924_v1  ;;  %v3211_v22 = vmul.f32 %v8938_v27, %v11023_v4 }
 0x2ce   : > { %v3212_v35 = vmul.f32 %v8938_v27, %v11024_v51  ;;  %v3311_v21 = vrot.slane %v3207_v49, 3  ;;  %v3312_v24 = vrot.slane %v3208_v52, 3  ;;  %v3314_v60 = vrot.slane %v3209_v43, 3  ;;  %v11046_v52 = vld [vmem:[#allocation3_spill] sm:$0xff] }
 0x2cf   : > { %v3316_v36 = vrot.slane %v3210_v32, 3  ;;  %v3317_v5 = vrot.slane %v3211_v22, 3  ;;  %v3452_v34 = vmul.f32 %v8959_v8, %v11018_v26  ;;  %v3453_v47 = vmul.f32 %v8959_v8, %v11019_v62 }
 0x2d0   : > { %v3319_v30 = vrot.slane %v3212_v35, 3  ;;  %v3313_v38 = vsel %vm1161_vm3, %v3311_v21, %v3312_v24  ;;  %v3315_v19 = vsel %vm1161_vm3, %v3312_v24, %v3314_v60  ;;  %v3454_v29 = vmul.f32 %v8959_v8, %v11021_v2 }
 0x2d1   : > { %v3455_v27 = vmul.f32 %v8959_v8, %v11022_v31  ;;  %v3318_v39 = vsel %vm1161_vm3, %v3316_v36, %v3317_v5  ;;  %v3411_v42 = vadd.f32 %v3313_v38, %v3166_v48  ;;  %v3412_v58 = vadd.f32 %v3315_v19, %v3167_v55 }
 0x2d2   : > { %v3320_v18 = vsel %vm1161_vm3, %v3317_v5, %v3319_v30  ;;  %v3413_v61 = vadd.f32 %v3318_v39, %v3168_v15  ;;  %v3456_v9 = vmul.f32 %v8959_v8, %v11023_v4  ;;  %v3457_v0 = vmul.f32 %v8959_v8, %v11024_v51  ;;  %v11047_v8 = vld [vmem:[#allocation2_spill] sm:$0xff]  ;;  %v11048_v5 = vld [vmem:[#allocation7_spill] sm:$0xff] }
 0x2d3   : > { %v3414_v46 = vadd.f32 %v3320_v18, %v3169_v20  ;;  %v3556_v1 = vrot.slane %v3452_v34, 4  ;;  %v3557_v28 = vrot.slane %v3453_v47, 4  ;;  %v3559_v17 = vrot.slane %v3454_v29, 4 }
 0x2d4   : > { %v3561_v14 = vrot.slane %v3455_v27, 4  ;;  %v3562_v37 = vrot.slane %v3456_v9, 4  ;;  %v3564_v7 = vrot.slane %v3457_v0, 4  ;;  %v3703_v57 = vmul.f32 %v8980_v44, %v11022_v31 }
 0x2d5   : > { %v3704_v16 = vmul.f32 %v8980_v44, %v11023_v4  ;;  %v3558_v6 = vsel %vm1407_vm1, %v3556_v1, %v3557_v28  ;;  %v3560_v49 = vsel %vm1407_vm1, %v3557_v28, %v3559_v17  ;;  %v3705_v11 = vmul.f32 %v8980_v44, %v11046_v52 }
 0x2d6   : > { %v3706_v56 = vmul.f32 %v8980_v44, %v11047_v8  ;;  %v3563_v43 = vsel %vm1407_vm1, %v3561_v14, %v3562_v37  ;;  %v3565_v32 = vsel %vm1407_vm1, %v3562_v37, %v3564_v7  ;;  %v3656_v13 = vadd.f32 %v3558_v6, %v3411_v42 }
 0x2d7   : > { %v3657_v63 = vadd.f32 %v3560_v49, %v3412_v58  ;;  %v3658_v48 = vadd.f32 %v3563_v43, %v3413_v61  ;;  %v3659_v55 = vadd.f32 %v3565_v32, %v3414_v46  ;;  %v3781_v15 = vmul.f32 %v8997_v41, %v11022_v31 }
 0x2d8   : > { %v3782_v20 = vmul.f32 %v8997_v41, %v11023_v4  ;;  %v3735_v22 = vadd.f32 %v3703_v57, %v3656_v13  ;;  %v3783_v21 = vmul.f32 %v8997_v41, %v11024_v51  ;;  %v3784_v44 = vmul.f32 %v8997_v41, %v11046_v52 }
 0x2d9   : > { %v3736_v35 = vadd.f32 %v3704_v16, %v3657_v63  ;;  %v3737_v24 = vadd.f32 %v3705_v11, %v3658_v48  ;;  %v3738_v60 = vadd.f32 %v3706_v56, %v3659_v55  ;;  %v3785_v36 = vmul.f32 %v8997_v41, %v11047_v8 }
 0x2da   : > { %v3786_v30 = vmul.f32 %v8997_v41, %v11048_v5  ;;  %v3885_v34 = vrot.slane %v3781_v15, 1  ;;  %v3886_v47 = vrot.slane %v3782_v20, 1  ;;  %v3888_v38 = vrot.slane %v3783_v21, 1 }
 0x2db   : > { %v3890_v19 = vrot.slane %v3784_v44, 1  ;;  %v3891_v29 = vrot.slane %v3785_v36, 1  ;;  %v4026_v39 = vmul.f32 %v9014_v3, %v11022_v31  ;;  %v4027_v18 = vmul.f32 %v9014_v3, %v11023_v4 }
 0x2dc   : > { %v3893_v27 = vrot.slane %v3786_v30, 1  ;;  %v3887_v42 = vsel %vm669_vm0, %v3885_v34, %v3886_v47  ;;  %v3889_v58 = vsel %vm669_vm0, %v3886_v47, %v3888_v38  ;;  %v4028_v61 = vmul.f32 %v9014_v3, %v11024_v51  ;;  %v11049_v38 = vld [vmem:[#allocation59_spill] sm:$0xff] }
 0x2dd   : > { %v4029_v41 = vmul.f32 %v9014_v3, %v11046_v52  ;;  %v3892_v46 = vsel %vm669_vm0, %v3890_v19, %v3891_v29  ;;  %v3985_v0 = vadd.f32 %v3887_v42, %v3735_v22  ;;  %v3986_v1 = vadd.f32 %v3889_v58, %v3736_v35 }
 0x2de   : > { %v3894_v9 = vsel %vm669_vm0, %v3891_v29, %v3893_v27  ;;  %v3987_v28 = vadd.f32 %v3892_v46, %v3737_v24  ;;  %v4030_v14 = vmul.f32 %v9014_v3, %v11047_v8  ;;  %v4031_v37 = vmul.f32 %v9014_v3, %v11048_v5 }
 0x2df   : > { %v3988_v17 = vadd.f32 %v3894_v9, %v3738_v60  ;;  %v4130_v7 = vrot.slane %v4026_v39, 2  ;;  %v4131_v57 = vrot.slane %v4027_v18, 2  ;;  %v4133_v16 = vrot.slane %v4028_v61, 2 }
 0x2e0   : > { %v4135_v6 = vrot.slane %v4029_v41, 2  ;;  %v4136_v49 = vrot.slane %v4030_v14, 2  ;;  %v4138_v11 = vrot.slane %v4031_v37, 2  ;;  %v4271_v56 = vmul.f32 %v9035_v45, %v11022_v31 }
 0x2e1   : > { %v4272_v43 = vmul.f32 %v9035_v45, %v11023_v4  ;;  %v4132_v32 = vsel %vm915_vm2, %v4130_v7, %v4131_v57  ;;  %v4134_v13 = vsel %vm915_vm2, %v4131_v57, %v4133_v16  ;;  %v4273_v63 = vmul.f32 %v9035_v45, %v11024_v51  ;;  %v11050_v16 = vld [vmem:[#allocation60_spill] sm:$0xff] }
 0x2e2   : > { %v4274_v3 = vmul.f32 %v9035_v45, %v11046_v52  ;;  %v4137_v48 = vsel %vm915_vm2, %v4135_v6, %v4136_v49  ;;  %v4139_v55 = vsel %vm915_vm2, %v4136_v49, %v4138_v11  ;;  %v4230_v15 = vadd.f32 %v4132_v32, %v3985_v0 }
 0x2e3   : > { %v4231_v20 = vadd.f32 %v4134_v13, %v3986_v1  ;;  %v4232_v22 = vadd.f32 %v4137_v48, %v3987_v28  ;;  %v4233_v35 = vadd.f32 %v4139_v55, %v3988_v17  ;;  %v4275_v21 = vmul.f32 %v9035_v45, %v11047_v8  ;;  %v11052_v13 = vld [vmem:[#allocation4_spill] sm:$0xff] }
 0x2e4   : > { %v4276_v44 = vmul.f32 %v9035_v45, %v11048_v5  ;;  %v4375_v24 = vrot.slane %v4271_v56, 3  ;;  %v4376_v60 = vrot.slane %v4272_v43, 3  ;;  %v4378_v36 = vrot.slane %v4273_v63, 3  ;;  %v11051_v43 = vld [vmem:[#allocation5_spill] sm:$0xff] }
 0x2e5   : > { %v4380_v30 = vrot.slane %v4274_v3, 3  ;;  %v4381_v34 = vrot.slane %v4275_v21, 3  ;;  %v4516_v19 = vmul.f32 %v11049_v38, %v11022_v31  ;;  %v4517_v29 = vmul.f32 %v11049_v38, %v11023_v4 }
 0x2e6   : > { %v4383_v47 = vrot.slane %v4276_v44, 3  ;;  %v4377_v27 = vsel %vm1161_vm3, %v4375_v24, %v4376_v60  ;;  %v4379_v39 = vsel %vm1161_vm3, %v4376_v60, %v4378_v36  ;;  %v4518_v18 = vmul.f32 %v11049_v38, %v11024_v51 }
 0x2e7   : > { %v4519_v45 = vmul.f32 %v11049_v38, %v11046_v52  ;;  %v4382_v42 = vsel %vm1161_vm3, %v4380_v30, %v4381_v34  ;;  %v4475_v61 = vadd.f32 %v4377_v27, %v4230_v15  ;;  %v4476_v41 = vadd.f32 %v4379_v39, %v4231_v20 }
 0x2e8   : > { %v4384_v58 = vsel %vm1161_vm3, %v4381_v34, %v4383_v47  ;;  %v4477_v46 = vadd.f32 %v4382_v42, %v4232_v22  ;;  %v4520_v0 = vmul.f32 %v11049_v38, %v11047_v8  ;;  %v4521_v1 = vmul.f32 %v11049_v38, %v11048_v5 }
 0x2e9   : > { %v4478_v9 = vadd.f32 %v4384_v58, %v4233_v35  ;;  %v4620_v28 = vrot.slane %v4516_v19, 4  ;;  %v4621_v17 = vrot.slane %v4517_v29, 4  ;;  %v4623_v14 = vrot.slane %v4518_v18, 4  ;;  %v11053_v35 = vld [vmem:[#allocation61_spill] sm:$0xff]  ;;  %v11054_v19 = vld [vmem:[#allocation6_spill] sm:$0xff] }
 0x2ea   : > { %v4625_v37 = vrot.slane %v4519_v45, 4  ;;  %v4626_v7 = vrot.slane %v4520_v0, 4  ;;  %v4628_v57 = vrot.slane %v4521_v1, 4  ;;  %v4767_v6 = vmul.f32 %v11050_v16, %v11046_v52 }
 0x2eb   : > { %v4768_v49 = vmul.f32 %v11050_v16, %v11047_v8  ;;  %v4622_v11 = vsel %vm1407_vm1, %v4620_v28, %v4621_v17  ;;  %v4624_v56 = vsel %vm1407_vm1, %v4621_v17, %v4623_v14  ;;  %v4769_v32 = vmul.f32 %v11050_v16, %v11051_v43 }
 0x2ec   : > { %v4770_v63 = vmul.f32 %v11050_v16, %v11052_v13  ;;  %v4627_v3 = vsel %vm1407_vm1, %v4625_v37, %v4626_v7  ;;  %v4629_v48 = vsel %vm1407_vm1, %v4626_v7, %v4628_v57  ;;  %v4720_v55 = vadd.f32 %v4622_v11, %v4475_v61 }
 0x2ed   : > { %v4721_v15 = vadd.f32 %v4624_v56, %v4476_v41  ;;  %v4722_v20 = vadd.f32 %v4627_v3, %v4477_v46  ;;  %v4723_v22 = vadd.f32 %v4629_v48, %v4478_v9  ;;  %v4845_v21 = vmul.f32 %v11053_v35, %v11046_v52 }
 0x2ee   : > { %v4846_v44 = vmul.f32 %v11053_v35, %v11047_v8  ;;  %v4799_v24 = vadd.f32 %v4767_v6, %v4720_v55  ;;  %v4847_v36 = vmul.f32 %v11053_v35, %v11048_v5  ;;  %v4848_v30 = vmul.f32 %v11053_v35, %v11051_v43 }
 0x2ef   : > { %v4800_v60 = vadd.f32 %v4768_v49, %v4721_v15  ;;  %v4801_v34 = vadd.f32 %v4769_v32, %v4722_v20  ;;  %v4802_v47 = vadd.f32 %v4770_v63, %v4723_v22  ;;  %v4849_v38 = vmul.f32 %v11053_v35, %v11052_v13 }
 0x2f0   : > { %v4850_v29 = vmul.f32 %v11053_v35, %v11054_v19  ;;  %v4949_v27 = vrot.slane %v4845_v21, 1  ;;  %v4950_v39 = vrot.slane %v4846_v44, 1  ;;  %v4952_v18 = vrot.slane %v4847_v36, 1 }
 0x2f1   : > { %v4954_v45 = vrot.slane %v4848_v30, 1  ;;  %v4955_v42 = vrot.slane %v4849_v38, 1  ;;  %v5090_v61 = vmul.f32 %v9111_v12, %v11046_v52  ;;  %v5091_v41 = vmul.f32 %v9111_v12, %v11047_v8 }
 0x2f2   : > { %v4957_v58 = vrot.slane %v4850_v29, 1  ;;  %v4951_v46 = vsel %vm669_vm0, %v4949_v27, %v4950_v39  ;;  %v4953_v9 = vsel %vm669_vm0, %v4950_v39, %v4952_v18  ;;  %v5092_v0 = vmul.f32 %v9111_v12, %v11048_v5 }
 0x2f3   : > { %v5093_v1 = vmul.f32 %v9111_v12, %v11051_v43  ;;  %v4956_v28 = vsel %vm669_vm0, %v4954_v45, %v4955_v42  ;;  %v5049_v14 = vadd.f32 %v4951_v46, %v4799_v24  ;;  %v5050_v37 = vadd.f32 %v4953_v9, %v4800_v60 }
 0x2f4   : > { %v4958_v17 = vsel %vm669_vm0, %v4955_v42, %v4957_v58  ;;  %v5051_v7 = vadd.f32 %v4956_v28, %v4801_v34  ;;  %v5094_v16 = vmul.f32 %v9111_v12, %v11052_v13  ;;  %v5095_v6 = vmul.f32 %v9111_v12, %v11054_v19 }
 0x2f5   : > { %v5052_v57 = vadd.f32 %v4958_v17, %v4802_v47  ;;  %v5194_v49 = vrot.slane %v5090_v61, 2  ;;  %v5195_v11 = vrot.slane %v5091_v41, 2  ;;  %v5197_v56 = vrot.slane %v5092_v0, 2 }
 0x2f6   : > { %v5199_v32 = vrot.slane %v5093_v1, 2  ;;  %v5200_v63 = vrot.slane %v5094_v16, 2  ;;  %v5202_v3 = vrot.slane %v5095_v6, 2  ;;  %v5335_v48 = vmul.f32 %v9132_v25, %v11046_v52 }
 0x2f7   : > { %v5336_v55 = vmul.f32 %v9132_v25, %v11047_v8  ;;  %v5196_v15 = vsel %vm915_vm2, %v5194_v49, %v5195_v11  ;;  %v5198_v20 = vsel %vm915_vm2, %v5195_v11, %v5197_v56  ;;  %v5337_v22 = vmul.f32 %v9132_v25, %v11048_v5  ;;  %v9560_v56 = vld [vmem:[%s10705_s1] ss:$0 sm:$0xff] }
 0x2f8   : > { %v5338_v12 = vmul.f32 %v9132_v25, %v11051_v43  ;;  %v5201_v35 = vsel %vm915_vm2, %v5199_v32, %v5200_v63  ;;  %v5203_v21 = vsel %vm915_vm2, %v5200_v63, %v5202_v3  ;;  %v5294_v44 = vadd.f32 %v5196_v15, %v5049_v14  ;;  %v11055_v32 = vld [vmem:[#allocation20_spill] sm:$0xff]  ;;  %v11056_v3 = vld [vmem:[#allocation26_spill] sm:$0xff] }
 0x2f9   : > { %v5295_v24 = vadd.f32 %v5198_v20, %v5050_v37  ;;  %v5296_v60 = vadd.f32 %v5201_v35, %v5051_v7  ;;  %v5297_v36 = vadd.f32 %v5203_v21, %v5052_v57  ;;  %v5339_v30 = vmul.f32 %v9132_v25, %v11052_v13  ;;  %v11057_v15 = vld [vmem:[#allocation22_spill] sm:$0xff] }
 0x2fa   : > { %v5340_v34 = vmul.f32 %v9132_v25, %v11054_v19  ;;  %v5439_v47 = vrot.slane %v5335_v48, 3  ;;  %v5440_v38 = vrot.slane %v5336_v55, 3  ;;  %v5442_v29 = vrot.slane %v5337_v22, 3  ;;  %v11058_v22 = vld [vmem:[#allocation27_spill] sm:$0xff] }
 0x2fb   : > { %v5444_v27 = vrot.slane %v5338_v12, 3  ;;  %v5445_v39 = vrot.slane %v5339_v30, 3  ;;  %v5580_v45 = vmul.f32 %v9153_v10, %v11046_v52  ;;  %v5581_v42 = vmul.f32 %v9153_v10, %v11047_v8  ;;  %v9577_v30 = vld [vmem:[%s10705_s1 + $0x1] ss:$0 sm:$0xff] }
 0x2fc   : > { %v5447_v18 = vrot.slane %v5340_v34, 3  ;;  %v5441_v58 = vsel %vm1161_vm3, %v5439_v47, %v5440_v38  ;;  %v5443_v61 = vsel %vm1161_vm3, %v5440_v38, %v5442_v29  ;;  %v5582_v41 = vmul.f32 %v9153_v10, %v11048_v5  ;;  %v9586_v38 = vld [vmem:[%s10706_s2] ss:$0 sm:$0xff] }
 0x2fd   : > { %v5583_v25 = vmul.f32 %v9153_v10, %v11051_v43  ;;  %v5446_v46 = vsel %vm1161_vm3, %v5444_v27, %v5445_v39  ;;  %v5539_v0 = vadd.f32 %v5441_v58, %v5294_v44  ;;  %v5540_v1 = vadd.f32 %v5443_v61, %v5295_v24 }
 0x2fe   : > { %v5448_v9 = vsel %vm1161_vm3, %v5445_v39, %v5447_v18  ;;  %v5541_v28 = vadd.f32 %v5446_v46, %v5296_v60  ;;  %v5584_v14 = vmul.f32 %v9153_v10, %v11052_v13  ;;  %v5585_v37 = vmul.f32 %v9153_v10, %v11054_v19  ;;  %v11059_v39 = vld [vmem:[#allocation32_spill] sm:$0xff] }
 0x2ff   : > { %v5542_v17 = vadd.f32 %v5448_v9, %v5297_v36  ;;  %v5684_v7 = vrot.slane %v5580_v45, 4  ;;  %v5685_v57 = vrot.slane %v5581_v42, 4  ;;  %v5687_v16 = vrot.slane %v5582_v41, 4  ;;  %v11060_v41 = vld [vmem:[#allocation30_spill] sm:$0xff] }
 0x300   : > { %v5689_v6 = vrot.slane %v5583_v25, 4  ;;  %v5690_v49 = vrot.slane %v5584_v14, 4  ;;  %v5692_v11 = vrot.slane %v5585_v37, 4  ;;  %v448_v63 = vmul.f32 %v9560_v56, %v11055_v32 }
 0x301   : > { %v449_v48 = vmul.f32 %v9560_v56, %v11056_v3  ;;  %v5686_v55 = vsel %vm1407_vm1, %v5684_v7, %v5685_v57  ;;  %v5688_v10 = vsel %vm1407_vm1, %v5685_v57, %v5687_v16  ;;  %v450_v20 = vmul.f32 %v9560_v56, %v11057_v15 }
 0x302   : > { %v451_v12 = vmul.f32 %v9560_v56, %v11058_v22  ;;  %v5691_v35 = vsel %vm1407_vm1, %v5689_v6, %v5690_v49  ;;  %v5693_v21 = vsel %vm1407_vm1, %v5690_v49, %v5692_v11  ;;  %v5784_v44 = vadd.f32 %v5686_v55, %v5539_v0 }
 0x303   : > { %v5785_v24 = vadd.f32 %v5688_v10, %v5540_v1  ;;  %v5786_v60 = vadd.f32 %v5691_v35, %v5541_v28  ;;  %v5787_v36 = vadd.f32 %v5693_v21, %v5542_v17  ;;  %v609_v34 = vmul.f32 %v9577_v30, %v11055_v32 }
 0x304   : > { %v610_v47 = vmul.f32 %v9577_v30, %v11056_v3  ;;  %v5823_v29 = vadd.f32 %v9586_v38, %v5784_v44  ;;  %v611_v18 = vmul.f32 %v9577_v30, %v11059_v39  ;;  %v612_v45 = vmul.f32 %v9577_v30, %v11057_v15 }
 0x305   : > { %v5824_v27 = vadd.f32 %v9586_v38, %v5785_v24  ;;  %v5825_v42 = vadd.f32 %v9586_v38, %v5786_v60  ;;  %v5826_v58 = vadd.f32 %v9586_v38, %v5787_v36  ;;  %v613_v61 = vmul.f32 %v9577_v30, %v11058_v22 }
 0x306   : > { %v614_v25 = vmul.f32 %v9577_v30, %v11060_v41  ;;  %v5855_v46 = vmax.f32 %v5823_v29, 0.0  ;;  %v730_v0 = vrot.slane %v609_v34, 1  ;;  %v731_v1 = vrot.slane %v610_v47, 1  ;;  %v9611_v47 = vld [vmem:[%s10705_s1 + $0x2] ss:$0 sm:$0xff] }
 0x307   : > { %v5856_v9 = vmax.f32 %v5824_v27, 0.0  ;;  %v5857_v28 = vmax.f32 %v5825_v42, 0.0  ;;  %v5858_v17 = vmax.f32 %v5826_v58, 0.0  ;;  %v733_v14 = vrot.slane %v611_v18, 1 }
 0x308   : > { %v735_v37 = vrot.slane %v612_v45, 1  ;;  %v5892_v7 = vsel %vm5879_vm4, %v5855_v46, -inf  ;;  %v732_v16 = vsel %vm669_vm0, %v730_v0, %v731_v1  ;;  %v736_v6 = vrot.slane %v613_v61, 1 }
 0x309   : > { %v5895_v57 = vsel %vm5879_vm4, %v5856_v9, -inf  ;;  %v5893_v49 = vsel %vm5879_vm4, %v5857_v28, -inf  ;;  %v5896_v11 = vsel %vm5879_vm4, %v5858_v17, -inf  ;;  %v734_v55 = vsel %vm669_vm0, %v731_v1, %v733_v14 }
 0x30a   : > { %v738_v10 = vrot.slane %v614_v25, 1  ;;  %v5894_v35 = vmax.f32 %v5892_v7, %v5893_v49  ;;  %v5897_v21 = vmax.f32 %v5895_v57, %v5896_v11  ;;  %v737_v44 = vsel %vm669_vm0, %v735_v37, %v736_v6  ;;  %v9631_v7 = vld [vmem:[%s10705_s1 + $0x3] ss:$0 sm:$0xff] }
 0x30b   : > { %v806_v24 = vadd.f32 %v732_v16, %v448_v63  ;;  %v807_v36 = vadd.f32 %v734_v55, %v449_v48  ;;  %v808_v34 = vadd.f32 %v737_v44, %v450_v20  ;;  %v855_v29 = vmul.f32 %v9611_v47, %v11055_v32 }
 0x30c   : > { %v739_v60 = vsel %vm669_vm0, %v736_v6, %v738_v10  ;;  %v5950_v27 = vrot.slane %v5894_v35, 1  ;;  %v5951_v18 = vrot.slane %v5897_v21, 1  ;;  %v856_v42 = vmul.f32 %v9611_v47, %v11056_v3 }
 0x30d   : > { %v809_v45 = vadd.f32 %v739_v60, %v451_v12  ;;  %v857_v63 = vmul.f32 %v9611_v47, %v11059_v39  ;;  %v858_v48 = vmul.f32 %v9611_v47, %v11057_v15  ;;  %v859_v20 = vmul.f32 %v9611_v47, %v11058_v22 }
 0x30e   : > { %v860_v58 = vmul.f32 %v9611_v47, %v11060_v41  ;;  %v5952_v61 = vsel %vm669_vm0, %v5950_v27, %v5951_v18  ;;  %v5994_v25 = vsel %vm669_vm0, %v5951_v18, %v5950_v27  ;;  %v976_v12 = vrot.slane %v855_v29, 2 }
 0x30f   : > { %v977_v46 = vrot.slane %v856_v42, 2  ;;  %v6004_v9 = vmax.f32 %v5894_v35, %v5952_v61  ;;  %v6005_v0 = vmax.f32 %v5897_v21, %v5994_v25  ;;  %v979_v1 = vrot.slane %v857_v63, 2 }
 0x310   : > { %v981_v28 = vrot.slane %v858_v48, 2  ;;  %v982_v14 = vrot.slane %v859_v20, 2  ;;  %v984_v37 = vrot.slane %v860_v58, 2  ;;  %v1101_v57 = vmul.f32 %v9631_v7, %v11055_v32  ;;  %v9652_v20 = vld [vmem:[%s10705_s1 + $0x4] ss:$0 sm:$0xff] }
 0x311   : > { %v978_v17 = vsel %vm915_vm2, %v976_v12, %v977_v46  ;;  %v6018_v16 = vpack.c.bf16 %v6005_v0, %v6004_v9  ;;  %v980_v6 = vsel %vm915_vm2, %v977_v46, %v979_v1  ;;  %v1102_v11 = vmul.f32 %v9631_v7, %v11056_v3 }
 0x312   : > { %v1052_v49 = vadd.f32 %v978_v17, %v806_v24  ;;  %v983_v55 = vsel %vm915_vm2, %v981_v28, %v982_v14  ;;  %v985_v10 = vsel %vm915_vm2, %v982_v14, %v984_v37  ;;  %v1053_v35 = vadd.f32 %v980_v6, %v807_v36 }
 0x313   : > { %v1103_v21 = vmul.f32 %v9631_v7, %v11059_v39  ;;  %6394 = vmatprep.mubr.msk.bf16.mxu0 %vm5879_vm4, %v6018_v16  ;;  %v1054_v44 = vadd.f32 %v983_v55, %v808_v34  ;;  %v1055_v60 = vadd.f32 %v985_v10, %v809_v45  ;;  %v1104_v29 = vmul.f32 %v9631_v7, %v11057_v15 }
 0x314   : > { %v1105_v24 = vmul.f32 %v9631_v7, %v11058_v22  ;;  %v1106_v27 = vmul.f32 %v9631_v7, %v11060_v41  ;;  %v1222_v18 = vrot.slane %v1101_v57, 3  ;;  %v1223_v42 = vrot.slane %v1102_v11, 3  ;;  %v9673_v11 = vld [vmem:[%s10705_s1 + $0x5] ss:$0 sm:$0xff] }
 0x315   : > { %v1225_v63 = vrot.slane %v1103_v21, 3  ;;  %v1227_v36 = vrot.slane %v1104_v29, 3  ;;  %v1347_v34 = vmul.f32 %v9652_v20, %v11055_v32  ;;  %v1348_v45 = vmul.f32 %v9652_v20, %v11056_v3 }
 0x316   : > { %v1228_v48 = vrot.slane %v1105_v24, 3  ;;  %v1224_v58 = vsel %vm1161_vm3, %v1222_v18, %v1223_v42  ;;  %v1230_v25 = vrot.slane %v1106_v27, 3  ;;  %v1349_v12 = vmul.f32 %v9652_v20, %v11059_v39 }
 0x317   : > { %v1226_v61 = vsel %vm1161_vm3, %v1223_v42, %v1225_v63  ;;  %v1298_v9 = vadd.f32 %v1224_v58, %v1052_v49  ;;  %v1350_v1 = vmul.f32 %v9652_v20, %v11057_v15  ;;  %v1351_v3 = vmul.f32 %v9652_v20, %v11058_v22 }
 0x318   : > { %v1229_v46 = vsel %vm1161_vm3, %v1227_v36, %v1228_v48  ;;  %v1299_v0 = vadd.f32 %v1226_v61, %v1053_v35  ;;  %v1231_v32 = vsel %vm1161_vm3, %v1228_v48, %v1230_v25  ;;  %v1352_v17 = vmul.f32 %v9652_v20, %v11060_v41  ;;  %v9690_v36 = vld [vmem:[%s10705_s1 + $0x6] ss:$0 sm:$0xff] }
 0x319   : > { %v1300_v28 = vadd.f32 %v1229_v46, %v1054_v44  ;;  %v1301_v14 = vadd.f32 %v1231_v32, %v1055_v60  ;;  %v1468_v37 = vrot.slane %v1347_v34, 4  ;;  %v1469_v57 = vrot.slane %v1348_v45, 4 }
 0x31a   : > { %v1471_v39 = vrot.slane %v1349_v12, 4  ;;  %v1473_v16 = vrot.slane %v1350_v1, 4  ;;  %v1474_v6 = vrot.slane %v1351_v3, 4  ;;  %v1476_v49 = vrot.slane %v1352_v17, 4 }
 0x31b   : > { %v1591_v55 = vmul.f32 %v9673_v11, %v11057_v15  ;;  %v1470_v10 = vsel %vm1407_vm1, %v1468_v37, %v1469_v57  ;;  %v1592_v21 = vmul.f32 %v9673_v11, %v11058_v22  ;;  %v1593_v44 = vmul.f32 %v9673_v11, %v11037_v53 }
 0x31c   : > { %v1472_v35 = vsel %vm1407_vm1, %v1469_v57, %v1471_v39  ;;  %v1475_v60 = vsel %vm1407_vm1, %v1473_v16, %v1474_v6  ;;  %v1477_v29 = vsel %vm1407_vm1, %v1474_v6, %v1476_v49  ;;  %v1544_v24 = vadd.f32 %v1470_v10, %v1298_v9 }
 0x31d   : > { %v1545_v27 = vadd.f32 %v1472_v35, %v1299_v0  ;;  %v1546_v18 = vadd.f32 %v1475_v60, %v1300_v28  ;;  %v1547_v42 = vadd.f32 %v1477_v29, %v1301_v14  ;;  %v1594_v63 = vmul.f32 %v9673_v11, %v11038_v50  ;;  %v9707_v14 = vld [vmem:[%s10705_s1 + $0x7] ss:$0 sm:$0xff] }
 0x31e   : > { %v1677_v48 = vmul.f32 %v9690_v36, %v11057_v15  ;;  %v1623_v34 = vadd.f32 %v1591_v55, %v1544_v24  ;;  %v1678_v58 = vmul.f32 %v9690_v36, %v11058_v22  ;;  %v1679_v61 = vmul.f32 %v9690_v36, %v11060_v41 }
 0x31f   : > { %v1624_v45 = vadd.f32 %v1592_v21, %v1545_v27  ;;  %v1625_v25 = vadd.f32 %v1593_v44, %v1546_v18  ;;  %v1626_v12 = vadd.f32 %v1594_v63, %v1547_v42  ;;  %v1680_v46 = vmul.f32 %v9690_v36, %v11037_v53 }
 0x320   : > { %v1681_v9 = vmul.f32 %v9690_v36, %v11038_v50  ;;  %v1682_v0 = vmul.f32 %v9690_v36, %v11039_v59  ;;  %v1797_v1 = vrot.slane %v1677_v48, 1  ;;  %v1798_v32 = vrot.slane %v1678_v58, 1 }
 0x321   : > { %v1800_v28 = vrot.slane %v1679_v61, 1  ;;  %v1802_v3 = vrot.slane %v1680_v46, 1  ;;  %v1922_v37 = vmul.f32 %v9707_v14, %v11057_v15  ;;  %v1923_v57 = vmul.f32 %v9707_v14, %v11058_v22 }
 0x322   : > { %v1803_v17 = vrot.slane %v1681_v9, 1  ;;  %v1799_v39 = vsel %vm669_vm0, %v1797_v1, %v1798_v32  ;;  %v1805_v6 = vrot.slane %v1682_v0, 1  ;;  %v1924_v49 = vmul.f32 %v9707_v14, %v11060_v41 }
 0x323   : > { %v1801_v16 = vsel %vm669_vm0, %v1798_v32, %v1800_v28  ;;  %v1873_v10 = vadd.f32 %v1799_v39, %v1623_v34  ;;  %v1925_v21 = vmul.f32 %v9707_v14, %v11037_v53  ;;  %v1926_v29 = vmul.f32 %v9707_v14, %v11038_v50 }
 0x324   : > { %v1804_v55 = vsel %vm669_vm0, %v1802_v3, %v1803_v17  ;;  %v1874_v35 = vadd.f32 %v1801_v16, %v1624_v45  ;;  %v1806_v44 = vsel %vm669_vm0, %v1803_v17, %v1805_v6  ;;  %v1927_v24 = vmul.f32 %v9707_v14, %v11039_v59 }
 0x325   : > { %v1875_v60 = vadd.f32 %v1804_v55, %v1625_v25  ;;  %v1876_v27 = vadd.f32 %v1806_v44, %v1626_v12  ;;  %v2042_v18 = vrot.slane %v1922_v37, 2  ;;  %v2043_v42 = vrot.slane %v1923_v57, 2 }
 0x326   : > { %v2045_v63 = vrot.slane %v1924_v49, 2  ;;  %v2047_v48 = vrot.slane %v1925_v21, 2  ;;  %v2048_v58 = vrot.slane %v1926_v29, 2  ;;  %v2050_v34 = vrot.slane %v1927_v24, 2 }
 0x327   : > { %v2167_v45 = vmul.f32 %v9297_v23, %v11057_v15  ;;  %v2044_v61 = vsel %vm915_vm2, %v2042_v18, %v2043_v42  ;;  %v2168_v46 = vmul.f32 %v9297_v23, %v11058_v22  ;;  %v2169_v9 = vmul.f32 %v9297_v23, %v11060_v41 }
 0x328   : > { %v2046_v25 = vsel %vm915_vm2, %v2043_v42, %v2045_v63  ;;  %v2049_v12 = vsel %vm915_vm2, %v2047_v48, %v2048_v58  ;;  %v2051_v0 = vsel %vm915_vm2, %v2048_v58, %v2050_v34  ;;  %v2118_v1 = vadd.f32 %v2044_v61, %v1873_v10 }
 0x329   : > { %v2119_v32 = vadd.f32 %v2046_v25, %v1874_v35  ;;  %v2120_v28 = vadd.f32 %v2049_v12, %v1875_v60  ;;  %v2121_v3 = vadd.f32 %v2051_v0, %v1876_v27  ;;  %v2170_v17 = vmul.f32 %v9297_v23, %v11037_v53 }
 0x32a   : > { %v2171_v37 = vmul.f32 %v9297_v23, %v11038_v50  ;;  %v2172_v57 = vmul.f32 %v9297_v23, %v11039_v59  ;;  %v2287_v39 = vrot.slane %v2167_v45, 3  ;;  %v2288_v16 = vrot.slane %v2168_v46, 3  ;;  %v9760_v46 = vld [vmem:[%s10705_s1 + $0xa] ss:$0 sm:$0xff] }
 0x32b   : > { %v2290_v6 = vrot.slane %v2169_v9, 3  ;;  %v2292_v49 = vrot.slane %v2170_v17, 3  ;;  %v2412_v10 = vmul.f32 %v9318_v40, %v11057_v15  ;;  %v2413_v35 = vmul.f32 %v9318_v40, %v11058_v22 }
 0x32c   : > { %v2293_v55 = vrot.slane %v2171_v37, 3  ;;  %v2289_v21 = vsel %vm1161_vm3, %v2287_v39, %v2288_v16  ;;  %v2295_v60 = vrot.slane %v2172_v57, 3  ;;  %v2414_v29 = vmul.f32 %v9318_v40, %v11060_v41 }
 0x32d   : > { %v2291_v44 = vsel %vm1161_vm3, %v2288_v16, %v2290_v6  ;;  %v2363_v24 = vadd.f32 %v2289_v21, %v2118_v1  ;;  %v2415_v18 = vmul.f32 %v9318_v40, %v11037_v53  ;;  %v2416_v22 = vmul.f32 %v9318_v40, %v11038_v50  ;;  %v11061_v1 = vld [vmem:[#allocation41_spill] sm:$0xff]  ;;  %v11062_v16 = vld [vmem:[#allocation36_spill] sm:$0xff] }
 0x32e   : > { %v2294_v23 = vsel %vm1161_vm3, %v2292_v49, %v2293_v55  ;;  %v2364_v27 = vadd.f32 %v2291_v44, %v2119_v32  ;;  %v2296_v15 = vsel %vm1161_vm3, %v2293_v55, %v2295_v60  ;;  %v2417_v63 = vmul.f32 %v9318_v40, %v11039_v59 }
 0x32f   : > { %v2365_v42 = vadd.f32 %v2294_v23, %v2120_v28  ;;  %v2366_v48 = vadd.f32 %v2296_v15, %v2121_v3  ;;  %v2532_v58 = vrot.slane %v2412_v10, 4  ;;  %v2533_v34 = vrot.slane %v2413_v35, 4 }
 0x330   : > { %v2535_v41 = vrot.slane %v2414_v29, 4  ;;  %v2537_v45 = vrot.slane %v2415_v18, 4  ;;  %v2538_v61 = vrot.slane %v2416_v22, 4  ;;  %v2540_v25 = vrot.slane %v2417_v63, 4  ;;  %v9789_v63 = vld [vmem:[%s10705_s1 + $0xc] ss:$0 sm:$0xff] }
 0x331   : > { %v2655_v9 = vmul.f32 %v9760_v46, %v11037_v53  ;;  %v2534_v12 = vsel %vm1407_vm1, %v2532_v58, %v2533_v34  ;;  %v2656_v40 = vmul.f32 %v9760_v46, %v11038_v50  ;;  %v2657_v32 = vmul.f32 %v9760_v46, %v11061_v1 }
 0x332   : > { %v2536_v0 = vsel %vm1407_vm1, %v2533_v34, %v2535_v41  ;;  %v2539_v28 = vsel %vm1407_vm1, %v2537_v45, %v2538_v61  ;;  %v2541_v3 = vsel %vm1407_vm1, %v2538_v61, %v2540_v25  ;;  %v2608_v17 = vadd.f32 %v2534_v12, %v2363_v24 }
 0x333   : > { %v2609_v37 = vadd.f32 %v2536_v0, %v2364_v27  ;;  %v2610_v57 = vadd.f32 %v2539_v28, %v2365_v42  ;;  %v2611_v39 = vadd.f32 %v2541_v3, %v2366_v48  ;;  %v2658_v6 = vmul.f32 %v9760_v46, %v11062_v16 }
 0x334   : > { %v2741_v49 = vmul.f32 %v9351_v33, %v11037_v53  ;;  %v2687_v55 = vadd.f32 %v2655_v9, %v2608_v17  ;;  %v2742_v35 = vmul.f32 %v9351_v33, %v11038_v50  ;;  %v2743_v21 = vmul.f32 %v9351_v33, %v11039_v59 }
 0x335   : > { %v2688_v10 = vadd.f32 %v2656_v40, %v2609_v37  ;;  %v2689_v44 = vadd.f32 %v2657_v32, %v2610_v57  ;;  %v2690_v60 = vadd.f32 %v2658_v6, %v2611_v39  ;;  %v2744_v29 = vmul.f32 %v9351_v33, %v11061_v1 }
 0x336   : > { %v2745_v23 = vmul.f32 %v9351_v33, %v11062_v16  ;;  %v2746_v24 = vmul.f32 %v9351_v33, %v11045_v54  ;;  %v2861_v27 = vrot.slane %v2741_v49, 1  ;;  %v2862_v18 = vrot.slane %v2742_v35, 1 }
 0x337   : > { %v2864_v15 = vrot.slane %v2743_v21, 1  ;;  %v2866_v42 = vrot.slane %v2744_v29, 1  ;;  %v2986_v48 = vmul.f32 %v9789_v63, %v11037_v53  ;;  %v2987_v58 = vmul.f32 %v9789_v63, %v11038_v50 }
 0x338   : > { %v2867_v22 = vrot.slane %v2745_v23, 1  ;;  %v2863_v34 = vsel %vm669_vm0, %v2861_v27, %v2862_v18  ;;  %v2869_v41 = vrot.slane %v2746_v24, 1  ;;  %v2988_v45 = vmul.f32 %v9789_v63, %v11039_v59 }
 0x339   : > { %v2865_v33 = vsel %vm669_vm0, %v2862_v18, %v2864_v15  ;;  %v2937_v25 = vadd.f32 %v2863_v34, %v2687_v55  ;;  %v2989_v12 = vmul.f32 %v9789_v63, %v11061_v1  ;;  %v2990_v32 = vmul.f32 %v9789_v63, %v11062_v16  ;;  %v9810_v55 = vld [vmem:[%s10705_s1 + $0xd] ss:$0 sm:$0xff] }
 0x33a   : > { %v2868_v61 = vsel %vm669_vm0, %v2866_v42, %v2867_v22  ;;  %v2938_v9 = vadd.f32 %v2865_v33, %v2688_v10  ;;  %v2870_v0 = vsel %vm669_vm0, %v2867_v22, %v2869_v41  ;;  %v2991_v28 = vmul.f32 %v9789_v63, %v11045_v54 }
 0x33b   : > { %v2939_v40 = vadd.f32 %v2868_v61, %v2689_v44  ;;  %v2940_v3 = vadd.f32 %v2870_v0, %v2690_v60  ;;  %v3106_v17 = vrot.slane %v2986_v48, 2  ;;  %v3107_v37 = vrot.slane %v2987_v58, 2  ;;  %v9831_v61 = vld [vmem:[%s10705_s1 + $0xe] ss:$0 sm:$0xff] }
 0x33c   : > { %v3109_v57 = vrot.slane %v2988_v45, 2  ;;  %v3111_v39 = vrot.slane %v2989_v12, 2  ;;  %v3112_v6 = vrot.slane %v2990_v32, 2  ;;  %v3114_v49 = vrot.slane %v2991_v28, 2 }
 0x33d   : > { %v3231_v10 = vmul.f32 %v9810_v55, %v11037_v53  ;;  %v3108_v35 = vsel %vm915_vm2, %v3106_v17, %v3107_v37  ;;  %v3232_v44 = vmul.f32 %v9810_v55, %v11038_v50  ;;  %v3233_v60 = vmul.f32 %v9810_v55, %v11039_v59 }
 0x33e   : > { %v3110_v21 = vsel %vm915_vm2, %v3107_v37, %v3109_v57  ;;  %v3113_v29 = vsel %vm915_vm2, %v3111_v39, %v3112_v6  ;;  %v3115_v23 = vsel %vm915_vm2, %v3112_v6, %v3114_v49  ;;  %v3182_v24 = vadd.f32 %v3108_v35, %v2937_v25 }
 0x33f   : > { %v3183_v27 = vadd.f32 %v3110_v21, %v2938_v9  ;;  %v3184_v18 = vadd.f32 %v3113_v29, %v2939_v40  ;;  %v3185_v15 = vadd.f32 %v3115_v23, %v2940_v3  ;;  %v3234_v42 = vmul.f32 %v9810_v55, %v11061_v1 }
 0x340   : > { %v3235_v22 = vmul.f32 %v9810_v55, %v11062_v16  ;;  %v3236_v48 = vmul.f32 %v9810_v55, %v11045_v54  ;;  %v3351_v58 = vrot.slane %v3231_v10, 3  ;;  %v3352_v34 = vrot.slane %v3232_v44, 3 }
 0x341   : > { %v3354_v33 = vrot.slane %v3233_v60, 3  ;;  %v3356_v41 = vrot.slane %v3234_v42, 3  ;;  %v3476_v25 = vmul.f32 %v9831_v61, %v11037_v53  ;;  %v3477_v9 = vmul.f32 %v9831_v61, %v11038_v50 }
 0x342   : > { %v3357_v45 = vrot.slane %v3235_v22, 3  ;;  %v3353_v12 = vsel %vm1161_vm3, %v3351_v58, %v3352_v34  ;;  %v3359_v40 = vrot.slane %v3236_v48, 3  ;;  %v3478_v32 = vmul.f32 %v9831_v61, %v11039_v59  ;;  %v11063_v22 = vld [vmem:[#allocation47_spill] sm:$0xff] }
 0x343   : > { %v3355_v0 = vsel %vm1161_vm3, %v3352_v34, %v3354_v33  ;;  %v3427_v3 = vadd.f32 %v3353_v12, %v3182_v24  ;;  %v3479_v37 = vmul.f32 %v9831_v61, %v11061_v1  ;;  %v3480_v6 = vmul.f32 %v9831_v61, %v11062_v16  ;;  %v9852_v24 = vld [vmem:[%s10705_s1 + $0xf] ss:$0 sm:$0xff] }
 0x344   : > { %v3358_v28 = vsel %vm1161_vm3, %v3356_v41, %v3357_v45  ;;  %v3428_v17 = vadd.f32 %v3355_v0, %v3183_v27  ;;  %v3360_v57 = vsel %vm1161_vm3, %v3357_v45, %v3359_v40  ;;  %v3481_v49 = vmul.f32 %v9831_v61, %v11045_v54  ;;  %v9869_v0 = vld [vmem:[%s10705_s1 + $0x10] ss:$0 sm:$0xff] }
 0x345   : > { %v3429_v39 = vadd.f32 %v3358_v28, %v3184_v18  ;;  %v3430_v10 = vadd.f32 %v3360_v57, %v3185_v15  ;;  %v3596_v35 = vrot.slane %v3476_v25, 4  ;;  %v3597_v21 = vrot.slane %v3477_v9, 4  ;;  %v11064_v9 = vld [vmem:[#allocation42_spill] sm:$0xff] }
 0x346   : > { %v3599_v44 = vrot.slane %v3478_v32, 4  ;;  %v3601_v60 = vrot.slane %v3479_v37, 4  ;;  %v3602_v29 = vrot.slane %v3480_v6, 4  ;;  %v3604_v23 = vrot.slane %v3481_v49, 4  ;;  %v11065_v49 = vld [vmem:[#allocation49_spill] sm:$0xff] }
 0x347   : > { %v3719_v27 = vmul.f32 %v9852_v24, %v11061_v1  ;;  %v3598_v18 = vsel %vm1407_vm1, %v3596_v35, %v3597_v21  ;;  %v3720_v15 = vmul.f32 %v9852_v24, %v11062_v16  ;;  %v3721_v48 = vmul.f32 %v9852_v24, %v11063_v22 }
 0x348   : > { %v3600_v42 = vsel %vm1407_vm1, %v3597_v21, %v3599_v44  ;;  %v3603_v58 = vsel %vm1407_vm1, %v3601_v60, %v3602_v29  ;;  %v3605_v34 = vsel %vm1407_vm1, %v3602_v29, %v3604_v23  ;;  %v3672_v33 = vadd.f32 %v3598_v18, %v3427_v3  ;;  %v9886_v23 = vld [vmem:[%s10705_s1 + $0x11] ss:$0 sm:$0xff] }
 0x349   : > { %v3673_v41 = vadd.f32 %v3600_v42, %v3428_v17  ;;  %v3674_v45 = vadd.f32 %v3603_v58, %v3429_v39  ;;  %v3675_v25 = vadd.f32 %v3605_v34, %v3430_v10  ;;  %v3722_v12 = vmul.f32 %v9852_v24, %v11064_v9 }
 0x34a   : > { %v3805_v40 = vmul.f32 %v9869_v0, %v11061_v1  ;;  %v3751_v32 = vadd.f32 %v3719_v27, %v3672_v33  ;;  %v3806_v37 = vmul.f32 %v9869_v0, %v11062_v16  ;;  %v3807_v3 = vmul.f32 %v9869_v0, %v11045_v54 }
 0x34b   : > { %v3752_v28 = vadd.f32 %v3720_v15, %v3673_v41  ;;  %v3753_v17 = vadd.f32 %v3721_v48, %v3674_v45  ;;  %v3754_v57 = vadd.f32 %v3722_v12, %v3675_v25  ;;  %v3808_v39 = vmul.f32 %v9869_v0, %v11063_v22 }
 0x34c   : > { %v3809_v6 = vmul.f32 %v9869_v0, %v11064_v9  ;;  %v3810_v10 = vmul.f32 %v9869_v0, %v11065_v49  ;;  %v3925_v35 = vrot.slane %v3805_v40, 1  ;;  %v3926_v21 = vrot.slane %v3806_v37, 1 }
 0x34d   : > { %v3928_v44 = vrot.slane %v3807_v3, 1  ;;  %v3930_v60 = vrot.slane %v3808_v39, 1  ;;  %v4050_v27 = vmul.f32 %v9886_v23, %v11061_v1  ;;  %v4051_v18 = vmul.f32 %v9886_v23, %v11062_v16 }
 0x34e   : > { %v3931_v29 = vrot.slane %v3809_v6, 1  ;;  %v3927_v42 = vsel %vm669_vm0, %v3925_v35, %v3926_v21  ;;  %v3933_v48 = vrot.slane %v3810_v10, 1  ;;  %v4052_v58 = vmul.f32 %v9886_v23, %v11045_v54 }
 0x34f   : > { %v3929_v15 = vsel %vm669_vm0, %v3926_v21, %v3928_v44  ;;  %v4001_v33 = vadd.f32 %v3927_v42, %v3751_v32  ;;  %v4053_v45 = vmul.f32 %v9886_v23, %v11063_v22  ;;  %v4054_v40 = vmul.f32 %v9886_v23, %v11064_v9 }
 0x350   : > { %v3932_v34 = vsel %vm669_vm0, %v3930_v60, %v3931_v29  ;;  %v4002_v41 = vadd.f32 %v3929_v15, %v3752_v28  ;;  %v3934_v25 = vsel %vm669_vm0, %v3931_v29, %v3933_v48  ;;  %v4055_v37 = vmul.f32 %v9886_v23, %v11065_v49  ;;  %v9907_v28 = vld [vmem:[%s10705_s1 + $0x12] ss:$0 sm:$0xff] }
 0x351   : > { %v4003_v12 = vadd.f32 %v3932_v34, %v3753_v17  ;;  %v4004_v3 = vadd.f32 %v3934_v25, %v3754_v57  ;;  %v4170_v39 = vrot.slane %v4050_v27, 2  ;;  %v4171_v6 = vrot.slane %v4051_v18, 2 }
 0x352   : > { %v4173_v10 = vrot.slane %v4052_v58, 2  ;;  %v4175_v35 = vrot.slane %v4053_v45, 2  ;;  %v4176_v21 = vrot.slane %v4054_v40, 2  ;;  %v4178_v32 = vrot.slane %v4055_v37, 2 }
 0x353   : > { %v4295_v17 = vmul.f32 %v9907_v28, %v11061_v1  ;;  %v4172_v44 = vsel %vm915_vm2, %v4170_v39, %v4171_v6  ;;  %v4296_v57 = vmul.f32 %v9907_v28, %v11062_v16  ;;  %v4297_v29 = vmul.f32 %v9907_v28, %v11045_v54 }
 0x354   : > { %v4174_v60 = vsel %vm915_vm2, %v4171_v6, %v4173_v10  ;;  %v4177_v27 = vsel %vm915_vm2, %v4175_v35, %v4176_v21  ;;  %v4179_v18 = vsel %vm915_vm2, %v4176_v21, %v4178_v32  ;;  %v4246_v42 = vadd.f32 %v4172_v44, %v4001_v33  ;;  %v9928_v33 = vld [vmem:[%s10705_s1 + $0x13] ss:$0 sm:$0xff] }
 0x355   : > { %v4247_v15 = vadd.f32 %v4174_v60, %v4002_v41  ;;  %v4248_v48 = vadd.f32 %v4177_v27, %v4003_v12  ;;  %v4249_v58 = vadd.f32 %v4179_v18, %v4004_v3  ;;  %v4298_v34 = vmul.f32 %v9907_v28, %v11063_v22 }
 0x356   : > { %v4299_v45 = vmul.f32 %v9907_v28, %v11064_v9  ;;  %v4300_v25 = vmul.f32 %v9907_v28, %v11065_v49  ;;  %v4415_v40 = vrot.slane %v4295_v17, 3  ;;  %v4416_v37 = vrot.slane %v4296_v57, 3 }
 0x357   : > { %v4418_v39 = vrot.slane %v4297_v29, 3  ;;  %v4420_v6 = vrot.slane %v4298_v34, 3  ;;  %v4540_v41 = vmul.f32 %v9928_v33, %v11061_v1  ;;  %v4541_v12 = vmul.f32 %v9928_v33, %v11062_v16 }
 0x358   : > { %v4421_v10 = vrot.slane %v4299_v45, 3  ;;  %v4417_v3 = vsel %vm1161_vm3, %v4415_v40, %v4416_v37  ;;  %v4423_v21 = vrot.slane %v4300_v25, 3  ;;  %v4542_v32 = vmul.f32 %v9928_v33, %v11045_v54 }
 0x359   : > { %v4419_v35 = vsel %vm1161_vm3, %v4416_v37, %v4418_v39  ;;  %v4491_v44 = vadd.f32 %v4417_v3, %v4246_v42  ;;  %v4543_v57 = vmul.f32 %v9928_v33, %v11063_v22  ;;  %v4544_v18 = vmul.f32 %v9928_v33, %v11064_v9 }
 0x35a   : > { %v4422_v17 = vsel %vm1161_vm3, %v4420_v6, %v4421_v10  ;;  %v4492_v60 = vadd.f32 %v4419_v35, %v4247_v15  ;;  %v4424_v29 = vsel %vm1161_vm3, %v4421_v10, %v4423_v21  ;;  %v4545_v34 = vmul.f32 %v9928_v33, %v11065_v49  ;;  %v9949_v15 = vld [vmem:[%s10705_s1 + $0x14] ss:$0 sm:$0xff] }
 0x35b   : > { %v4493_v27 = vadd.f32 %v4422_v17, %v4248_v48  ;;  %v4494_v45 = vadd.f32 %v4424_v29, %v4249_v58  ;;  %v4660_v25 = vrot.slane %v4540_v41, 4  ;;  %v4661_v40 = vrot.slane %v4541_v12, 4  ;;  %v11066_v41 = vld [vmem:[#allocation44_spill] sm:$0xff] }
 0x35c   : > { %v4663_v37 = vrot.slane %v4542_v32, 4  ;;  %v4665_v39 = vrot.slane %v4543_v57, 4  ;;  %v4666_v6 = vrot.slane %v4544_v18, 4  ;;  %v4668_v42 = vrot.slane %v4545_v34, 4  ;;  %v11067_v18 = vld [vmem:[#allocation55_spill] sm:$0xff] }
 0x35d   : > { %v4783_v48 = vmul.f32 %v9949_v15, %v11063_v22  ;;  %v4662_v10 = vsel %vm1407_vm1, %v4660_v25, %v4661_v40  ;;  %v4784_v58 = vmul.f32 %v9949_v15, %v11064_v9  ;;  %v4785_v12 = vmul.f32 %v9949_v15, %v11066_v41  ;;  %v9966_v25 = vld [vmem:[%s10705_s1 + $0x15] ss:$0 sm:$0xff] }
 0x35e   : > { %v4664_v3 = vsel %vm1407_vm1, %v4661_v40, %v4663_v37  ;;  %v4667_v35 = vsel %vm1407_vm1, %v4665_v39, %v4666_v6  ;;  %v4669_v21 = vsel %vm1407_vm1, %v4666_v6, %v4668_v42  ;;  %v4736_v32 = vadd.f32 %v4662_v10, %v4491_v44  ;;  %v11068_v42 = vld [vmem:[#allocation46_spill] sm:$0xff] }
 0x35f   : > { %v4737_v17 = vadd.f32 %v4664_v3, %v4492_v60  ;;  %v4738_v57 = vadd.f32 %v4667_v35, %v4493_v27  ;;  %v4739_v29 = vadd.f32 %v4669_v21, %v4494_v45  ;;  %v4786_v34 = vmul.f32 %v9949_v15, %v11067_v18 }
 0x360   : > { %v4869_v40 = vmul.f32 %v9966_v25, %v11063_v22  ;;  %v4815_v37 = vadd.f32 %v4783_v48, %v4736_v32  ;;  %v4870_v39 = vmul.f32 %v9966_v25, %v11064_v9  ;;  %v4871_v44 = vmul.f32 %v9966_v25, %v11065_v49  ;;  %v9983_v32 = vld [vmem:[%s10705_s1 + $0x16] ss:$0 sm:$0xff] }
 0x361   : > { %v4816_v54 = vadd.f32 %v4784_v58, %v4737_v17  ;;  %v4817_v60 = vadd.f32 %v4785_v12, %v4738_v57  ;;  %v4818_v27 = vadd.f32 %v4786_v34, %v4739_v29  ;;  %v4872_v45 = vmul.f32 %v9966_v25, %v11066_v41  ;;  %11069 = vst [vmem:[#allocation52_spill] sm:$0xff] %v9983_v32 }
 0x362   : > { %v4873_v6 = vmul.f32 %v9966_v25, %v11067_v18  ;;  %v4874_v10 = vmul.f32 %v9966_v25, %v11068_v42  ;;  %v4989_v3 = vrot.slane %v4869_v40, 1  ;;  %v4990_v48 = vrot.slane %v4870_v39, 1 }
 0x363   : > { %v4992_v58 = vrot.slane %v4871_v44, 1  ;;  %v4994_v35 = vrot.slane %v4872_v45, 1  ;;  %v5114_v12 = vmul.f32 %v9983_v32, %v11063_v22  ;;  %v5115_v17 = vmul.f32 %v9983_v32, %v11064_v9 }
 0x364   : > { %v4995_v21 = vrot.slane %v4873_v6, 1  ;;  %v4991_v57 = vsel %vm669_vm0, %v4989_v3, %v4990_v48  ;;  %v4997_v34 = vrot.slane %v4874_v10, 1  ;;  %v5116_v40 = vmul.f32 %v9983_v32, %v11065_v49 }
 0x365   : > { %v4993_v29 = vsel %vm669_vm0, %v4990_v48, %v4992_v58  ;;  %v5065_v44 = vadd.f32 %v4991_v57, %v4815_v37  ;;  %v5117_v6 = vmul.f32 %v9983_v32, %v11066_v41  ;;  %v5118_v59 = vmul.f32 %v9983_v32, %v11067_v18 }
 0x366   : > { %v4996_v39 = vsel %vm669_vm0, %v4994_v35, %v4995_v21  ;;  %v5066_v45 = vadd.f32 %v4993_v29, %v4816_v54  ;;  %v4998_v16 = vsel %vm669_vm0, %v4995_v21, %v4997_v34  ;;  %v5119_v3 = vmul.f32 %v9983_v32, %v11068_v42  ;;  %v10004_v54 = vld [vmem:[%s10705_s1 + $0x17] ss:$0 sm:$0xff] }
 0x367   : > { %v5067_v1 = vadd.f32 %v4996_v39, %v4817_v60  ;;  %v5068_v10 = vadd.f32 %v4998_v16, %v4818_v27  ;;  %v5234_v48 = vrot.slane %v5114_v12, 2  ;;  %v5235_v58 = vrot.slane %v5115_v17, 2 }
 0x368   : > { %v5237_v50 = vrot.slane %v5116_v40, 2  ;;  %v5239_v53 = vrot.slane %v5117_v6, 2  ;;  %v5240_v35 = vrot.slane %v5118_v59, 2  ;;  %v5242_v37 = vrot.slane %v5119_v3, 2 }
 0x369   : > { %v5359_v60 = vmul.f32 %v10004_v54, %v11063_v22  ;;  %v5236_v21 = vsel %vm915_vm2, %v5234_v48, %v5235_v58  ;;  %v5360_v16 = vmul.f32 %v10004_v54, %v11064_v9  ;;  %v5361_v27 = vmul.f32 %v10004_v54, %v11065_v49 }
 0x36a   : > { %v5238_v57 = vsel %vm915_vm2, %v5235_v58, %v5237_v50  ;;  %v5241_v59 = vsel %vm915_vm2, %v5239_v53, %v5240_v35  ;;  %v5243_v12 = vsel %vm915_vm2, %v5240_v35, %v5242_v37  ;;  %v5310_v17 = vadd.f32 %v5236_v21, %v5065_v44  ;;  %v10025_v44 = vld [vmem:[%s10705_s1 + $0x18] ss:$0 sm:$0xff] }
 0x36b   : > { %v5311_v29 = vadd.f32 %v5238_v57, %v5066_v45  ;;  %v5312_v34 = vadd.f32 %v5241_v59, %v5067_v1  ;;  %v5313_v40 = vadd.f32 %v5243_v12, %v5068_v10  ;;  %v5362_v39 = vmul.f32 %v10004_v54, %v11066_v41 }
 0x36c   : > { %v5363_v50 = vmul.f32 %v10004_v54, %v11067_v18  ;;  %v5364_v6 = vmul.f32 %v10004_v54, %v11068_v42  ;;  %v5479_v3 = vrot.slane %v5359_v60, 3  ;;  %v5480_v48 = vrot.slane %v5360_v16, 3 }
 0x36d   : > { %v5482_v58 = vrot.slane %v5361_v27, 3  ;;  %v5484_v32 = vrot.slane %v5362_v39, 3  ;;  %v5604_v1 = vmul.f32 %v10025_v44, %v11063_v22  ;;  %v5605_v45 = vmul.f32 %v10025_v44, %v11064_v9 }
 0x36e   : > { %v5485_v53 = vrot.slane %v5363_v50, 3  ;;  %v5481_v10 = vsel %vm1161_vm3, %v5479_v3, %v5480_v48  ;;  %v5487_v37 = vrot.slane %v5364_v6, 3  ;;  %v5606_v60 = vmul.f32 %v10025_v44, %v11065_v49 }
 0x36f   : > { %v5483_v35 = vsel %vm1161_vm3, %v5480_v48, %v5482_v58  ;;  %v5555_v57 = vadd.f32 %v5481_v10, %v5310_v17  ;;  %v5607_v27 = vmul.f32 %v10025_v44, %v11066_v41  ;;  %v5608_v39 = vmul.f32 %v10025_v44, %v11067_v18 }
 0x370   : > { %v5486_v21 = vsel %vm1161_vm3, %v5484_v32, %v5485_v53  ;;  %v5556_v16 = vadd.f32 %v5483_v35, %v5311_v29  ;;  %v5488_v59 = vsel %vm1161_vm3, %v5485_v53, %v5487_v37  ;;  %v5609_v50 = vmul.f32 %v10025_v44, %v11068_v42 }
 0x371   : > { %v5557_v12 = vadd.f32 %v5486_v21, %v5312_v34  ;;  %v5558_v6 = vadd.f32 %v5488_v59, %v5313_v40  ;;  %v5724_v3 = vrot.slane %v5604_v1, 4  ;;  %v5725_v48 = vrot.slane %v5605_v45, 4 }
 0x372   : > { %v5727_v58 = vrot.slane %v5606_v60, 4  ;;  %v5729_v49 = vrot.slane %v5607_v27, 4  ;;  %v5730_v32 = vrot.slane %v5608_v39, 4  ;;  %v5732_v17 = vrot.slane %v5609_v50, 4 }
 0x373   : > { %v436_v29 = vmul.f32 %v9560_v56, %v11018_v26  ;;  %v5726_v10 = vsel %vm1407_vm1, %v5724_v3, %v5725_v48  ;;  %v437_v53 = vmul.f32 %v9560_v56, %v11019_v62  ;;  %v438_v35 = vmul.f32 %v9560_v56, %v11022_v31 }
 0x374   : > { %v5728_v34 = vsel %vm1407_vm1, %v5725_v48, %v5727_v58  ;;  %v5731_v40 = vsel %vm1407_vm1, %v5729_v49, %v5730_v32  ;;  %v5733_v1 = vsel %vm1407_vm1, %v5730_v32, %v5732_v17  ;;  %v5800_v45 = vadd.f32 %v5726_v10, %v5555_v57 }
 0x375   : > { %v5801_v37 = vadd.f32 %v5728_v34, %v5556_v16  ;;  %v5802_v60 = vadd.f32 %v5731_v40, %v5557_v12  ;;  %v5803_v21 = vadd.f32 %v5733_v1, %v5558_v6  ;;  %v439_v27 = vmul.f32 %v9560_v56, %v11023_v4 }
 0x376   : > { %v591_v59 = vmul.f32 %v9577_v30, %v11018_v26  ;;  %v5839_v39 = vadd.f32 %v9586_v38, %v5800_v45  ;;  %v592_v3 = vmul.f32 %v9577_v30, %v11019_v62  ;;  %v593_v49 = vmul.f32 %v9577_v30, %v11021_v2 }
 0x377   : > { %v5840_v50 = vadd.f32 %v9586_v38, %v5801_v37  ;;  %v5841_v57 = vadd.f32 %v9586_v38, %v5802_v60  ;;  %v5842_v16 = vadd.f32 %v9586_v38, %v5803_v21  ;;  %v594_v56 = vmul.f32 %v9577_v30, %v11022_v31 }
 0x378   : > { %v595_v12 = vmul.f32 %v9577_v30, %v11023_v4  ;;  %v5871_v6 = vmax.f32 %v5839_v39, 0.0  ;;  %v596_v58 = vmul.f32 %v9577_v30, %v11024_v51  ;;  %v700_v32 = vrot.slane %v591_v59, 1 }
 0x379   : > { %v5872_v48 = vmax.f32 %v5840_v50, 0.0  ;;  %v5873_v17 = vmax.f32 %v5841_v57, 0.0  ;;  %v5874_v10 = vmax.f32 %v5842_v16, 0.0  ;;  %v701_v34 = vrot.slane %v592_v3, 1 }
 0x37a   : > { %v703_v40 = vrot.slane %v593_v49, 1  ;;  %v5916_v1 = vsel %vm5879_vm4, %v5871_v6, -inf  ;;  %v705_v45 = vrot.slane %v594_v56, 1  ;;  %v706_v37 = vrot.slane %v595_v12, 1 }
 0x37b   : > { %v5919_v38 = vsel %vm5879_vm4, %v5872_v48, -inf  ;;  %v5917_v60 = vsel %vm5879_vm4, %v5873_v17, -inf  ;;  %v5920_v21 = vsel %vm5879_vm4, %v5874_v10, -inf  ;;  %v702_v39 = vsel %vm669_vm0, %v700_v32, %v701_v34 }
 0x37c   : > { %v704_v50 = vsel %vm669_vm0, %v701_v34, %v703_v40  ;;  %v5918_v30 = vmax.f32 %v5916_v1, %v5917_v60  ;;  %v5921_v59 = vmax.f32 %v5919_v38, %v5920_v21  ;;  %v707_v57 = vsel %vm669_vm0, %v705_v45, %v706_v37 }
 0x37d   : > { %v708_v3 = vrot.slane %v596_v58, 1  ;;  %v794_v49 = vadd.f32 %v702_v39, %v436_v29  ;;  %v795_v16 = vadd.f32 %v704_v50, %v437_v53  ;;  %v796_v6 = vadd.f32 %v707_v57, %v438_v35 }
 0x37e   : > { %v837_v56 = vmul.f32 %v9611_v47, %v11018_v26  ;;  %v5962_v12 = vrot.slane %v5918_v30, 1  ;;  %v5963_v48 = vrot.slane %v5921_v59, 1  ;;  %v838_v32 = vmul.f32 %v9611_v47, %v11019_v62 }
 0x37f   : > { %v709_v17 = vsel %vm669_vm0, %v706_v37, %v708_v3  ;;  %v839_v34 = vmul.f32 %v9611_v47, %v11021_v2  ;;  %v840_v58 = vmul.f32 %v9611_v47, %v11022_v31  ;;  %v841_v29 = vmul.f32 %v9611_v47, %v11023_v4 }
 0x380   : > { %v797_v10 = vadd.f32 %v709_v17, %v439_v27  ;;  %v5964_v53 = vsel %vm669_vm0, %v5962_v12, %v5963_v48  ;;  %v5998_v35 = vsel %vm669_vm0, %v5963_v48, %v5962_v12  ;;  %v842_v40 = vmul.f32 %v9611_v47, %v11024_v51 }
 0x381   : > { %v946_v1 = vrot.slane %v837_v56, 2  ;;  %v6012_v38 = vmax.f32 %v5918_v30, %v5964_v53  ;;  %v6013_v45 = vmax.f32 %v5921_v59, %v5998_v35  ;;  %v947_v27 = vrot.slane %v838_v32, 2 }
 0x382   : > { %v949_v37 = vrot.slane %v839_v34, 2  ;;  %v951_v60 = vrot.slane %v840_v58, 2  ;;  %v952_v21 = vrot.slane %v841_v29, 2  ;;  %v954_v39 = vrot.slane %v842_v40, 2 }
 0x383   : > { %v1083_v50 = vmul.f32 %v9631_v7, %v11018_v26  ;;  %v6022_v57 = vpack.c.bf16 %v6013_v45, %v6012_v38  ;;  %v948_v3 = vsel %vm915_vm2, %v946_v1, %v947_v27  ;;  %v1084_v12 = vmul.f32 %v9631_v7, %v11019_v62 }
 0x384   : > { %v950_v17 = vsel %vm915_vm2, %v947_v27, %v949_v37  ;;  %v953_v47 = vsel %vm915_vm2, %v951_v60, %v952_v21  ;;  %v955_v30 = vsel %vm915_vm2, %v952_v21, %v954_v39  ;;  %v1040_v59 = vadd.f32 %v948_v3, %v794_v49 }
 0x385   : > { %v1041_v56 = vadd.f32 %v950_v17, %v795_v16  ;;  %6402 = vmatprep.mubr.msk.bf16.mxu1 %vm5879_vm4, %v6022_v57  ;;  %v1042_v48 = vadd.f32 %v953_v47, %v796_v6  ;;  %v1043_v32 = vadd.f32 %v955_v30, %v797_v10  ;;  %v1085_v34 = vmul.f32 %v9631_v7, %v11021_v2 }
 0x386   : > { %v1086_v58 = vmul.f32 %v9631_v7, %v11022_v31  ;;  %v1087_v29 = vmul.f32 %v9631_v7, %v11023_v4  ;;  %v1088_v53 = vmul.f32 %v9631_v7, %v11024_v51  ;;  %v1192_v35 = vrot.slane %v1083_v50, 3 }
 0x387   : > { %v1193_v40 = vrot.slane %v1084_v12, 3  ;;  %v1195_v49 = vrot.slane %v1085_v34, 3  ;;  %v1329_v6 = vmul.f32 %v9652_v20, %v11018_v26  ;;  %v1330_v10 = vmul.f32 %v9652_v20, %v11019_v62 }
 0x388   : > { %v1197_v16 = vrot.slane %v1086_v58, 3  ;;  %v1198_v38 = vrot.slane %v1087_v29, 3  ;;  %v1200_v45 = vrot.slane %v1088_v53, 3  ;;  %v1331_v27 = vmul.f32 %v9652_v20, %v11021_v2 }
 0x389   : > { %v1194_v1 = vsel %vm1161_vm3, %v1192_v35, %v1193_v40  ;;  %v1196_v37 = vsel %vm1161_vm3, %v1193_v40, %v1195_v49  ;;  %v1332_v60 = vmul.f32 %v9652_v20, %v11022_v31  ;;  %v1333_v21 = vmul.f32 %v9652_v20, %v11023_v4 }
 0x38a   : > { %v1286_v7 = vadd.f32 %v1194_v1, %v1040_v59  ;;  %v1199_v26 = vsel %vm1161_vm3, %v1197_v16, %v1198_v38  ;;  %v1201_v62 = vsel %vm1161_vm3, %v1198_v38, %v1200_v45  ;;  %v1287_v39 = vadd.f32 %v1196_v37, %v1041_v56 }
 0x38b   : > { %v1334_v50 = vmul.f32 %v9652_v20, %v11024_v51  ;;  %v1288_v57 = vadd.f32 %v1199_v26, %v1042_v48  ;;  %v1289_v3 = vadd.f32 %v1201_v62, %v1043_v32  ;;  %v1438_v2 = vrot.slane %v1329_v6, 4 }
 0x38c   : > { %v1439_v17 = vrot.slane %v1330_v10, 4  ;;  %v1441_v12 = vrot.slane %v1331_v27, 4  ;;  %v1443_v47 = vrot.slane %v1332_v60, 4  ;;  %v1444_v30 = vrot.slane %v1333_v21, 4 }
 0x38d   : > { %v1446_v59 = vrot.slane %v1334_v50, 4  ;;  %v1579_v58 = vmul.f32 %v9673_v11, %v11022_v31  ;;  %v1580_v29 = vmul.f32 %v9673_v11, %v11023_v4  ;;  %v1581_v56 = vmul.f32 %v9673_v11, %v11046_v52 }
 0x38e   : > { %v1440_v34 = vsel %vm1407_vm1, %v1438_v2, %v1439_v17  ;;  %v1442_v20 = vsel %vm1407_vm1, %v1439_v17, %v1441_v12  ;;  %v1445_v48 = vsel %vm1407_vm1, %v1443_v47, %v1444_v30  ;;  %v1582_v16 = vmul.f32 %v9673_v11, %v11047_v8 }
 0x38f   : > { %v1447_v32 = vsel %vm1407_vm1, %v1444_v30, %v1446_v59  ;;  %v1532_v53 = vadd.f32 %v1440_v34, %v1286_v7  ;;  %v1533_v35 = vadd.f32 %v1442_v20, %v1287_v39  ;;  %v1534_v40 = vadd.f32 %v1445_v48, %v1288_v57 }
 0x390   : > { %v1535_v49 = vadd.f32 %v1447_v32, %v1289_v3  ;;  %v1659_v10 = vmul.f32 %v9690_v36, %v11022_v31  ;;  %v1660_v1 = vmul.f32 %v9690_v36, %v11023_v4  ;;  %v1661_v38 = vmul.f32 %v9690_v36, %v11024_v51 }
 0x391   : > { %v1611_v6 = vadd.f32 %v1579_v58, %v1532_v53  ;;  %v1612_v45 = vadd.f32 %v1580_v29, %v1533_v35  ;;  %v1613_v27 = vadd.f32 %v1581_v56, %v1534_v40  ;;  %v1662_v7 = vmul.f32 %v9690_v36, %v11046_v52 }
 0x392   : > { %v1614_v37 = vadd.f32 %v1582_v16, %v1535_v49  ;;  %v1663_v60 = vmul.f32 %v9690_v36, %v11047_v8  ;;  %v1664_v11 = vmul.f32 %v9690_v36, %v11048_v5  ;;  %v1767_v21 = vrot.slane %v1659_v10, 1  ;;  %v10170_v10 = vld [vmem:[%s10705_s1 + $0x8] ss:$0 sm:$0xff] }
 0x393   : > { %v1768_v26 = vrot.slane %v1660_v1, 1  ;;  %v1770_v62 = vrot.slane %v1661_v38, 1  ;;  %v1772_v39 = vrot.slane %v1662_v7, 1  ;;  %v1904_v50 = vmul.f32 %v9707_v14, %v11022_v31 }
 0x394   : > { %v1905_v57 = vmul.f32 %v9707_v14, %v11023_v4  ;;  %v1773_v2 = vrot.slane %v1663_v60, 1  ;;  %v1775_v17 = vrot.slane %v1664_v11, 1  ;;  %v1906_v12 = vmul.f32 %v9707_v14, %v11024_v51 }
 0x395   : > { %v1769_v3 = vsel %vm669_vm0, %v1767_v21, %v1768_v26  ;;  %v1771_v47 = vsel %vm669_vm0, %v1768_v26, %v1770_v62  ;;  %v1907_v30 = vmul.f32 %v9707_v14, %v11046_v52  ;;  %v1908_v59 = vmul.f32 %v9707_v14, %v11047_v8 }
 0x396   : > { %v1861_v36 = vadd.f32 %v1769_v3, %v1611_v6  ;;  %v1774_v34 = vsel %vm669_vm0, %v1772_v39, %v1773_v2  ;;  %v1776_v58 = vsel %vm669_vm0, %v1773_v2, %v1775_v17  ;;  %v1862_v29 = vadd.f32 %v1771_v47, %v1612_v45  ;;  %v10190_v17 = vld [vmem:[%s10705_s1 + $0x9] ss:$0 sm:$0xff] }
 0x397   : > { %v1909_v56 = vmul.f32 %v9707_v14, %v11048_v5  ;;  %v1863_v20 = vadd.f32 %v1774_v34, %v1613_v27  ;;  %v1864_v48 = vadd.f32 %v1776_v58, %v1614_v37  ;;  %v2012_v32 = vrot.slane %v1904_v50, 2 }
 0x398   : > { %v2013_v53 = vrot.slane %v1905_v57, 2  ;;  %v2015_v35 = vrot.slane %v1906_v12, 2  ;;  %v2017_v40 = vrot.slane %v1907_v30, 2  ;;  %v2018_v49 = vrot.slane %v1908_v59, 2 }
 0x399   : > { %v2020_v16 = vrot.slane %v1909_v56, 2  ;;  %v2149_v1 = vmul.f32 %v10170_v10, %v11022_v31  ;;  %v2150_v14 = vmul.f32 %v10170_v10, %v11023_v4  ;;  %v2151_v38 = vmul.f32 %v10170_v10, %v11024_v51 }
 0x39a   : > { %v2014_v6 = vsel %vm915_vm2, %v2012_v32, %v2013_v53  ;;  %v2016_v45 = vsel %vm915_vm2, %v2013_v53, %v2015_v35  ;;  %v2019_v27 = vsel %vm915_vm2, %v2017_v40, %v2018_v49  ;;  %v2152_v26 = vmul.f32 %v10170_v10, %v11046_v52 }
 0x39b   : > { %v2021_v37 = vsel %vm915_vm2, %v2018_v49, %v2020_v16  ;;  %v2106_v7 = vadd.f32 %v2014_v6, %v1861_v36  ;;  %v2107_v60 = vadd.f32 %v2016_v45, %v1862_v29  ;;  %v2108_v11 = vadd.f32 %v2019_v27, %v1863_v20 }
 0x39c   : > { %v2109_v21 = vadd.f32 %v2021_v37, %v1864_v48  ;;  %v2153_v62 = vmul.f32 %v10170_v10, %v11047_v8  ;;  %v2154_v39 = vmul.f32 %v10170_v10, %v11048_v5  ;;  %v2257_v50 = vrot.slane %v2149_v1, 3 }
 0x39d   : > { %v2258_v57 = vrot.slane %v2150_v14, 3  ;;  %v2260_v3 = vrot.slane %v2151_v38, 3  ;;  %v2262_v2 = vrot.slane %v2152_v26, 3  ;;  %v2394_v12 = vmul.f32 %v10190_v17, %v11022_v31 }
 0x39e   : > { %v2395_v47 = vmul.f32 %v10190_v17, %v11023_v4  ;;  %v2263_v30 = vrot.slane %v2153_v62, 3  ;;  %v2265_v59 = vrot.slane %v2154_v39, 3  ;;  %v2396_v34 = vmul.f32 %v10190_v17, %v11024_v51 }
 0x39f   : > { %v2259_v36 = vsel %vm1161_vm3, %v2257_v50, %v2258_v57  ;;  %v2261_v58 = vsel %vm1161_vm3, %v2258_v57, %v2260_v3  ;;  %v2397_v56 = vmul.f32 %v10190_v17, %v11046_v52  ;;  %v2398_v20 = vmul.f32 %v10190_v17, %v11047_v8  ;;  %v10223_v57 = vld [vmem:[%s10705_s1 + $0xb] ss:$0 sm:$0xff] }
 0x3a0   : > { %v2351_v29 = vadd.f32 %v2259_v36, %v2106_v7  ;;  %v2264_v31 = vsel %vm1161_vm3, %v2262_v2, %v2263_v30  ;;  %v2266_v4 = vsel %vm1161_vm3, %v2263_v30, %v2265_v59  ;;  %v2352_v48 = vadd.f32 %v2261_v58, %v2107_v60 }
 0x3a1   : > { %v2399_v32 = vmul.f32 %v10190_v17, %v11048_v5  ;;  %v2353_v53 = vadd.f32 %v2264_v31, %v2108_v11  ;;  %v2354_v35 = vadd.f32 %v2266_v4, %v2109_v21  ;;  %v2502_v51 = vrot.slane %v2394_v12, 4 }
 0x3a2   : > { %v2503_v40 = vrot.slane %v2395_v47, 4  ;;  %v2505_v49 = vrot.slane %v2396_v34, 4  ;;  %v2507_v16 = vrot.slane %v2397_v56, 4  ;;  %v2508_v6 = vrot.slane %v2398_v20, 4 }
 0x3a3   : > { %v2510_v1 = vrot.slane %v2399_v32, 4  ;;  %v2643_v38 = vmul.f32 %v9760_v46, %v11046_v52  ;;  %v2644_v45 = vmul.f32 %v9760_v46, %v11047_v8  ;;  %v2645_v27 = vmul.f32 %v9760_v46, %v11051_v43 }
 0x3a4   : > { %v2504_v14 = vsel %vm1407_vm1, %v2502_v51, %v2503_v40  ;;  %v2506_v37 = vsel %vm1407_vm1, %v2503_v40, %v2505_v49  ;;  %v2509_v7 = vsel %vm1407_vm1, %v2507_v16, %v2508_v6  ;;  %v2646_v39 = vmul.f32 %v9760_v46, %v11052_v13 }
 0x3a5   : > { %v2511_v60 = vsel %vm1407_vm1, %v2508_v6, %v2510_v1  ;;  %v2596_v11 = vadd.f32 %v2504_v14, %v2351_v29  ;;  %v2597_v21 = vadd.f32 %v2506_v37, %v2352_v48  ;;  %v2598_v26 = vadd.f32 %v2509_v7, %v2353_v53 }
 0x3a6   : > { %v2599_v62 = vadd.f32 %v2511_v60, %v2354_v35  ;;  %v2723_v3 = vmul.f32 %v10223_v57, %v11046_v52  ;;  %v2724_v2 = vmul.f32 %v10223_v57, %v11047_v8  ;;  %v2725_v12 = vmul.f32 %v10223_v57, %v11048_v5 }
 0x3a7   : > { %v2675_v50 = vadd.f32 %v2643_v38, %v2596_v11  ;;  %v2676_v47 = vadd.f32 %v2644_v45, %v2597_v21  ;;  %v2677_v36 = vadd.f32 %v2645_v27, %v2598_v26  ;;  %v2726_v46 = vmul.f32 %v10223_v57, %v11051_v43 }
 0x3a8   : > { %v2678_v30 = vadd.f32 %v2646_v39, %v2599_v62  ;;  %v2727_v59 = vmul.f32 %v10223_v57, %v11052_v13  ;;  %v2728_v34 = vmul.f32 %v10223_v57, %v11054_v19  ;;  %v2831_v58 = vrot.slane %v2723_v3, 1 }
 0x3a9   : > { %v2832_v29 = vrot.slane %v2724_v2, 1  ;;  %v2834_v56 = vrot.slane %v2725_v12, 1  ;;  %v2836_v20 = vrot.slane %v2726_v46, 1  ;;  %v2968_v31 = vmul.f32 %v9789_v63, %v11046_v52 }
 0x3aa   : > { %v2969_v4 = vmul.f32 %v9789_v63, %v11047_v8  ;;  %v2837_v32 = vrot.slane %v2727_v59, 1  ;;  %v2839_v53 = vrot.slane %v2728_v34, 1  ;;  %v2970_v35 = vmul.f32 %v9789_v63, %v11048_v5 }
 0x3ab   : > { %v2833_v48 = vsel %vm669_vm0, %v2831_v58, %v2832_v29  ;;  %v2835_v51 = vsel %vm669_vm0, %v2832_v29, %v2834_v56  ;;  %v2971_v49 = vmul.f32 %v9789_v63, %v11051_v43  ;;  %v2972_v16 = vmul.f32 %v9789_v63, %v11052_v13 }
 0x3ac   : > { %v2925_v40 = vadd.f32 %v2833_v48, %v2675_v50  ;;  %v2838_v6 = vsel %vm669_vm0, %v2836_v20, %v2837_v32  ;;  %v2840_v1 = vsel %vm669_vm0, %v2837_v32, %v2839_v53  ;;  %v2926_v14 = vadd.f32 %v2835_v51, %v2676_v47 }
 0x3ad   : > { %v2973_v38 = vmul.f32 %v9789_v63, %v11054_v19  ;;  %v2927_v45 = vadd.f32 %v2838_v6, %v2677_v36  ;;  %v2928_v27 = vadd.f32 %v2840_v1, %v2678_v30  ;;  %v3076_v37 = vrot.slane %v2968_v31, 2 }
 0x3ae   : > { %v3077_v7 = vrot.slane %v2969_v4, 2  ;;  %v3079_v60 = vrot.slane %v2970_v35, 2  ;;  %v3081_v11 = vrot.slane %v2971_v49, 2  ;;  %v3082_v21 = vrot.slane %v2972_v16, 2 }
 0x3af   : > { %v3084_v26 = vrot.slane %v2973_v38, 2  ;;  %v3213_v39 = vmul.f32 %v9810_v55, %v11046_v52  ;;  %v3214_v50 = vmul.f32 %v9810_v55, %v11047_v8  ;;  %v3215_v3 = vmul.f32 %v9810_v55, %v11048_v5 }
 0x3b0   : > { %v3078_v62 = vsel %vm915_vm2, %v3076_v37, %v3077_v7  ;;  %v3080_v63 = vsel %vm915_vm2, %v3077_v7, %v3079_v60  ;;  %v3083_v2 = vsel %vm915_vm2, %v3081_v11, %v3082_v21  ;;  %v3216_v59 = vmul.f32 %v9810_v55, %v11051_v43 }
 0x3b1   : > { %v3085_v12 = vsel %vm915_vm2, %v3082_v21, %v3084_v26  ;;  %v3170_v47 = vadd.f32 %v3078_v62, %v2925_v40  ;;  %v3171_v36 = vadd.f32 %v3080_v63, %v2926_v14  ;;  %v3172_v30 = vadd.f32 %v3083_v2, %v2927_v45  ;;  %v11070_v62 = vld [vmem:[#allocation11_spill] sm:$0xff] }
 0x3b2   : > { %v3173_v46 = vadd.f32 %v3085_v12, %v2928_v27  ;;  %v3217_v34 = vmul.f32 %v9810_v55, %v11052_v13  ;;  %v3218_v58 = vmul.f32 %v9810_v55, %v11054_v19  ;;  %v3321_v29 = vrot.slane %v3213_v39, 3 }
 0x3b3   : > { %v3322_v56 = vrot.slane %v3214_v50, 3  ;;  %v3324_v20 = vrot.slane %v3215_v3, 3  ;;  %v3326_v31 = vrot.slane %v3216_v59, 3  ;;  %v3458_v4 = vmul.f32 %v9831_v61, %v11046_v52 }
 0x3b4   : > { %v3459_v48 = vmul.f32 %v9831_v61, %v11047_v8  ;;  %v3327_v53 = vrot.slane %v3217_v34, 3  ;;  %v3329_v35 = vrot.slane %v3218_v58, 3  ;;  %v3460_v51 = vmul.f32 %v9831_v61, %v11048_v5 }
 0x3b5   : > { %v3323_v32 = vsel %vm1161_vm3, %v3321_v29, %v3322_v56  ;;  %v3325_v40 = vsel %vm1161_vm3, %v3322_v56, %v3324_v20  ;;  %v3461_v49 = vmul.f32 %v9831_v61, %v11051_v43  ;;  %v3462_v16 = vmul.f32 %v9831_v61, %v11052_v13 }
 0x3b6   : > { %v3415_v55 = vadd.f32 %v3323_v32, %v3170_v47  ;;  %v3328_v52 = vsel %vm1161_vm3, %v3326_v31, %v3327_v53  ;;  %v3330_v8 = vsel %vm1161_vm3, %v3327_v53, %v3329_v35  ;;  %v3416_v6 = vadd.f32 %v3325_v40, %v3171_v36  ;;  %v11071_v36 = vld [vmem:[#allocation10_spill] sm:$0xff] }
 0x3b7   : > { %v3463_v1 = vmul.f32 %v9831_v61, %v11054_v19  ;;  %v3417_v14 = vadd.f32 %v3328_v52, %v3172_v30  ;;  %v3418_v38 = vadd.f32 %v3330_v8, %v3173_v46  ;;  %v3566_v5 = vrot.slane %v3458_v4, 4 }
 0x3b8   : > { %v3567_v45 = vrot.slane %v3459_v48, 4  ;;  %v3569_v27 = vrot.slane %v3460_v51, 4  ;;  %v3571_v37 = vrot.slane %v3461_v49, 4  ;;  %v3572_v7 = vrot.slane %v3462_v16, 4 }
 0x3b9   : > { %v3574_v60 = vrot.slane %v3463_v1, 4  ;;  %v3707_v21 = vmul.f32 %v9852_v24, %v11051_v43  ;;  %v3708_v26 = vmul.f32 %v9852_v24, %v11052_v13  ;;  %v3709_v39 = vmul.f32 %v9852_v24, %v11070_v62 }
 0x3ba   : > { %v3568_v11 = vsel %vm1407_vm1, %v3566_v5, %v3567_v45  ;;  %v3570_v61 = vsel %vm1407_vm1, %v3567_v45, %v3569_v27  ;;  %v3573_v50 = vsel %vm1407_vm1, %v3571_v37, %v3572_v7  ;;  %v3710_v30 = vmul.f32 %v9852_v24, %v11071_v36  ;;  %v11072_v24 = vld [vmem:[#allocation17_spill] sm:$0xff] }
 0x3bb   : > { %v3575_v3 = vsel %vm1407_vm1, %v3572_v7, %v3574_v60  ;;  %v3660_v63 = vadd.f32 %v3568_v11, %v3415_v55  ;;  %v3661_v2 = vadd.f32 %v3570_v61, %v3416_v6  ;;  %v3662_v12 = vadd.f32 %v3573_v50, %v3417_v14 }
 0x3bc   : > { %v3663_v47 = vadd.f32 %v3575_v3, %v3418_v38  ;;  %v3787_v59 = vmul.f32 %v9869_v0, %v11051_v43  ;;  %v3788_v34 = vmul.f32 %v9869_v0, %v11052_v13  ;;  %v3789_v58 = vmul.f32 %v9869_v0, %v11054_v19 }
 0x3bd   : > { %v3739_v46 = vadd.f32 %v3707_v21, %v3660_v63  ;;  %v3740_v29 = vadd.f32 %v3708_v26, %v3661_v2  ;;  %v3741_v56 = vadd.f32 %v3709_v39, %v3662_v12  ;;  %v3790_v31 = vmul.f32 %v9869_v0, %v11070_v62 }
 0x3be   : > { %v3742_v20 = vadd.f32 %v3710_v30, %v3663_v47  ;;  %v3791_v4 = vmul.f32 %v9869_v0, %v11071_v36  ;;  %v3792_v48 = vmul.f32 %v9869_v0, %v11072_v24  ;;  %v3895_v32 = vrot.slane %v3787_v59, 1 }
 0x3bf   : > { %v3896_v53 = vrot.slane %v3788_v34, 1  ;;  %v3898_v35 = vrot.slane %v3789_v58, 1  ;;  %v3900_v51 = vrot.slane %v3790_v31, 1  ;;  %v4032_v40 = vmul.f32 %v9886_v23, %v11051_v43 }
 0x3c0   : > { %v4033_v55 = vmul.f32 %v9886_v23, %v11052_v13  ;;  %v3901_v16 = vrot.slane %v3791_v4, 1  ;;  %v3903_v52 = vrot.slane %v3792_v48, 1  ;;  %v4034_v8 = vmul.f32 %v9886_v23, %v11054_v19 }
 0x3c1   : > { %v3897_v49 = vsel %vm669_vm0, %v3895_v32, %v3896_v53  ;;  %v3899_v6 = vsel %vm669_vm0, %v3896_v53, %v3898_v35  ;;  %v4035_v1 = vmul.f32 %v9886_v23, %v11070_v62  ;;  %v4036_v14 = vmul.f32 %v9886_v23, %v11071_v36 }
 0x3c2   : > { %v3989_v0 = vadd.f32 %v3897_v49, %v3739_v46  ;;  %v3902_v38 = vsel %vm669_vm0, %v3900_v51, %v3901_v16  ;;  %v3904_v5 = vsel %vm669_vm0, %v3901_v16, %v3903_v52  ;;  %v3990_v45 = vadd.f32 %v3899_v6, %v3740_v29 }
 0x3c3   : > { %v4037_v27 = vmul.f32 %v9886_v23, %v11072_v24  ;;  %v3991_v37 = vadd.f32 %v3902_v38, %v3741_v56  ;;  %v3992_v7 = vadd.f32 %v3904_v5, %v3742_v20  ;;  %v4140_v60 = vrot.slane %v4032_v40, 2 }
 0x3c4   : > { %v4141_v11 = vrot.slane %v4033_v55, 2  ;;  %v4143_v21 = vrot.slane %v4034_v8, 2  ;;  %v4145_v26 = vrot.slane %v4035_v1, 2  ;;  %v4146_v39 = vrot.slane %v4036_v14, 2 }
 0x3c5   : > { %v4148_v61 = vrot.slane %v4037_v27, 2  ;;  %v4277_v3 = vmul.f32 %v9907_v28, %v11051_v43  ;;  %v4278_v63 = vmul.f32 %v9907_v28, %v11052_v13  ;;  %v4279_v2 = vmul.f32 %v9907_v28, %v11054_v19 }
 0x3c6   : > { %v4142_v50 = vsel %vm915_vm2, %v4140_v60, %v4141_v11  ;;  %v4144_v23 = vsel %vm915_vm2, %v4141_v11, %v4143_v21  ;;  %v4147_v12 = vsel %vm915_vm2, %v4145_v26, %v4146_v39  ;;  %v4280_v58 = vmul.f32 %v9907_v28, %v11070_v62  ;;  %v11073_v11 = vld [vmem:[#allocation12_spill] sm:$0xff] }
 0x3c7   : > { %v4149_v47 = vsel %vm915_vm2, %v4146_v39, %v4148_v61  ;;  %v4234_v30 = vadd.f32 %v4142_v50, %v3989_v0  ;;  %v4235_v46 = vadd.f32 %v4144_v23, %v3990_v45  ;;  %v4236_v59 = vadd.f32 %v4147_v12, %v3991_v37 }
 0x3c8   : > { %v4237_v34 = vadd.f32 %v4149_v47, %v3992_v7  ;;  %v4281_v29 = vmul.f32 %v9907_v28, %v11071_v36  ;;  %v4282_v56 = vmul.f32 %v9907_v28, %v11072_v24  ;;  %v4385_v20 = vrot.slane %v4277_v3, 3 }
 0x3c9   : > { %v4386_v31 = vrot.slane %v4278_v63, 3  ;;  %v4388_v4 = vrot.slane %v4279_v2, 3  ;;  %v4390_v48 = vrot.slane %v4280_v58, 3  ;;  %v4522_v32 = vmul.f32 %v9928_v33, %v11051_v43  ;;  %v11074_v2 = vld [vmem:[#allocation13_spill] sm:$0xff] }
 0x3ca   : > { %v4523_v53 = vmul.f32 %v9928_v33, %v11052_v13  ;;  %v4391_v51 = vrot.slane %v4281_v29, 3  ;;  %v4393_v40 = vrot.slane %v4282_v56, 3  ;;  %v4524_v55 = vmul.f32 %v9928_v33, %v11054_v19 }
 0x3cb   : > { %v4387_v35 = vsel %vm1161_vm3, %v4385_v20, %v4386_v31  ;;  %v4389_v49 = vsel %vm1161_vm3, %v4386_v31, %v4388_v4  ;;  %v4525_v16 = vmul.f32 %v9928_v33, %v11070_v62  ;;  %v4526_v52 = vmul.f32 %v9928_v33, %v11071_v36 }
 0x3cc   : > { %v4479_v28 = vadd.f32 %v4387_v35, %v4234_v30  ;;  %v4392_v43 = vsel %vm1161_vm3, %v4390_v48, %v4391_v51  ;;  %v4394_v13 = vsel %vm1161_vm3, %v4391_v51, %v4393_v40  ;;  %v4480_v8 = vadd.f32 %v4389_v49, %v4235_v46 }
 0x3cd   : > { %v4527_v6 = vmul.f32 %v9928_v33, %v11072_v24  ;;  %v4481_v0 = vadd.f32 %v4392_v43, %v4236_v59  ;;  %v4482_v1 = vadd.f32 %v4394_v13, %v4237_v34  ;;  %v4630_v19 = vrot.slane %v4522_v32, 4 }
 0x3ce   : > { %v4631_v14 = vrot.slane %v4523_v53, 4  ;;  %v4633_v38 = vrot.slane %v4524_v55, 4  ;;  %v4635_v5 = vrot.slane %v4525_v16, 4  ;;  %v4636_v45 = vrot.slane %v4526_v52, 4  ;;  %v11076_v53 = vld [vmem:[#allocation52_spill] sm:$0xff] }
 0x3cf   : > { %v4638_v27 = vrot.slane %v4527_v6, 4  ;;  %v4771_v7 = vmul.f32 %v9949_v15, %v11070_v62  ;;  %v4772_v60 = vmul.f32 %v9949_v15, %v11071_v36  ;;  %v4773_v21 = vmul.f32 %v9949_v15, %v11073_v11 }
 0x3d0   : > { %v4632_v37 = vsel %vm1407_vm1, %v4630_v19, %v4631_v14  ;;  %v4634_v33 = vsel %vm1407_vm1, %v4631_v14, %v4633_v38  ;;  %v4637_v26 = vsel %vm1407_vm1, %v4635_v5, %v4636_v45  ;;  %v4774_v23 = vmul.f32 %v9949_v15, %v11074_v2  ;;  %v11075_v15 = vld [vmem:[#allocation21_spill] sm:$0xff] }
 0x3d1   : > { %v4639_v39 = vsel %vm1407_vm1, %v4636_v45, %v4638_v27  ;;  %v4724_v61 = vadd.f32 %v4632_v37, %v4479_v28  ;;  %v4725_v50 = vadd.f32 %v4634_v33, %v4480_v8  ;;  %v4726_v3 = vadd.f32 %v4637_v26, %v4481_v0 }
 0x3d2   : > { %v4727_v63 = vadd.f32 %v4639_v39, %v4482_v1  ;;  %v4851_v47 = vmul.f32 %v9966_v25, %v11070_v62  ;;  %v4852_v30 = vmul.f32 %v9966_v25, %v11071_v36  ;;  %v4853_v46 = vmul.f32 %v9966_v25, %v11072_v24 }
 0x3d3   : > { %v4803_v12 = vadd.f32 %v4771_v7, %v4724_v61  ;;  %v4804_v59 = vadd.f32 %v4772_v60, %v4725_v50  ;;  %v4805_v34 = vadd.f32 %v4773_v21, %v4726_v3  ;;  %v4854_v29 = vmul.f32 %v9966_v25, %v11073_v11 }
 0x3d4   : > { %v4806_v58 = vadd.f32 %v4774_v23, %v4727_v63  ;;  %v4855_v56 = vmul.f32 %v9966_v25, %v11074_v2  ;;  %v4856_v20 = vmul.f32 %v9966_v25, %v11075_v15  ;;  %v4959_v31 = vrot.slane %v4851_v47, 1 }
 0x3d5   : > { %v4960_v4 = vrot.slane %v4852_v30, 1  ;;  %v4962_v48 = vrot.slane %v4853_v46, 1  ;;  %v4964_v32 = vrot.slane %v4854_v29, 1  ;;  %v5096_v35 = vmul.f32 %v11076_v53, %v11070_v62 }
 0x3d6   : > { %v5097_v51 = vmul.f32 %v11076_v53, %v11071_v36  ;;  %v4965_v55 = vrot.slane %v4855_v56, 1  ;;  %v4967_v49 = vrot.slane %v4856_v20, 1  ;;  %v5098_v28 = vmul.f32 %v11076_v53, %v11072_v24 }
 0x3d7   : > { %v4961_v40 = vsel %vm669_vm0, %v4959_v31, %v4960_v4  ;;  %v4963_v16 = vsel %vm669_vm0, %v4960_v4, %v4962_v48  ;;  %v5099_v52 = vmul.f32 %v11076_v53, %v11073_v11  ;;  %v5100_v43 = vmul.f32 %v11076_v53, %v11074_v2 }
 0x3d8   : > { %v5053_v25 = vadd.f32 %v4961_v40, %v4803_v12  ;;  %v4966_v13 = vsel %vm669_vm0, %v4964_v32, %v4965_v55  ;;  %v4968_v8 = vsel %vm669_vm0, %v4965_v55, %v4967_v49  ;;  %v5054_v6 = vadd.f32 %v4963_v16, %v4804_v59 }
 0x3d9   : > { %v5101_v0 = vmul.f32 %v11076_v53, %v11075_v15  ;;  %v5055_v1 = vadd.f32 %v4966_v13, %v4805_v34  ;;  %v5056_v19 = vadd.f32 %v4968_v8, %v4806_v58  ;;  %v5204_v14 = vrot.slane %v5096_v35, 2  ;;  %v11077_v13 = vld [vmem:[#allocation39_spill] sm:$0xff] }
 0x3da   : > { %v5205_v38 = vrot.slane %v5097_v51, 2  ;;  %v5207_v5 = vrot.slane %v5098_v28, 2  ;;  %v5209_v45 = vrot.slane %v5099_v52, 2  ;;  %v5210_v27 = vrot.slane %v5100_v43, 2 }
 0x3db   : > { %v5212_v37 = vrot.slane %v5101_v0, 2  ;;  %v5341_v60 = vmul.f32 %v10004_v54, %v11070_v62  ;;  %v5342_v21 = vmul.f32 %v10004_v54, %v11071_v36  ;;  %v5343_v33 = vmul.f32 %v10004_v54, %v11072_v24 }
 0x3dc   : > { %v5206_v7 = vsel %vm915_vm2, %v5204_v14, %v5205_v38  ;;  %v5208_v26 = vsel %vm915_vm2, %v5205_v38, %v5207_v5  ;;  %v5211_v39 = vsel %vm915_vm2, %v5209_v45, %v5210_v27  ;;  %v5344_v12 = vmul.f32 %v10004_v54, %v11073_v11 }
 0x3dd   : > { %v5213_v61 = vsel %vm915_vm2, %v5210_v27, %v5212_v37  ;;  %v5298_v50 = vadd.f32 %v5206_v7, %v5053_v25  ;;  %v5299_v3 = vadd.f32 %v5208_v26, %v5054_v6  ;;  %v5300_v63 = vadd.f32 %v5211_v39, %v5055_v1  ;;  %v11078_v6 = vld [vmem:[#allocation34_spill] sm:$0xff] }
 0x3de   : > { %v5301_v23 = vadd.f32 %v5213_v61, %v5056_v19  ;;  %v5345_v47 = vmul.f32 %v10004_v54, %v11074_v2  ;;  %v5346_v30 = vmul.f32 %v10004_v54, %v11075_v15  ;;  %v5449_v46 = vrot.slane %v5341_v60, 3  ;;  %v10446_v7 = vld [vmem:[%s10706_s2] ss:$0 sm:$0xff]  ;;  %v6515_v39 = vld [vmem:[%s10705_s1 + $0x2] ss:$0 sm:$0xff] }
 0x3df   : > { %v5450_v59 = vrot.slane %v5342_v21, 3  ;;  %v5452_v34 = vrot.slane %v5343_v33, 3  ;;  %v5454_v58 = vrot.slane %v5344_v12, 3  ;;  %v5586_v29 = vmul.f32 %v10025_v44, %v11070_v62  ;;  %v11079_v21 = vld [vmem:[#allocation45_spill] sm:$0xff] }
 0x3e0   : > { %v5587_v56 = vmul.f32 %v10025_v44, %v11071_v36  ;;  %v5455_v31 = vrot.slane %v5345_v47, 3  ;;  %v5457_v4 = vrot.slane %v5346_v30, 3  ;;  %v5588_v48 = vmul.f32 %v10025_v44, %v11072_v24 }
 0x3e1   : > { %v5451_v20 = vsel %vm1161_vm3, %v5449_v46, %v5450_v59  ;;  %v5453_v32 = vsel %vm1161_vm3, %v5450_v59, %v5452_v34  ;;  %v5589_v53 = vmul.f32 %v10025_v44, %v11073_v11  ;;  %v5590_v35 = vmul.f32 %v10025_v44, %v11074_v2  ;;  %v6512_v2 = vld [vmem:[%s10705_s1] ss:$0 sm:$0xff] }
 0x3e2   : > { %v5543_v54 = vadd.f32 %v5451_v20, %v5298_v50  ;;  %v5456_v62 = vsel %vm1161_vm3, %v5454_v58, %v5455_v31  ;;  %v5458_v36 = vsel %vm1161_vm3, %v5455_v31, %v5457_v4  ;;  %v5544_v51 = vadd.f32 %v5453_v32, %v5299_v3 }
 0x3e3   : > { %v5591_v40 = vmul.f32 %v10025_v44, %v11075_v15  ;;  %v5545_v55 = vadd.f32 %v5456_v62, %v5300_v63  ;;  %v5546_v49 = vadd.f32 %v5458_v36, %v5301_v23  ;;  %v5694_v24 = vrot.slane %v5586_v29, 4  ;;  %v6513_v44 = vld [vmem:[%s10705_s1 + $0x1] ss:$0 sm:$0xff] }
 0x3e4   : > { %v5695_v28 = vrot.slane %v5587_v56, 4  ;;  %v5697_v16 = vrot.slane %v5588_v48, 4  ;;  %v5699_v25 = vrot.slane %v5589_v53, 4  ;;  %v5700_v52 = vrot.slane %v5590_v35, 4 }
 0x3e5   : > { %v5702_v43 = vrot.slane %v5591_v40, 4  ;;  %v452_v8 = vmul.f32 %v6512_v2, %v11077_v13  ;;  %v453_v0 = vmul.f32 %v6512_v2, %v11078_v6  ;;  %v615_v15 = vmul.f32 %v6513_v44, %v11077_v13  ;;  %v6516_v40 = vld [vmem:[%s10705_s1 + $0x3] ss:$0 sm:$0xff] }
 0x3e6   : > { %v5696_v11 = vsel %vm1407_vm1, %v5694_v24, %v5695_v28  ;;  %v5698_v1 = vsel %vm1407_vm1, %v5695_v28, %v5697_v16  ;;  %v5701_v19 = vsel %vm1407_vm1, %v5699_v25, %v5700_v52  ;;  %v616_v37 = vmul.f32 %v6513_v44, %v11078_v6  ;;  %v6517_v28 = vld [vmem:[%s10705_s1 + $0x4] ss:$0 sm:$0xff] }
 0x3e7   : > { %v5703_v14 = vsel %vm1407_vm1, %v5700_v52, %v5702_v43  ;;  %v5788_v38 = vadd.f32 %v5696_v11, %v5543_v54  ;;  %v5789_v5 = vadd.f32 %v5698_v1, %v5544_v51  ;;  %v5790_v45 = vadd.f32 %v5701_v19, %v5545_v55 }
 0x3e8   : > { %v5791_v27 = vadd.f32 %v5703_v14, %v5546_v49  ;;  %v617_v33 = vmul.f32 %v6513_v44, %v11079_v21  ;;  %v740_v26 = vrot.slane %v615_v15, 1  ;;  %v861_v61 = vmul.f32 %v6515_v39, %v11077_v13 }
 0x3e9   : > { %v5827_v60 = vadd.f32 %v10446_v7, %v5788_v38  ;;  %v5828_v50 = vadd.f32 %v10446_v7, %v5789_v5  ;;  %v5829_v3 = vadd.f32 %v10446_v7, %v5790_v45  ;;  %v741_v23 = vrot.slane %v616_v37, 1 }
 0x3ea   : > { %v5830_v63 = vadd.f32 %v10446_v7, %v5791_v27  ;;  %v743_v47 = vrot.slane %v617_v33, 1  ;;  %v862_v30 = vmul.f32 %v6515_v39, %v11078_v6  ;;  %v863_v46 = vmul.f32 %v6515_v39, %v11079_v21 }
 0x3eb   : > { %v5859_v12 = vmax.f32 %v5827_v60, 0.0  ;;  %v5860_v59 = vmax.f32 %v5828_v50, 0.0  ;;  %v5861_v34 = vmax.f32 %v5829_v3, 0.0  ;;  %v742_v29 = vsel %vm669_vm0, %v740_v26, %v741_v23  ;;  %v6518_v50 = vld [vmem:[%s10705_s1 + $0x5] ss:$0 sm:$0xff]  ;;  %v11080_v3 = vld [vmem:[#allocation41_spill] sm:$0xff] }
 0x3ec   : > { %v5862_v58 = vmax.f32 %v5830_v63, 0.0  ;;  %v744_v20 = vsel %vm669_vm0, %v741_v23, %v743_v47  ;;  %v810_v31 = vadd.f32 %v742_v29, %v452_v8  ;;  %v986_v4 = vrot.slane %v861_v61, 2  ;;  %v11081_v23 = vld [vmem:[#allocation36_spill] sm:$0xff]  ;;  %v6520_v29 = vld [vmem:[%s10705_s1 + $0x7] ss:$0 sm:$0xff] }
 0x3ed   : > { %v5898_v56 = vsel %vm5879_vm4, %v5859_v12, -inf  ;;  %v5899_v48 = vsel %vm5879_vm4, %v5861_v34, -inf  ;;  %v5901_v32 = vsel %vm5879_vm4, %v5860_v59, -inf  ;;  %v811_v53 = vadd.f32 %v744_v20, %v453_v0  ;;  %v11082_v34 = vld [vmem:[#allocation40_spill] sm:$0xff] }
 0x3ee   : > { %v5902_v54 = vsel %vm5879_vm4, %v5862_v58, -inf  ;;  %v5900_v35 = vmax.f32 %v5898_v56, %v5899_v48  ;;  %v987_v36 = vrot.slane %v862_v30, 2  ;;  %v989_v51 = vrot.slane %v863_v46, 2 }
 0x3ef   : > { %v5903_v62 = vmax.f32 %v5901_v32, %v5902_v54  ;;  %v1107_v55 = vmul.f32 %v6516_v40, %v11077_v13  ;;  %v1108_v49 = vmul.f32 %v6516_v40, %v11078_v6  ;;  %v1109_v24 = vmul.f32 %v6516_v40, %v11079_v21 }
 0x3f0   : > { %v1353_v16 = vmul.f32 %v6517_v28, %v11077_v13  ;;  %v5953_v25 = vrot.slane %v5900_v35, 1  ;;  %v988_v43 = vsel %vm915_vm2, %v986_v4, %v987_v36  ;;  %v990_v11 = vsel %vm915_vm2, %v987_v36, %v989_v51 }
 0x3f1   : > { %v5954_v52 = vrot.slane %v5903_v62, 1  ;;  %v1056_v2 = vadd.f32 %v988_v43, %v810_v31  ;;  %v1057_v8 = vadd.f32 %v990_v11, %v811_v53  ;;  %v1232_v0 = vrot.slane %v1107_v55, 3 }
 0x3f2   : > { %v1233_v44 = vrot.slane %v1108_v49, 3  ;;  %v1235_v19 = vrot.slane %v1109_v24, 3  ;;  %v1354_v14 = vmul.f32 %v6517_v28, %v11078_v6  ;;  %v1355_v45 = vmul.f32 %v6517_v28, %v11079_v21  ;;  %v6519_v21 = vld [vmem:[%s10705_s1 + $0x6] ss:$0 sm:$0xff] }
 0x3f3   : > { %v5955_v15 = vsel %vm669_vm0, %v5953_v25, %v5954_v52  ;;  %v5995_v1 = vsel %vm669_vm0, %v5954_v52, %v5953_v25  ;;  %v1478_v60 = vrot.slane %v1353_v16, 4  ;;  %v1595_v6 = vmul.f32 %v6518_v50, %v11080_v3 }
 0x3f4   : > { %v6006_v38 = vmax.f32 %v5900_v35, %v5955_v15  ;;  %v6007_v5 = vmax.f32 %v5903_v62, %v5995_v1  ;;  %v1234_v13 = vsel %vm1161_vm3, %v1232_v0, %v1233_v44  ;;  %v1236_v27 = vsel %vm1161_vm3, %v1233_v44, %v1235_v19 }
 0x3f5   : > { %v1302_v37 = vadd.f32 %v1234_v13, %v1056_v2  ;;  %v1479_v33 = vrot.slane %v1354_v14, 4  ;;  %v1303_v39 = vadd.f32 %v1236_v27, %v1057_v8  ;;  %v1481_v61 = vrot.slane %v1355_v45, 4 }
 0x3f6   : > { %v6019_v26 = vpack.c.bf16 %v6007_v5, %v6006_v38  ;;  %v1596_v12 = vmul.f32 %v6518_v50, %v11081_v23  ;;  %v1683_v47 = vmul.f32 %v6519_v21, %v11080_v3  ;;  %v1684_v30 = vmul.f32 %v6519_v21, %v11081_v23 }
 0x3f7   : > { %v1480_v63 = vsel %vm1407_vm1, %v1478_v60, %v1479_v33  ;;  %v1482_v46 = vsel %vm1407_vm1, %v1479_v33, %v1481_v61  ;;  %v1685_v58 = vmul.f32 %v6519_v21, %v11082_v34  ;;  %v1928_v56 = vmul.f32 %v6520_v29, %v11080_v3 }
 0x3f8   : > { %6395 = vmatmul.mubr.msk.bf16.gmra.mxu0 %vm5879_vm4, %v6019_v26  ;;  %v1548_v59 = vadd.f32 %v1480_v63, %v1302_v37  ;;  %v1549_v20 = vadd.f32 %v1482_v46, %v1303_v39  ;;  %v1807_v31 = vrot.slane %v1683_v47, 1  ;;  %v1808_v4 = vrot.slane %v1684_v30, 1  ;;  %v11083_v39 = vld [vmem:[#allocation49_spill] sm:$0xff] }
 0x3f9   : > { %v1929_v48 = vmul.f32 %v6520_v29, %v11081_v23  ;;  %v1810_v54 = vrot.slane %v1685_v58, 1  ;;  %v1930_v53 = vmul.f32 %v6520_v29, %v11082_v34  ;;  %v2052_v35 = vrot.slane %v1928_v56, 2 }
 0x3fa   : > { %v1627_v32 = vadd.f32 %v1595_v6, %v1548_v59  ;;  %v1628_v62 = vadd.f32 %v1596_v12, %v1549_v20  ;;  %v1809_v36 = vsel %vm669_vm0, %v1807_v31, %v1808_v4  ;;  %v2173_v40 = vmul.f32 %v10170_v10, %v11080_v3  ;;  %v6522_v6 = vld [vmem:[%s10705_s1 + $0xc] ss:$0 sm:$0xff]  ;;  %v6523_v20 = vld [vmem:[%s10705_s1 + $0xd] ss:$0 sm:$0xff] }
 0x3fb   : > { %v2053_v51 = vrot.slane %v1929_v48, 2  ;;  %v1811_v55 = vsel %vm669_vm0, %v1808_v4, %v1810_v54  ;;  %v2055_v24 = vrot.slane %v1930_v53, 2  ;;  %v2174_v28 = vmul.f32 %v10170_v10, %v11081_v23 }
 0x3fc   : > { %v1877_v49 = vadd.f32 %v1809_v36, %v1627_v32  ;;  %v1878_v16 = vadd.f32 %v1811_v55, %v1628_v62  ;;  %v2175_v52 = vmul.f32 %v10170_v10, %v11082_v34  ;;  %v2297_v43 = vrot.slane %v2173_v40, 3  ;;  %v6521_v10 = vld [vmem:[%s10705_s1 + $0xa] ss:$0 sm:$0xff]  ;;  %v6524_v55 = vld [vmem:[%s10705_s1 + $0xe] ss:$0 sm:$0xff] }
 0x3fd   : > { %v2054_v25 = vsel %vm915_vm2, %v2052_v35, %v2053_v51  ;;  %v2056_v11 = vsel %vm915_vm2, %v2053_v51, %v2055_v24  ;;  %v2298_v8 = vrot.slane %v2174_v28, 3  ;;  %v2418_v0 = vmul.f32 %v10190_v17, %v11080_v3 }
 0x3fe   : > { %v2122_v2 = vadd.f32 %v2054_v25, %v1877_v49  ;;  %v2123_v44 = vadd.f32 %v2056_v11, %v1878_v16  ;;  %v2300_v15 = vrot.slane %v2175_v52, 3  ;;  %v2419_v1 = vmul.f32 %v10190_v17, %v11081_v23 }
 0x3ff   : > { %v2420_v19 = vmul.f32 %v10190_v17, %v11082_v34  ;;  %v2299_v14 = vsel %vm1161_vm3, %v2297_v43, %v2298_v8  ;;  %v2542_v38 = vrot.slane %v2418_v0, 4  ;;  %v2659_v5 = vmul.f32 %v6521_v10, %v11063_v22 }
 0x400   : > { %v2660_v13 = vmul.f32 %v6521_v10, %v11064_v9  ;;  %v2301_v45 = vsel %vm1161_vm3, %v2298_v8, %v2300_v15  ;;  %v2367_v27 = vadd.f32 %v2299_v14, %v2122_v2  ;;  %v2543_v37 = vrot.slane %v2419_v1, 4  ;;  %v6525_v8 = vld [vmem:[%s10705_s1 + $0xf] ss:$0 sm:$0xff]  ;;  %v6526_v14 = vld [vmem:[%s10705_s1 + $0x10] ss:$0 sm:$0xff] }
 0x401   : > { %v2545_v60 = vrot.slane %v2420_v19, 4  ;;  %v2368_v33 = vadd.f32 %v2301_v45, %v2123_v44  ;;  %v2747_v17 = vmul.f32 %v10223_v57, %v11063_v22  ;;  %v2748_v26 = vmul.f32 %v10223_v57, %v11064_v9 }
 0x402   : > { %v2749_v61 = vmul.f32 %v10223_v57, %v11083_v39  ;;  %v2544_v50 = vsel %vm1407_vm1, %v2542_v38, %v2543_v37  ;;  %v2992_v63 = vmul.f32 %v6522_v6, %v11063_v22  ;;  %v2993_v23 = vmul.f32 %v6522_v6, %v11064_v9 }
 0x403   : > { %v2546_v3 = vsel %vm1407_vm1, %v2543_v37, %v2545_v60  ;;  %v2612_v12 = vadd.f32 %v2544_v50, %v2367_v27  ;;  %v2871_v47 = vrot.slane %v2747_v17, 1  ;;  %v2872_v30 = vrot.slane %v2748_v26, 1  ;;  %v6527_v27 = vld [vmem:[%s10705_s1 + $0x11] ss:$0 sm:$0xff] }
 0x404   : > { %v2613_v21 = vadd.f32 %v2546_v3, %v2368_v33  ;;  %v2874_v46 = vrot.slane %v2749_v61, 1  ;;  %v2994_v59 = vmul.f32 %v6522_v6, %v11083_v39  ;;  %v3116_v57 = vrot.slane %v2992_v63, 2 }
 0x405   : > { %v3117_v34 = vrot.slane %v2993_v23, 2  ;;  %v2691_v58 = vadd.f32 %v2659_v5, %v2612_v12  ;;  %v2873_v56 = vsel %vm669_vm0, %v2871_v47, %v2872_v30  ;;  %v3237_v31 = vmul.f32 %v6523_v20, %v11063_v22  ;;  %v6528_v12 = vld [vmem:[%s10705_s1 + $0x12] ss:$0 sm:$0xff] }
 0x406   : > { %v2692_v29 = vadd.f32 %v2660_v13, %v2613_v21  ;;  %v2875_v4 = vsel %vm669_vm0, %v2872_v30, %v2874_v46  ;;  %v3119_v32 = vrot.slane %v2994_v59, 2  ;;  %v3238_v54 = vmul.f32 %v6523_v20, %v11064_v9 }
 0x407   : > { %v3118_v48 = vsel %vm915_vm2, %v3116_v57, %v3117_v34  ;;  %v2941_v53 = vadd.f32 %v2873_v56, %v2691_v58  ;;  %v3239_v62 = vmul.f32 %v6523_v20, %v11083_v39  ;;  %v3361_v36 = vrot.slane %v3237_v31, 3 }
 0x408   : > { %v2942_v35 = vadd.f32 %v2875_v4, %v2692_v29  ;;  %v3120_v51 = vsel %vm915_vm2, %v3117_v34, %v3119_v32  ;;  %v3362_v40 = vrot.slane %v3238_v54, 3  ;;  %v3482_v49 = vmul.f32 %v6524_v55, %v11063_v22  ;;  %v6529_v4 = vld [vmem:[%s10705_s1 + $0x13] ss:$0 sm:$0xff]  ;;  %v10591_v32 = vpop.f32.mrf.mxu0  ;;  %v10593_v54 = vpop.f32.mrf.mxu1 }
 0x409   : > { %v3483_v24 = vmul.f32 %v6524_v55, %v11064_v9  ;;  %v3186_v28 = vadd.f32 %v3118_v48, %v2941_v53  ;;  %v3364_v25 = vrot.slane %v3239_v62, 3  ;;  %v3484_v52 = vmul.f32 %v6524_v55, %v11083_v39  ;;  %v6530_v55 = vld [vmem:[%s10705_s1 + $0x14] ss:$0 sm:$0xff] }
 0x40a   : > { %v3187_v16 = vadd.f32 %v3120_v51, %v2942_v35  ;;  %v3363_v43 = vsel %vm1161_vm3, %v3361_v36, %v3362_v40  ;;  %v3606_v11 = vrot.slane %v3482_v49, 4  ;;  %v3723_v0 = vmul.f32 %v6525_v8, %v11066_v41  ;;  %v11084_v49 = vld [vmem:[#allocation58_spill] sm:$0xff] }
 0x40b   : > { %v3607_v2 = vrot.slane %v3483_v24, 4  ;;  %v3365_v44 = vsel %vm1161_vm3, %v3362_v40, %v3364_v25  ;;  %v3431_v22 = vadd.f32 %v3363_v43, %v3186_v28  ;;  %v3609_v15 = vrot.slane %v3484_v52, 4 }
 0x40c   : > { %v3724_v9 = vmul.f32 %v6525_v8, %v11067_v18  ;;  %v3432_v1 = vadd.f32 %v3365_v44, %v3187_v16  ;;  %v3811_v38 = vmul.f32 %v6526_v14, %v11066_v41  ;;  %v3812_v10 = vmul.f32 %v6526_v14, %v11067_v18  ;;  %v6532_v8 = vld [vmem:[%s10705_s1 + $0x16] ss:$0 sm:$0xff]  ;;  %v6098_v44 = vpop.f32.mrf.mxu0 }
 0x40d   : > { %v3608_v19 = vsel %vm1407_vm1, %v3606_v11, %v3607_v2  ;;  %v3610_v5 = vsel %vm1407_vm1, %v3607_v2, %v3609_v15  ;;  %v3813_v45 = vmul.f32 %v6526_v14, %v11068_v42  ;;  %v4056_v37 = vmul.f32 %v6527_v27, %v11066_v41 }
 0x40e   : > { %v3676_v13 = vadd.f32 %v3608_v19, %v3431_v22  ;;  %v3677_v60 = vadd.f32 %v3610_v5, %v3432_v1  ;;  %v3935_v33 = vrot.slane %v3811_v38, 1  ;;  %v3936_v17 = vrot.slane %v3812_v10, 1  ;;  %v10613_v22 = vpop.f32.mrf.mxu1  ;;  %v6533_v19 = vld [vmem:[%s10705_s1 + $0x17] ss:$0 sm:$0xff] }
 0x40f   : > { %v4057_v26 = vmul.f32 %v6527_v27, %v11067_v18  ;;  %v3938_v61 = vrot.slane %v3813_v45, 1  ;;  %v4058_v50 = vmul.f32 %v6527_v27, %v11068_v42  ;;  %v4180_v3 = vrot.slane %v4056_v37, 2 }
 0x410   : > { %v3755_v39 = vadd.f32 %v3723_v0, %v3676_v13  ;;  %v3756_v6 = vadd.f32 %v3724_v9, %v3677_v60  ;;  %v3937_v63 = vsel %vm669_vm0, %v3935_v33, %v3936_v17  ;;  %v4301_v21 = vmul.f32 %v6528_v12, %v11066_v41  ;;  %v11086_v33 = vld [vmem:[#allocation53_spill] sm:$0xff] }
 0x411   : > { %v4181_v23 = vrot.slane %v4057_v26, 2  ;;  %v3939_v47 = vsel %vm669_vm0, %v3936_v17, %v3938_v61  ;;  %v4183_v46 = vrot.slane %v4058_v50, 2  ;;  %v4302_v59 = vmul.f32 %v6528_v12, %v11067_v18  ;;  %v11087_v26 = vld [vmem:[#allocation51_spill] sm:$0xff] }
 0x412   : > { %v4005_v30 = vadd.f32 %v3937_v63, %v3755_v39  ;;  %v4006_v57 = vadd.f32 %v3939_v47, %v3756_v6  ;;  %v4303_v58 = vmul.f32 %v6528_v12, %v11068_v42  ;;  %v4425_v29 = vrot.slane %v4301_v21, 3  ;;  %v6401_v6 = vpop.f32.mrf.mxu1 }
 0x413   : > { %v4182_v34 = vsel %vm915_vm2, %v4180_v3, %v4181_v23  ;;  %v4184_v56 = vsel %vm915_vm2, %v4181_v23, %v4183_v46  ;;  %v4426_v31 = vrot.slane %v4302_v59, 3  ;;  %v4546_v48 = vmul.f32 %v6529_v4, %v11066_v41  ;;  %v11085_v41 = vld [vmem:[#allocation48_spill] sm:$0xff]  ;;  %v6393_v3 = vpop.f32.mrf.mxu0  ;;  %v11088_v23 = vld [vmem:[#allocation67_spill] sm:$0xff] }
 0x414   : > { %v4250_v20 = vadd.f32 %v4182_v34, %v4005_v30  ;;  %v4251_v53 = vadd.f32 %v4184_v56, %v4006_v57  ;;  %v4428_v35 = vrot.slane %v4303_v58, 3  ;;  %v4547_v62 = vmul.f32 %v6529_v4, %v11067_v18  ;;  %v6531_v18 = vld [vmem:[%s10705_s1 + $0x15] ss:$0 sm:$0xff]  ;;  %v6534_v30 = vld [vmem:[%s10705_s1 + $0x18] ss:$0 sm:$0xff] }
 0x415   : > { %v4548_v36 = vmul.f32 %v6529_v4, %v11068_v42  ;;  %v4427_v51 = vsel %vm1161_vm3, %v4425_v29, %v4426_v31  ;;  %v4670_v40 = vrot.slane %v4546_v48, 4  ;;  %v4787_v24 = vmul.f32 %v6530_v55, %v11084_v49  ;;  %v11090_v29 = vld [vmem:[#allocation68_spill] sm:$0xff]  ;;  %v11092_v4 = vld [vmem:[#allocation69_spill] sm:$0xff] }
 0x416   : > { %v4788_v28 = vmul.f32 %v6530_v55, %v11085_v41  ;;  %v4429_v16 = vsel %vm1161_vm3, %v4426_v31, %v4428_v35  ;;  %v4495_v25 = vadd.f32 %v4427_v51, %v4250_v20  ;;  %v4671_v52 = vrot.slane %v4547_v62, 4  ;;  %v6101_v55 = vpop.f32.mrf.mxu0 }
 0x417   : > { %v4673_v43 = vrot.slane %v4548_v36, 4  ;;  %v4496_v11 = vadd.f32 %v4429_v16, %v4251_v53  ;;  %v4875_v42 = vmul.f32 %v6531_v18, %v11084_v49  ;;  %v4876_v2 = vmul.f32 %v6531_v18, %v11085_v41 }
 0x418   : > { %v5120_v0 = vmul.f32 %v6532_v8, %v11084_v49  ;;  %v4672_v15 = vsel %vm1407_vm1, %v4670_v40, %v4671_v52  ;;  %v5121_v1 = vmul.f32 %v6532_v8, %v11085_v41  ;;  %v5365_v14 = vmul.f32 %v6533_v19, %v11084_v49 }
 0x419   : > { %v4674_v9 = vsel %vm1407_vm1, %v4671_v52, %v4673_v43  ;;  %v4740_v38 = vadd.f32 %v4672_v15, %v4495_v25  ;;  %v4999_v5 = vrot.slane %v4875_v42, 1  ;;  %v5000_v13 = vrot.slane %v4876_v2, 1  ;;  %v11094_v43 = vld [vmem:[#allocation71_spill] sm:$0xff] }
 0x41a   : > { %v4741_v10 = vadd.f32 %v4674_v9, %v4496_v11  ;;  %v5244_v45 = vrot.slane %v5120_v0, 2  ;;  %v5245_v27 = vrot.slane %v5121_v1, 2  ;;  %v5366_v37 = vmul.f32 %v6533_v19, %v11085_v41 }
 0x41b   : > { %v5489_v60 = vrot.slane %v5365_v14, 3  ;;  %v5845_v17 = vadd.f32 %v10446_v7, %v11086_v33  ;;  %v5846_v39 = vadd.f32 %v10446_v7, %v11087_v26  ;;  %v4819_v61 = vadd.f32 %v4787_v24, %v4740_v38 }
 0x41c   : > { %v4820_v50 = vadd.f32 %v4788_v28, %v4741_v10  ;;  %v5001_v63 = vsel %vm669_vm0, %v4999_v5, %v5000_v13  ;;  %v11089_v12 = vrot.slane %v11088_v23, 1  ;;  %v5490_v47 = vrot.slane %v5366_v37, 3 }
 0x41d   : > { %v5610_v46 = vmul.f32 %v6534_v30, %v11084_v49  ;;  %v5069_v59 = vadd.f32 %v5001_v63, %v4819_v61  ;;  %v5246_v34 = vsel %vm915_vm2, %v5244_v45, %v5245_v27  ;;  %v5611_v58 = vmul.f32 %v6534_v30, %v11085_v41  ;;  %v6133_v49 = vpop.f32.mrf.mxu1 }
 0x41e   : > { %v5003_v21 = vsel %vm669_vm0, %v5000_v13, %v11089_v12  ;;  %v11091_v56 = vrot.slane %v11090_v29, 2  ;;  %v5491_v31 = vsel %vm1161_vm3, %v5489_v60, %v5490_v47  ;;  %v11093_v48 = vrot.slane %v11092_v4, 3 }
 0x41f   : > { %v5070_v57 = vadd.f32 %v5003_v21, %v4820_v50  ;;  %v5734_v35 = vrot.slane %v5610_v46, 4  ;;  %v5314_v62 = vadd.f32 %v5246_v34, %v5069_v59  ;;  %v5735_v51 = vrot.slane %v5611_v58, 4 }
 0x420   : > { %v5248_v20 = vsel %vm915_vm2, %v5245_v27, %v11091_v56  ;;  %v5493_v53 = vsel %vm1161_vm3, %v5490_v47, %v11093_v48  ;;  %v6362_v40 = vpack.c.bf16 %v10591_v32, %v10591_v32  ;;  %v6360_v24 = vpack.c.bf16 %v6098_v44, %v6098_v44 }
 0x421   : > { %v5315_v36 = vadd.f32 %v5248_v20, %v5070_v57  ;;  %v6363_v41 = vpack.c.bf16 %v6393_v3, %v6393_v3  ;;  %v6370_v28 = vpack.c.bf16 %v10593_v54, %v10593_v54  ;;  %v5559_v16 = vadd.f32 %v5491_v31, %v5314_v62 }
 0x422   : > { %v5736_v52 = vsel %vm1407_vm1, %v5734_v35, %v5735_v51  ;;  %v11095_v11 = vrot.slane %v11094_v43, 4  ;;  %6228 = vst.msk [vmem:[%s10648_s11 + $0x8] sm:$0xf] %vm6225_vm5, %v6362_v40  ;;  %6226 = vst.msk [vmem:[%s10648_s11] sm:$0xf] %vm6225_vm5, %v6360_v24  ;;  %v6361_v32 = vpack.c.bf16 %v6101_v55, %v6101_v55  ;;  %v6368_v54 = vpack.c.bf16 %v10613_v22, %v10613_v22 }
 0x423   : > { %v5560_v25 = vadd.f32 %v5493_v53, %v5315_v36  ;;  %6229 = vst.msk [vmem:[%s10648_s11 + $0xc] sm:$0xf] %vm6225_vm5, %v6363_v41  ;;  %6236 = vst.msk [vmem:[%s10648_s11 + $0x28] sm:$0xf] %vm6225_vm5, %v6370_v28  ;;  %v6371_v42 = vpack.c.bf16 %v6401_v6, %v6401_v6  ;;  %v6369_v2 = vpack.c.bf16 %v6133_v49, %v6133_v49  ;;  %v5877_v8 = vmax.f32 %v5845_v17, 0.0 }
 0x424   : > { %v5738_v18 = vsel %vm1407_vm1, %v5735_v51, %v11095_v11  ;;  %v5878_v0 = vmax.f32 %v5846_v39, 0.0  ;;  %v5804_v44 = vadd.f32 %v5736_v52, %v5559_v16  ;;  %6227 = vst.msk [vmem:[%s10648_s11 + $0x4] sm:$0xf] %vm6225_vm5, %v6361_v32  ;;  %6234 = vst.msk [vmem:[%s10648_s11 + $0x20] sm:$0xf] %vm6225_vm5, %v6368_v54 }
 0x425   : > { %v5805_v15 = vadd.f32 %v5738_v18, %v5560_v25  ;;  %6237 = vst.msk [vmem:[%s10648_s11 + $0x2c] sm:$0xf] %vm6225_vm5, %v6371_v42  ;;  %6235 = vst.msk [vmem:[%s10648_s11 + $0x24] sm:$0xf] %vm6225_vm5, %v6369_v2  ;;  %v5923_v14 = vsel %vm5879_vm4, %v5877_v8, -inf }
 0x426   : > { %v5843_v9 = vadd.f32 %v10446_v7, %v5804_v44  ;;  %v5926_v38 = vsel %vm5879_vm4, %v5878_v0, -inf }
 0x427   : > { %v5844_v1 = vadd.f32 %v10446_v7, %v5805_v15 }
 0x428   : > { %v5875_v19 = vmax.f32 %v5843_v9, 0.0 }
 0x429   : > { %v5876_v22 = vmax.f32 %v5844_v1, 0.0 }
 0x42a   : > { %v5922_v10 = vsel %vm5879_vm4, %v5875_v19, -inf }
 0x42b   : > { %v5925_v5 = vsel %vm5879_vm4, %v5876_v22, -inf  ;;  %v5924_v13 = vmax.f32 %v5922_v10, %v5923_v14 }
 0x42c   : > { %v5927_v45 = vmax.f32 %v5925_v5, %v5926_v38 }
 0x42d   : > { %v5965_v27 = vrot.slane %v5924_v13, 1 }
 0x42e   : > { %v5966_v37 = vrot.slane %v5927_v45, 1 }
 0x430   : > { %v5967_v60 = vsel %vm669_vm0, %v5965_v27, %v5966_v37  ;;  %v5999_v7 = vsel %vm669_vm0, %v5966_v37, %v5965_v27 }
 0x431   : > { %v6014_v33 = vmax.f32 %v5924_v13, %v5967_v60  ;;  %v6015_v17 = vmax.f32 %v5927_v45, %v5999_v7 }
 0x433   : > { %v6023_v26 = vpack.c.bf16 %v6015_v17, %v6014_v33 }
 0x435   : > { %6403 = vmatmul.mubr.msk.bf16.gmra.mxu1 %vm5879_vm4, %v6023_v26 }
 0x4b8   : > { %v6396_v39 = vpop.f32.mrf.mxu0 }
 0x4b9   : > { %v6366_v61 = vpack.c.bf16 %v6396_v39, %v6396_v39 }
 0x4ba   : > { %v6114_v50 = vpop.f32.mrf.mxu0 }
 0x4bb   : > { %6232 = vst.msk [vmem:[%s10648_s11 + $0x18] sm:$0xf] %vm6225_vm5, %v6366_v61  ;;  %v6364_v3 = vpack.c.bf16 %v6114_v50, %v6114_v50 }
 0x4bc   : > { %v6397_v6 = vpop.f32.mrf.mxu0 }
 0x4bd   : > { %6230 = vst.msk [vmem:[%s10648_s11 + $0x10] sm:$0xf] %vm6225_vm5, %v6364_v3  ;;  %v6367_v63 = vpack.c.bf16 %v6397_v6, %v6397_v6 }
 0x4be   : > { %v6117_v23 = vpop.f32.mrf.mxu0 }
 0x4bf   : > { %6233 = vst.msk [vmem:[%s10648_s11 + $0x1c] sm:$0xf] %vm6225_vm5, %v6367_v63  ;;  %v6365_v12 = vpack.c.bf16 %v6117_v23, %v6117_v23 }
 0x4c1   : > { %6231 = vst.msk [vmem:[%s10648_s11 + $0x14] sm:$0xf] %vm6225_vm5, %v6365_v12 }
 0x4f5   : > { %v6404_v21 = vpop.f32.mrf.mxu1 }
 0x4f6   : > { %v6374_v47 = vpack.c.bf16 %v6404_v21, %v6404_v21 }
 0x4f7   : > { %v6146_v30 = vpop.f32.mrf.mxu1 }
 0x4f8   : > { %6240 = vst.msk [vmem:[%s10648_s11 + $0x38] sm:$0xf] %vm6225_vm5, %v6374_v47  ;;  %v6372_v46 = vpack.c.bf16 %v6146_v30, %v6146_v30 }
 0x4f9   : > { %v6405_v59 = vpop.f32.mrf.mxu1 }
 0x4fa   : > { %6238 = vst.msk [vmem:[%s10648_s11 + $0x30] sm:$0xf] %vm6225_vm5, %v6372_v46  ;;  %v6375_v57 = vpack.c.bf16 %v6405_v59, %v6405_v59 }
 0x4fb   : > { %v6149_v34 = vpop.f32.mrf.mxu1 }
 0x4fc   : > { %6241 = vst.msk [vmem:[%s10648_s11 + $0x3c] sm:$0xf] %vm6225_vm5, %v6375_v57  ;;  %v6373_v58 = vpack.c.bf16 %v6149_v34, %v6149_v34 }
 0x4fe   : > { %6239 = vst.msk [vmem:[%s10648_s11 + $0x34] sm:$0xf] %vm6225_vm5, %v6373_v58 }
 0x4ff PF: > { %s14_s15 = sadd.s32 1, %s6541_s15  }
 0x500   : > { %p11_p4 = scmp.ge.s32.totalorder %s14_s15, 4  }
 0x502   :  { %13 = sbr.rel (!%p11_p4) target bundleno = 1 (0x1), region = 66 }

</bundles_post_ra>
